<compile_context>
chip_gen: v7x
topology: tpu7x:2x2x1
jax: 0.10.0
libtpu: 0.0.40
codegen_flags: <defaults>
</compile_context>

<pallas_src>
import functools

import jax
import jax.numpy as jnp
from jax import lax
from jax.experimental import pallas as pl
from jax.experimental.pallas import tpu as pltpu

# ----- EEGNetv4 hyper-parameters fixed by EEGNetv4_Encoder.__init__ ----------
IN_CHANS  = 63            # EEG electrodes
T_IN      = 250           # input window samples
F1        = 8
D         = 20
F2        = 160           # F1 * D
KLEN      = 4             # temporal kernel length
KD        = 16            # separable depthwise kernel length
N_CLASSES = 1024
EPS       = 1e-3          # BatchNorm eps

T1    = T_IN + 2 * (KLEN // 2) - KLEN + 1   # 251 after conv_temporal (pad=2)
TP1   = (T1 - 4) // 4 + 1                   # 62  after pool_1 (1,4)/4
TC    = 4 * TP1                             # 248 stage-1 rows consumed by pool_1
T2    = TP1 + 2 * (KD // 2) - KD + 1        # 63  after separable depthwise (pad 8)
TP2   = (T2 - 8) // 8 + 1                   # 7   after pool_2 (1,8)/8
CP    = 64                                  # 63 channels padded to 64 lanes
TIN_P = 256                                 # 2 + 250 + 2 time rows padded to 256
K1    = KLEN * CP                           # 256 stage-1 contraction (4 taps x 64)
KC    = TP2 * F2                            # 1120 classifier contraction

_HI = jax.lax.Precision.HIGHEST             # used only by the f32 reference


# --------------------------------- kernel -----------------------------------
def _eegnet_kernel(x_ref, w1_ref, b1_ref, p1_ref, wd_ref, wp_ref, b2_ref,
                   p2_ref, wc_ref, bc_ref, o_ref, xcat_ref, q_ref):
    bblk = o_ref.shape[0]                      # examples in this batch block

    def per_example(b, carry):
        # Build the lane-dense stage-1 LHS in VMEM (bf16):
        #   xcat[t, 64*k + h] = x_pad[b, t + k, h],  t in [0, 248)
        # so folded conv_temporal + bn_t + conv_spatial + bn_1 is ONE K=256 dot.
        for k in range(KLEN):
            xcat_ref[:, k * CP:(k + 1) * CP] = (
                x_ref[b, pl.ds(k, TC), :].astype(jnp.bfloat16))

        a = jnp.dot(xcat_ref[...], w1_ref[...],
                    preferred_element_type=jnp.float32) + b1_ref[...]
        a = jnp.where(a > 0, a, jnp.exp(jnp.minimum(a, 0.0)) - 1.0)   # ELU (f32)

        # pool_1 (mean (1,4)/4) as a bf16 matmul; the pooling matrix also embeds
        # the 8-row zero padding required by the following depthwise conv.
        pp = jnp.dot(p1_ref[...], a.astype(jnp.bfloat16),
                     preferred_element_type=jnp.float32)              # (78, 160)

        # conv_separable_depth (depthwise, k=(1,16), pad 8): VPU MACs in f32
        wd = wd_ref[...]
        d = wd[0:1, :] * pp[0:T2, :]
        for k in range(1, KD):
            d = d + wd[k:k + 1, :] * pp[k:k + T2, :]                  # (63, 160)

        # conv_separable_point (1x1, bn_2 scale folded) + shift + ELU
        s = jnp.dot(d.astype(jnp.bfloat16), wp_ref[...],
                    preferred_element_type=jnp.float32) + b2_ref[...]
        s = jnp.where(s > 0, s, jnp.exp(jnp.minimum(s, 0.0)) - 1.0)   # (63, 160)

        # pool_2 (mean (1,8)/8) as a bf16 matmul -> (7, 160); scatter the 7 rows
        # into the (bblk, 1120) classifier-activation scratch (layout t*160+c).
        q = jnp.dot(p2_ref[...], s.astype(jnp.bfloat16),
                    preferred_element_type=jnp.float32)
        for t in range(TP2):
            q_ref[pl.ds(b, 1), pl.ds(t * F2, F2)] = q[t:t + 1, :]
        return carry

    lax.fori_loop(0, bblk, per_example, 0)

    # conv_classifier: single (bblk, 1120) x (1120, 1024) bf16 matmul + bias
    logits = jnp.dot(q_ref[...].astype(jnp.bfloat16), wc_ref[...],
                     preferred_element_type=jnp.float32) + bc_ref[...]

    # LogSoftmax over classes (f32)
    m = jnp.max(logits, axis=1, keepdims=True)
    lse = m + jnp.log(jnp.sum(jnp.exp(logits - m), axis=1, keepdims=True))
    o_ref[...] = logits - lse


# --------------------------------- wrapper ----------------------------------
@functools.partial(jax.jit, static_argnames=("block_b",))
def eegnetv4_encoder_pallas(x, Pf, block_b=32):
    """x: (B, 63, 250) float32 — the tensor EEGNetv4_Encoder.forward receives."""
    B = x.shape[0]
    if B <= block_b:
        bblk = B                                  # single block == full array dims
    else:
        # >= 2 grid blocks (v7x has 2 TensorCores) and a multiple of 8 so the
        # output block stays (8,128)-tileable.
        bblk = min(block_b, ((B + 1) // 2 + 7) // 8 * 8)
    bpad = -(-B // bblk) * bblk
    nblk = bpad // bblk

    # Layout plumbing outside the kernel: time-major + conv_temporal zero
    # padding (2 each side) + channel pad 63->64 + time pad 254->256.
    # No 4x duplication and no extra concat round trip (~64 KB/example HBM).
    xt = jnp.transpose(x, (0, 2, 1)).astype(jnp.float32)        # (B, 250, 63)
    xp = jnp.pad(xt, ((0, bpad - B), (2, TIN_P - T_IN - 2), (0, CP - IN_CHANS)))

    wspec = lambda shape: pl.BlockSpec(shape, lambda i: (0, 0))

    out = pl.pallas_call(
        _eegnet_kernel,
        out_shape=jax.ShapeDtypeStruct((bpad, N_CLASSES), jnp.float32),
        grid=(nblk,),
        in_specs=[
            pl.BlockSpec((bblk, TIN_P, CP), lambda i: (i, 0, 0)),  # raw padded input
            wspec((K1, F2)),            # folded stage-1 weights (256, 160) bf16
            wspec((1, F2)),             # folded stage-1 bias (f32)
            wspec((TP1 + KD, TC)),      # pool_1 matrix (78, 248) bf16
            wspec((KD, F2)),            # depthwise taps (16, 160) f32 (VPU stage)
            wspec((F2, F2)),            # pointwise weights, bn_2 scale folded, bf16
            wspec((1, F2)),             # bn_2 shift (f32)
            wspec((TP2, T2)),           # pool_2 matrix (7, 63) bf16
            wspec((KC, N_CLASSES)),     # classifier weights (1120, 1024) bf16
            wspec((1, N_CLASSES)),      # classifier bias (f32)
        ],
        out_specs=pl.BlockSpec((bblk, N_CLASSES), lambda i: (i, 0)),
        scratch_shapes=[
            pltpu.VMEM((TC, K1), jnp.bfloat16),    # stage-1 LHS build buffer
            pltpu.VMEM((bblk, KC), jnp.float32),   # pooled features -> classifier
        ],
        compiler_params=pltpu.CompilerParams(
            dimension_semantics=("parallel",),     # batch blocks are independent
            # Worst case ~10 MiB (x block 2x2 MiB, weights ~2.5 MiB x2 buffers,
            # scratches ~0.3 MiB): fits v5e/v6e defaults and v7x's 64 MiB core.
            vmem_limit_bytes=32 * 1024 * 1024),
    )(xp, Pf["w1"], Pf["b1"], Pf["p1mat"], Pf["wd_kc"], Pf["wp_fold"],
      Pf["bn2_shift"], Pf["p2mat"], Pf["wc_flat"], Pf["bc"])
    return out[:B]                                  # (B, 1024) log-probs


# ----------------------- deterministic parameter init -----------------------
def init_params(key):
    ks = jax.random.split(key, 6)
    wt = 0.4 * jax.random.normal(ks[0], (F1, 1, 1, KLEN), jnp.float32)        # conv_temporal
    ws = 0.2 * jax.random.normal(ks[1], (F2, 1, IN_CHANS, 1), jnp.float32)    # conv_spatial
    wd = 0.3 * jax.random.normal(ks[2], (F2, 1, 1, KD), jnp.float32)          # sep. depthwise
    wp = 0.15 * jax.random.normal(ks[3], (F2, F2, 1, 1), jnp.float32)         # sep. pointwise
    wc = 0.1 * jax.random.normal(ks[4], (N_CLASSES, F2, 1, TP2), jnp.float32) # classifier
    bc = 0.05 * jax.random.normal(ks[5], (N_CLASSES,), jnp.float32)

    def bn(n, off):   # deterministic BatchNorm (inference) folded to scale/shift
        f = jnp.arange(n, dtype=jnp.float32)
        gamma = 1.0 + 0.02 * jnp.cos(f + off)
        beta = 0.05 * jnp.sin(f + off)
        mean = 0.01 * jnp.sin(2.0 * f + off)
        var = 1.0 + 0.1 * (jnp.cos(3.0 * f + off) ** 2)
        scale = gamma / jnp.sqrt(var + EPS)
        return scale, beta - mean * scale

    bnt_scale, bnt_shift = bn(F1, 0.0)
    bn1_scale, bn1_shift = bn(F2, 1.0)
    bn2_scale, bn2_shift = bn(F2, 2.0)

    # Conv2dWithConstraint(max_norm=1): renorm each output filter (host-side).
    ws2 = ws[:, 0, :, 0]                                    # (160, 63)
    norm = jnp.sqrt(jnp.sum(ws2 ** 2, axis=1, keepdims=True))
    ws_rn = ws2 * jnp.where(norm > 1.0, 1.0 / (norm + 1e-7), 1.0)

    return dict(wt=wt[:, 0, 0, :],                          # (8, 4)
                bnt_scale=bnt_scale, bnt_shift=bnt_shift,
                ws_rn=ws_rn,                                # (160, 63)
                bn1_scale=bn1_scale, bn1_shift=bn1_shift,
                wd_ck=wd[:, 0, 0, :],                       # (160, 16)
                wp_oc=wp[:, :, 0, 0],                       # (160, 160) [out, in]
                bn2_scale=bn2_scale, bn2_shift=bn2_shift,
                wc_nct=wc[:, :, 0, :],                      # (1024, 160, 7)
                bc=bc)


# ---------------- host-side algebraic folding of kernel params ---------------
def fold_params(P):
    bf = jnp.bfloat16
    grp = jnp.arange(F2) // D                               # channel -> group map
    coef = P["bn1_scale"] * P["bnt_scale"][grp]             # (160,)
    # W1[k*64+h, c] = bn1_s[c] * bnt_s[g(c)] * wt[g(c), k] * ws_rn[c, h]
    w1 = (coef[None, None, :]
          * P["wt"][grp, :].T[:, None, :]                   # (4, 1, 160)
          * P["ws_rn"].T[None, :, :])                       # (1, 63, 160)
    w1 = jnp.pad(w1, ((0, 0), (0, CP - IN_CHANS), (0, 0)))  # channel pad 63 -> 64
    w1 = w1.reshape(K1, F2)                                 # (256, 160)
    b1 = (P["bn1_scale"] * P["bnt_shift"][grp] * jnp.sum(P["ws_rn"], axis=1)
          + P["bn1_shift"]).reshape(1, F2)

    # pool_1 matrix (78, 248): mean over windows of 4, plus zero rows realising
    # the 8-sample zero padding of the depthwise conv.
    r1 = jnp.arange(TP1 + KD)[:, None]
    t1 = jnp.arange(TC)[None, :]
    p1mat = jnp.where((r1 >= 8) & (r1 < 8 + TP1) & (t1 // 4 == r1 - 8),
                      0.25, 0.0).astype(jnp.float32)

    # pool_2 matrix (7, 63): mean over windows of 8 (last 7 rows of s unused)
    r2 = jnp.arange(TP2)[:, None]
    t2 = jnp.arange(T2)[None, :]
    p2mat = jnp.where(t2 // 8 == r2, 0.125, 0.0).astype(jnp.float32)

    wp_fold = P["wp_oc"].T * P["bn2_scale"][None, :]        # (in, out) * bn2 scale
    # classifier weights flattened to (7*160, 1024) matching the q layout t*160+c
    wc_flat = jnp.transpose(P["wc_nct"], (2, 1, 0)).reshape(KC, N_CLASSES)

    return dict(w1=w1.astype(bf),
                b1=b1.astype(jnp.float32),
                p1mat=p1mat.astype(bf),
                wd_kc=P["wd_ck"].T.astype(jnp.float32),     # (16, 160)
                wp_fold=wp_fold.astype(bf),
                bn2_shift=P["bn2_shift"].reshape(1, F2).astype(jnp.float32),
                p2mat=p2mat.astype(bf),
                wc_flat=wc_flat.astype(bf),
                bc=P["bc"].reshape(1, N_CLASSES).astype(jnp.float32))


# ------------------------- pure-JAX reference check --------------------------
def eegnetv4_encoder_reference(x, P):
    # Mirrors the PyTorch (NCHW) forward, inference mode, in f32/HIGHEST.
    # TODO(synk): Dropout layers are identity (inference); BatchNorm uses running stats.
    B = x.shape[0]
    xpad = jnp.pad(x, ((0, 0), (0, 0), (2, 2)))             # (B, 63, 254)
    out1 = jnp.stack(
        [sum(P["wt"][f, k] * xpad[:, :, k:k + T1] for k in range(KLEN))
         for f in range(F1)], axis=1)                       # (B, 8, 63, 251)
    out1 = out1 * P["bnt_scale"][None, :, None, None] + P["bnt_shift"][None, :, None, None]
    grp = jnp.arange(F2) // D
    out2 = jnp.einsum("oh,boht->bot", P["ws_rn"], out1[:, grp],
                      precision=_HI)                        # (B, 160, 251)
    a = out2 * P["bn1_scale"][None, :, None] + P["bn1_shift"][None, :, None]
    a = jnp.where(a > 0, a, jnp.exp(jnp.minimum(a, 0.0)) - 1.0)
    pool1 = a[:, :, :TP1 * 4].reshape(B, F2, TP1, 4).mean(-1)         # (B, 160, 62)
    p1p = jnp.pad(pool1, ((0, 0), (0, 0), (8, 8)))                    # (B, 160, 78)
    out4 = sum(P["wd_ck"][None, :, k:k + 1] * p1p[:, :, k:k + T2] for k in range(KD))
    out5 = jnp.einsum("oc,bct->bot", P["wp_oc"], out4, precision=_HI) # (B, 160, 63)
    s = out5 * P["bn2_scale"][None, :, None] + P["bn2_shift"][None, :, None]
    s = jnp.where(s > 0, s, jnp.exp(jnp.minimum(s, 0.0)) - 1.0)
    pool2 = s[:, :, :TP2 * 8].reshape(B, F2, TP2, 8).mean(-1)         # (B, 160, 7)
    logits = jnp.einsum("nct,bct->bn", P["wc_nct"], pool2,
                        precision=_HI) + P["bc"][None, :]
    return jax.nn.log_softmax(logits, axis=-1)


if __name__ == "__main__":
    key = jax.random.PRNGKey(0)
    kx, kp = jax.random.split(key)
    B = 2
    # EEGNetv4_Encoder.forward input: (batch, 63 EEG channels, 250 samples)
    x = jax.random.normal(kx, (B, IN_CHANS, T_IN), jnp.float32)
    P = init_params(kp)
    Pf = fold_params(P)

    out = jax.block_until_ready(eegnetv4_encoder_pallas(x, Pf))
    assert out.shape == (B, N_CLASSES), out.shape
    assert bool(jnp.all(jnp.isfinite(out)))

    # LogSoftmax self-consistency (computed in f32 in-kernel): exp(out) sums to 1.
    norm_err = float(jnp.max(jnp.abs(jnp.log(jnp.sum(jnp.exp(out), axis=-1)))))
    assert norm_err < 1e-3, norm_err

    ref = jax.block_until_ready(eegnetv4_encoder_reference(x, P))
    err = float(jnp.max(jnp.abs(out - ref)))
    # bf16 MXU path: rounding analysis predicts ~2e-2 max-abs error on the
    # 1024-way log-probs for this random init (deep chain of large-K bf16
    # contractions); assert with margin against the f32/HIGHEST reference.
    assert err < 8e-2, f"kernel/reference mismatch: max abs err = {err}"
    print("KERNEL_OK")
</pallas_src>

<mosaic_0001>
module attributes {stable_mosaic.version = 11 : i64} {
  func.func @_eegnet_kernel(%arg0: i32, %arg1: memref<2x256x64xf32, #tpu.memory_space<vmem>>, %arg2: memref<256x160xbf16, #tpu.memory_space<vmem>>, %arg3: memref<1x160xf32, #tpu.memory_space<vmem>>, %arg4: memref<78x248xbf16, #tpu.memory_space<vmem>>, %arg5: memref<16x160xf32, #tpu.memory_space<vmem>>, %arg6: memref<160x160xbf16, #tpu.memory_space<vmem>>, %arg7: memref<1x160xf32, #tpu.memory_space<vmem>>, %arg8: memref<7x63xbf16, #tpu.memory_space<vmem>>, %arg9: memref<1120x1024xbf16, #tpu.memory_space<vmem>>, %arg10: memref<1x1024xf32, #tpu.memory_space<vmem>>, %arg11: memref<2x1024xf32, #tpu.memory_space<vmem>>, %arg12: memref<248x256xbf16, #tpu.memory_space<vmem>>, %arg13: memref<2x1120xf32, #tpu.memory_space<vmem>>) attributes {dimension_semantics = [#tpu.dimension_semantics<parallel>], iteration_bounds = array<i64: 1>, scalar_prefetch = 0 : i64, scratch_operands = 2 : i64, tpu.core_type = #tpu.core_type<tc>, window_params = [{transform_indices = @transform_0, window_bounds = array<i64: 2, 256, 64>}, {pipeline_mode = #tpu.pipeline_mode<synchronous>, transform_indices = @transform_1, window_bounds = array<i64: 256, 160>}, {pipeline_mode = #tpu.pipeline_mode<synchronous>, transform_indices = @transform_2, window_bounds = array<i64: 1, 160>}, {pipeline_mode = #tpu.pipeline_mode<synchronous>, transform_indices = @transform_3, window_bounds = array<i64: 78, 248>}, {pipeline_mode = #tpu.pipeline_mode<synchronous>, transform_indices = @transform_4, window_bounds = array<i64: 16, 160>}, {pipeline_mode = #tpu.pipeline_mode<synchronous>, transform_indices = @transform_5, window_bounds = array<i64: 160, 160>}, {pipeline_mode = #tpu.pipeline_mode<synchronous>, transform_indices = @transform_6, window_bounds = array<i64: 1, 160>}, {pipeline_mode = #tpu.pipeline_mode<synchronous>, transform_indices = @transform_7, window_bounds = array<i64: 7, 63>}, {pipeline_mode = #tpu.pipeline_mode<synchronous>, transform_indices = @transform_8, window_bounds = array<i64: 1120, 1024>}, {pipeline_mode = #tpu.pipeline_mode<synchronous>, transform_indices = @transform_9, window_bounds = array<i64: 1, 1024>}, {transform_indices = @transform_10, window_bounds = array<i64: 2, 1024>}]} {
    %c0_i32 = arith.constant 0 : i32
    %c2_i32 = arith.constant 2 : i32
    %0 = arith.addi %c0_i32, %c2_i32 : i32
    %c1_i32 = arith.constant 1 : i32
    scf.for %arg14 = %c0_i32 to %0 step %c1_i32  : i32 {
      %20 = arith.index_cast %arg14 : i32 to index
      %c0_10 = arith.constant 0 : index
      %c0_11 = arith.constant 0 : index
      %21 = vector.load %arg1[%20, %c0_10, %c0_11] : memref<2x256x64xf32, #tpu.memory_space<vmem>>, vector<1x248x64xf32>
      %22 = vector.shape_cast %21 : vector<1x248x64xf32> to vector<248x64xf32>
      %23 = arith.truncf %22 : vector<248x64xf32> to vector<248x64xbf16>
      %c0_12 = arith.constant 0 : index
      %c0_13 = arith.constant 0 : index
      %24 = vector.load %arg12[%c0_12, %c0_13] : memref<248x256xbf16, #tpu.memory_space<vmem>>, vector<248x64xbf16>
      tpu.vector_store %arg12[%c0_12, %c0_13], %23 {strides = array<i32>} : memref<248x256xbf16, #tpu.memory_space<vmem>>, vector<248x64xbf16>,
      %25 = arith.index_cast %arg14 : i32 to index
      %c1 = arith.constant 1 : index
      %c0_14 = arith.constant 0 : index
      %26 = vector.load %arg1[%25, %c1, %c0_14] : memref<2x256x64xf32, #tpu.memory_space<vmem>>, vector<1x248x64xf32>
      %27 = vector.shape_cast %26 : vector<1x248x64xf32> to vector<248x64xf32>
      %28 = arith.truncf %27 : vector<248x64xf32> to vector<248x64xbf16>
      %c0_15 = arith.constant 0 : index
      %c64 = arith.constant 64 : index
      %29 = vector.load %arg12[%c0_15, %c64] : memref<248x256xbf16, #tpu.memory_space<vmem>>, vector<248x64xbf16>
      tpu.vector_store %arg12[%c0_15, %c64], %28 {strides = array<i32>} : memref<248x256xbf16, #tpu.memory_space<vmem>>, vector<248x64xbf16>,
      %30 = arith.index_cast %arg14 : i32 to index
      %c2 = arith.constant 2 : index
      %c0_16 = arith.constant 0 : index
      %31 = vector.load %arg1[%30, %c2, %c0_16] : memref<2x256x64xf32, #tpu.memory_space<vmem>>, vector<1x248x64xf32>
      %32 = vector.shape_cast %31 : vector<1x248x64xf32> to vector<248x64xf32>
      %33 = arith.truncf %32 : vector<248x64xf32> to vector<248x64xbf16>
      %c0_17 = arith.constant 0 : index
      %c128 = arith.constant 128 : index
      %34 = vector.load %arg12[%c0_17, %c128] : memref<248x256xbf16, #tpu.memory_space<vmem>>, vector<248x64xbf16>
      tpu.vector_store %arg12[%c0_17, %c128], %33 {strides = array<i32>} : memref<248x256xbf16, #tpu.memory_space<vmem>>, vector<248x64xbf16>,
      %35 = arith.index_cast %arg14 : i32 to index
      %c3 = arith.constant 3 : index
      %c0_18 = arith.constant 0 : index
      %36 = vector.load %arg1[%35, %c3, %c0_18] : memref<2x256x64xf32, #tpu.memory_space<vmem>>, vector<1x248x64xf32>
      %37 = vector.shape_cast %36 : vector<1x248x64xf32> to vector<248x64xf32>
      %38 = arith.truncf %37 : vector<248x64xf32> to vector<248x64xbf16>
      %c0_19 = arith.constant 0 : index
      %c192 = arith.constant 192 : index
      %39 = vector.load %arg12[%c0_19, %c192] : memref<248x256xbf16, #tpu.memory_space<vmem>>, vector<248x64xbf16>
      tpu.vector_store %arg12[%c0_19, %c192], %38 {strides = array<i32>} : memref<248x256xbf16, #tpu.memory_space<vmem>>, vector<248x64xbf16>,
      %c0_20 = arith.constant 0 : index
      %c0_21 = arith.constant 0 : index
      %40 = vector.load %arg12[%c0_20, %c0_21] : memref<248x256xbf16, #tpu.memory_space<vmem>>, vector<248x256xbf16>
      %c0_22 = arith.constant 0 : index
      %c0_23 = arith.constant 0 : index
      %41 = vector.load %arg2[%c0_22, %c0_23] : memref<256x160xbf16, #tpu.memory_space<vmem>>, vector<256x160xbf16>
      %cst_24 = arith.constant dense<0.000000e+00> : vector<248x160xf32>
      %42 = tpu.matmul %40, %41, %cst_24 {dimension_numbers = #tpu.dot_dimension_numbers<[1], [0], [0], [1], [0, 0, 1, 1], [], []>} : vector<248x256xbf16>, vector<256x160xbf16>, vector<248x160xf32> -> vector<248x160xf32>
      %c0_25 = arith.constant 0 : index
      %c0_26 = arith.constant 0 : index
      %43 = vector.load %arg3[%c0_25, %c0_26] : memref<1x160xf32, #tpu.memory_space<vmem>>, vector<1x160xf32>
      %44 = vector.broadcast %43 : vector<1x160xf32> to vector<248x160xf32>
      %45 = arith.addf %42, %44 : vector<248x160xf32>
      %cst_27 = arith.constant 0.000000e+00 : f32
      %46 = vector.broadcast %cst_27 : f32 to vector<248x160xf32>
      %47 = arith.cmpf ogt, %45, %46 : vector<248x160xf32>
      %cst_28 = arith.constant 0.000000e+00 : f32
      %48 = vector.broadcast %cst_28 : f32 to vector<248x160xf32>
      %49 = arith.minimumf %45, %48 : vector<248x160xf32>
      %50 = math.exp %49 : vector<248x160xf32>
      %cst_29 = arith.constant 1.000000e+00 : f32
      %51 = vector.broadcast %cst_29 : f32 to vector<248x160xf32>
      %52 = arith.subf %50, %51 : vector<248x160xf32>
      %53 = arith.select %47, %45, %52 : vector<248x160xi1>, vector<248x160xf32>
      %c0_30 = arith.constant 0 : index
      %c0_31 = arith.constant 0 : index
      %54 = vector.load %arg4[%c0_30, %c0_31] : memref<78x248xbf16, #tpu.memory_space<vmem>>, vector<78x248xbf16>
      %55 = arith.truncf %53 : vector<248x160xf32> to vector<248x160xbf16>
      %cst_32 = arith.constant dense<0.000000e+00> : vector<78x160xf32>
      %56 = tpu.matmul %54, %55, %cst_32 {dimension_numbers = #tpu.dot_dimension_numbers<[1], [0], [0], [1], [0, 0, 1, 1], [], []>} : vector<78x248xbf16>, vector<248x160xbf16>, vector<78x160xf32> -> vector<78x160xf32>
      %c0_33 = arith.constant 0 : index
      %c0_34 = arith.constant 0 : index
      %57 = vector.load %arg5[%c0_33, %c0_34] : memref<16x160xf32, #tpu.memory_space<vmem>>, vector<16x160xf32>
      %58 = vector.extract_strided_slice %57 {offsets = [0, 0], sizes = [1, 160], strides = [1, 1]} : vector<16x160xf32> to vector<1x160xf32>
      %59 = vector.extract_strided_slice %56 {offsets = [0, 0], sizes = [63, 160], strides = [1, 1]} : vector<78x160xf32> to vector<63x160xf32>
      %60 = vector.broadcast %58 : vector<1x160xf32> to vector<63x160xf32>
      %61 = arith.mulf %60, %59 : vector<63x160xf32>
      %62 = vector.extract_strided_slice %57 {offsets = [1, 0], sizes = [1, 160], strides = [1, 1]} : vector<16x160xf32> to vector<1x160xf32>
      %63 = vector.extract_strided_slice %56 {offsets = [1, 0], sizes = [63, 160], strides = [1, 1]} : vector<78x160xf32> to vector<63x160xf32>
      %64 = vector.broadcast %62 : vector<1x160xf32> to vector<63x160xf32>
      %65 = arith.mulf %64, %63 : vector<63x160xf32>
      %66 = arith.addf %61, %65 : vector<63x160xf32>
      %67 = vector.extract_strided_slice %57 {offsets = [2, 0], sizes = [1, 160], strides = [1, 1]} : vector<16x160xf32> to vector<1x160xf32>
      %68 = vector.extract_strided_slice %56 {offsets = [2, 0], sizes = [63, 160], strides = [1, 1]} : vector<78x160xf32> to vector<63x160xf32>
      %69 = vector.broadcast %67 : vector<1x160xf32> to vector<63x160xf32>
      %70 = arith.mulf %69, %68 : vector<63x160xf32>
      %71 = arith.addf %66, %70 : vector<63x160xf32>
      %72 = vector.extract_strided_slice %57 {offsets = [3, 0], sizes = [1, 160], strides = [1, 1]} : vector<16x160xf32> to vector<1x160xf32>
      %73 = vector.extract_strided_slice %56 {offsets = [3, 0], sizes = [63, 160], strides = [1, 1]} : vector<78x160xf32> to vector<63x160xf32>
      %74 = vector.broadcast %72 : vector<1x160xf32> to vector<63x160xf32>
      %75 = arith.mulf %74, %73 : vector<63x160xf32>
      %76 = arith.addf %71, %75 : vector<63x160xf32>
      %77 = vector.extract_strided_slice %57 {offsets = [4, 0], sizes = [1, 160], strides = [1, 1]} : vector<16x160xf32> to vector<1x160xf32>
      %78 = vector.extract_strided_slice %56 {offsets = [4, 0], sizes = [63, 160], strides = [1, 1]} : vector<78x160xf32> to vector<63x160xf32>
      %79 = vector.broadcast %77 : vector<1x160xf32> to vector<63x160xf32>
      %80 = arith.mulf %79, %78 : vector<63x160xf32>
      %81 = arith.addf %76, %80 : vector<63x160xf32>
      %82 = vector.extract_strided_slice %57 {offsets = [5, 0], sizes = [1, 160], strides = [1, 1]} : vector<16x160xf32> to vector<1x160xf32>
      %83 = vector.extract_strided_slice %56 {offsets = [5, 0], sizes = [63, 160], strides = [1, 1]} : vector<78x160xf32> to vector<63x160xf32>
      %84 = vector.broadcast %82 : vector<1x160xf32> to vector<63x160xf32>
      %85 = arith.mulf %84, %83 : vector<63x160xf32>
      %86 = arith.addf %81, %85 : vector<63x160xf32>
      %87 = vector.extract_strided_slice %57 {offsets = [6, 0], sizes = [1, 160], strides = [1, 1]} : vector<16x160xf32> to vector<1x160xf32>
      %88 = vector.extract_strided_slice %56 {offsets = [6, 0], sizes = [63, 160], strides = [1, 1]} : vector<78x160xf32> to vector<63x160xf32>
      %89 = vector.broadcast %87 : vector<1x160xf32> to vector<63x160xf32>
      %90 = arith.mulf %89, %88 : vector<63x160xf32>
      %91 = arith.addf %86, %90 : vector<63x160xf32>
      %92 = vector.extract_strided_slice %57 {offsets = [7, 0], sizes = [1, 160], strides = [1, 1]} : vector<16x160xf32> to vector<1x160xf32>
      %93 = vector.extract_strided_slice %56 {offsets = [7, 0], sizes = [63, 160], strides = [1, 1]} : vector<78x160xf32> to vector<63x160xf32>
      %94 = vector.broadcast %92 : vector<1x160xf32> to vector<63x160xf32>
      %95 = arith.mulf %94, %93 : vector<63x160xf32>
      %96 = arith.addf %91, %95 : vector<63x160xf32>
      %97 = vector.extract_strided_slice %57 {offsets = [8, 0], sizes = [1, 160], strides = [1, 1]} : vector<16x160xf32> to vector<1x160xf32>
      %98 = vector.extract_strided_slice %56 {offsets = [8, 0], sizes = [63, 160], strides = [1, 1]} : vector<78x160xf32> to vector<63x160xf32>
      %99 = vector.broadcast %97 : vector<1x160xf32> to vector<63x160xf32>
      %100 = arith.mulf %99, %98 : vector<63x160xf32>
      %101 = arith.addf %96, %100 : vector<63x160xf32>
      %102 = vector.extract_strided_slice %57 {offsets = [9, 0], sizes = [1, 160], strides = [1, 1]} : vector<16x160xf32> to vector<1x160xf32>
      %103 = vector.extract_strided_slice %56 {offsets = [9, 0], sizes = [63, 160], strides = [1, 1]} : vector<78x160xf32> to vector<63x160xf32>
      %104 = vector.broadcast %102 : vector<1x160xf32> to vector<63x160xf32>
      %105 = arith.mulf %104, %103 : vector<63x160xf32>
      %106 = arith.addf %101, %105 : vector<63x160xf32>
      %107 = vector.extract_strided_slice %57 {offsets = [10, 0], sizes = [1, 160], strides = [1, 1]} : vector<16x160xf32> to vector<1x160xf32>
      %108 = vector.extract_strided_slice %56 {offsets = [10, 0], sizes = [63, 160], strides = [1, 1]} : vector<78x160xf32> to vector<63x160xf32>
      %109 = vector.broadcast %107 : vector<1x160xf32> to vector<63x160xf32>
      %110 = arith.mulf %109, %108 : vector<63x160xf32>
      %111 = arith.addf %106, %110 : vector<63x160xf32>
      %112 = vector.extract_strided_slice %57 {offsets = [11, 0], sizes = [1, 160], strides = [1, 1]} : vector<16x160xf32> to vector<1x160xf32>
      %113 = vector.extract_strided_slice %56 {offsets = [11, 0], sizes = [63, 160], strides = [1, 1]} : vector<78x160xf32> to vector<63x160xf32>
      %114 = vector.broadcast %112 : vector<1x160xf32> to vector<63x160xf32>
      %115 = arith.mulf %114, %113 : vector<63x160xf32>
      %116 = arith.addf %111, %115 : vector<63x160xf32>
      %117 = vector.extract_strided_slice %57 {offsets = [12, 0], sizes = [1, 160], strides = [1, 1]} : vector<16x160xf32> to vector<1x160xf32>
      %118 = vector.extract_strided_slice %56 {offsets = [12, 0], sizes = [63, 160], strides = [1, 1]} : vector<78x160xf32> to vector<63x160xf32>
      %119 = vector.broadcast %117 : vector<1x160xf32> to vector<63x160xf32>
      %120 = arith.mulf %119, %118 : vector<63x160xf32>
      %121 = arith.addf %116, %120 : vector<63x160xf32>
      %122 = vector.extract_strided_slice %57 {offsets = [13, 0], sizes = [1, 160], strides = [1, 1]} : vector<16x160xf32> to vector<1x160xf32>
      %123 = vector.extract_strided_slice %56 {offsets = [13, 0], sizes = [63, 160], strides = [1, 1]} : vector<78x160xf32> to vector<63x160xf32>
      %124 = vector.broadcast %122 : vector<1x160xf32> to vector<63x160xf32>
      %125 = arith.mulf %124, %123 : vector<63x160xf32>
      %126 = arith.addf %121, %125 : vector<63x160xf32>
      %127 = vector.extract_strided_slice %57 {offsets = [14, 0], sizes = [1, 160], strides = [1, 1]} : vector<16x160xf32> to vector<1x160xf32>
      %128 = vector.extract_strided_slice %56 {offsets = [14, 0], sizes = [63, 160], strides = [1, 1]} : vector<78x160xf32> to vector<63x160xf32>
      %129 = vector.broadcast %127 : vector<1x160xf32> to vector<63x160xf32>
      %130 = arith.mulf %129, %128 : vector<63x160xf32>
      %131 = arith.addf %126, %130 : vector<63x160xf32>
      %132 = vector.extract_strided_slice %57 {offsets = [15, 0], sizes = [1, 160], strides = [1, 1]} : vector<16x160xf32> to vector<1x160xf32>
      %133 = vector.extract_strided_slice %56 {offsets = [15, 0], sizes = [63, 160], strides = [1, 1]} : vector<78x160xf32> to vector<63x160xf32>
      %134 = vector.broadcast %132 : vector<1x160xf32> to vector<63x160xf32>
      %135 = arith.mulf %134, %133 : vector<63x160xf32>
      %136 = arith.addf %131, %135 : vector<63x160xf32>
      %137 = arith.truncf %136 : vector<63x160xf32> to vector<63x160xbf16>
      %c0_35 = arith.constant 0 : index
      %c0_36 = arith.constant 0 : index
      %138 = vector.load %arg6[%c0_35, %c0_36] : memref<160x160xbf16, #tpu.memory_space<vmem>>, vector<160x160xbf16>
      %cst_37 = arith.constant dense<0.000000e+00> : vector<63x160xf32>
      %139 = tpu.matmul %137, %138, %cst_37 {dimension_numbers = #tpu.dot_dimension_numbers<[1], [0], [0], [1], [0, 0, 1, 1], [], []>} : vector<63x160xbf16>, vector<160x160xbf16>, vector<63x160xf32> -> vector<63x160xf32>
      %c0_38 = arith.constant 0 : index
      %c0_39 = arith.constant 0 : index
      %140 = vector.load %arg7[%c0_38, %c0_39] : memref<1x160xf32, #tpu.memory_space<vmem>>, vector<1x160xf32>
      %141 = vector.broadcast %140 : vector<1x160xf32> to vector<63x160xf32>
      %142 = arith.addf %139, %141 : vector<63x160xf32>
      %cst_40 = arith.constant 0.000000e+00 : f32
      %143 = vector.broadcast %cst_40 : f32 to vector<63x160xf32>
      %144 = arith.cmpf ogt, %142, %143 : vector<63x160xf32>
      %cst_41 = arith.constant 0.000000e+00 : f32
      %145 = vector.broadcast %cst_41 : f32 to vector<63x160xf32>
      %146 = arith.minimumf %142, %145 : vector<63x160xf32>
      %147 = math.exp %146 : vector<63x160xf32>
      %cst_42 = arith.constant 1.000000e+00 : f32
      %148 = vector.broadcast %cst_42 : f32 to vector<63x160xf32>
      %149 = arith.subf %147, %148 : vector<63x160xf32>
      %150 = arith.select %144, %142, %149 : vector<63x160xi1>, vector<63x160xf32>
      %c0_43 = arith.constant 0 : index
      %c0_44 = arith.constant 0 : index
      %151 = vector.load %arg8[%c0_43, %c0_44] : memref<7x63xbf16, #tpu.memory_space<vmem>>, vector<7x63xbf16>
      %152 = arith.truncf %150 : vector<63x160xf32> to vector<63x160xbf16>
      %cst_45 = arith.constant dense<0.000000e+00> : vector<7x160xf32>
      %153 = tpu.matmul %151, %152, %cst_45 {dimension_numbers = #tpu.dot_dimension_numbers<[1], [0], [0], [1], [0, 0, 1, 1], [], []>} : vector<7x63xbf16>, vector<63x160xbf16>, vector<7x160xf32> -> vector<7x160xf32>
      %154 = vector.extract_strided_slice %153 {offsets = [0, 0], sizes = [1, 160], strides = [1, 1]} : vector<7x160xf32> to vector<1x160xf32>
      %155 = arith.index_cast %arg14 : i32 to index
      %c0_46 = arith.constant 0 : index
      %156 = vector.load %arg13[%155, %c0_46] : memref<2x1120xf32, #tpu.memory_space<vmem>>, vector<1x160xf32>
      tpu.vector_store %arg13[%155, %c0_46], %154 {strides = array<i32>} : memref<2x1120xf32, #tpu.memory_space<vmem>>, vector<1x160xf32>,
      %157 = vector.extract_strided_slice %153 {offsets = [1, 0], sizes = [1, 160], strides = [1, 1]} : vector<7x160xf32> to vector<1x160xf32>
      %158 = arith.index_cast %arg14 : i32 to index
      %c160 = arith.constant 160 : index
      %159 = vector.load %arg13[%158, %c160] : memref<2x1120xf32, #tpu.memory_space<vmem>>, vector<1x160xf32>
      tpu.vector_store %arg13[%158, %c160], %157 {strides = array<i32>} : memref<2x1120xf32, #tpu.memory_space<vmem>>, vector<1x160xf32>,
      %160 = vector.extract_strided_slice %153 {offsets = [2, 0], sizes = [1, 160], strides = [1, 1]} : vector<7x160xf32> to vector<1x160xf32>
      %161 = arith.index_cast %arg14 : i32 to index
      %c320 = arith.constant 320 : index
      %162 = vector.load %arg13[%161, %c320] : memref<2x1120xf32, #tpu.memory_space<vmem>>, vector<1x160xf32>
      tpu.vector_store %arg13[%161, %c320], %160 {strides = array<i32>} : memref<2x1120xf32, #tpu.memory_space<vmem>>, vector<1x160xf32>,
      %163 = vector.extract_strided_slice %153 {offsets = [3, 0], sizes = [1, 160], strides = [1, 1]} : vector<7x160xf32> to vector<1x160xf32>
      %164 = arith.index_cast %arg14 : i32 to index
      %c480 = arith.constant 480 : index
      %165 = vector.load %arg13[%164, %c480] : memref<2x1120xf32, #tpu.memory_space<vmem>>, vector<1x160xf32>
      tpu.vector_store %arg13[%164, %c480], %163 {strides = array<i32>} : memref<2x1120xf32, #tpu.memory_space<vmem>>, vector<1x160xf32>,
      %166 = vector.extract_strided_slice %153 {offsets = [4, 0], sizes = [1, 160], strides = [1, 1]} : vector<7x160xf32> to vector<1x160xf32>
      %167 = arith.index_cast %arg14 : i32 to index
      %c640 = arith.constant 640 : index
      %168 = vector.load %arg13[%167, %c640] : memref<2x1120xf32, #tpu.memory_space<vmem>>, vector<1x160xf32>
      tpu.vector_store %arg13[%167, %c640], %166 {strides = array<i32>} : memref<2x1120xf32, #tpu.memory_space<vmem>>, vector<1x160xf32>,
      %169 = vector.extract_strided_slice %153 {offsets = [5, 0], sizes = [1, 160], strides = [1, 1]} : vector<7x160xf32> to vector<1x160xf32>
      %170 = arith.index_cast %arg14 : i32 to index
      %c800 = arith.constant 800 : index
      %171 = vector.load %arg13[%170, %c800] : memref<2x1120xf32, #tpu.memory_space<vmem>>, vector<1x160xf32>
      tpu.vector_store %arg13[%170, %c800], %169 {strides = array<i32>} : memref<2x1120xf32, #tpu.memory_space<vmem>>, vector<1x160xf32>,
      %172 = vector.extract_strided_slice %153 {offsets = [6, 0], sizes = [1, 160], strides = [1, 1]} : vector<7x160xf32> to vector<1x160xf32>
      %173 = arith.index_cast %arg14 : i32 to index
      %c960 = arith.constant 960 : index
      %174 = vector.load %arg13[%173, %c960] : memref<2x1120xf32, #tpu.memory_space<vmem>>, vector<1x160xf32>
      tpu.vector_store %arg13[%173, %c960], %172 {strides = array<i32>} : memref<2x1120xf32, #tpu.memory_space<vmem>>, vector<1x160xf32>,
    }
    %c2_i32_0 = arith.constant 2 : i32
    %c0 = arith.constant 0 : index
    %c0_1 = arith.constant 0 : index
    %1 = vector.load %arg13[%c0, %c0_1] : memref<2x1120xf32, #tpu.memory_space<vmem>>, vector<2x1120xf32>
    %2 = arith.truncf %1 : vector<2x1120xf32> to vector<2x1120xbf16>
    %c0_2 = arith.constant 0 : index
    %c0_3 = arith.constant 0 : index
    %3 = vector.load %arg9[%c0_2, %c0_3] : memref<1120x1024xbf16, #tpu.memory_space<vmem>>, vector<1120x1024xbf16>
    %cst = arith.constant dense<0.000000e+00> : vector<2x1024xf32>
    %4 = tpu.matmul %2, %3, %cst {dimension_numbers = #tpu.dot_dimension_numbers<[1], [0], [0], [1], [0, 0, 1, 1], [], []>} : vector<2x1120xbf16>, vector<1120x1024xbf16>, vector<2x1024xf32> -> vector<2x1024xf32>
    %c0_4 = arith.constant 0 : index
    %c0_5 = arith.constant 0 : index
    %5 = vector.load %arg10[%c0_4, %c0_5] : memref<1x1024xf32, #tpu.memory_space<vmem>>, vector<1x1024xf32>
    %6 = vector.broadcast %5 : vector<1x1024xf32> to vector<2x1024xf32>
    %7 = arith.addf %4, %6 : vector<2x1024xf32>
    %cst_6 = arith.constant dense<0xFF800000> : vector<2xf32>
    %8 = vector.multi_reduction <maximumf>, %7, %cst_6 [1] : vector<2x1024xf32> to vector<2xf32>
    %9 = vector.shape_cast %8 : vector<2xf32> to vector<2x1xf32>
    %10 = vector.broadcast %9 : vector<2x1xf32> to vector<2x1024xf32>
    %11 = arith.subf %7, %10 : vector<2x1024xf32>
    %12 = math.exp %11 : vector<2x1024xf32>
    %cst_7 = arith.constant dense<0.000000e+00> : vector<2xf32>
    %13 = vector.multi_reduction <add>, %12, %cst_7 [1] : vector<2x1024xf32> to vector<2xf32>
    %14 = vector.shape_cast %13 : vector<2xf32> to vector<2x1xf32>
    %15 = math.log %14 : vector<2x1xf32>
    %16 = arith.addf %9, %15 : vector<2x1xf32>
    %17 = vector.broadcast %16 : vector<2x1xf32> to vector<2x1024xf32>
    %18 = arith.subf %7, %17 : vector<2x1024xf32>
    %c0_8 = arith.constant 0 : index
    %c0_9 = arith.constant 0 : index
    %19 = vector.load %arg11[%c0_8, %c0_9] : memref<2x1024xf32, #tpu.memory_space<vmem>>, vector<2x1024xf32>
    tpu.vector_store %arg11[%c0_8, %c0_9], %18 {strides = array<i32>} : memref<2x1024xf32, #tpu.memory_space<vmem>>, vector<2x1024xf32>,
    return
  }
  func.func @transform_0(%arg0: i32) -> (i32, i32, i32) {
    %c0_i32 = arith.constant 0 : i32
    %c0_i32_0 = arith.constant 0 : i32
    %c0_i32_1 = arith.constant 0 : i32
    return %arg0, %c0_i32, %c0_i32_0 : i32, i32, i32
  }
  func.func @transform_1(%arg0: i32) -> (i32, i32) {
    %c0_i32 = arith.constant 0 : i32
    %c0_i32_0 = arith.constant 0 : i32
    %c0_i32_1 = arith.constant 0 : i32
    return %c0_i32, %c0_i32_0 : i32, i32
  }
  func.func @transform_2(%arg0: i32) -> (i32, i32) {
    %c0_i32 = arith.constant 0 : i32
    %c0_i32_0 = arith.constant 0 : i32
    %c0_i32_1 = arith.constant 0 : i32
    return %c0_i32, %c0_i32_0 : i32, i32
  }
  func.func @transform_3(%arg0: i32) -> (i32, i32) {
    %c0_i32 = arith.constant 0 : i32
    %c0_i32_0 = arith.constant 0 : i32
    %c0_i32_1 = arith.constant 0 : i32
    return %c0_i32, %c0_i32_0 : i32, i32
  }
  func.func @transform_4(%arg0: i32) -> (i32, i32) {
    %c0_i32 = arith.constant 0 : i32
    %c0_i32_0 = arith.constant 0 : i32
    %c0_i32_1 = arith.constant 0 : i32
    return %c0_i32, %c0_i32_0 : i32, i32
  }
  func.func @transform_5(%arg0: i32) -> (i32, i32) {
    %c0_i32 = arith.constant 0 : i32
    %c0_i32_0 = arith.constant 0 : i32
    %c0_i32_1 = arith.constant 0 : i32
    return %c0_i32, %c0_i32_0 : i32, i32
  }
  func.func @transform_6(%arg0: i32) -> (i32, i32) {
    %c0_i32 = arith.constant 0 : i32
    %c0_i32_0 = arith.constant 0 : i32
    %c0_i32_1 = arith.constant 0 : i32
    return %c0_i32, %c0_i32_0 : i32, i32
  }
  func.func @transform_7(%arg0: i32) -> (i32, i32) {
    %c0_i32 = arith.constant 0 : i32
    %c0_i32_0 = arith.constant 0 : i32
    %c0_i32_1 = arith.constant 0 : i32
    return %c0_i32, %c0_i32_0 : i32, i32
  }
  func.func @transform_8(%arg0: i32) -> (i32, i32) {
    %c0_i32 = arith.constant 0 : i32
    %c0_i32_0 = arith.constant 0 : i32
    %c0_i32_1 = arith.constant 0 : i32
    return %c0_i32, %c0_i32_0 : i32, i32
  }
  func.func @transform_9(%arg0: i32) -> (i32, i32) {
    %c0_i32 = arith.constant 0 : i32
    %c0_i32_0 = arith.constant 0 : i32
    %c0_i32_1 = arith.constant 0 : i32
    return %c0_i32, %c0_i32_0 : i32, i32
  }
  func.func @transform_10(%arg0: i32) -> (i32, i32) {
    %c0_i32 = arith.constant 0 : i32
    %c0_i32_0 = arith.constant 0 : i32
    return %arg0, %c0_i32 : i32, i32
  }
}

</mosaic_0001>

<bundles_post_ra>
// kernel: eegnetv4_encoder_pallas.1
= control target key start
LH: loop header
LB: loop body
LE: loop exit
PB: predicated region body
PF: predicated region fallthrough
CT: control target
= control target key end

     0   :  { %15 = vsyncpa [#allocation5], 0  ;;  %s13449_s0 = inlined_call_operand.vmem [shape: f32[2,256,64], index: 0, kind: input, shape index: {}]   ;;  %s13450_s1 = inlined_call_operand.vmem [shape: bf16[256,160], index: 1, kind: input, shape index: {}]   ;;  %s13451_s2 = inlined_call_operand.hbm [shape: f32[1,160], index: 2, kind: input, shape index: {}]   ;;  %s13452_s3 = inlined_call_operand.hbm [shape: bf16[78,248], index: 3, kind: input, shape index: {}]   ;;  %s13453_s4 = inlined_call_operand.hbm [shape: f32[16,160], index: 4, kind: input, shape index: {}]   ;;  %s13454_s5 = inlined_call_operand.hbm [shape: bf16[160,160], index: 5, kind: input, shape index: {}]   ;;  %s13455_s6 = inlined_call_operand.hbm [shape: f32[1,160], index: 6, kind: input, shape index: {}]   ;;  %s13456_s7 = inlined_call_operand.hbm [shape: bf16[7,63], index: 7, kind: input, shape index: {}]   ;;  %s13457_s8 = inlined_call_operand.hbm [shape: bf16[1120,1024], index: 8, kind: input, shape index: {}]   ;;  %s13458_s9 = inlined_call_operand.hbm [shape: f32[1,1024], index: 9, kind: input, shape index: {}]   ;;  %s13459_s10 = inlined_call_operand.hbm [shape: f32[2,1024], index: 10, kind: output, shape index: {}]  }
   0x1   :  { %16 = vsyncpa [#allocation8], 0 }
   0x2   :  { %17 = vsyncpa [#allocation11], 0 }
   0x3   :  { %18 = vsyncpa [#allocation14], 0 }
   0x4   :  { %19 = vsyncpa [#allocation17], 0 }
   0x5   :  { %20 = vsyncpa [#allocation6], 0  ;;  %s10380_s13 = smov [#allocation7]   ;;  %s10162_s17 = scalar_lea.hbm %s13452_s3, 1280 }
   0x6   :  { %s40_s14 = sshll.u32 %s10380_s13, 4  ;;  %p10163_p0 = scmp.ne.s32.totalorder %s13452_s3, %s10162_s17  ;;  %s41_s14 = int_to_ptr.vmem [resolvable:$true] %s40_s14 }
   0x7   :  { %p10166_p1 = scmp.lt.u32.totalorder %s10162_s17, %s13452_s3 }
   0x9   :  { %p10168_p2 = pnand %p10166_p1, %p10163_p0 }
   0xb   :  { %10171 = shalt.err (!%p10168_p2)
}
   0xc   :  { %s10172_s22 = scalar_lea.vmem %s41_s14, 1280  ;;  %p10177_p4 = scmp.lt.s32.totalorder %s41_s14, %s41_s14 }
   0xd   :  { %p10173_p3 = scmp.ne.s32.totalorder %s41_s14, %s10172_s22  ;;  %p10178_p5 = scmp.lt.s32.totalorder %s10172_s22, %s10172_s22 }
   0xf   :  { %p10179_p6 = por %p10178_p5, %p10177_p4 }
  0x11   :  { %p10180_p7 = pnand %p10179_p6, %p10173_p3 }
  0x13   :  { %10183 = shalt.err (!%p10180_p7)
}
  0x14   :  { %s10381_s23 = smov 128   ;;  %s10382_s24 = smov 8  }
  0x15   :  { %46 = dma.hbm_to_vmem [thread:$0]  %s13452_s3, 1280, %s41_s14, [#allocation8], %s10381_s23, %s10381_s23, %s10382_s24  }
  0x16   :  { %s10383_s27 = smov [#allocation10]   ;;  %s10384_s29 = smov [#allocation13]  }
  0x17   :  { %s64_s28 = sshll.u32 %s10383_s27, 4  ;;  %s87_s30 = sshll.u32 %s10384_s29, 4  ;;  %s65_s28 = int_to_ptr.vmem [resolvable:$true] %s64_s28  ;;  %s88_s30 = int_to_ptr.vmem [resolvable:$true] %s87_s30 }
  0x18   :  { %s10184_s13 = scalar_lea.hbm %s13454_s5, 2560 }
  0x19   :  { %p10185_p8 = scmp.ne.s32.totalorder %s13454_s5, %s10184_s13  ;;  %p10188_p9 = scmp.lt.u32.totalorder %s10184_s13, %s13454_s5 }
  0x1b   :  { %p10190_p10 = pnand %p10188_p9, %p10185_p8 }
  0x1d   :  { %10193 = shalt.err (!%p10190_p10)
}
  0x1e   :  { %s10194_s3 = scalar_lea.vmem %s65_s28, 2560  ;;  %p10199_p12 = scmp.lt.s32.totalorder %s65_s28, %s65_s28 }
  0x1f   :  { %p10195_p11 = scmp.ne.s32.totalorder %s65_s28, %s10194_s3  ;;  %p10200_p13 = scmp.lt.s32.totalorder %s10194_s3, %s10194_s3 }
  0x21   :  { %p10201_p0 = por %p10200_p13, %p10199_p12 }
  0x23   :  { %p10202_p1 = pnand %p10201_p0, %p10195_p11 }
  0x25   :  { %10205 = shalt.err (!%p10202_p1)
}
  0x26   :  { %70 = dma.hbm_to_vmem [thread:$0]  %s13454_s5, 2560, %s65_s28, [#allocation11], %s10381_s23, %s10381_s23, %s10382_s24  }
  0x27   :  { %s10206_s22 = scalar_lea.hbm %s13456_s7, 64 }
  0x28   :  { %p10207_p2 = scmp.ne.s32.totalorder %s13456_s7, %s10206_s22  ;;  %p10210_p3 = scmp.lt.u32.totalorder %s10206_s22, %s13456_s7 }
  0x2a   :  { %p10212_p4 = pnand %p10210_p3, %p10207_p2 }
  0x2c   :  { %10215 = shalt.err (!%p10212_p4)
}
  0x2d   :  { %s10216_s11 = scalar_lea.vmem %s88_s30, 64  ;;  %p10221_p6 = scmp.lt.s32.totalorder %s88_s30, %s88_s30 }
  0x2e   :  { %p10217_p5 = scmp.ne.s32.totalorder %s88_s30, %s10216_s11  ;;  %p10222_p7 = scmp.lt.s32.totalorder %s10216_s11, %s10216_s11 }
  0x30   :  { %p10223_p8 = por %p10222_p7, %p10221_p6 }
  0x32   :  { %p10224_p9 = pnand %p10223_p8, %p10217_p5 }
  0x34   :  { %10227 = shalt.err (!%p10224_p9)
}
  0x35   :  { %90 = dma.hbm_to_vmem [thread:$0]  %s13456_s7, 64, %s88_s30, [#allocation14]  }
  0x36   :  { %s10385_s24 = smov [#allocation4]   ;;  %s10386_s12 = smov [#allocation9]  }
  0x37   :  { %s31_s28 = sshll.u32 %s10385_s24, 4  ;;  %s52_s13 = sshll.u32 %s10386_s12, 4  ;;  %s32_s28 = int_to_ptr.vmem [resolvable:$true] %s31_s28  ;;  %s53_s13 = int_to_ptr.vmem [resolvable:$true] %s52_s13 }
  0x38   :  { %s10228_s17 = scalar_lea.hbm %s13451_s2, 32 }
  0x39   :  { %p10229_p10 = scmp.ne.s32.totalorder %s13451_s2, %s10228_s17  ;;  %p10232_p11 = scmp.lt.u32.totalorder %s10228_s17, %s13451_s2 }
  0x3b   :  { %p10234_p12 = pnand %p10232_p11, %p10229_p10 }
  0x3d   :  { %10237 = shalt.err (!%p10234_p12)
}
  0x3e   :  { %s10238_s7 = scalar_lea.vmem %s32_s28, 32  ;;  %p10243_p0 = scmp.lt.s32.totalorder %s32_s28, %s32_s28 }
  0x3f   :  { %p10239_p13 = scmp.ne.s32.totalorder %s32_s28, %s10238_s7  ;;  %p10244_p1 = scmp.lt.s32.totalorder %s10238_s7, %s10238_s7 }
  0x41   :  { %p10245_p2 = por %p10244_p1, %p10243_p0 }
  0x43   :  { %p10246_p3 = pnand %p10245_p2, %p10239_p13 }
  0x45   :  { %10249 = shalt.err (!%p10246_p3)
}
  0x46   :  { %34 = dma.hbm_to_vmem [thread:$0]  %s13451_s2, 32, %s32_s28, [#allocation5]  }
  0x47   :  { %s10250_s25 = scalar_lea.hbm %s13453_s4, 512 }
  0x48   :  { %p10251_p4 = scmp.ne.s32.totalorder %s13453_s4, %s10250_s25  ;;  %p10254_p5 = scmp.lt.u32.totalorder %s10250_s25, %s13453_s4 }
  0x4a   :  { %p10256_p6 = pnand %p10254_p5, %p10251_p4 }
  0x4c   :  { %10259 = shalt.err (!%p10256_p6)
}
  0x4d   :  { %s10260_s5 = scalar_lea.vmem %s53_s13, 512  ;;  %p10265_p8 = scmp.lt.s32.totalorder %s53_s13, %s53_s13 }
  0x4e   :  { %p10261_p7 = scmp.ne.s32.totalorder %s53_s13, %s10260_s5  ;;  %p10266_p9 = scmp.lt.s32.totalorder %s10260_s5, %s10260_s5 }
  0x50   :  { %p10267_p10 = por %p10266_p9, %p10265_p8 }
  0x52   :  { %p10268_p11 = pnand %p10267_p10, %p10261_p7 }
  0x54   :  { %10271 = shalt.err (!%p10268_p11)
}
  0x55   :  { %s10387_s2 = smov 256   ;;  %s10388_s23 = smov 16  }
  0x56   :  { %58 = dma.hbm_to_vmem [thread:$0]  %s13453_s4, 512, %s53_s13, [#allocation8], %s10387_s2, %s10387_s2, %s10388_s23  }
  0x57   :  { %s10389_s12 = smov [#allocation12]   ;;  %s10390_s16 = smov [#allocation15]  }
  0x58   :  { %s77_s15 = sshll.u32 %s10389_s12, 4  ;;  %s96_s17 = sshll.u32 %s10390_s16, 4  ;;  %s78_s15 = int_to_ptr.vmem [resolvable:$true] %s77_s15  ;;  %s97_s17 = int_to_ptr.vmem [resolvable:$true] %s96_s17 }
  0x59   :  { %s10272_s14 = scalar_lea.hbm %s13455_s6, 32 }
  0x5a   :  { %p10273_p12 = scmp.ne.s32.totalorder %s13455_s6, %s10272_s14  ;;  %p10276_p13 = scmp.lt.u32.totalorder %s10272_s14, %s13455_s6 }
  0x5c   :  { %p10278_p0 = pnand %p10276_p13, %p10273_p12 }
  0x5e   :  { %10281 = shalt.err (!%p10278_p0)
}
  0x5f   :  { %s10282_s4 = scalar_lea.vmem %s78_s15, 32  ;;  %p10287_p2 = scmp.lt.s32.totalorder %s78_s15, %s78_s15 }
  0x60   :  { %p10283_p1 = scmp.ne.s32.totalorder %s78_s15, %s10282_s4  ;;  %p10288_p3 = scmp.lt.s32.totalorder %s10282_s4, %s10282_s4 }
  0x62   :  { %p10289_p4 = por %p10288_p3, %p10287_p2 }
  0x64   :  { %p10290_p5 = pnand %p10289_p4, %p10283_p1 }
  0x66   :  { %10293 = shalt.err (!%p10290_p5)
}
  0x67   :  { %80 = dma.hbm_to_vmem [thread:$0]  %s13455_s6, 32, %s78_s15, [#allocation11]  }
  0x68   :  { %s10294_s26 = scalar_lea.hbm %s13457_s8, 71680 }
  0x69   :  { %p10295_p6 = scmp.ne.s32.totalorder %s13457_s8, %s10294_s26  ;;  %p10298_p7 = scmp.lt.u32.totalorder %s10294_s26, %s13457_s8 }
  0x6b   :  { %p10300_p8 = pnand %p10298_p7, %p10295_p6 }
  0x6d   :  { %10303 = shalt.err (!%p10300_p8)
}
  0x6e   :  { %s10304_s2 = scalar_lea.vmem %s97_s17, 71680  ;;  %p10309_p10 = scmp.lt.s32.totalorder %s97_s17, %s97_s17 }
  0x6f   :  { %p10305_p9 = scmp.ne.s32.totalorder %s97_s17, %s10304_s2  ;;  %p10310_p11 = scmp.lt.s32.totalorder %s10304_s2, %s10304_s2 }
  0x71   :  { %p10311_p12 = por %p10310_p11, %p10309_p10 }
  0x73   :  { %p10312_p13 = pnand %p10311_p12, %p10305_p9 }
  0x75   :  { %10315 = shalt.err (!%p10312_p13)
}
  0x76   :  { %s10391_s6 = smov 512   ;;  %s10392_s23 = smov 32  }
  0x77   :  { %102 = dma.hbm_to_vmem [thread:$0]  %s13457_s8, 71680, %s97_s17, [#allocation14], %s10391_s6, %s10391_s6, %s10392_s23  }
  0x78   :  { %s10393_s12 = smov [#allocation16]   ;;  %s10316_s3 = scalar_lea.hbm %s13458_s9, 128 }
  0x79   :  { %s109_s15 = sshll.u32 %s10393_s12, 4  ;;  %p10317_p0 = scmp.ne.s32.totalorder %s13458_s9, %s10316_s3  ;;  %s110_s15 = int_to_ptr.vmem [resolvable:$true] %s109_s15 }
  0x7a   :  { %p10320_p1 = scmp.lt.u32.totalorder %s10316_s3, %s13458_s9 }
  0x7c   :  { %p10322_p2 = pnand %p10320_p1, %p10317_p0 }
  0x7e   :  { %10325 = shalt.err (!%p10322_p2)
}
  0x7f   :  { %s10326_s20 = scalar_lea.vmem %s110_s15, 128  ;;  %p10331_p4 = scmp.lt.s32.totalorder %s110_s15, %s110_s15 }
  0x80   :  { %p10327_p3 = scmp.ne.s32.totalorder %s110_s15, %s10326_s20  ;;  %p10332_p5 = scmp.lt.s32.totalorder %s10326_s20, %s10326_s20 }
  0x82   :  { %p10333_p6 = por %p10332_p5, %p10331_p4 }
  0x84   :  { %p10334_p7 = pnand %p10333_p6, %p10327_p3 }
  0x86   :  { %10337 = shalt.err (!%p10334_p7)
}
  0x87   :  { %112 = dma.hbm_to_vmem [thread:$0]  %s13458_s9, 128, %s110_s15, [#allocation17]  }
  0x88   :  { %10364 = dma.done.wait [#allocation5], 32  }
  0x89   :  { %10365 = vsyncadd [#allocation5], 4294967264 }
  0x8a   :  { %10366 = dma.done.wait [#allocation8], 1792  }
  0x8b   :  { %10367 = vsyncadd [#allocation8], 4294965504 }
  0x8c   :  { %10368 = dma.done.wait [#allocation11], 2592  }
  0x8d   :  { %10369 = vsyncadd [#allocation11], 4294964704 }
  0x8e   :  { %10370 = dma.done.wait [#allocation14], 71744  }
  0x8f   :  { %10371 = vsyncadd [#allocation14], 4294895552 }
  0x90   :  { %10372 = dma.done.wait [#allocation17], 128  }
  0x91   :  { %10373 = vsyncadd [#allocation17], 4294967168  ;;  %s10554_s4 = smov 0  }
  0x92 LB: > { %v9862_v0 = vld [vmem:[%s13450_s1 + $0x4] ss:$8 sps:$4 sm:$0xff]   ;;  %v9864_v1 = vld [vmem:[%s13450_s1] ss:$8 sps:$4 sm:$0xff]   ;;  %s8749_s25 = sshll.u32 %s10378_s4, 8  ;;  %s10394_s28 = smov 64   ;;  %s10378_s4 = sphi %s10554_s4, %s143_s4  }
  0x93   : > { %1412 = vmatprep.subr.bf16.mxu0 %v9862_v0  ;;  %v9865_v2 = vld [vmem:[%s13450_s1 + $0x14] ss:$8 sps:$4 sm:$0xff]   ;;  %s10572_s5 = scalar_lea.vmem %s13449_s0, %s8749_s25  ;;  %v9867_v3 = vld [vmem:[%s13450_s1 + $0x10] ss:$8 sps:$4 sm:$0xff]   ;;  %v9868_v10 = vld [vmem:[%s13450_s1 + $0x24] ss:$8 sps:$4 sm:$0xff]  }
  0x94   : > { %1413 = vmatpush1.bf16.msra.mxu0 %v9864_v1  ;;  %v771_v4 = vld [vmem:[%s10572_s5 + $0x3] sm:$0xff]  ;;  %v772_v6 = vld [vmem:[%s10572_s5 + $0xb] sm:$0xff]  ;;  %v337_v13 = vld [vmem:[%s10572_s5 + $0x19] sm:$0xff]  ;;  %vm302_vm0 = vcmask 519168   ;;  %vm552_vm1 = vcmask 1043968   ;;  %vm2062_vm2 = vcmask 982016  }
  0x95   : > { %v334_v5 = vld [vmem:[%s10572_s5 + $0x1] sm:$0xff]  ;;  %1414 = vmatprep.subr.bf16.mxu0 %v9865_v2  ;;  %v9728_v7 = vpack.c.bf16 %v771_v4, %v771_v4  ;;  %v335_v9 = vld [vmem:[%s10572_s5 + $0x9] sm:$0xff]  ;;  %v9729_v11 = vpack.c.bf16 %v772_v6, %v772_v6  ;;  %v336_v14 = vld [vmem:[%s10572_s5 + $0x11] sm:$0xff]  ;;  %v9669_v16 = vpack.c.bf16 %v337_v13, %v337_v13  ;;  %s4176_s21 = sand.u32 1, %s10378_s4  ;;  %s10398_s25 = smov 32  }
  0x96   : > { %v9666_v8 = vpack.c.bf16 %v334_v5, %v334_v5  ;;  %v9667_v12 = vpack.c.bf16 %v335_v9, %v335_v9  ;;  %v9870_v15 = vld [vmem:[%s13450_s1 + $0x20] ss:$8 sps:$4 sm:$0xff]   ;;  %v9668_v17 = vpack.c.bf16 %v336_v14, %v336_v14  ;;  %v773_v19 = vld [vmem:[%s10572_s5 + $0x13] sm:$0xff]  ;;  %v9874_v30 = vld [vmem:[%s13450_s1 + $0x44] ss:$8 sps:$4 sm:$0xff]   ;;  %s10399_s26 = smov 96  }
  0x97   : > { %896 = vrot.lane.b32.xlu1 %v9728_v7, %s10394_s28  ;;  %v774_v18 = vld [vmem:[%s10572_s5 + $0x1b] sm:$0xff]  ;;  %v9730_v21 = vpack.c.bf16 %v773_v19, %v773_v19  ;;  %v339_v22 = vld [vmem:[%s10572_s5 + $0x29] sm:$0xff]  ;;  %v340_v35 = vld [vmem:[%s10572_s5 + $0x31] sm:$0xff] }
  0x98   : > { %459 = vrot.lane.b32.xlu0 %v9666_v8, %s10394_s28  ;;  %1415 = vmatpush1.bf16.msra.mxu0 %v9867_v3  ;;  %v9731_v20 = vpack.c.bf16 %v774_v18, %v774_v18  ;;  %v338_v23 = vld [vmem:[%s10572_s5 + $0x21] sm:$0xff]  ;;  %v9671_v24 = vpack.c.bf16 %v339_v22, %v339_v22  ;;  %v9871_v26 = vld [vmem:[%s13450_s1 + $0x34] ss:$8 sps:$4 sm:$0xff]   ;;  %v9873_v27 = vld [vmem:[%s13450_s1 + $0x30] ss:$8 sps:$4 sm:$0xff]   ;;  %v9672_v39 = vpack.c.bf16 %v340_v35, %v340_v35 }
  0x99   : > { %1416 = vmatprep.subr.bf16.mxu0 %v9868_v10  ;;  %v9670_v25 = vpack.c.bf16 %v338_v23, %v338_v23  ;;  %v776_v28 = vld [vmem:[%s10572_s5 + $0x2b] sm:$0xff]  ;;  %v775_v29 = vld [vmem:[%s10572_s5 + $0x23] sm:$0xff]  ;;  %v341_v34 = vld [vmem:[%s10572_s5 + $0x39] sm:$0xff] }
  0x9a   : > { %v9876_v31 = vld [vmem:[%s13450_s1 + $0x40] ss:$8 sps:$4 sm:$0xff]   ;;  %v9733_v32 = vpack.c.bf16 %v776_v28, %v776_v28  ;;  %v9732_v33 = vpack.c.bf16 %v775_v29, %v775_v29  ;;  %v9877_v36 = vld [vmem:[%s13450_s1 + $0x54] ss:$8 sps:$4 sm:$0xff]   ;;  %v9879_v37 = vld [vmem:[%s13450_s1 + $0x50] ss:$8 sps:$4 sm:$0xff]   ;;  %v9673_v38 = vpack.c.bf16 %v341_v34, %v341_v34 }
  0x9b   : > { %898 = vrot.lane.b32.xlu1 %v9729_v11, %s10394_s28  ;;  %v778_v40 = vld [vmem:[%s10572_s5 + $0x3b] sm:$0xff]  ;;  %v777_v41 = vld [vmem:[%s10572_s5 + $0x33] sm:$0xff]  ;;  %v9880_v42 = vld [vmem:[%s13450_s1 + $0x64] ss:$8 sps:$4 sm:$0xff]  }
  0x9c   : > { %461 = vrot.lane.b32.xlu0 %v9667_v12, %s10394_s28  ;;  %1417 = vmatpush1.bf16.msra.mxu0 %v9870_v15  ;;  %v9882_v43 = vld [vmem:[%s13450_s1 + $0x60] ss:$8 sps:$4 sm:$0xff]   ;;  %v9735_v44 = vpack.c.bf16 %v778_v40, %v778_v40  ;;  %v9734_v45 = vpack.c.bf16 %v777_v41, %v777_v41  ;;  %v9883_v48 = vld [vmem:[%s13450_s1 + $0x74] ss:$8 sps:$4 sm:$0xff]   ;;  %v9885_v49 = vld [vmem:[%s13450_s1 + $0x70] ss:$8 sps:$4 sm:$0xff]  }
  0x9d   : > { %1418 = vmatprep.subr.bf16.mxu0 %v9871_v26  ;;  %v343_v46 = vld [vmem:[%s10572_s5 + $0x49] sm:$0xff]  ;;  %v342_v47 = vld [vmem:[%s10572_s5 + $0x41] sm:$0xff]  ;;  %v345_v60 = vld [vmem:[%s10572_s5 + $0x59] sm:$0xff] }
  0x9e   : > { %v9675_v50 = vpack.c.bf16 %v343_v46, %v343_v46  ;;  %v9674_v51 = vpack.c.bf16 %v342_v47, %v342_v47  ;;  %v780_v52 = vld [vmem:[%s10572_s5 + $0x4b] sm:$0xff]  ;;  %v779_v53 = vld [vmem:[%s10572_s5 + $0x43] sm:$0xff]  ;;  %v9889_v62 = vld [vmem:[%s13450_s1 + $0x94] ss:$8 sps:$4 sm:$0xff]   ;;  %v9677_v6 = vpack.c.bf16 %v345_v60, %v345_v60 }
  0x9f   : > { %465 = vrot.lane.b32.xlu1 %v9669_v16, %s10394_s28  ;;  %v9886_v54 = vld [vmem:[%s13450_s1 + $0x84] ss:$8 sps:$4 sm:$0xff]   ;;  %v9888_v55 = vld [vmem:[%s13450_s1 + $0x80] ss:$8 sps:$4 sm:$0xff]   ;;  %v9737_v56 = vpack.c.bf16 %v780_v52, %v780_v52  ;;  %v9736_v57 = vpack.c.bf16 %v779_v53, %v779_v53  ;;  %v344_v61 = vld [vmem:[%s10572_s5 + $0x51] sm:$0xff] }
  0xa0   : > { %463 = vrot.lane.b32.xlu0 %v9668_v17, %s10394_s28  ;;  %1419 = vmatpush1.bf16.msra.mxu0 %v9873_v27  ;;  %v584_v58 = vld [vmem:[%s10572_s5 + $0x2] sm:$0xff]  ;;  %v585_v1 = vld [vmem:[%s10572_s5 + $0xa] sm:$0xff]  ;;  %v9676_v7 = vpack.c.bf16 %v344_v61, %v344_v61  ;;  %v781_v8 = vld [vmem:[%s10572_s5 + $0x53] sm:$0xff] }
  0xa1   : > { %1420 = vmatprep.subr.bf16.mxu0 %v9874_v30  ;;  %v146_v59 = vld [vmem:[%s10572_s5] sm:$0xff]  ;;  %v9697_v63 = vpack.c.bf16 %v584_v58, %v584_v58  ;;  %v9891_v3 = vld [vmem:[%s13450_s1 + $0x90] ss:$8 sps:$4 sm:$0xff]   ;;  %v9698_v4 = vpack.c.bf16 %v585_v1, %v585_v1  ;;  %v147_v5 = vld [vmem:[%s10572_s5 + $0x8] sm:$0xff]  ;;  %v9738_v19 = vpack.c.bf16 %v781_v8, %v781_v8 }
  0xa2   : > { %v9635_v0 = vpack.c.bf16 %v146_v59, %v146_v59  ;;  %v10666_v2 = vld [vmem:[%s10572_s5 + $0x5b] sm:$0xff]  ;;  %v9636_v9 = vpack.c.bf16 %v147_v5, %v147_v5  ;;  %v9892_v11 = vld [vmem:[%s13450_s1 + $0xa4] ss:$8 sps:$4 sm:$0xff]   ;;  %v148_v13 = vld [vmem:[%s10572_s5 + $0x10] sm:$0xff] }
  0xa3   : > { %902 = vrot.lane.b32.xlu1 %v9731_v20, %s10394_s28  ;;  %740 = vst.msk [vmem:[#allocation2 + $0x4] sm:$0xf] %vm302_vm0, %v9697_v63  ;;  %v149_v10 = vld [vmem:[%s10572_s5 + $0x18] sm:$0xff]  ;;  %741 = vst.msk [vmem:[#allocation2 + $0xc] sm:$0xf] %vm302_vm0, %v9698_v4  ;;  %v10684_v14 = vld [vmem:[%s10572_s5 + $0x69] sm:$0xff]  ;;  %v9637_v17 = vpack.c.bf16 %v148_v13, %v148_v13  ;;  %v9739_v18 = vpack.c.bf16 %v10666_v2, %v10666_v2 }
  0xa4   : > { %900 = vrot.lane.b32.xlu0 %v9730_v21, %s10394_s28  ;;  %1421 = vmatpush1.bf16.msra.mxu0 %v9876_v31  ;;  %303 = vst.msk [vmem:[#allocation2] sm:$0xf] %vm302_vm0, %v9635_v0  ;;  %v9638_v12 = vpack.c.bf16 %v149_v10, %v149_v10  ;;  %v10687_v15 = vld [vmem:[%s10572_s5 + $0x61] sm:$0xff]  ;;  %304 = vst.msk [vmem:[#allocation2 + $0x8] sm:$0xf] %vm302_vm0, %v9636_v9  ;;  %v586_v22 = vld [vmem:[%s10572_s5 + $0x12] sm:$0xff] }
  0xa5   : > { %1422 = vmatprep.subr.bf16.mxu0 %v9877_v36  ;;  %v9894_v16 = vld [vmem:[%s13450_s1 + $0xa0] ss:$8 sps:$4 sm:$0xff]   ;;  %v9895_v20 = vld [vmem:[%s13450_s1 + $0xb4] ss:$8 sps:$4 sm:$0xff]   ;;  %305 = vst.msk [vmem:[#allocation2 + $0x10] sm:$0xf] %vm302_vm0, %v9637_v17  ;;  %v9699_v26 = vpack.c.bf16 %v586_v22, %v586_v22  ;;  %v9678_v46 = vpack.c.bf16 %v10687_v15, %v10687_v15 }
  0xa6   : > { %306 = vst.msk [vmem:[#allocation2 + $0x18] sm:$0xf] %vm302_vm0, %v9638_v12  ;;  %v587_v21 = vld [vmem:[%s10572_s5 + $0x1a] sm:$0xff]  ;;  %v151_v23 = vld [vmem:[%s10572_s5 + $0x28] sm:$0xff]  ;;  %v152_v36 = vld [vmem:[%s10572_s5 + $0x30] sm:$0xff] }
  0xa7   : > { %469 = vrot.lane.b32.xlu1 %v9671_v24, %s10394_s28  ;;  %v10705_v24 = vld [vmem:[%s10572_s5 + $0x6b] sm:$0xff]  ;;  %v9640_v27 = vpack.c.bf16 %v151_v23, %v151_v23  ;;  %v150_v28 = vld [vmem:[%s10572_s5 + $0x20] sm:$0xff]  ;;  %v153_v35 = vld [vmem:[%s10572_s5 + $0x38] sm:$0xff]  ;;  %742 = vst.msk [vmem:[#allocation2 + $0x14] sm:$0xf] %vm302_vm0, %v9699_v26 }
  0xa8   : > { %467 = vrot.lane.b32.xlu0 %v9670_v25, %s10394_s28  ;;  %1423 = vmatpush1.bf16.msra.mxu0 %v9879_v37  ;;  %v9700_v25 = vpack.c.bf16 %v587_v21, %v587_v21  ;;  %v589_v29 = vld [vmem:[%s10572_s5 + $0x2a] sm:$0xff]  ;;  %v588_v34 = vld [vmem:[%s10572_s5 + $0x22] sm:$0xff]  ;;  %v9679_v37 = vpack.c.bf16 %v10684_v14, %v10684_v14  ;;  %v9642_v41 = vpack.c.bf16 %v153_v35, %v153_v35  ;;  %v594_v63 = vld [vmem:[%s10572_s5 + $0x52] sm:$0xff] }
  0xa9   : > { %1424 = vmatprep.subr.bf16.mxu0 %v9880_v42  ;;  %v10711_v30 = vld [vmem:[%s10572_s5 + $0x63] sm:$0xff]  ;;  %v9897_v31 = vld [vmem:[%s13450_s1 + $0xb0] ss:$8 sps:$4 sm:$0xff]   ;;  %308 = vst.msk [vmem:[#allocation2 + $0x28] sm:$0xf] %vm302_vm0, %v9640_v27  ;;  %v9701_v40 = vpack.c.bf16 %v588_v34, %v588_v34  ;;  %v9641_v42 = vpack.c.bf16 %v152_v36, %v152_v36  ;;  %v9741_v59 = vpack.c.bf16 %v10705_v24, %v10705_v24 }
  0xaa   : > { %743 = vst.msk [vmem:[#allocation2 + $0x1c] sm:$0xf] %vm302_vm0, %v9700_v25  ;;  %v10742_v47 = vld [vmem:[%s13450_s1 + $0xc4] ss:$8 sps:$4 sm:$0xff]   ;;  %310 = vst.msk [vmem:[#allocation2 + $0x38] sm:$0xf] %vm302_vm0, %v9642_v41  ;;  %v9740_v1 = vpack.c.bf16 %v10711_v30, %v10711_v30 }
  0xab   : > { %906 = vrot.lane.b32.xlu1 %v9733_v32, %s10394_s28  ;;  %v9639_v32 = vpack.c.bf16 %v150_v28, %v150_v28  ;;  %v593_v52 = vld [vmem:[%s10572_s5 + $0x4a] sm:$0xff]  ;;  %v592_v53 = vld [vmem:[%s10572_s5 + $0x42] sm:$0xff]  ;;  %744 = vst.msk [vmem:[#allocation2 + $0x24] sm:$0xf] %vm302_vm0, %v9701_v40  ;;  %309 = vst.msk [vmem:[#allocation2 + $0x30] sm:$0xf] %vm302_vm0, %v9641_v42 }
  0xac   : > { %904 = vrot.lane.b32.xlu0 %v9732_v33, %s10394_s28  ;;  %1425 = vmatpush1.bf16.msra.mxu0 %v9882_v43  ;;  %v9702_v33 = vpack.c.bf16 %v589_v29, %v589_v29  ;;  %v591_v43 = vld [vmem:[%s10572_s5 + $0x3a] sm:$0xff]  ;;  %v156_v58 = vld [vmem:[%s10572_s5 + $0x50] sm:$0xff]  ;;  %v159_v0 = vld [vmem:[%s10572_s5 + $0x68] sm:$0xff] }
  0xad   : > { %1426 = vmatprep.subr.bf16.mxu0 %v9883_v48  ;;  %307 = vst.msk [vmem:[#allocation2 + $0x20] sm:$0xf] %vm302_vm0, %v9639_v32  ;;  %v9704_v48 = vpack.c.bf16 %v591_v43, %v591_v43  ;;  %v9645_v61 = vpack.c.bf16 %v156_v58, %v156_v58  ;;  %v10767_v2 = vld [vmem:[%s10572_s5 + $0x79] sm:$0xff]  ;;  %v597_v9 = vld [vmem:[%s10572_s5 + $0x6a] sm:$0xff]  ;;  %v596_v10 = vld [vmem:[%s10572_s5 + $0x62] sm:$0xff] }
  0xae   : > { %745 = vst.msk [vmem:[#allocation2 + $0x2c] sm:$0xf] %vm302_vm0, %v9702_v33  ;;  %v10777_v4 = vld [vmem:[%s13450_s1 + $0xd8] sm:$0xff]  ;;  %v158_v8 = vld [vmem:[%s10572_s5 + $0x60] sm:$0xff]  ;;  %v9709_v17 = vpack.c.bf16 %v596_v10, %v596_v10  ;;  %v163_v26 = vld [vmem:[%s10572_s5 + $0x88] sm:$0xff]  ;;  %v9681_v33 = vpack.c.bf16 %v10767_v2, %v10767_v2 }
  0xaf   : > { %473 = vrot.lane.b32.xlu1 %v9673_v38, %s10394_s28  ;;  %v10724_v38 = vld [vmem:[%s13450_s1 + $0xc0] sm:$0xff]  ;;  %747 = vst.msk [vmem:[#allocation2 + $0x3c] sm:$0xf] %vm302_vm0, %v9704_v48  ;;  %v9900_v13 = vld [vmem:[%s13450_s1 + $0xd4] ss:$8 sps:$4 sm:$0xff]   ;;  %v9647_v15 = vpack.c.bf16 %v158_v8, %v158_v8  ;;  %v9652_v27 = vpack.c.bf16 %v163_v26, %v163_v26  ;;  %v351_v42 = vld [vmem:[%s10572_s5 + $0x89] sm:$0xff] }
  0xb0   : > { %471 = vrot.lane.b32.xlu0 %v9672_v39, %s10394_s28  ;;  %1427 = vmatpush1.bf16.msra.mxu0 %v9885_v49  ;;  %v10729_v39 = vld [vmem:[%s13450_s1 + $0xc8] sm:$0xff]  ;;  %313 = vst.msk [vmem:[#allocation2 + $0x50] sm:$0xf] %vm302_vm0, %v9645_v61  ;;  %v598_v25 = vld [vmem:[%s10572_s5 + $0x72] sm:$0xff]  ;;  %752 = vst.msk [vmem:[#allocation2 + $0x64] sm:$0xf] %vm302_vm0, %v9709_v17 }
  0xb1   : > { %1428 = vmatprep.subr.bf16.mxu0 %v9886_v54  ;;  %v8930_v12 = vcombine.low %v10724_v38, %v10729_v39  ;;  %315 = vst.msk [vmem:[#allocation2 + $0x60] sm:$0xf] %vm302_vm0, %v9647_v15  ;;  %v9711_v14 = vpack.c.bf16 %v598_v25, %v598_v25  ;;  %v162_v28 = vld [vmem:[%s10572_s5 + $0x80] sm:$0xff]  ;;  %v785_v34 = vld [vmem:[%s10572_s5 + $0x73] sm:$0xff]  ;;  %320 = vst.msk [vmem:[#allocation2 + $0x88] sm:$0xf] %vm302_vm0, %v9652_v27 }
  0xb2   : > { %v786_v29 = vld [vmem:[%s10572_s5 + $0x7b] sm:$0xff]  ;;  %v9651_v32 = vpack.c.bf16 %v162_v28, %v162_v28  ;;  %v9902_v36 = vld [vmem:[%s13450_s1 + $0xe4] ss:$8 sps:$4 sm:$0xff]   ;;  %v164_v24 = vld [vmem:[%s10572_s5 + $0x90] sm:$0xff] }
  0xb3   : > { %910 = vrot.lane.b32.xlu1 %v9735_v44, %s10394_s28  ;;  %v590_v44 = vld [vmem:[%s10572_s5 + $0x32] sm:$0xff]  ;;  %v1079_v30 = vld [vmem:[%s13450_s1 + $0xe0] sm:$0xff]  ;;  %754 = vst.msk [vmem:[#allocation2 + $0x74] sm:$0xf] %vm302_vm0, %v9711_v14  ;;  %v9743_v43 = vpack.c.bf16 %v786_v29, %v786_v29 }
  0xb4   : > { %908 = vrot.lane.b32.xlu0 %v9734_v45, %s10394_s28  ;;  %1429 = vmatpush1.bf16.msra.mxu0 %v9888_v55  ;;  %v155_v45 = vld [vmem:[%s10572_s5 + $0x48] sm:$0xff]  ;;  %v9703_v49 = vpack.c.bf16 %v590_v44, %v590_v44  ;;  %v9706_v55 = vpack.c.bf16 %v593_v52, %v593_v52  ;;  %319 = vst.msk [vmem:[#allocation2 + $0x80] sm:$0xf] %vm302_vm0, %v9651_v32  ;;  %v1082_v48 = vld [vmem:[%s13450_s1 + $0xf8] sm:$0xff]  ;;  %v168_v17 = vld [vmem:[%s10572_s5 + $0xb0] sm:$0xff] }
  0xb5   : > { %1430 = vmatprep.subr.bf16.mxu0 %v9889_v62  ;;  %v595_v62 = vld [vmem:[%s10572_s5 + $0x5a] sm:$0xff]  ;;  %v600_v38 = vld [vmem:[%s10572_s5 + $0x82] sm:$0xff]  ;;  %v788_v58 = vld [vmem:[%s10572_s5 + $0x8b] sm:$0xff] }
  0xb6   : > { %746 = vst.msk [vmem:[#allocation2 + $0x34] sm:$0xf] %vm302_vm0, %v9703_v49  ;;  %749 = vst.msk [vmem:[#allocation2 + $0x4c] sm:$0xf] %vm302_vm0, %v9706_v55  ;;  %v9708_v5 = vpack.c.bf16 %v595_v62, %v595_v62  ;;  %v9713_v41 = vpack.c.bf16 %v600_v38, %v600_v38  ;;  %v9904_v52 = vld [vmem:[%s13450_s1 + $0xf4] ss:$8 sps:$4 sm:$0xff]   ;;  %v9745_v62 = vpack.c.bf16 %v788_v58, %v788_v58 }
  0xb7   : > { %477 = vrot.lane.b32.xlu1 %v9675_v50, %s10394_s28  ;;  %v9644_v50 = vpack.c.bf16 %v155_v45, %v155_v45  ;;  %v165_v45 = vld [vmem:[%s10572_s5 + $0x98] sm:$0xff]  ;;  %v787_v61 = vld [vmem:[%s10572_s5 + $0x83] sm:$0xff]  ;;  %v792_v27 = vld [vmem:[%s10572_s5 + $0xab] sm:$0xff] }
  0xb8   : > { %475 = vrot.lane.b32.xlu0 %v9674_v51, %s10394_s28  ;;  %1431 = vmatpush1.bf16.msra.mxu0 %v9891_v3  ;;  %v154_v51 = vld [vmem:[%s10572_s5 + $0x40] sm:$0xff]  ;;  %v10772_v3 = vld [vmem:[%s13450_s1 + $0xd0] sm:$0xff]  ;;  %751 = vst.msk [vmem:[#allocation2 + $0x5c] sm:$0xf] %vm302_vm0, %v9708_v5  ;;  %756 = vst.msk [vmem:[#allocation2 + $0x84] sm:$0xf] %vm302_vm0, %v9713_v41  ;;  %v9654_v49 = vpack.c.bf16 %v165_v45, %v165_v45 }
  0xb9   : > { %1432 = vmatprep.subr.bf16.mxu0 %v9892_v11  ;;  %v9643_v54 = vpack.c.bf16 %v154_v51, %v154_v51  ;;  %312 = vst.msk [vmem:[#allocation2 + $0x48] sm:$0xf] %vm302_vm0, %v9644_v50  ;;  %v348_v11 = vld [vmem:[%s10572_s5 + $0x71] sm:$0xff]  ;;  %v8932_v35 = vcombine.low %v10772_v3, %v10777_v4  ;;  %v9653_v50 = vpack.c.bf16 %v164_v24, %v164_v24  ;;  %v350_v51 = vld [vmem:[%s10572_s5 + $0x81] sm:$0xff]  ;;  %v353_v2 = vld [vmem:[%s10572_s5 + $0x99] sm:$0xff] }
  0xba   : > { %v9680_v39 = vpack.c.bf16 %v348_v11, %v348_v11  ;;  %322 = vst.msk [vmem:[#allocation2 + $0x98] sm:$0xf] %vm302_vm0, %v9654_v49  ;;  %v603_v55 = vld [vmem:[%s10572_s5 + $0x9a] sm:$0xff]  ;;  %v352_v5 = vld [vmem:[%s10572_s5 + $0x91] sm:$0xff]  ;;  %v604_v8 = vld [vmem:[%s10572_s5 + $0xa2] sm:$0xff] }
  0xbb   : > { %914 = vrot.lane.b32.xlu1 %v9737_v56, %s10394_s28  ;;  %v9705_v56 = vpack.c.bf16 %v592_v53, %v592_v53  ;;  %311 = vst.msk [vmem:[#allocation2 + $0x40] sm:$0xf] %vm302_vm0, %v9643_v54  ;;  %321 = vst.msk [vmem:[#allocation2 + $0x90] sm:$0xf] %vm302_vm0, %v9653_v50  ;;  %v9683_v53 = vpack.c.bf16 %v351_v42, %v351_v42  ;;  %v790_v10 = vld [vmem:[%s10572_s5 + $0x9b] sm:$0xff]  ;;  %v606_v26 = vld [vmem:[%s10572_s5 + $0xb2] sm:$0xff] }
  0xbc   : > { %912 = vrot.lane.b32.xlu0 %v9736_v57, %s10394_s28  ;;  %1433 = vmatpush1.bf16.msra.mxu0 %v9894_v16  ;;  %v157_v57 = vld [vmem:[%s10572_s5 + $0x58] sm:$0xff]  ;;  %v9710_v16 = vpack.c.bf16 %v597_v9, %v597_v9  ;;  %v9684_v9 = vpack.c.bf16 %v352_v5, %v352_v5  ;;  %v9747_v15 = vpack.c.bf16 %v790_v10, %v790_v10  ;;  %v171_v32 = vld [vmem:[%s10572_s5 + $0xc8] sm:$0xff] }
  0xbd   : > { %1434 = vmatprep.subr.bf16.mxu0 %v9895_v20  ;;  %v9646_v60 = vpack.c.bf16 %v157_v57, %v157_v57  ;;  %748 = vst.msk [vmem:[#allocation2 + $0x44] sm:$0xf] %vm302_vm0, %v9705_v56  ;;  %v599_v20 = vld [vmem:[%s10572_s5 + $0x7a] sm:$0xff]  ;;  %v602_v56 = vld [vmem:[%s10572_s5 + $0x92] sm:$0xff]  ;;  %v9682_v57 = vpack.c.bf16 %v350_v51, %v350_v51  ;;  %v9719_v29 = vpack.c.bf16 %v606_v26, %v606_v26  ;;  %v608_v41 = vld [vmem:[%s10572_s5 + $0xc2] sm:$0xff] }
  0xbe   : > { %v9712_v23 = vpack.c.bf16 %v599_v20, %v599_v20  ;;  %753 = vst.msk [vmem:[#allocation2 + $0x6c] sm:$0xf] %vm302_vm0, %v9710_v16  ;;  %v169_v16 = vld [vmem:[%s10572_s5 + $0xb8] sm:$0xff]  ;;  %v9721_v45 = vpack.c.bf16 %v608_v41, %v608_v41  ;;  %v359_v50 = vld [vmem:[%s10572_s5 + $0xc9] sm:$0xff] }
  0xbf   : > { %481 = vrot.lane.b32.xlu1 %v9677_v6, %s10394_s28  ;;  %v9707_v6 = vpack.c.bf16 %v594_v63, %v594_v63  ;;  %314 = vst.msk [vmem:[#allocation2 + $0x58] sm:$0xf] %vm302_vm0, %v9646_v60  ;;  %v9715_v60 = vpack.c.bf16 %v602_v56, %v602_v56  ;;  %v167_v63 = vld [vmem:[%s10572_s5 + $0xa8] sm:$0xff]  ;;  %v9658_v20 = vpack.c.bf16 %v169_v16, %v169_v16  ;;  %v607_v25 = vld [vmem:[%s10572_s5 + $0xba] sm:$0xff]  ;;  %762 = vst.msk [vmem:[#allocation2 + $0xb4] sm:$0xf] %vm302_vm0, %v9719_v29 }
  0xc0   : > { %479 = vrot.lane.b32.xlu0 %v9676_v7, %s10394_s28  ;;  %v9648_v7 = vpack.c.bf16 %v159_v0, %v159_v0  ;;  %1435 = vmatpush1.bf16.msra.mxu0 %v9897_v31  ;;  %v1080_v31 = vld [vmem:[%s13450_s1 + $0xe8] sm:$0xff]  ;;  %755 = vst.msk [vmem:[#allocation2 + $0x7c] sm:$0xf] %vm302_vm0, %v9712_v23  ;;  %v166_v0 = vld [vmem:[%s10572_s5 + $0xa0] sm:$0xff]  ;;  %v9656_v3 = vpack.c.bf16 %v167_v63, %v167_v63  ;;  %v356_v38 = vld [vmem:[%s10572_s5 + $0xb1] sm:$0xff] }
  0xc1   : > { %750 = vst.msk [vmem:[#allocation2 + $0x54] sm:$0xf] %vm302_vm0, %v9707_v6  ;;  %1436 = vmatprep.subr.bf16.mxu0 %v10742_v47  ;;  %v8934_v44 = vcombine.low %v1079_v30, %v1080_v31  ;;  %v1081_v47 = vld [vmem:[%s13450_s1 + $0xf0] sm:$0xff]  ;;  %758 = vst.msk [vmem:[#allocation2 + $0x94] sm:$0xf] %vm302_vm0, %v9715_v60  ;;  %v9655_v4 = vpack.c.bf16 %v166_v0, %v166_v0  ;;  %v9685_v6 = vpack.c.bf16 %v353_v2, %v353_v2  ;;  %v791_v30 = vld [vmem:[%s10572_s5 + $0xa3] sm:$0xff] }
  0xc2   : > { %316 = vst.msk [vmem:[#allocation2 + $0x68] sm:$0xf] %vm302_vm0, %v9648_v7  ;;  %v8936_v54 = vcombine.low %v1081_v47, %v1082_v48  ;;  %324 = vst.msk [vmem:[#allocation2 + $0xa8] sm:$0xf] %vm302_vm0, %v9656_v3  ;;  %v605_v7 = vld [vmem:[%s10572_s5 + $0xaa] sm:$0xff]  ;;  %v9720_v28 = vpack.c.bf16 %v607_v25, %v607_v25  ;;  %v9749_v31 = vpack.c.bf16 %v792_v27, %v792_v27  ;;  %v793_v24 = vld [vmem:[%s10572_s5 + $0xb3] sm:$0xff] }
  0xc3   : > { %918 = vrot.lane.b32.xlu1 %v9739_v18, %s10394_s28  ;;  %v161_v18 = vld [vmem:[%s10572_s5 + $0x78] sm:$0xff]  ;;  %323 = vst.msk [vmem:[#allocation2 + $0xa0] sm:$0xf] %vm302_vm0, %v9655_v4  ;;  %v9718_v11 = vpack.c.bf16 %v605_v7, %v605_v7  ;;  %326 = vst.msk [vmem:[#allocation2 + $0xb8] sm:$0xf] %vm302_vm0, %v9658_v20  ;;  %v9688_v42 = vpack.c.bf16 %v356_v38, %v356_v38  ;;  %v172_v48 = vld [vmem:[%s10572_s5 + $0xd0] sm:$0xff]  ;;  %v9750_v49 = vpack.c.bf16 %v793_v24, %v793_v24 }
  0xc4   : > { %916 = vrot.lane.b32.xlu0 %v9738_v19, %s10394_s28  ;;  %v160_v19 = vld [vmem:[%s10572_s5 + $0x70] sm:$0xff]  ;;  %v9650_v21 = vpack.c.bf16 %v161_v18, %v161_v18  ;;  %1437 = vmatpush1.bf16.msra.mxu0 %v8930_v12  ;;  %v9717_v12 = vpack.c.bf16 %v604_v8, %v604_v8  ;;  %763 = vst.msk [vmem:[#allocation2 + $0xbc] sm:$0xf] %vm302_vm0, %v9720_v28  ;;  %764 = vst.msk [vmem:[#allocation2 + $0xc4] sm:$0xf] %vm302_vm0, %v9721_v45  ;;  %v173_v47 = vld [vmem:[%s10572_s5 + $0xd8] sm:$0xff] }
  0xc5   : > { %v9649_v22 = vpack.c.bf16 %v160_v19, %v160_v19  ;;  %1438 = vmatprep.subr.bf16.mxu0 %v9900_v13  ;;  %v789_v13 = vld [vmem:[%s10572_s5 + $0x93] sm:$0xff]  ;;  %761 = vst.msk [vmem:[#allocation2 + $0xac] sm:$0xf] %vm302_vm0, %v9718_v11  ;;  %v355_v19 = vld [vmem:[%s10572_s5 + $0xa9] sm:$0xff]  ;;  %v9662_v51 = vpack.c.bf16 %v173_v47, %v173_v47  ;;  %v174_v0 = vld [vmem:[%s10572_s5 + $0xe0] sm:$0xff] }
  0xc6   : > { %318 = vst.msk [vmem:[#allocation2 + $0x78] sm:$0xf] %vm302_vm0, %v9650_v21  ;;  %760 = vst.msk [vmem:[#allocation2 + $0xa4] sm:$0xf] %vm302_vm0, %v9717_v12  ;;  %v9746_v18 = vpack.c.bf16 %v789_v13, %v789_v13  ;;  %v9657_v21 = vpack.c.bf16 %v168_v17, %v168_v17  ;;  %v9687_v23 = vpack.c.bf16 %v355_v19, %v355_v19  ;;  %v610_v56 = vld [vmem:[%s10572_s5 + $0xd2] sm:$0xff]  ;;  %v175_v63 = vld [vmem:[%s10572_s5 + $0xe8] sm:$0xff] }
  0xc7   : > { %485 = vrot.lane.b32.xlu1 %v9679_v37, %s10394_s28  ;;  %317 = vst.msk [vmem:[#allocation2 + $0x70] sm:$0xf] %vm302_vm0, %v9649_v22  ;;  %v601_v37 = vld [vmem:[%s10572_s5 + $0x8a] sm:$0xff]  ;;  %v354_v22 = vld [vmem:[%s10572_s5 + $0xa1] sm:$0xff]  ;;  %330 = vst.msk [vmem:[#allocation2 + $0xd8] sm:$0xf] %vm302_vm0, %v9662_v51  ;;  %v9723_v60 = vpack.c.bf16 %v610_v56, %v610_v56  ;;  %v9664_v3 = vpack.c.bf16 %v175_v63, %v175_v63  ;;  %v9663_v4 = vpack.c.bf16 %v174_v0, %v174_v0 }
  0xc8   : > { %483 = vrot.lane.b32.xlu0 %v9678_v46, %s10394_s28  ;;  %v9714_v40 = vpack.c.bf16 %v601_v37, %v601_v37  ;;  %1439 = vmatpush1.bf16.msra.mxu0 %v8932_v35  ;;  %v9742_v46 = vpack.c.bf16 %v785_v34, %v785_v34  ;;  %325 = vst.msk [vmem:[#allocation2 + $0xb0] sm:$0xf] %vm302_vm0, %v9657_v21  ;;  %v357_v35 = vld [vmem:[%s10572_s5 + $0xb9] sm:$0xff]  ;;  %v796_v58 = vld [vmem:[%s10572_s5 + $0xcb] sm:$0xff]  ;;  %v612_v8 = vld [vmem:[%s10572_s5 + $0xe2] sm:$0xff] }
  0xc9   : > { %1440 = vmatprep.subr.bf16.mxu0 %v9902_v36  ;;  %v9686_v14 = vpack.c.bf16 %v354_v22, %v354_v22  ;;  %v9748_v34 = vpack.c.bf16 %v791_v30, %v791_v30  ;;  %v9660_v36 = vpack.c.bf16 %v171_v32, %v171_v32  ;;  %766 = vst.msk [vmem:[#allocation2 + $0xd4] sm:$0xf] %vm302_vm0, %v9723_v60  ;;  %v361_v2 = vld [vmem:[%s10572_s5 + $0xd9] sm:$0xff]  ;;  %v360_v5 = vld [vmem:[%s10572_s5 + $0xd1] sm:$0xff]  ;;  %332 = vst.msk [vmem:[#allocation2 + $0xe8] sm:$0xf] %vm302_vm0, %v9664_v3 }
  0xca   : > { %757 = vst.msk [vmem:[#allocation2 + $0x8c] sm:$0xf] %vm302_vm0, %v9714_v40  ;;  %v609_v40 = vld [vmem:[%s10572_s5 + $0xca] sm:$0xff]  ;;  %331 = vst.msk [vmem:[#allocation2 + $0xe0] sm:$0xf] %vm302_vm0, %v9663_v4  ;;  %v9725_v11 = vpack.c.bf16 %v612_v8, %v612_v8  ;;  %v798_v12 = vld [vmem:[%s10572_s5 + $0xdb] sm:$0xff] }
  0xcb   : > { %922 = vrot.lane.b32.xlu1 %v9741_v59, %s10394_s28  ;;  %v9716_v59 = vpack.c.bf16 %v603_v55, %v603_v55  ;;  %328 = vst.msk [vmem:[#allocation2 + $0xc8] sm:$0xf] %vm302_vm0, %v9660_v36  ;;  %v611_v55 = vld [vmem:[%s10572_s5 + $0xda] sm:$0xff]  ;;  %v613_v7 = vld [vmem:[%s10572_s5 + $0xea] sm:$0xff]  ;;  %v614_v19 = vld [vmem:[%s10572_s5 + $0xf2] sm:$0xff] }
  0xcc   : > { %920 = vrot.lane.b32.xlu0 %v9740_v1, %s10394_s28  ;;  %1441 = vmatpush1.bf16.msra.mxu0 %v8934_v44  ;;  %v9744_v1 = vpack.c.bf16 %v787_v61, %v787_v61  ;;  %v9722_v44 = vpack.c.bf16 %v609_v40, %v609_v40  ;;  %v795_v61 = vld [vmem:[%s10572_s5 + $0xc3] sm:$0xff]  ;;  %v9726_v10 = vpack.c.bf16 %v613_v7, %v613_v7  ;;  %v797_v13 = vld [vmem:[%s10572_s5 + $0xd3] sm:$0xff]  ;;  %v800_v26 = vld [vmem:[%s10572_s5 + $0xeb] sm:$0xff] }
  0xcd   : > { %1442 = vmatprep.subr.bf16.mxu0 %v9904_v52  ;;  %759 = vst.msk [vmem:[#allocation2 + $0x9c] sm:$0xf] %vm302_vm0, %v9716_v59  ;;  %v9661_v52 = vpack.c.bf16 %v172_v48, %v172_v48  ;;  %v9724_v59 = vpack.c.bf16 %v611_v55, %v611_v55  ;;  %768 = vst.msk [vmem:[#allocation2 + $0xe4] sm:$0xf] %vm302_vm0, %v9725_v11  ;;  %v9754_v16 = vpack.c.bf16 %v797_v13, %v797_v13  ;;  %v363_v17 = vld [vmem:[%s10572_s5 + $0xe9] sm:$0xff]  ;;  %v801_v29 = vld [vmem:[%s10572_s5 + $0xf3] sm:$0xff] }
  0xce   : > { %765 = vst.msk [vmem:[#allocation2 + $0xcc] sm:$0xf] %vm302_vm0, %v9722_v44  ;;  %769 = vst.msk [vmem:[#allocation2 + $0xec] sm:$0xf] %vm302_vm0, %v9726_v10  ;;  %v9727_v20 = vpack.c.bf16 %v614_v19, %v614_v19  ;;  %v176_v21 = vld [vmem:[%s10572_s5 + $0xf0] sm:$0xff]  ;;  %v9695_v22 = vpack.c.bf16 %v363_v17, %v363_v17  ;;  %v9757_v27 = vpack.c.bf16 %v800_v26, %v800_v26 }
  0xcf   : > { %489 = vrot.lane.b32.xlu1 %v9681_v33, %s10394_s28  ;;  %v170_v33 = vld [vmem:[%s10572_s5 + $0xc0] sm:$0xff]  ;;  %329 = vst.msk [vmem:[#allocation2 + $0xd0] sm:$0xf] %vm302_vm0, %v9661_v52  ;;  %767 = vst.msk [vmem:[#allocation2 + $0xdc] sm:$0xf] %vm302_vm0, %v9724_v59  ;;  %v9665_v25 = vpack.c.bf16 %v176_v21, %v176_v21  ;;  %v364_v30 = vld [vmem:[%s10572_s5 + $0xf1] sm:$0xff] }
  0xd0   : > { %487 = vrot.lane.b32.xlu0 %v9680_v39, %s10394_s28  ;;  %1443 = vmatpush1.bf16.msra.mxu0 %v8936_v54  ;;  %v9659_v37 = vpack.c.bf16 %v170_v33, %v170_v33  ;;  %v9689_v39 = vpack.c.bf16 %v357_v35, %v357_v35  ;;  %v9691_v54 = vpack.c.bf16 %v359_v50, %v359_v50 }
  0xd1   : > { %770 = vst.msk [vmem:[#allocation2 + $0xf4] sm:$0xf] %vm302_vm0, %v9727_v20  ;;  %333 = vst.msk [vmem:[#allocation2 + $0xf0] sm:$0xf] %vm302_vm0, %v9665_v25  ;;  %v9758_v33 = vpack.c.bf16 %v801_v29, %v801_v29 }
  0xd2   : > { %327 = vst.msk [vmem:[#allocation2 + $0xc0] sm:$0xf] %vm302_vm0, %v9659_v37 }
  0xd3   : > { %926 = vrot.lane.b32.xlu1 %v9743_v43, %s10394_s28  ;;  %v794_v43 = vld [vmem:[%s10572_s5 + $0xbb] sm:$0xff] }
  0xd4   : > { %924 = vrot.lane.b32.xlu0 %v9742_v46, %s10394_s28  ;;  %v9751_v46 = vpack.c.bf16 %v794_v43, %v794_v43 }
  0xd7   : > { %493 = vrot.lane.b32.xlu1 %v9683_v53, %s10394_s28  ;;  %v358_v53 = vld [vmem:[%s10572_s5 + $0xc1] sm:$0xff] }
  0xd8   : > { %491 = vrot.lane.b32.xlu0 %v9682_v57, %s10394_s28  ;;  %v9690_v57 = vpack.c.bf16 %v358_v53, %v358_v53 }
  0xdb   : > { %930 = vrot.lane.b32.xlu1 %v9745_v62, %s10394_s28  ;;  %v9753_v62 = vpack.c.bf16 %v796_v58, %v796_v58 }
  0xdc   : > { %928 = vrot.lane.b32.xlu0 %v9744_v1, %s10394_s28  ;;  %v9752_v1 = vpack.c.bf16 %v795_v61, %v795_v61 }
  0xdf   : > { %497 = vrot.lane.b32.xlu1 %v9685_v6, %s10394_s28  ;;  %v9693_v6 = vpack.c.bf16 %v361_v2, %v361_v2 }
  0xe0   : > { %495 = vrot.lane.b32.xlu0 %v9684_v9, %s10394_s28  ;;  %v9692_v9 = vpack.c.bf16 %v360_v5, %v360_v5 }
  0xe3   : > { %934 = vrot.lane.b32.xlu1 %v9747_v15, %s10394_s28  ;;  %v9755_v15 = vpack.c.bf16 %v798_v12, %v798_v12 }
  0xe4   : > { %932 = vrot.lane.b32.xlu0 %v9746_v18, %s10394_s28  ;;  %v362_v18 = vld [vmem:[%s10572_s5 + $0xe1] sm:$0xff] }
  0xe7   : > { %501 = vrot.lane.b32.xlu1 %v9687_v23, %s10394_s28  ;;  %v9694_v23 = vpack.c.bf16 %v362_v18, %v362_v18 }
  0xe8   : > { %499 = vrot.lane.b32.xlu0 %v9686_v14, %s10394_s28  ;;  %v799_v14 = vld [vmem:[%s10572_s5 + $0xe3] sm:$0xff]  ;;  %s4173_s5 = sshra.s32 %s10378_s4, 1  ;;  %s143_s4 = sadd.s32 1, %s10378_s4  }
  0xe9   : > { %v9756_v28 = vpack.c.bf16 %v799_v14, %v799_v14  ;;  %s9057_s13 = smul.u32 18, %s4173_s5  ;;  %p140_p8 = scmp.ge.s32.totalorder %s143_s4, 2  }
  0xea   :  { %s10402_s0 = smov (%p140_p8), [#allocation18]  }
  0xeb   : > { %938 = vrot.lane.b32.xlu1 %v9749_v31, %s10394_s28  ;;  %s4179_s9 = sadd.s32 %s9057_s13, %s4176_s21  ;;  %s8696_s1 = sshll.u32 (%p140_p8), %s10402_s0, 4  ;;  %s8697_s1 = int_to_ptr.vmem [resolvable:$true] %s8696_s1 }
  0xec   : > { %936 = vrot.lane.b32.xlu0 %v9748_v34, %s10394_s28  ;;  %v9696_v34 = vpack.c.bf16 %v364_v30, %v364_v30  ;;  %s13179_s22 = scalar_lea.vmem [#allocation3], %s4179_s9  ;;  %s10338_s4 = scalar_lea.vmem (%p140_p8), %s8697_s1, 256 }
  0xed   :  { %p10339_p9 = scmp.ne.s32.totalorder (%p140_p8), %s8697_s1, %s10338_s4  ;;  %p10343_p10 = scmp.lt.s32.totalorder (%p140_p8), %s8697_s1, %s8697_s1 }
  0xee   :  { %p10344_p11 = scmp.lt.s32.totalorder (%p140_p8), %s10338_s4, %s10338_s4 }
  0xef   : > { %505 = vrot.lane.b32.xlu1 %v9689_v39, %s10394_s28 }
  0xf0   : > { %503 = vrot.lane.b32.xlu0 %v9688_v42, %s10394_s28  ;;  %p10345_p12 = por (%p140_p8), %p10344_p11, %p10343_p10 }
  0xf2   :  { %p10346_p13 = pnand (%p140_p8), %p10345_p12, %p10339_p9 }
  0xf3   : > { %942 = vrot.lane.b32.xlu1 %v9751_v46, %s10394_s28 }
  0xf4   : > { %940 = vrot.lane.b32.xlu0 %v9750_v49, %s10394_s28 }
  0xf7   : > { %509 = vrot.lane.b32.xlu1 %v9691_v54, %s10394_s28 }
  0xf8   : > { %507 = vrot.lane.b32.xlu0 %v9690_v57, %s10394_s28 }
  0xfb   : > { %946 = vrot.lane.b32.xlu1 %v9753_v62, %s10394_s28 }
  0xfc   : > { %944 = vrot.lane.b32.xlu0 %v9752_v1, %s10394_s28 }
  0xff   : > { %513 = vrot.lane.b32.xlu1 %v9693_v6, %s10394_s28 }
 0x100   : > { %511 = vrot.lane.b32.xlu0 %v9692_v9, %s10394_s28 }
 0x103   : > { %950 = vrot.lane.b32.xlu1 %v9755_v15, %s10394_s28 }
 0x104   : > { %948 = vrot.lane.b32.xlu0 %v9754_v16, %s10394_s28 }
 0x107   : > { %517 = vrot.lane.b32.xlu1 %v9695_v22, %s10394_s28 }
 0x108   : > { %515 = vrot.lane.b32.xlu0 %v9694_v23, %s10394_s28 }
 0x109   : > { %v897_v31 = vpop.permute.xlu1 %896 }
 0x10a   : > { %v460_v32 = vpop.permute.xlu0 %459  ;;  %989 = vst.msk [vmem:[#allocation2 + $0x4] sm:$0xf] %vm552_vm1, %v897_v31 }
 0x10b   : > { %553 = vst.msk [vmem:[#allocation2] sm:$0xf] %vm552_vm1, %v460_v32  ;;  %954 = vrot.lane.b32.xlu1 %v9757_v27, %s10394_s28 }
 0x10c   : > { %952 = vrot.lane.b32.xlu0 %v9756_v28, %s10394_s28 }
 0x10d   : > { %v899_v35 = vpop.permute.xlu1 %898 }
 0x10e   : > { %v462_v36 = vpop.permute.xlu0 %461  ;;  %990 = vst.msk [vmem:[#allocation2 + $0xc] sm:$0xf] %vm552_vm1, %v899_v35 }
 0x10f   : > { %554 = vst.msk [vmem:[#allocation2 + $0x8] sm:$0xf] %vm552_vm1, %v462_v36  ;;  %956 = vrot.lane.b32.xlu1 %v9758_v33, %s10394_s28 }
 0x110   : > { %519 = vrot.lane.b32.xlu0 %v9696_v34, %s10394_s28 }
 0x111   : > { %v466_v37 = vpop.permute.xlu1 %465 }
 0x112   : > { %v464_v38 = vpop.permute.xlu0 %463  ;;  %556 = vst.msk [vmem:[#allocation2 + $0x18] sm:$0xf] %vm552_vm1, %v466_v37 }
 0x113   : > { %555 = vst.msk [vmem:[#allocation2 + $0x10] sm:$0xf] %vm552_vm1, %v464_v38 }
 0x115   : > { %v903_v39 = vpop.permute.xlu1 %902  ;;  %v9908_v42 = vld [vmem:[#allocation2 + $0x4] ss:$8 sps:$4 sm:$0xff]  }
 0x116   : > { %v901_v40 = vpop.permute.xlu0 %900  ;;  %v9906_v41 = vld [vmem:[#allocation2] ss:$8 sps:$4 sm:$0xff]   ;;  %992 = vst.msk [vmem:[#allocation2 + $0x1c] sm:$0xf] %vm552_vm1, %v903_v39  ;;  %1444 = vmatprep.mubr.bf16.mxu0 %v9908_v42 }
 0x117   : > { %991 = vst.msk [vmem:[#allocation2 + $0x14] sm:$0xf] %vm552_vm1, %v901_v40  ;;  %1445 = vmatmul.mubr.bf16.vlgmr.msra.gmra.mrb[0].mxu0 %v9906_v41 }
 0x119   : > { %v470_v43 = vpop.permute.xlu1 %469 }
 0x11a   : > { %v468_v44 = vpop.permute.xlu0 %467  ;;  %558 = vst.msk [vmem:[#allocation2 + $0x28] sm:$0xf] %vm552_vm1, %v470_v43 }
 0x11b   : > { %557 = vst.msk [vmem:[#allocation2 + $0x20] sm:$0xf] %vm552_vm1, %v468_v44 }
 0x11d   : > { %v907_v45 = vpop.permute.xlu1 %906  ;;  %v1023_v47 = vld [vmem:[#allocation2 + $0x18] sm:$0xff] }
 0x11e   : > { %v905_v24 = vpop.permute.xlu0 %904  ;;  %v1022_v46 = vld [vmem:[#allocation2 + $0x10] sm:$0xff]  ;;  %994 = vst.msk [vmem:[#allocation2 + $0x2c] sm:$0xf] %vm552_vm1, %v907_v45 }
 0x11f   : > { %v9909_v48 = vld [vmem:[#allocation2 + $0x14] ss:$8 sps:$4 sm:$0xff]   ;;  %993 = vst.msk [vmem:[#allocation2 + $0x24] sm:$0xf] %vm552_vm1, %v905_v24  ;;  %v8876_v49 = vcombine.low %v1022_v46, %v1023_v47 }
 0x120   : > { %1454 = vmatprep.mubr.bf16.mxu0 %v9909_v48 }
 0x121   : > { %1455 = vmatmul.mubr.bf16.gmra.mrb[4].mxu0 %v8876_v49  ;;  %v474_v50 = vpop.permute.xlu1 %473 }
 0x122   : > { %v472_v51 = vpop.permute.xlu0 %471  ;;  %560 = vst.msk [vmem:[#allocation2 + $0x38] sm:$0xf] %vm552_vm1, %v474_v50 }
 0x123   : > { %559 = vst.msk [vmem:[#allocation2 + $0x30] sm:$0xf] %vm552_vm1, %v472_v51 }
 0x125   : > { %v911_v52 = vpop.permute.xlu1 %910  ;;  %v1025_v55 = vld [vmem:[#allocation2 + $0x28] sm:$0xff] }
 0x126   : > { %v909_v53 = vpop.permute.xlu0 %908  ;;  %v1024_v54 = vld [vmem:[#allocation2 + $0x20] sm:$0xff]  ;;  %996 = vst.msk [vmem:[#allocation2 + $0x3c] sm:$0xf] %vm552_vm1, %v911_v52 }
 0x127   : > { %v9911_v56 = vld [vmem:[#allocation2 + $0x24] ss:$8 sps:$4 sm:$0xff]   ;;  %995 = vst.msk [vmem:[#allocation2 + $0x34] sm:$0xf] %vm552_vm1, %v909_v53  ;;  %v8878_v57 = vcombine.low %v1024_v54, %v1025_v55 }
 0x128   : > { %1464 = vmatprep.mubr.bf16.mxu0 %v9911_v56 }
 0x129   : > { %1465 = vmatmul.mubr.bf16.gmra.mrb[8].mxu0 %v8878_v57  ;;  %v478_v58 = vpop.permute.xlu1 %477 }
 0x12a   : > { %v476_v59 = vpop.permute.xlu0 %475  ;;  %562 = vst.msk [vmem:[#allocation2 + $0x48] sm:$0xf] %vm552_vm1, %v478_v58 }
 0x12b   : > { %561 = vst.msk [vmem:[#allocation2 + $0x40] sm:$0xf] %vm552_vm1, %v476_v59 }
 0x12d   : > { %v915_v60 = vpop.permute.xlu1 %914  ;;  %v1027_v63 = vld [vmem:[#allocation2 + $0x38] sm:$0xff] }
 0x12e   : > { %v913_v61 = vpop.permute.xlu0 %912  ;;  %v1026_v62 = vld [vmem:[#allocation2 + $0x30] sm:$0xff]  ;;  %998 = vst.msk [vmem:[#allocation2 + $0x4c] sm:$0xf] %vm552_vm1, %v915_v60 }
 0x12f   : > { %v9913_v0 = vld [vmem:[#allocation2 + $0x34] ss:$8 sps:$4 sm:$0xff]   ;;  %997 = vst.msk [vmem:[#allocation2 + $0x44] sm:$0xf] %vm552_vm1, %v913_v61  ;;  %v8880_v1 = vcombine.low %v1026_v62, %v1027_v63 }
 0x130   : > { %1474 = vmatprep.mubr.bf16.mxu0 %v9913_v0 }
 0x131   : > { %1475 = vmatmul.mubr.bf16.gmra.mrb[12].mxu0 %v8880_v1  ;;  %v482_v2 = vpop.permute.xlu1 %481 }
 0x132   : > { %v480_v3 = vpop.permute.xlu0 %479  ;;  %564 = vst.msk [vmem:[#allocation2 + $0x58] sm:$0xf] %vm552_vm1, %v482_v2 }
 0x133   : > { %563 = vst.msk [vmem:[#allocation2 + $0x50] sm:$0xf] %vm552_vm1, %v480_v3 }
 0x135   : > { %v919_v4 = vpop.permute.xlu1 %918  ;;  %v1029_v7 = vld [vmem:[#allocation2 + $0x48] sm:$0xff] }
 0x136   : > { %v917_v5 = vpop.permute.xlu0 %916  ;;  %v1028_v6 = vld [vmem:[#allocation2 + $0x40] sm:$0xff]  ;;  %1000 = vst.msk [vmem:[#allocation2 + $0x5c] sm:$0xf] %vm552_vm1, %v919_v4 }
 0x137   : > { %v9915_v8 = vld [vmem:[#allocation2 + $0x44] ss:$8 sps:$4 sm:$0xff]   ;;  %999 = vst.msk [vmem:[#allocation2 + $0x54] sm:$0xf] %vm552_vm1, %v917_v5  ;;  %v8882_v9 = vcombine.low %v1028_v6, %v1029_v7 }
 0x138   : > { %1484 = vmatprep.mubr.bf16.mxu0 %v9915_v8 }
 0x139   : > { %1485 = vmatmul.mubr.bf16.gmra.mrb[16].mxu0 %v8882_v9  ;;  %v486_v10 = vpop.permute.xlu1 %485 }
 0x13a   : > { %v484_v11 = vpop.permute.xlu0 %483  ;;  %566 = vst.msk [vmem:[#allocation2 + $0x68] sm:$0xf] %vm552_vm1, %v486_v10 }
 0x13b   : > { %565 = vst.msk [vmem:[#allocation2 + $0x60] sm:$0xf] %vm552_vm1, %v484_v11 }
 0x13d   : > { %v923_v12 = vpop.permute.xlu1 %922  ;;  %v1031_v16 = vld [vmem:[#allocation2 + $0x58] sm:$0xff] }
 0x13e   : > { %v921_v13 = vpop.permute.xlu0 %920  ;;  %v1030_v15 = vld [vmem:[#allocation2 + $0x50] sm:$0xff]  ;;  %1002 = vst.msk [vmem:[#allocation2 + $0x6c] sm:$0xf] %vm552_vm1, %v923_v12 }
 0x13f   : > { %v9917_v17 = vld [vmem:[#allocation2 + $0x54] ss:$8 sps:$4 sm:$0xff]   ;;  %1001 = vst.msk [vmem:[#allocation2 + $0x64] sm:$0xf] %vm552_vm1, %v921_v13  ;;  %v8884_v18 = vcombine.low %v1030_v15, %v1031_v16 }
 0x140   : > { %1494 = vmatprep.mubr.bf16.mxu0 %v9917_v17 }
 0x141   : > { %1495 = vmatmul.mubr.bf16.gmra.mrb[20].mxu0 %v8884_v18  ;;  %v490_v19 = vpop.permute.xlu1 %489 }
 0x142   : > { %v488_v20 = vpop.permute.xlu0 %487  ;;  %568 = vst.msk [vmem:[#allocation2 + $0x78] sm:$0xf] %vm552_vm1, %v490_v19 }
 0x143   : > { %567 = vst.msk [vmem:[#allocation2 + $0x70] sm:$0xf] %vm552_vm1, %v488_v20 }
 0x145   : > { %v927_v21 = vpop.permute.xlu1 %926  ;;  %v1033_v25 = vld [vmem:[#allocation2 + $0x68] sm:$0xff] }
 0x146   : > { %v925_v22 = vpop.permute.xlu0 %924  ;;  %v1032_v23 = vld [vmem:[#allocation2 + $0x60] sm:$0xff]  ;;  %1004 = vst.msk [vmem:[#allocation2 + $0x7c] sm:$0xf] %vm552_vm1, %v927_v21 }
 0x147   : > { %v9919_v26 = vld [vmem:[#allocation2 + $0x64] ss:$8 sps:$4 sm:$0xff]   ;;  %1003 = vst.msk [vmem:[#allocation2 + $0x74] sm:$0xf] %vm552_vm1, %v925_v22  ;;  %v8886_v14 = vcombine.low %v1032_v23, %v1033_v25  ;;  %v13460_v25 = vlaneseq }
 0x148   : > { %1504 = vmatprep.mubr.bf16.mxu0 %v9919_v26 }
 0x149   : > { %1505 = vmatmul.mubr.bf16.gmra.mrb[24].mxu0 %v8886_v14  ;;  %v494_v27 = vpop.permute.xlu1 %493  ;;  %v11029_v26 = vshrl.u32 %v13460_v25, 7 }
 0x14a   : > { %v492_v28 = vpop.permute.xlu0 %491  ;;  %570 = vst.msk [vmem:[#allocation2 + $0x88] sm:$0xf] %vm552_vm1, %v494_v27  ;;  %v1083_v27 = vld [vmem:[#allocation4] sm:$0x3] }
 0x14b   : > { %569 = vst.msk [vmem:[#allocation2 + $0x80] sm:$0xf] %vm552_vm1, %v492_v28  ;;  %13682 = vst [vmem:[#allocation25_spill] sm:$0xff] %v11029_v26  ;;  %v11032_v14 = vsub.s32 0, %v11029_v26  ;;  %v11035_v28 = vsub.s32 1, %v11029_v26 }
 0x14d   : > { %v931_v29 = vpop.permute.xlu1 %930  ;;  %v1035_v32 = vld [vmem:[#allocation2 + $0x78] sm:$0xff]  ;;  %13683 = vst [vmem:[#allocation26_spill] sm:$0xff] %v11032_v14  ;;  %13684 = vst [vmem:[#allocation27_spill] sm:$0xff] %v11035_v28 }
 0x14e   : > { %v929_v30 = vpop.permute.xlu0 %928  ;;  %v1034_v31 = vld [vmem:[#allocation2 + $0x70] sm:$0xff]  ;;  %1006 = vst.msk [vmem:[#allocation2 + $0x8c] sm:$0xf] %vm552_vm1, %v931_v29  ;;  %v11038_v29 = vrot.slane %v1083_v27, %v11032_v14 }
 0x14f   : > { %v9921_v33 = vld [vmem:[#allocation2 + $0x74] ss:$8 sps:$4 sm:$0xff]   ;;  %1005 = vst.msk [vmem:[#allocation2 + $0x84] sm:$0xf] %vm552_vm1, %v929_v30  ;;  %v8888_v34 = vcombine.low %v1034_v31, %v1035_v32  ;;  %v11041_v30 = vrot.slane %v1083_v27, %v11035_v28 }
 0x150   : > { %1514 = vmatprep.mubr.bf16.mxu0 %v9921_v33 }
 0x151   : > { %1515 = vmatmul.mubr.bf16.gmra.mrb[28].mxu0 %v8888_v34  ;;  %v498_v35 = vpop.permute.xlu1 %497 }
 0x152   : > { %v496_v36 = vpop.permute.xlu0 %495  ;;  %572 = vst.msk [vmem:[#allocation2 + $0x98] sm:$0xf] %vm552_vm1, %v498_v35 }
 0x153   : > { %571 = vst.msk [vmem:[#allocation2 + $0x90] sm:$0xf] %vm552_vm1, %v496_v36 }
 0x155   : > { %v935_v37 = vpop.permute.xlu1 %934  ;;  %v1037_v40 = vld [vmem:[#allocation2 + $0x88] sm:$0xff] }
 0x156   : > { %v933_v38 = vpop.permute.xlu0 %932  ;;  %v1036_v39 = vld [vmem:[#allocation2 + $0x80] sm:$0xff]  ;;  %1008 = vst.msk [vmem:[#allocation2 + $0x9c] sm:$0xf] %vm552_vm1, %v935_v37 }
 0x157   : > { %v9923_v41 = vld [vmem:[#allocation2 + $0x84] ss:$8 sps:$4 sm:$0xff]   ;;  %1007 = vst.msk [vmem:[#allocation2 + $0x94] sm:$0xf] %vm552_vm1, %v933_v38  ;;  %v8890_v42 = vcombine.low %v1036_v39, %v1037_v40 }
 0x158   : > { %1524 = vmatprep.mubr.bf16.mxu0 %v9923_v41 }
 0x159   : > { %1525 = vmatmul.mubr.bf16.gmra.mrb[32].mxu0 %v8890_v42  ;;  %v502_v43 = vpop.permute.xlu1 %501 }
 0x15a   : > { %v500_v44 = vpop.permute.xlu0 %499  ;;  %574 = vst.msk [vmem:[#allocation2 + $0xa8] sm:$0xf] %vm552_vm1, %v502_v43 }
 0x15b   : > { %573 = vst.msk [vmem:[#allocation2 + $0xa0] sm:$0xf] %vm552_vm1, %v500_v44 }
 0x15d   : > { %v939_v45 = vpop.permute.xlu1 %938  ;;  %v1039_v47 = vld [vmem:[#allocation2 + $0x98] sm:$0xff] }
 0x15e   : > { %v937_v24 = vpop.permute.xlu0 %936  ;;  %v1038_v46 = vld [vmem:[#allocation2 + $0x90] sm:$0xff]  ;;  %1010 = vst.msk [vmem:[#allocation2 + $0xac] sm:$0xf] %vm552_vm1, %v939_v45 }
 0x15f   : > { %v9925_v48 = vld [vmem:[#allocation2 + $0x94] ss:$8 sps:$4 sm:$0xff]   ;;  %1009 = vst.msk [vmem:[#allocation2 + $0xa4] sm:$0xf] %vm552_vm1, %v937_v24  ;;  %v8892_v49 = vcombine.low %v1038_v46, %v1039_v47 }
 0x160   : > { %1534 = vmatprep.mubr.bf16.mxu0 %v9925_v48 }
 0x161   : > { %1535 = vmatmul.mubr.bf16.gmra.mrb[36].mxu0 %v8892_v49  ;;  %v506_v50 = vpop.permute.xlu1 %505 }
 0x162   : > { %v504_v51 = vpop.permute.xlu0 %503  ;;  %576 = vst.msk [vmem:[#allocation2 + $0xb8] sm:$0xf] %vm552_vm1, %v506_v50 }
 0x163   : > { %575 = vst.msk [vmem:[#allocation2 + $0xb0] sm:$0xf] %vm552_vm1, %v504_v51 }
 0x165   : > { %v943_v52 = vpop.permute.xlu1 %942  ;;  %v1041_v55 = vld [vmem:[#allocation2 + $0xa8] sm:$0xff] }
 0x166   : > { %v941_v53 = vpop.permute.xlu0 %940  ;;  %v1040_v54 = vld [vmem:[#allocation2 + $0xa0] sm:$0xff]  ;;  %1012 = vst.msk [vmem:[#allocation2 + $0xbc] sm:$0xf] %vm552_vm1, %v943_v52 }
 0x167   : > { %v9927_v56 = vld [vmem:[#allocation2 + $0xa4] ss:$8 sps:$4 sm:$0xff]   ;;  %1011 = vst.msk [vmem:[#allocation2 + $0xb4] sm:$0xf] %vm552_vm1, %v941_v53  ;;  %v8894_v57 = vcombine.low %v1040_v54, %v1041_v55 }
 0x168   : > { %1544 = vmatprep.mubr.bf16.mxu0 %v9927_v56 }
 0x169   : > { %1545 = vmatmul.mubr.bf16.gmra.mrb[40].mxu0 %v8894_v57  ;;  %v510_v58 = vpop.permute.xlu1 %509 }
 0x16a   : > { %v508_v59 = vpop.permute.xlu0 %507  ;;  %578 = vst.msk [vmem:[#allocation2 + $0xc8] sm:$0xf] %vm552_vm1, %v510_v58 }
 0x16b   : > { %577 = vst.msk [vmem:[#allocation2 + $0xc0] sm:$0xf] %vm552_vm1, %v508_v59 }
 0x16d   : > { %v947_v60 = vpop.permute.xlu1 %946  ;;  %v1043_v63 = vld [vmem:[#allocation2 + $0xb8] sm:$0xff] }
 0x16e   : > { %v945_v61 = vpop.permute.xlu0 %944  ;;  %v1042_v62 = vld [vmem:[#allocation2 + $0xb0] sm:$0xff]  ;;  %1014 = vst.msk [vmem:[#allocation2 + $0xcc] sm:$0xf] %vm552_vm1, %v947_v60 }
 0x16f   : > { %v9929_v0 = vld [vmem:[#allocation2 + $0xb4] ss:$8 sps:$4 sm:$0xff]   ;;  %1013 = vst.msk [vmem:[#allocation2 + $0xc4] sm:$0xf] %vm552_vm1, %v945_v61  ;;  %v8896_v1 = vcombine.low %v1042_v62, %v1043_v63 }
 0x170   : > { %1554 = vmatprep.mubr.bf16.mxu0 %v9929_v0 }
 0x171   : > { %1555 = vmatmul.mubr.bf16.gmra.mrb[44].mxu0 %v8896_v1  ;;  %v514_v2 = vpop.permute.xlu1 %513 }
 0x172   : > { %v512_v3 = vpop.permute.xlu0 %511  ;;  %580 = vst.msk [vmem:[#allocation2 + $0xd8] sm:$0xf] %vm552_vm1, %v514_v2  ;;  %v9943_v2 = vld [vmem:[#allocation7 + $0x4] ss:$8 sps:$4 sm:$0xff]  }
 0x173   : > { %579 = vst.msk [vmem:[#allocation2 + $0xd0] sm:$0xf] %vm552_vm1, %v512_v3  ;;  %9011 = vmatprep.mubr.msk.bf16.mxu1 %vm2062_vm2, %v9943_v2 }
 0x175   : > { %v951_v4 = vpop.permute.xlu1 %950  ;;  %v1045_v7 = vld [vmem:[#allocation2 + $0xc8] sm:$0xff] }
 0x176   : > { %v949_v5 = vpop.permute.xlu0 %948  ;;  %v1044_v6 = vld [vmem:[#allocation2 + $0xc0] sm:$0xff]  ;;  %1016 = vst.msk [vmem:[#allocation2 + $0xdc] sm:$0xf] %vm552_vm1, %v951_v4 }
 0x177   : > { %v9931_v8 = vld [vmem:[#allocation2 + $0xc4] ss:$8 sps:$4 sm:$0xff]   ;;  %1015 = vst.msk [vmem:[#allocation2 + $0xd4] sm:$0xf] %vm552_vm1, %v949_v5  ;;  %v8898_v9 = vcombine.low %v1044_v6, %v1045_v7 }
 0x178   : > { %1564 = vmatprep.mubr.bf16.mxu0 %v9931_v8 }
 0x179   : > { %1565 = vmatmul.mubr.bf16.gmra.mrb[48].mxu0 %v8898_v9  ;;  %v518_v10 = vpop.permute.xlu1 %517 }
 0x17a   : > { %v516_v11 = vpop.permute.xlu0 %515  ;;  %582 = vst.msk [vmem:[#allocation2 + $0xe8] sm:$0xf] %vm552_vm1, %v518_v10  ;;  %v9935_v16 = vld [vmem:[#allocation2 + $0xd0] ss:$8 sps:$4 sm:$0xff]  }
 0x17b   : > { %581 = vst.msk [vmem:[#allocation2 + $0xe0] sm:$0xf] %vm552_vm1, %v516_v11 }
 0x17d   : > { %v955_v12 = vpop.permute.xlu1 %954 }
 0x17e   : > { %v953_v13 = vpop.permute.xlu0 %952  ;;  %v9933_v15 = vld [vmem:[#allocation2 + $0xd4] ss:$8 sps:$4 sm:$0xff]   ;;  %1018 = vst.msk [vmem:[#allocation2 + $0xec] sm:$0xf] %vm552_vm1, %v955_v12 }
 0x17f   : > { %1017 = vst.msk [vmem:[#allocation2 + $0xe4] sm:$0xf] %vm552_vm1, %v953_v13  ;;  %1574 = vmatprep.mubr.bf16.mxu0 %v9933_v15 }
 0x181   : > { %1575 = vmatmul.mubr.bf16.gmra.mrb[52].mxu0 %v9935_v16  ;;  %v957_v17 = vpop.permute.xlu1 %956 }
 0x182   : > { %v520_v18 = vpop.permute.xlu0 %519  ;;  %1019 = vst.msk [vmem:[#allocation2 + $0xf4] sm:$0xf] %vm552_vm1, %v957_v17  ;;  %v9938_v20 = vld [vmem:[#allocation2 + $0xe0] ss:$8 sps:$4 sm:$0xff]  }
 0x183   : > { %583 = vst.msk [vmem:[#allocation2 + $0xf0] sm:$0xf] %vm552_vm1, %v520_v18 }
 0x186   : > { %v9936_v19 = vld [vmem:[#allocation2 + $0xe4] ss:$8 sps:$4 sm:$0xff]  }
 0x187   : > { %1584 = vmatprep.mubr.bf16.mxu0 %v9936_v19 }
 0x189   : > { %1585 = vmatmul.mubr.bf16.gmra.mrb[56].mxu0 %v9938_v20 }
 0x18a   : > { %v1050_v21 = vld [vmem:[#allocation2 + $0xf0] sm:$0xff] }
 0x18b   : > { %v8905_v22 = vcombine.high %v1050_v21, %v1050_v21  ;;  %v8904_v23 = vcombine.low %v1050_v21, %v1050_v21 }
 0x18d   : > { %1594 = vmatprep.mubr.bf16.mxu0 %v8905_v22 }
 0x191   : > { %1595 = vmatmul.mubr.bf16.gmra.mrb[60].mxu0 %v8904_v23 }
 0x1ea   : > { %v1446_v31 = vpop.f32.mrb[0].mxu0 }
 0x1eb   : > { %v11044_v32 = vadd.f32 %v1446_v31, %v11038_v29  ;;  %v1448_v33 = vpop.f32.mrb[1].mxu0 }
 0x1ec   : > { %v11047_v34 = vadd.f32 %v1448_v33, %v11041_v30  ;;  %v1450_v35 = vpop.f32.mrb[2].mxu0 }
 0x1ed   : > { %v1665_v36 = vmin.f32 %v11044_v32, 0.0  ;;  %v11051_v37 = vadd.f32 %v1450_v35, %v11038_v29  ;;  %v1452_v38 = vpop.f32.mrb[3].mxu0  ;;  %vm1603_vm3 = vcmp.gt.f32.partialorder %v11044_v32, 0.0 }
 0x1ee   : > { %v1666_v39 = vmin.f32 %v11047_v34, 0.0  ;;  %v11055_v40 = vadd.f32 %v1452_v38, %v11041_v30  ;;  %vm1604_vm4 = vcmp.gt.f32.partialorder %v11047_v34, 0.0 }
 0x1ef   : > { %v1727_v41 = vmul.f32 1.442695, %v1665_v36  ;;  %v1667_v42 = vmin.f32 %v11051_v37, 0.0  ;;  %vm1605_vm5 = vcmp.gt.f32.partialorder %v11051_v37, 0.0 }
 0x1f0   : > { %v1729_v43 = vmul.f32 1.442695, %v1666_v39  ;;  %v1668_v44 = vmin.f32 %v11055_v40, 0.0  ;;  %vm1606_vm6 = vcmp.gt.f32.partialorder %v11055_v40, 0.0 }
 0x1f1   : > { %9986 = vpow2.f32 %v1727_v41  ;;  %v1731_v45 = vmul.f32 1.442695, %v1667_v42 }
 0x1f2   : > { %9988 = vpow2.f32 %v1729_v43  ;;  %v1733_v24 = vmul.f32 1.442695, %v1668_v44 }
 0x1f3   : > { %9990 = vpow2.f32 %v1731_v45 }
 0x1f4   : > { %v1456_v46 = vpop.f32.mrb[4].mxu0  ;;  %9992 = vpow2.f32 %v1733_v24 }
 0x1f5   : > { %v11060_v47 = vadd.f32 %v1456_v46, %v11038_v29  ;;  %v1458_v48 = vpop.f32.mrb[5].mxu0 }
 0x1f6   : > { %v11063_v49 = vadd.f32 %v1458_v48, %v11041_v30  ;;  %v1460_v50 = vpop.f32.mrb[6].mxu0 }
 0x1f7   : > { %v1669_v51 = vmin.f32 %v11060_v47, 0.0  ;;  %v11067_v52 = vadd.f32 %v1460_v50, %v11038_v29  ;;  %v1462_v53 = vpop.f32.mrb[7].mxu0  ;;  %vm1607_vm7 = vcmp.gt.f32.partialorder %v11060_v47, 0.0 }
 0x1f8   : > { %v1670_v54 = vmin.f32 %v11063_v49, 0.0  ;;  %v11071_v55 = vadd.f32 %v1462_v53, %v11041_v30  ;;  %vm1608_vm8 = vcmp.gt.f32.partialorder %v11063_v49, 0.0 }
 0x1f9   : > { %v1735_v56 = vmul.f32 1.442695, %v1669_v51  ;;  %v1671_v57 = vmin.f32 %v11067_v52, 0.0  ;;  %vm1609_vm9 = vcmp.gt.f32.partialorder %v11067_v52, 0.0 }
 0x1fa   : > { %v1737_v58 = vmul.f32 1.442695, %v1670_v54  ;;  %v1672_v59 = vmin.f32 %v11071_v55, 0.0  ;;  %vm1610_vm10 = vcmp.gt.f32.partialorder %v11071_v55, 0.0 }
 0x1fb   : > { %9994 = vpow2.f32 %v1735_v56  ;;  %v1739_v60 = vmul.f32 1.442695, %v1671_v57  ;;  %v9987_v63 = vpop.eup %9986 }
 0x1fc   : > { %9996 = vpow2.f32 %v1737_v58  ;;  %v1741_v61 = vmul.f32 1.442695, %v1672_v59  ;;  %v1466_v62 = vpop.f32.mrb[8].mxu0  ;;  %v9989_v3 = vpop.eup %9988  ;;  %v8938_v11 = vadd.f32 -1.0, %v9987_v63 }
 0x1fd   : > { %9998 = vpow2.f32 %v1739_v60  ;;  %v11076_v0 = vadd.f32 %v1466_v62, %v11038_v29  ;;  %v1468_v1 = vpop.f32.mrb[9].mxu0  ;;  %v9991_v6 = vpop.eup %9990  ;;  %v8939_v10 = vadd.f32 -1.0, %v9989_v3 }
 0x1fe   : > { %10000 = vpow2.f32 %v1741_v61  ;;  %v11079_v4 = vadd.f32 %v1468_v1, %v11041_v30  ;;  %v1470_v5 = vpop.f32.mrb[10].mxu0  ;;  %v9993_v12 = vpop.eup %9992  ;;  %v8940_v16 = vadd.f32 -1.0, %v9991_v6  ;;  %v1913_v31 = vsel %vm1603_vm3, %v11044_v32, %v8938_v11 }
 0x1ff   : > { %v1673_v7 = vmin.f32 %v11076_v0, 0.0  ;;  %v11084_v8 = vadd.f32 %v1470_v5, %v11038_v29  ;;  %v1472_v9 = vpop.f32.mrb[11].mxu0  ;;  %v8941_v19 = vadd.f32 -1.0, %v9993_v12  ;;  %v1914_v22 = vsel %vm1604_vm4, %v11047_v34, %v8939_v10 }
 0x200   : > { %v1674_v13 = vmin.f32 %v11079_v4, 0.0  ;;  %v11089_v15 = vadd.f32 %v1472_v9, %v11041_v30  ;;  %v1915_v38 = vsel %vm1605_vm5, %v11051_v37, %v8940_v16  ;;  %vm1611_vm11 = vcmp.gt.f32.partialorder %v11076_v0, 0.0 }
 0x201   : > { %v1743_v17 = vmul.f32 1.442695, %v1673_v7  ;;  %v1675_v18 = vmin.f32 %v11084_v8, 0.0  ;;  %v1916_v27 = vsel %vm1606_vm6, %v11055_v40, %v8941_v19  ;;  %v1985_v42 = vpack.c.bf16 %v1915_v38, %v1913_v31 }
 0x202   : > { %v1745_v20 = vmul.f32 1.442695, %v1674_v13  ;;  %v1676_v21 = vmin.f32 %v11089_v15, 0.0  ;;  %v1986_v36 = vpack.c.bf16 %v1916_v27, %v1914_v22  ;;  %vm1612_vm12 = vcmp.gt.f32.partialorder %v11079_v4, 0.0 }
 0x203   : > { %10002 = vpow2.f32 %v1743_v17  ;;  %v1747_v23 = vmul.f32 1.442695, %v1675_v18  ;;  %vm1613_vm13 = vcmp.gt.f32.partialorder %v11084_v8, 0.0  ;;  %vm1614_vm14 = vcmp.gt.f32.partialorder %v11089_v15, 0.0 }
 0x204   : > { %10004 = vpow2.f32 %v1745_v20  ;;  %v1749_v33 = vmul.f32 1.442695, %v1676_v21  ;;  %v1476_v35 = vpop.f32.mrb[12].mxu0  ;;  %2085 = vmatprep.subr.bf16.mxu1 %v1986_v36 }
 0x205   : > { %v9995_v39 = vpop.eup %9994  ;;  %10006 = vpow2.f32 %v1747_v23  ;;  %v11103_v41 = vadd.f32 %v1476_v35, %v11038_v29  ;;  %v1478_v34 = vpop.f32.mrb[13].mxu0  ;;  %2086 = vmatpush1.bf16.msra.mxu1 %v1985_v42 }
 0x206   : > { %v9997_v43 = vpop.eup %9996  ;;  %10008 = vpow2.f32 %v1749_v33  ;;  %v11107_v40 = vadd.f32 %v1478_v34, %v11041_v30  ;;  %v1480_v32 = vpop.f32.mrb[14].mxu0  ;;  %v8942_v45 = vadd.f32 -1.0, %v9995_v39 }
 0x207   : > { %v9999_v44 = vpop.eup %9998  ;;  %v8943_v24 = vadd.f32 -1.0, %v9997_v43  ;;  %v1677_v37 = vmin.f32 %v11103_v41, 0.0  ;;  %v11111_v46 = vadd.f32 %v1480_v32, %v11038_v29  ;;  %v1482_v48 = vpop.f32.mrb[15].mxu0  ;;  %vm1615_vm15 = vcmp.gt.f32.partialorder %v11103_v41, 0.0 }
 0x208   : > { %v10001_v50 = vpop.eup %10000  ;;  %v8944_v51 = vadd.f32 -1.0, %v9999_v44  ;;  %v1678_v53 = vmin.f32 %v11107_v40, 0.0  ;;  %v11116_v54 = vadd.f32 %v1482_v48, %v11041_v30  ;;  %v1917_v1 = vsel %vm1607_vm7, %v11060_v47, %v8942_v45 }
 0x209   : > { %v8945_v56 = vadd.f32 -1.0, %v10001_v50  ;;  %v1751_v57 = vmul.f32 1.442695, %v1677_v37  ;;  %v1679_v58 = vmin.f32 %v11111_v46, 0.0  ;;  %v1918_v61 = vsel %vm1608_vm8, %v11063_v49, %v8943_v24 }
 0x20a   : > { %v1753_v59 = vmul.f32 1.442695, %v1678_v53  ;;  %v1680_v60 = vmin.f32 %v11116_v54, 0.0  ;;  %v1919_v6 = vsel %vm1609_vm9, %v11067_v52, %v8944_v51  ;;  %vm1616_vm0 = vcmp.gt.f32.partialorder %v11107_v40, 0.0 }
 0x20b   : > { %10010 = vpow2.f32 %v1751_v57  ;;  %v1755_v62 = vmul.f32 1.442695, %v1679_v58  ;;  %v1920_v63 = vsel %vm1610_vm10, %v11071_v55, %v8945_v56  ;;  %v1987_v10 = vpack.c.bf16 %v1919_v6, %v1917_v1 }
 0x20c   : > { %10012 = vpow2.f32 %v1753_v59  ;;  %v1757_v2 = vmul.f32 1.442695, %v1680_v60  ;;  %v1486_v3 = vpop.f32.mrb[16].mxu0  ;;  %v1988_v5 = vpack.c.bf16 %v1920_v63, %v1918_v61  ;;  %vm1617_vm1 = vcmp.gt.f32.partialorder %v11111_v46, 0.0 }
 0x20d   : > { %v10003_v7 = vpop.eup %10002  ;;  %10014 = vpow2.f32 %v1755_v62  ;;  %v11131_v49 = vadd.f32 %v1486_v3, %v11038_v29  ;;  %v1488_v9 = vpop.f32.mrb[17].mxu0  ;;  %vm1618_vm3 = vcmp.gt.f32.partialorder %v11116_v54, 0.0 }
 0x20e   : > { %v10005_v55 = vpop.eup %10004  ;;  %10016 = vpow2.f32 %v1757_v2  ;;  %v11135_v47 = vadd.f32 %v1488_v9, %v11041_v30  ;;  %v1490_v11 = vpop.f32.mrb[18].mxu0  ;;  %2087 = vmatprep.subr.bf16.mxu1 %v1988_v5  ;;  %v8946_v13 = vadd.f32 -1.0, %v10003_v7 }
 0x20f   : > { %v10007_v12 = vpop.eup %10006  ;;  %v8947_v16 = vadd.f32 -1.0, %v10005_v55  ;;  %v1681_v52 = vmin.f32 %v11131_v49, 0.0  ;;  %v11139_v17 = vadd.f32 %v1490_v11, %v11038_v29  ;;  %v1492_v18 = vpop.f32.mrb[19].mxu0  ;;  %2088 = vmatpush1.bf16.msra.mxu1 %v1987_v10  ;;  %vm1619_vm4 = vcmp.gt.f32.partialorder %v11131_v49, 0.0 }
 0x210   : > { %v10009_v19 = vpop.eup %10008  ;;  %v8948_v20 = vadd.f32 -1.0, %v10007_v12  ;;  %v1682_v21 = vmin.f32 %v11135_v47, 0.0  ;;  %v11144_v22 = vadd.f32 %v1492_v18, %v11041_v30  ;;  %v1921_v34 = vsel %vm1611_vm11, %v11076_v0, %v8946_v13 }
 0x211   : > { %v8949_v23 = vadd.f32 -1.0, %v10009_v19  ;;  %v1759_v27 = vmul.f32 1.442695, %v1681_v52  ;;  %v1683_v31 = vmin.f32 %v11139_v17, 0.0  ;;  %v1922_v36 = vsel %vm1612_vm12, %v11079_v4, %v8947_v16 }
 0x212   : > { %v1761_v33 = vmul.f32 1.442695, %v1682_v21  ;;  %v1684_v35 = vmin.f32 %v11144_v22, 0.0  ;;  %v1923_v44 = vsel %vm1613_vm13, %v11084_v8, %v8948_v20  ;;  %vm1620_vm5 = vcmp.gt.f32.partialorder %v11135_v47, 0.0 }
 0x213   : > { %10018 = vpow2.f32 %v1759_v27  ;;  %v1763_v38 = vmul.f32 1.442695, %v1683_v31  ;;  %v1924_v39 = vsel %vm1614_vm14, %v11089_v15, %v8949_v23  ;;  %v1989_v37 = vpack.c.bf16 %v1923_v44, %v1921_v34 }
 0x214   : > { %10020 = vpow2.f32 %v1761_v33  ;;  %v1765_v42 = vmul.f32 1.442695, %v1684_v35  ;;  %v1496_v43 = vpop.f32.mrb[20].mxu0  ;;  %v1990_v32 = vpack.c.bf16 %v1924_v39, %v1922_v36  ;;  %vm1621_vm6 = vcmp.gt.f32.partialorder %v11139_v17, 0.0 }
 0x215   : > { %v10011_v45 = vpop.eup %10010  ;;  %10022 = vpow2.f32 %v1763_v38  ;;  %v11159_v4 = vadd.f32 %v1496_v43, %v11038_v29  ;;  %v1498_v24 = vpop.f32.mrb[21].mxu0  ;;  %vm1622_vm7 = vcmp.gt.f32.partialorder %v11144_v22, 0.0 }
 0x216   : > { %v10013_v15 = vpop.eup %10012  ;;  %10024 = vpow2.f32 %v1765_v42  ;;  %v11163_v0 = vadd.f32 %v1498_v24, %v11041_v30  ;;  %v1500_v48 = vpop.f32.mrb[22].mxu0  ;;  %2089 = vmatprep.subr.bf16.mxu1 %v1990_v32  ;;  %v8950_v51 = vadd.f32 -1.0, %v10011_v45 }
 0x217   : > { %v10015_v50 = vpop.eup %10014  ;;  %v8951_v53 = vadd.f32 -1.0, %v10013_v15  ;;  %v1685_v8 = vmin.f32 %v11159_v4, 0.0  ;;  %v11167_v56 = vadd.f32 %v1500_v48, %v11038_v29  ;;  %v1502_v57 = vpop.f32.mrb[23].mxu0  ;;  %2090 = vmatpush1.bf16.msra.mxu1 %v1989_v37  ;;  %vm1623_vm8 = vcmp.gt.f32.partialorder %v11159_v4, 0.0 }
 0x218   : > { %v10017_v58 = vpop.eup %10016  ;;  %v8952_v59 = vadd.f32 -1.0, %v10015_v50  ;;  %v1686_v60 = vmin.f32 %v11163_v0, 0.0  ;;  %v11172_v61 = vadd.f32 %v1502_v57, %v11041_v30  ;;  %v1925_v9 = vsel %vm1615_vm15, %v11103_v41, %v8950_v51 }
 0x219   : > { %v8953_v62 = vadd.f32 -1.0, %v10017_v58  ;;  %v1767_v63 = vmul.f32 1.442695, %v1685_v8  ;;  %v1687_v1 = vmin.f32 %v11167_v56, 0.0  ;;  %v1926_v5 = vsel %vm1616_vm0, %v11107_v40, %v8951_v53 }
 0x21a   : > { %v1769_v2 = vmul.f32 1.442695, %v1686_v60  ;;  %v1688_v3 = vmin.f32 %v11172_v61, 0.0  ;;  %v1927_v12 = vsel %vm1617_vm1, %v11111_v46, %v8952_v59  ;;  %vm1624_vm9 = vcmp.gt.f32.partialorder %v11163_v0, 0.0 }
 0x21b   : > { %10026 = vpow2.f32 %v1767_v63  ;;  %v1771_v6 = vmul.f32 1.442695, %v1687_v1  ;;  %v1928_v7 = vsel %vm1618_vm3, %v11116_v54, %v8953_v62  ;;  %v1991_v52 = vpack.c.bf16 %v1927_v12, %v1925_v9 }
 0x21c   : > { %10028 = vpow2.f32 %v1769_v2  ;;  %v1773_v10 = vmul.f32 1.442695, %v1688_v3  ;;  %v1506_v55 = vpop.f32.mrb[24].mxu0  ;;  %v1992_v11 = vpack.c.bf16 %v1928_v7, %v1926_v5  ;;  %vm1625_vm10 = vcmp.gt.f32.partialorder %v11167_v56, 0.0 }
 0x21d   : > { %v10019_v13 = vpop.eup %10018  ;;  %10030 = vpow2.f32 %v1771_v6  ;;  %v11187_v40 = vadd.f32 %v1506_v55, %v11038_v29  ;;  %v1508_v16 = vpop.f32.mrb[25].mxu0  ;;  %vm1626_vm11 = vcmp.gt.f32.partialorder %v11172_v61, 0.0 }
 0x21e   : > { %v10021_v54 = vpop.eup %10020  ;;  %10032 = vpow2.f32 %v1773_v10  ;;  %v11191_v41 = vadd.f32 %v1508_v16, %v11041_v30  ;;  %v1510_v18 = vpop.f32.mrb[26].mxu0  ;;  %2091 = vmatprep.subr.bf16.mxu1 %v1992_v11  ;;  %v8954_v20 = vadd.f32 -1.0, %v10019_v13 }
 0x21f   : > { %v10023_v19 = vpop.eup %10022  ;;  %v8955_v21 = vadd.f32 -1.0, %v10021_v54  ;;  %v1689_v46 = vmin.f32 %v11187_v40, 0.0  ;;  %v11195_v23 = vadd.f32 %v1510_v18, %v11038_v29  ;;  %v1512_v27 = vpop.f32.mrb[27].mxu0  ;;  %2092 = vmatpush1.bf16.msra.mxu1 %v1991_v52  ;;  %vm1627_vm12 = vcmp.gt.f32.partialorder %v11187_v40, 0.0 }
 0x220   : > { %v10025_v31 = vpop.eup %10024  ;;  %v8956_v33 = vadd.f32 -1.0, %v10023_v19  ;;  %v1690_v35 = vmin.f32 %v11191_v41, 0.0  ;;  %v11200_v36 = vadd.f32 %v1512_v27, %v11041_v30  ;;  %v1929_v24 = vsel %vm1619_vm4, %v11131_v49, %v8954_v20 }
 0x221   : > { %v8957_v38 = vadd.f32 -1.0, %v10025_v31  ;;  %v1775_v39 = vmul.f32 1.442695, %v1689_v46  ;;  %v1691_v34 = vmin.f32 %v11195_v23, 0.0  ;;  %v1930_v32 = vsel %vm1620_vm5, %v11135_v47, %v8955_v21 }
 0x222   : > { %v1777_v42 = vmul.f32 1.442695, %v1690_v35  ;;  %v1692_v43 = vmin.f32 %v11200_v36, 0.0  ;;  %v1931_v50 = vsel %vm1621_vm6, %v11139_v17, %v8956_v33  ;;  %vm1628_vm13 = vcmp.gt.f32.partialorder %v11191_v41, 0.0 }
 0x223   : > { %10034 = vpow2.f32 %v1775_v39  ;;  %v1779_v44 = vmul.f32 1.442695, %v1691_v34  ;;  %v1932_v45 = vsel %vm1622_vm7, %v11144_v22, %v8957_v38  ;;  %v1993_v8 = vpack.c.bf16 %v1931_v50, %v1929_v24 }
 0x224   : > { %10036 = vpow2.f32 %v1777_v42  ;;  %v1781_v37 = vmul.f32 1.442695, %v1692_v43  ;;  %v1516_v15 = vpop.f32.mrb[28].mxu0  ;;  %v1994_v48 = vpack.c.bf16 %v1932_v45, %v1930_v32  ;;  %vm1629_vm14 = vcmp.gt.f32.partialorder %v11195_v23, 0.0 }
 0x225   : > { %v10027_v51 = vpop.eup %10026  ;;  %10038 = vpow2.f32 %v1779_v44  ;;  %v11215_v47 = vadd.f32 %v1516_v15, %v11038_v29  ;;  %v1518_v53 = vpop.f32.mrb[29].mxu0  ;;  %vm1630_vm15 = vcmp.gt.f32.partialorder %v11200_v36, 0.0 }
 0x226   : > { %v10029_v22 = vpop.eup %10028  ;;  %10040 = vpow2.f32 %v1781_v37  ;;  %v11219_v49 = vadd.f32 %v1518_v53, %v11041_v30  ;;  %v1520_v57 = vpop.f32.mrb[30].mxu0  ;;  %2093 = vmatprep.subr.bf16.mxu1 %v1994_v48  ;;  %v8958_v59 = vadd.f32 -1.0, %v10027_v51 }
 0x227   : > { %v10031_v58 = vpop.eup %10030  ;;  %v8959_v60 = vadd.f32 -1.0, %v10029_v22  ;;  %v1693_v17 = vmin.f32 %v11215_v47, 0.0  ;;  %v11223_v62 = vadd.f32 %v1520_v57, %v11038_v29  ;;  %v1522_v63 = vpop.f32.mrb[31].mxu0  ;;  %2094 = vmatpush1.bf16.msra.mxu1 %v1993_v8  ;;  %vm1631_vm0 = vcmp.gt.f32.partialorder %v11215_v47, 0.0 }
 0x228   : > { %v10033_v1 = vpop.eup %10032  ;;  %v8960_v2 = vadd.f32 -1.0, %v10031_v58  ;;  %v1694_v3 = vmin.f32 %v11219_v49, 0.0  ;;  %v11228_v5 = vadd.f32 %v1522_v63, %v11041_v30  ;;  %v1933_v16 = vsel %vm1623_vm8, %v11159_v4, %v8958_v59 }
 0x229   : > { %v8961_v6 = vadd.f32 -1.0, %v10033_v1  ;;  %v1783_v7 = vmul.f32 1.442695, %v1693_v17  ;;  %v1695_v9 = vmin.f32 %v11223_v62, 0.0  ;;  %v1934_v11 = vsel %vm1624_vm9, %v11163_v0, %v8959_v60 }
 0x22a   : > { %v1785_v10 = vmul.f32 1.442695, %v1694_v3  ;;  %v1696_v55 = vmin.f32 %v11228_v5, 0.0  ;;  %v1935_v19 = vsel %vm1625_vm10, %v11167_v56, %v8960_v2  ;;  %vm1632_vm1 = vcmp.gt.f32.partialorder %v11219_v49, 0.0 }
 0x22b   : > { %10042 = vpow2.f32 %v1783_v7  ;;  %v1787_v12 = vmul.f32 1.442695, %v1695_v9  ;;  %v1936_v13 = vsel %vm1626_vm11, %v11172_v61, %v8961_v6  ;;  %v1995_v46 = vpack.c.bf16 %v1935_v19, %v1933_v16 }
 0x22c   : > { %10044 = vpow2.f32 %v1785_v10  ;;  %v1789_v52 = vmul.f32 1.442695, %v1696_v55  ;;  %v1526_v54 = vpop.f32.mrb[32].mxu0  ;;  %v1996_v18 = vpack.c.bf16 %v1936_v13, %v1934_v11  ;;  %vm1633_vm3 = vcmp.gt.f32.partialorder %v11223_v62, 0.0 }
 0x22d   : > { %v10035_v20 = vpop.eup %10034  ;;  %10046 = vpow2.f32 %v1787_v12  ;;  %v11243_v0 = vadd.f32 %v1526_v54, %v11038_v29  ;;  %v1528_v21 = vpop.f32.mrb[33].mxu0  ;;  %vm1634_vm4 = vcmp.gt.f32.partialorder %v11228_v5, 0.0 }
 0x22e   : > { %v10037_v61 = vpop.eup %10036  ;;  %10048 = vpow2.f32 %v1789_v52  ;;  %v11247_v4 = vadd.f32 %v1528_v21, %v11041_v30  ;;  %v1530_v27 = vpop.f32.mrb[34].mxu0  ;;  %2095 = vmatprep.subr.bf16.mxu1 %v1996_v18  ;;  %v8962_v33 = vadd.f32 -1.0, %v10035_v20 }
 0x22f   : > { %v10039_v31 = vpop.eup %10038  ;;  %v8963_v35 = vadd.f32 -1.0, %v10037_v61  ;;  %v1697_v56 = vmin.f32 %v11243_v0, 0.0  ;;  %v11251_v38 = vadd.f32 %v1530_v27, %v11038_v29  ;;  %v1532_v39 = vpop.f32.mrb[35].mxu0  ;;  %2096 = vmatpush1.bf16.msra.mxu1 %v1995_v46  ;;  %vm1635_vm5 = vcmp.gt.f32.partialorder %v11243_v0, 0.0 }
 0x230   : > { %v10041_v34 = vpop.eup %10040  ;;  %v8964_v42 = vadd.f32 -1.0, %v10039_v31  ;;  %v1698_v43 = vmin.f32 %v11247_v4, 0.0  ;;  %v11256_v32 = vadd.f32 %v1532_v39, %v11041_v30  ;;  %v1937_v53 = vsel %vm1627_vm12, %v11187_v40, %v8962_v33 }
 0x231   : > { %v8965_v44 = vadd.f32 -1.0, %v10041_v34  ;;  %v1791_v45 = vmul.f32 1.442695, %v1697_v56  ;;  %v1699_v24 = vmin.f32 %v11251_v38, 0.0  ;;  %v1938_v48 = vsel %vm1628_vm13, %v11191_v41, %v8963_v35 }
 0x232   : > { %v1793_v37 = vmul.f32 1.442695, %v1698_v43  ;;  %v1700_v15 = vmin.f32 %v11256_v32, 0.0  ;;  %v1939_v58 = vsel %vm1629_vm14, %v11195_v23, %v8964_v42  ;;  %vm1636_vm6 = vcmp.gt.f32.partialorder %v11247_v4, 0.0 }
 0x233   : > { %10050 = vpow2.f32 %v1791_v45  ;;  %v1795_v50 = vmul.f32 1.442695, %v1699_v24  ;;  %v1940_v51 = vsel %vm1630_vm15, %v11200_v36, %v8965_v44  ;;  %v1997_v17 = vpack.c.bf16 %v1939_v58, %v1937_v53 }
 0x234   : > { %10052 = vpow2.f32 %v1793_v37  ;;  %v1797_v8 = vmul.f32 1.442695, %v1700_v15  ;;  %v1536_v22 = vpop.f32.mrb[36].mxu0  ;;  %v1998_v57 = vpack.c.bf16 %v1940_v51, %v1938_v48  ;;  %vm1637_vm7 = vcmp.gt.f32.partialorder %v11251_v38, 0.0 }
 0x235   : > { %v10043_v59 = vpop.eup %10042  ;;  %10054 = vpow2.f32 %v1795_v50  ;;  %v11271_v41 = vadd.f32 %v1536_v22, %v11038_v29  ;;  %v1538_v60 = vpop.f32.mrb[37].mxu0  ;;  %vm1638_vm8 = vcmp.gt.f32.partialorder %v11256_v32, 0.0 }
 0x236   : > { %v10045_v36 = vpop.eup %10044  ;;  %10056 = vpow2.f32 %v1797_v8  ;;  %v11275_v40 = vadd.f32 %v1538_v60, %v11041_v30  ;;  %v1540_v63 = vpop.f32.mrb[38].mxu0  ;;  %2097 = vmatprep.subr.bf16.mxu1 %v1998_v57  ;;  %v8966_v2 = vadd.f32 -1.0, %v10043_v59 }
 0x237   : > { %v10047_v1 = vpop.eup %10046  ;;  %v8967_v3 = vadd.f32 -1.0, %v10045_v36  ;;  %v1701_v23 = vmin.f32 %v11271_v41, 0.0  ;;  %v11279_v6 = vadd.f32 %v1540_v63, %v11038_v29  ;;  %v1542_v7 = vpop.f32.mrb[39].mxu0  ;;  %2098 = vmatpush1.bf16.msra.mxu1 %v1997_v17  ;;  %vm1639_vm9 = vcmp.gt.f32.partialorder %v11271_v41, 0.0 }
 0x238   : > { %v10049_v9 = vpop.eup %10048  ;;  %v8968_v10 = vadd.f32 -1.0, %v10047_v1  ;;  %v1702_v55 = vmin.f32 %v11275_v40, 0.0  ;;  %v11284_v11 = vadd.f32 %v1542_v7, %v11041_v30  ;;  %v1941_v21 = vsel %vm1631_vm0, %v11215_v47, %v8966_v2 }
 0x239   : > { %v8969_v12 = vadd.f32 -1.0, %v10049_v9  ;;  %v1799_v13 = vmul.f32 1.442695, %v1701_v23  ;;  %v1703_v16 = vmin.f32 %v11279_v6, 0.0  ;;  %v1942_v18 = vsel %vm1632_vm1, %v11219_v49, %v8967_v3 }
 0x23a   : > { %v1801_v52 = vmul.f32 1.442695, %v1702_v55  ;;  %v1704_v54 = vmin.f32 %v11284_v11, 0.0  ;;  %v1943_v31 = vsel %vm1633_vm3, %v11223_v62, %v8968_v10  ;;  %vm1640_vm10 = vcmp.gt.f32.partialorder %v11275_v40, 0.0 }
 0x23b   : > { %10058 = vpow2.f32 %v1799_v13  ;;  %v1803_v19 = vmul.f32 1.442695, %v1703_v16  ;;  %v1944_v20 = vsel %vm1634_vm4, %v11228_v5, %v8969_v12  ;;  %v1999_v56 = vpack.c.bf16 %v1943_v31, %v1941_v21 }
 0x23c   : > { %10060 = vpow2.f32 %v1801_v52  ;;  %v1805_v46 = vmul.f32 1.442695, %v1704_v54  ;;  %v1546_v61 = vpop.f32.mrb[40].mxu0  ;;  %v2000_v27 = vpack.c.bf16 %v1944_v20, %v1942_v18  ;;  %vm1641_vm11 = vcmp.gt.f32.partialorder %v11279_v6, 0.0 }
 0x23d   : > { %v10051_v33 = vpop.eup %10050  ;;  %10062 = vpow2.f32 %v1803_v19  ;;  %v11299_v49 = vadd.f32 %v1546_v61, %v11038_v29  ;;  %v1548_v35 = vpop.f32.mrb[41].mxu0  ;;  %vm1642_vm12 = vcmp.gt.f32.partialorder %v11284_v11, 0.0 }
 0x23e   : > { %v10053_v5 = vpop.eup %10052  ;;  %10064 = vpow2.f32 %v1805_v46  ;;  %v11303_v47 = vadd.f32 %v1548_v35, %v11041_v30  ;;  %v1550_v39 = vpop.f32.mrb[42].mxu0  ;;  %2099 = vmatprep.subr.bf16.mxu1 %v2000_v27  ;;  %v8970_v42 = vadd.f32 -1.0, %v10051_v33 }
 0x23f   : > { %v10055_v34 = vpop.eup %10054  ;;  %v8971_v43 = vadd.f32 -1.0, %v10053_v5  ;;  %v1705_v62 = vmin.f32 %v11299_v49, 0.0  ;;  %v11307_v44 = vadd.f32 %v1550_v39, %v11038_v29  ;;  %v1552_v45 = vpop.f32.mrb[43].mxu0  ;;  %2100 = vmatpush1.bf16.msra.mxu1 %v1999_v56  ;;  %vm1643_vm13 = vcmp.gt.f32.partialorder %v11299_v49, 0.0 }
 0x240   : > { %v10057_v24 = vpop.eup %10056  ;;  %v8972_v37 = vadd.f32 -1.0, %v10055_v34  ;;  %v1706_v15 = vmin.f32 %v11303_v47, 0.0  ;;  %v11312_v48 = vadd.f32 %v1552_v45, %v11041_v30  ;;  %v1945_v60 = vsel %vm1635_vm5, %v11243_v0, %v8970_v42 }
 0x241   : > { %v8973_v50 = vadd.f32 -1.0, %v10057_v24  ;;  %v1807_v51 = vmul.f32 1.442695, %v1705_v62  ;;  %v1707_v53 = vmin.f32 %v11307_v44, 0.0  ;;  %v1946_v57 = vsel %vm1636_vm6, %v11247_v4, %v8971_v43 }
 0x242   : > { %v1809_v8 = vmul.f32 1.442695, %v1706_v15  ;;  %v1708_v22 = vmin.f32 %v11312_v48, 0.0  ;;  %v1947_v1 = vsel %vm1637_vm7, %v11251_v38, %v8972_v37  ;;  %vm1644_vm14 = vcmp.gt.f32.partialorder %v11303_v47, 0.0 }
 0x243   : > { %10066 = vpow2.f32 %v1807_v51  ;;  %v1811_v58 = vmul.f32 1.442695, %v1707_v53  ;;  %v1948_v59 = vsel %vm1638_vm8, %v11256_v32, %v8973_v50  ;;  %v2001_v23 = vpack.c.bf16 %v1947_v1, %v1945_v60 }
 0x244   : > { %10068 = vpow2.f32 %v1809_v8  ;;  %v1813_v17 = vmul.f32 1.442695, %v1708_v22  ;;  %v1556_v36 = vpop.f32.mrb[44].mxu0  ;;  %v2002_v63 = vpack.c.bf16 %v1948_v59, %v1946_v57  ;;  %vm1645_vm15 = vcmp.gt.f32.partialorder %v11307_v44, 0.0 }
 0x245   : > { %v10059_v2 = vpop.eup %10058  ;;  %10070 = vpow2.f32 %v1811_v58  ;;  %v11327_v4 = vadd.f32 %v1556_v36, %v11038_v29  ;;  %v1558_v3 = vpop.f32.mrb[45].mxu0  ;;  %vm1646_vm0 = vcmp.gt.f32.partialorder %v11312_v48, 0.0 }
 0x246   : > { %v10061_v32 = vpop.eup %10060  ;;  %10072 = vpow2.f32 %v1813_v17  ;;  %v11331_v0 = vadd.f32 %v1558_v3, %v11041_v30  ;;  %v1560_v7 = vpop.f32.mrb[46].mxu0  ;;  %2101 = vmatprep.subr.bf16.mxu1 %v2002_v63  ;;  %v8974_v10 = vadd.f32 -1.0, %v10059_v2 }
 0x247   : > { %v10063_v9 = vpop.eup %10062  ;;  %v8975_v55 = vadd.f32 -1.0, %v10061_v32  ;;  %v1709_v38 = vmin.f32 %v11327_v4, 0.0  ;;  %v11335_v12 = vadd.f32 %v1560_v7, %v11038_v29  ;;  %v1562_v13 = vpop.f32.mrb[47].mxu0  ;;  %2102 = vmatpush1.bf16.msra.mxu1 %v2001_v23  ;;  %vm1647_vm1 = vcmp.gt.f32.partialorder %v11327_v4, 0.0 }
 0x248   : > { %v10065_v16 = vpop.eup %10064  ;;  %v8976_v52 = vadd.f32 -1.0, %v10063_v9  ;;  %v1710_v54 = vmin.f32 %v11331_v0, 0.0  ;;  %v11340_v18 = vadd.f32 %v1562_v13, %v11041_v30  ;;  %v1949_v35 = vsel %vm1639_vm9, %v11271_v41, %v8974_v10 }
 0x249   : > { %v8977_v19 = vadd.f32 -1.0, %v10065_v16  ;;  %v1815_v20 = vmul.f32 1.442695, %v1709_v38  ;;  %v1711_v21 = vmin.f32 %v11335_v12, 0.0  ;;  %v1950_v27 = vsel %vm1640_vm10, %v11275_v40, %v8975_v55 }
 0x24a   : > { %v1817_v46 = vmul.f32 1.442695, %v1710_v54  ;;  %v1712_v61 = vmin.f32 %v11340_v18, 0.0  ;;  %v1951_v34 = vsel %vm1641_vm11, %v11279_v6, %v8976_v52  ;;  %vm1648_vm3 = vcmp.gt.f32.partialorder %v11331_v0, 0.0 }
 0x24b   : > { %10074 = vpow2.f32 %v1815_v20  ;;  %v1819_v31 = vmul.f32 1.442695, %v1711_v21  ;;  %v1952_v33 = vsel %vm1642_vm12, %v11284_v11, %v8977_v19  ;;  %v2003_v62 = vpack.c.bf16 %v1951_v34, %v1949_v35 }
 0x24c   : > { %10076 = vpow2.f32 %v1817_v46  ;;  %v1821_v56 = vmul.f32 1.442695, %v1712_v61  ;;  %v1566_v5 = vpop.f32.mrb[48].mxu0  ;;  %v2004_v39 = vpack.c.bf16 %v1952_v33, %v1950_v27  ;;  %vm1649_vm4 = vcmp.gt.f32.partialorder %v11335_v12, 0.0 }
 0x24d   : > { %v10067_v42 = vpop.eup %10066  ;;  %10078 = vpow2.f32 %v1819_v31  ;;  %v11355_v40 = vadd.f32 %v1566_v5, %v11038_v29  ;;  %v1568_v43 = vpop.f32.mrb[49].mxu0  ;;  %vm1650_vm5 = vcmp.gt.f32.partialorder %v11340_v18, 0.0 }
 0x24e   : > { %v10069_v11 = vpop.eup %10068  ;;  %10080 = vpow2.f32 %v1821_v56  ;;  %v11359_v41 = vadd.f32 %v1568_v43, %v11041_v30  ;;  %v1570_v45 = vpop.f32.mrb[50].mxu0  ;;  %2103 = vmatprep.subr.bf16.mxu1 %v2004_v39  ;;  %v8978_v37 = vadd.f32 -1.0, %v10067_v42 }
 0x24f   : > { %v10071_v24 = vpop.eup %10070  ;;  %v8979_v15 = vadd.f32 -1.0, %v10069_v11  ;;  %v1713_v6 = vmin.f32 %v11355_v40, 0.0  ;;  %v11363_v50 = vadd.f32 %v1570_v45, %v11038_v29  ;;  %v1572_v51 = vpop.f32.mrb[51].mxu0  ;;  %2104 = vmatpush1.bf16.msra.mxu1 %v2003_v62  ;;  %vm1651_vm6 = vcmp.gt.f32.partialorder %v11355_v40, 0.0 }
 0x250   : > { %v10073_v53 = vpop.eup %10072  ;;  %v8980_v8 = vadd.f32 -1.0, %v10071_v24  ;;  %v1714_v22 = vmin.f32 %v11359_v41, 0.0  ;;  %v11368_v57 = vadd.f32 %v1572_v51, %v11041_v30  ;;  %v1953_v3 = vsel %vm1643_vm13, %v11299_v49, %v8978_v37 }
 0x251   : > { %v8981_v58 = vadd.f32 -1.0, %v10073_v53  ;;  %v1823_v59 = vmul.f32 1.442695, %v1713_v6  ;;  %v1715_v60 = vmin.f32 %v11363_v50, 0.0  ;;  %v1954_v63 = vsel %vm1644_vm14, %v11303_v47, %v8979_v15 }
 0x252   : > { %v1825_v17 = vmul.f32 1.442695, %v1714_v22  ;;  %v1716_v36 = vmin.f32 %v11368_v57, 0.0  ;;  %v1955_v9 = vsel %vm1645_vm15, %v11307_v44, %v8980_v8  ;;  %vm1652_vm7 = vcmp.gt.f32.partialorder %v11359_v41, 0.0 }
 0x253   : > { %10082 = vpow2.f32 %v1823_v59  ;;  %v1827_v1 = vmul.f32 1.442695, %v1715_v60  ;;  %v1956_v2 = vsel %vm1646_vm0, %v11312_v48, %v8981_v58  ;;  %v2005_v38 = vpack.c.bf16 %v1955_v9, %v1953_v3 }
 0x254   : > { %10084 = vpow2.f32 %v1825_v17  ;;  %v1829_v23 = vmul.f32 1.442695, %v1716_v36  ;;  %v1576_v32 = vpop.f32.mrb[52].mxu0  ;;  %v2006_v7 = vpack.c.bf16 %v1956_v2, %v1954_v63  ;;  %vm1653_vm8 = vcmp.gt.f32.partialorder %v11363_v50, 0.0 }
 0x255   : > { %v10075_v10 = vpop.eup %10074  ;;  %10086 = vpow2.f32 %v1827_v1  ;;  %v11383_v47 = vadd.f32 %v1576_v32, %v11038_v29  ;;  %v1578_v55 = vpop.f32.mrb[53].mxu0  ;;  %vm1654_vm9 = vcmp.gt.f32.partialorder %v11368_v57, 0.0 }
 0x256   : > { %v10077_v48 = vpop.eup %10076  ;;  %10088 = vpow2.f32 %v1829_v23  ;;  %v11387_v49 = vadd.f32 %v1578_v55, %v11041_v30  ;;  %v1580_v13 = vpop.f32.mrb[54].mxu0  ;;  %2105 = vmatprep.subr.bf16.mxu1 %v2006_v7  ;;  %v8982_v52 = vadd.f32 -1.0, %v10075_v10 }
 0x257   : > { %v10079_v16 = vpop.eup %10078  ;;  %v8983_v54 = vadd.f32 -1.0, %v10077_v48  ;;  %v1717_v44 = vmin.f32 %v11383_v47, 0.0  ;;  %v11391_v19 = vadd.f32 %v1580_v13, %v11038_v29  ;;  %v1582_v20 = vpop.f32.mrb[55].mxu0  ;;  %2106 = vmatpush1.bf16.msra.mxu1 %v2005_v38  ;;  %vm1655_vm10 = vcmp.gt.f32.partialorder %v11383_v47, 0.0 }
 0x258   : > { %v10081_v21 = vpop.eup %10080  ;;  %v8984_v46 = vadd.f32 -1.0, %v10079_v16  ;;  %v1718_v61 = vmin.f32 %v11387_v49, 0.0  ;;  %v11396_v27 = vadd.f32 %v1582_v20, %v11041_v30  ;;  %v1957_v43 = vsel %vm1647_vm1, %v11327_v4, %v8982_v52 }
 0x259   : > { %v8985_v31 = vadd.f32 -1.0, %v10081_v21  ;;  %v1831_v33 = vmul.f32 1.442695, %v1717_v44  ;;  %v1719_v35 = vmin.f32 %v11391_v19, 0.0  ;;  %v1958_v39 = vsel %vm1648_vm3, %v11331_v0, %v8983_v54 }
 0x25a   : > { %v1833_v56 = vmul.f32 1.442695, %v1718_v61  ;;  %v1720_v5 = vmin.f32 %v11396_v27, 0.0  ;;  %v1959_v24 = vsel %vm1649_vm4, %v11335_v12, %v8984_v46  ;;  %vm1656_vm11 = vcmp.gt.f32.partialorder %v11387_v49, 0.0 }
 0x25b   : > { %10090 = vpow2.f32 %v1831_v33  ;;  %v1835_v34 = vmul.f32 1.442695, %v1719_v35  ;;  %v1960_v42 = vsel %vm1650_vm5, %v11340_v18, %v8985_v31  ;;  %v2007_v6 = vpack.c.bf16 %v1959_v24, %v1957_v43 }
 0x25c   : > { %10092 = vpow2.f32 %v1833_v56  ;;  %v1837_v62 = vmul.f32 1.442695, %v1720_v5  ;;  %v1586_v11 = vpop.f32.mrb[56].mxu0  ;;  %v2008_v45 = vpack.c.bf16 %v1960_v42, %v1958_v39  ;;  %vm1657_vm12 = vcmp.gt.f32.partialorder %v11391_v19, 0.0 }
 0x25d   : > { %v10083_v37 = vpop.eup %10082  ;;  %10094 = vpow2.f32 %v1835_v34  ;;  %v11411_v0 = vadd.f32 %v1586_v11, %v11038_v29  ;;  %v1588_v15 = vpop.f32.mrb[57].mxu0  ;;  %vm1658_vm13 = vcmp.gt.f32.partialorder %v11396_v27, 0.0  ;;  %vm2078_vm5 = vcmask 1043456  }
 0x25e   : > { %v10085_v18 = vpop.eup %10084  ;;  %10096 = vpow2.f32 %v1837_v62  ;;  %v11415_v4 = vadd.f32 %v1588_v15, %v11041_v30  ;;  %v1590_v51 = vpop.f32.mrb[58].mxu0  ;;  %2107 = vmatprep.subr.bf16.mxu1 %v2008_v45  ;;  %v8986_v8 = vadd.f32 -1.0, %v10083_v37 }
 0x25f   : > { %v10087_v53 = vpop.eup %10086  ;;  %v8987_v22 = vadd.f32 -1.0, %v10085_v18  ;;  %v1721_v12 = vmin.f32 %v11411_v0, 0.0  ;;  %v11419_v58 = vadd.f32 %v1590_v51, %v11038_v29  ;;  %v1592_v59 = vpop.f32.mrb[59].mxu0  ;;  %2108 = vmatpush1.bf16.msra.mxu1 %v2007_v6  ;;  %vm1659_vm14 = vcmp.gt.f32.partialorder %v11411_v0, 0.0 }
 0x260   : > { %v10089_v60 = vpop.eup %10088  ;;  %v8988_v17 = vadd.f32 -1.0, %v10087_v53  ;;  %v1722_v36 = vmin.f32 %v11415_v4, 0.0  ;;  %v11424_v63 = vadd.f32 %v1592_v59, %v11041_v30  ;;  %v1961_v55 = vsel %vm1651_vm6, %v11355_v40, %v8986_v8 }
 0x261   : > { %v8989_v1 = vadd.f32 -1.0, %v10089_v60  ;;  %v1839_v2 = vmul.f32 1.442695, %v1721_v12  ;;  %v1723_v3 = vmin.f32 %v11419_v58, 0.0  ;;  %v1962_v7 = vsel %vm1652_vm7, %v11359_v41, %v8987_v22 }
 0x262   : > { %v1841_v23 = vmul.f32 1.442695, %v1722_v36  ;;  %v1724_v32 = vmin.f32 %v11424_v63, 0.0  ;;  %v1963_v16 = vsel %vm1653_vm8, %v11363_v50, %v8988_v17  ;;  %vm1661_vm15 = vcmp.gt.f32.partialorder %v11419_v58, 0.0 }
 0x263   : > { %10098 = vpow2.f32 %v1839_v2  ;;  %v1843_v9 = vmul.f32 1.442695, %v1723_v3  ;;  %v1964_v10 = vsel %vm1654_vm9, %v11368_v57, %v8989_v1  ;;  %v2009_v44 = vpack.c.bf16 %v1963_v16, %v1961_v55  ;;  %v9946_v3 = vld [vmem:[#allocation7 + $0x10] ss:$8 sps:$4 sm:$0xff]   ;;  %v9961_v16 = vld [vmem:[#allocation10 + $0x14] ss:$8 sps:$4 sm:$0xff]  }
 0x264   : > { %10100 = vpow2.f32 %v1841_v23  ;;  %v1845_v38 = vmul.f32 1.442695, %v1724_v32  ;;  %v1596_v48 = vpop.f32.mrb[60].mxu0  ;;  %v2010_v13 = vpack.c.bf16 %v1964_v10, %v1962_v7  ;;  %vm1660_vm0 = vcmp.gt.f32.partialorder %v11415_v4, 0.0  ;;  %v9947_v23 = vld [vmem:[#allocation7 + $0x24] ss:$8 sps:$4 sm:$0xff]  }
 0x265   : > { %v10091_v52 = vpop.eup %10090  ;;  %10102 = vpow2.f32 %v1843_v9  ;;  %v1597_v41 = vadd.f32 %v1596_v48, %v11038_v29  ;;  %v1598_v54 = vpop.f32.mrb[61].mxu0  ;;  %vm1662_vm1 = vcmp.gt.f32.partialorder %v11424_v63, 0.0  ;;  %v9949_v32 = vld [vmem:[#allocation7 + $0x20] ss:$8 sps:$4 sm:$0xff]   ;;  %v9950_v7 = vld [vmem:[#allocation7 + $0x34] ss:$8 sps:$4 sm:$0xff]  }
 0x266   : > { %v10093_v20 = vpop.eup %10092  ;;  %v8990_v57 = vadd.f32 -1.0, %v10091_v52  ;;  %10104 = vpow2.f32 %v1845_v38  ;;  %v1599_v21 = vadd.f32 %v1598_v54, %v11041_v30  ;;  %v1600_v40 = vpop.f32.mrb[62].mxu0  ;;  %2109 = vmatprep.subr.bf16.mxu1 %v2010_v13  ;;  %v9952_v9 = vld [vmem:[#allocation7 + $0x30] ss:$8 sps:$4 sm:$0xff]   ;;  %v9958_v48 = vld [vmem:[#allocation10 + $0x4] ss:$8 sps:$4 sm:$0xff]  }
 0x267   : > { %v10095_v46 = vpop.eup %10094  ;;  %v8991_v61 = vadd.f32 -1.0, %v10093_v20  ;;  %v1725_v31 = vmin.f32 %v1597_v41, 0.0  ;;  %v1601_v33 = vpop.f32.mrb[63].mxu0  ;;  %2110 = vmatpush1.bf16.msra.mxu1 %v2009_v44  ;;  %vm1663_vm3 = vcmp.gt.f32.partialorder %v1597_v41, 0.0  ;;  %v9956_v38 = vld [vmem:[#allocation10] ss:$8 sps:$4 sm:$0xff]  }
 0x268   : > { %v10097_v35 = vpop.eup %10096  ;;  %v8992_v50 = vadd.f32 -1.0, %v10095_v46  ;;  %v1726_v56 = vmin.f32 %v1599_v21, 0.0  ;;  %v1965_v39 = vsel %vm1655_vm10, %v11383_v47, %v8990_v57  ;;  %vm1664_vm4 = vcmp.gt.f32.partialorder %v1599_v21, 0.0  ;;  %v9953_v10 = vld [vmem:[#allocation7 + $0x44] ss:$8 sps:$4 sm:$0x7f]  }
 0x269   : > { %v8993_v29 = vadd.f32 -1.0, %v10097_v35  ;;  %v1847_v5 = vmul.f32 1.442695, %v1725_v31  ;;  %v1966_v42 = vsel %vm1656_vm11, %v11387_v49, %v8991_v61  ;;  %v9955_v55 = vld [vmem:[#allocation7 + $0x40] ss:$8 sps:$4 sm:$0x7f]  }
 0x26a   : > { %v1849_v30 = vmul.f32 1.442695, %v1726_v56  ;;  %v1967_v34 = vsel %vm1657_vm12, %v11391_v19, %v8992_v50  ;;  %v9959_v13 = vld [vmem:[#allocation10 + $0x10] ss:$8 sps:$4 sm:$0xff]   ;;  %v9962_v52 = vld [vmem:[#allocation10 + $0x20] ss:$8 sps:$4 sm:$0xff]  }
 0x26b   : > { %10106 = vpow2.f32 %v1847_v5  ;;  %v1968_v43 = vsel %vm1658_vm13, %v11396_v27, %v8993_v29  ;;  %v2011_v62 = vpack.c.bf16 %v1967_v34, %v1965_v39  ;;  %v9965_v54 = vld [vmem:[#allocation10 + $0x30] ss:$8 sps:$4 sm:$0xff]   ;;  %v9967_v44 = vld [vmem:[#allocation10 + $0x34] ss:$8 sps:$4 sm:$0xff]   ;;  %v9968_v20 = vld [vmem:[#allocation10 + $0x40] ss:$8 sps:$4 sm:$0xff]  }
 0x26c   : > { %10108 = vpow2.f32 %v1849_v30  ;;  %v2012_v11 = vpack.c.bf16 %v1968_v43, %v1966_v42  ;;  %v9970_v57 = vld [vmem:[#allocation10 + $0x44] ss:$8 sps:$4 sm:$0xff]   ;;  %v9973_v40 = vld [vmem:[#allocation10 + $0x54] ss:$8 sps:$4 sm:$0xff]   ;;  %v9974_v46 = vld [vmem:[#allocation10 + $0x60] ss:$8 sps:$4 sm:$0xff]  }
 0x26d   : > { %v10099_v45 = vpop.eup %10098  ;;  %v9976_v61 = vld [vmem:[#allocation10 + $0x64] ss:$8 sps:$4 sm:$0xff]   ;;  %v9979_v31 = vld [vmem:[#allocation10 + $0x74] ss:$8 sps:$4 sm:$0xff]   ;;  %v9977_v33 = vld [vmem:[#allocation10 + $0x70] ss:$8 sps:$4 sm:$0xff]  }
 0x26e   : > { %v10101_v24 = vpop.eup %10100  ;;  %v8994_v37 = vadd.f32 -1.0, %v10099_v45  ;;  %2111 = vmatprep.subr.bf16.mxu1 %v2012_v11  ;;  %v9982_v35 = vld [vmem:[#allocation10 + $0x84] ss:$8 sps:$4 sm:$0xff]   ;;  %v9980_v50 = vld [vmem:[#allocation10 + $0x80] ss:$8 sps:$4 sm:$0xff]   ;;  %v11463_v5 = vsub.s32 2, %v11029_v26 }
 0x26f   : > { %v10103_v15 = vpop.eup %10102  ;;  %v8995_v6 = vadd.f32 -1.0, %v10101_v24  ;;  %2112 = vmatpush1.bf16.msra.mxu1 %v2011_v62  ;;  %v9985_v56 = vld [vmem:[#allocation10 + $0x94] ss:$8 sps:$4 sm:$0xff]   ;;  %v9983_v29 = vld [vmem:[#allocation10 + $0x90] ss:$8 sps:$4 sm:$0xff]   ;;  %v11466_v30 = vsub.s32 3, %v11029_v26 }
 0x270   : > { %v10105_v18 = vpop.eup %10104  ;;  %v8996_v51 = vadd.f32 -1.0, %v10103_v15  ;;  %v1969_v49 = vsel %vm1659_vm14, %v11411_v0, %v8994_v37  ;;  %13685 = vst [vmem:[#allocation28_spill] sm:$0xff] %v11463_v5  ;;  %v2168_v39 = vld [vmem:[#allocation9] sm:$0xff]  ;;  %v11469_v34 = vsub.s32 4, %v11029_v26  ;;  %v11472_v42 = vsub.s32 5, %v11029_v26  ;;  %v2169_v11 = vld [vmem:[#allocation9 + $0x8] sm:$0xff] }
 0x271   : > { %v8997_v47 = vadd.f32 -1.0, %v10105_v18  ;;  %v1970_v27 = vsel %vm1660_vm0, %v11415_v4, %v8995_v6  ;;  %v9941_v4 = vld [vmem:[#allocation7] ss:$8 sps:$4 sm:$0xff]   ;;  %13686 = vst [vmem:[#allocation29_spill] sm:$0xff] %v11466_v30  ;;  %v11475_v43 = vsub.s32 6, %v11029_v26  ;;  %v11478_v62 = vsub.s32 7, %v11029_v26 }
 0x272   : > { %v1971_v19 = vsel %vm1661_vm15, %v11419_v58, %v8996_v51  ;;  %13687 = vst [vmem:[#allocation30_spill] sm:$0xff] %v11469_v34  ;;  %13688 = vst [vmem:[#allocation31_spill] sm:$0xff] %v11472_v42  ;;  %v11481_v45 = vrot.slane %v2168_v39, %v11032_v14  ;;  %v11484_v24 = vrot.slane %v2168_v39, %v11035_v28  ;;  %vm2343_vm6 = vcmask 1045504  }
 0x273   : > { %v1972_v53 = vsel %vm1662_vm1, %v11424_v63, %v8997_v47  ;;  %v2013_v8 = vpack.c.bf16 %v1971_v19, %v1969_v49  ;;  %v9944_v63 = vld [vmem:[#allocation7 + $0x14] ss:$8 sps:$4 sm:$0xff]   ;;  %13689 = vst [vmem:[#allocation32_spill] sm:$0xff] %v11475_v43  ;;  %13690 = vst [vmem:[#allocation33_spill] sm:$0xff] %v11478_v62  ;;  %v11487_v37 = vrot.slane %v2168_v39, %v11463_v5  ;;  %v2170_v49 = vld [vmem:[#allocation9 + $0x10] sm:$0xff]  ;;  %vm2454_vm7 = vcmask 1044480  }
 0x274   : > { %v2014_v22 = vpack.c.bf16 %v1972_v53, %v1970_v27  ;;  %13691 = vst [vmem:[#allocation34_spill] sm:$0xff] %v11484_v24  ;;  %v11490_v15 = vrot.slane %v2168_v39, %v11466_v30  ;;  %v11493_v6 = vrot.slane %v2168_v39, %v11469_v34  ;;  %v11496_v18 = vrot.slane %v2168_v39, %v11472_v42 }
 0x275   : > { %v10107_v12 = vpop.eup %10106  ;;  %v11499_v51 = vrot.slane %v2168_v39, %v11475_v43  ;;  %v11502_v47 = vrot.slane %v2168_v39, %v11478_v62  ;;  %v11505_v19 = vrot.slane %v2169_v11, %v11032_v14  ;;  %v11508_v27 = vrot.slane %v2169_v11, %v11035_v28 }
 0x276   : > { %v10109_v59 = vpop.eup %10108  ;;  %2113 = vmatprep.subr.bf16.mxu1 %v2014_v22  ;;  %v8998_v60 = vadd.f32 -1.0, %v10107_v12  ;;  %13692 = vst [vmem:[#allocation35_spill] sm:$0xff] %v11496_v18  ;;  %v11511_v53 = vrot.slane %v2169_v11, %v11463_v5  ;;  %v2171_v22 = vld [vmem:[#allocation9 + $0x18] sm:$0xff]  ;;  %v11517_v12 = vrot.slane %v2169_v11, %v11469_v34  ;;  %vm2675_vm8 = vcmask 1042432  }
 0x277   : > { %v8999_v17 = vadd.f32 -1.0, %v10109_v59  ;;  %2114 = vmatpush1.bf16.msra.mxu1 %v2013_v8  ;;  %13693 = vst [vmem:[#allocation36_spill] sm:$0xff] %v11499_v51  ;;  %13694 = vst [vmem:[#allocation37_spill] sm:$0xff] %v11502_v47  ;;  %v11514_v8 = vrot.slane %v2169_v11, %v11466_v30  ;;  %v11520_v59 = vrot.slane %v2169_v11, %v11472_v42  ;;  %vm2786_vm9 = vcmask 1041408  }
 0x278   : > { %v1973_v36 = vsel %vm1663_vm3, %v1597_v41, %v8998_v60  ;;  %v9964_v41 = vld [vmem:[#allocation10 + $0x24] ss:$8 sps:$4 sm:$0xff]   ;;  %13695 = vst [vmem:[#allocation38_spill] sm:$0xff] %v11505_v19  ;;  %13696 = vst [vmem:[#allocation39_spill] sm:$0xff] %v11508_v27  ;;  %v11523_v60 = vrot.slane %v2169_v11, %v11475_v43  ;;  %vm2897_vm10 = vcmask 1040384   ;;  %vm3906_vm11 = vcmask 261120  }
 0x279   : > { %v1974_v1 = vsel %vm1664_vm4, %v1599_v21, %v8999_v17  ;;  %v2015_v0 = vpack.c.bf16 %v1973_v36, %v1973_v36  ;;  %v9971_v21 = vld [vmem:[#allocation10 + $0x50] ss:$8 sps:$4 sm:$0xff]   ;;  %13697 = vst [vmem:[#allocation40_spill] sm:$0xff] %v11511_v53  ;;  %13698 = vst [vmem:[#allocation41_spill] sm:$0xff] %v11514_v8  ;;  %v11526_v17 = vrot.slane %v2169_v11, %v11478_v62 }
 0x27a   : > { %v2016_v2 = vpack.c.bf16 %v1974_v1, %v1974_v1  ;;  %13699 = vst [vmem:[#allocation42_spill] sm:$0xff] %v11517_v12  ;;  %13700 = vst [vmem:[#allocation43_spill] sm:$0xff] %v11520_v59  ;;  %v11529_v36 = vrot.slane %v2170_v49, %v11463_v5  ;;  %v11532_v1 = vrot.slane %v2170_v49, %v11466_v30 }
 0x27b   : > { %v2080_v58 = vsel %vm2078_vm5, %v2015_v0, 0  ;;  %13701 = vst [vmem:[#allocation44_spill] sm:$0xff] %v11523_v60  ;;  %13702 = vst [vmem:[#allocation45_spill] sm:$0xff] %v11526_v17  ;;  %v11535_v0 = vrot.slane %v2170_v49, %v11469_v34 }
 0x27c   : > { %9010 = vmatprep.subr.msk.bf16.mxu1 %vm2078_vm5, %v2016_v2  ;;  %13703 = vst [vmem:[#allocation46_spill] sm:$0xff] %v11532_v1  ;;  %v11538_v2 = vrot.slane %v2170_v49, %v11472_v42 }
 0x27d   : > { %2116 = vmatpush1.bf16.msra.mxu1 %v2080_v58  ;;  %13704 = vst [vmem:[#allocation47_spill] sm:$0xff] %v11535_v0  ;;  %v11541_v58 = vrot.slane %v2170_v49, %v11475_v43 }
 0x27e   : > { %3919 = vmatprep.subr.bf16.mxu1 %v9958_v48  ;;  %13705 = vst [vmem:[#allocation48_spill] sm:$0xff] %v11538_v2  ;;  %v11571_v48 = vrot.slane %v2170_v49, %v11032_v14 }
 0x27f   : > { %13706 = vst [vmem:[#allocation49_spill] sm:$0xff] %v11541_v58 }
 0x280   : > { %2118 = vmatmul.mubr.bf16.vlgmr.msra.gmra.mrb[0].mxu1 %v9941_v4  ;;  %v11544_v4 = vrot.slane %v2170_v49, %v11478_v62  ;;  %13712 = vst [vmem:[#allocation55_spill] sm:$0xff] %v11571_v48 }
 0x281   : > { %9012 = vmatprep.mubr.msk.bf16.mxu1 %vm2062_vm2, %v9944_v63  ;;  %3920 = vmatpush1.bf16.msra.mxu1 %v9956_v38  ;;  %v11547_v63 = vrot.slane %v2171_v22, %v11032_v14  ;;  %v11568_v38 = vrot.slane %v2171_v22, %v11478_v62 }
 0x282   : > { %3921 = vmatprep.subr.bf16.mxu1 %v9961_v16  ;;  %13707 = vst [vmem:[#allocation50_spill] sm:$0xff] %v11544_v4 }
 0x283   : > { %13708 = vst [vmem:[#allocation51_spill] sm:$0xff] %v11547_v63 }
 0x285   : > { %3922 = vmatpush1.bf16.msra.mxu1 %v9959_v13  ;;  %v11574_v13 = vrot.slane %v2170_v49, %v11035_v28 }
 0x286   : > { %3923 = vmatprep.subr.bf16.mxu1 %v9964_v41 }
 0x287   : > { %13713 = vst [vmem:[#allocation56_spill] sm:$0xff] %v11574_v13 }
 0x288   : > { %2128 = vmatmul.mubr.bf16.gmra.mrb[4].mxu1 %v9946_v3  ;;  %v11550_v3 = vrot.slane %v2171_v22, %v11035_v28 }
 0x289   : > { %9013 = vmatprep.mubr.msk.bf16.mxu1 %vm2062_vm2, %v9947_v23  ;;  %3924 = vmatpush1.bf16.msra.mxu1 %v9962_v52  ;;  %v11553_v23 = vrot.slane %v2171_v22, %v11463_v5 }
 0x28a   : > { %3925 = vmatprep.subr.bf16.mxu1 %v9967_v44  ;;  %13709 = vst [vmem:[#allocation52_spill] sm:$0xff] %v11550_v3 }
 0x28b   : > { %13710 = vst [vmem:[#allocation53_spill] sm:$0xff] %v11553_v23 }
 0x28d   : > { %3926 = vmatpush1.bf16.msra.mxu1 %v9965_v54 }
 0x28e   : > { %3927 = vmatprep.subr.bf16.mxu1 %v9970_v57 }
 0x290   : > { %2138 = vmatmul.mubr.bf16.gmra.mrb[8].mxu1 %v9949_v32  ;;  %v11556_v32 = vrot.slane %v2171_v22, %v11466_v30 }
 0x291   : > { %9014 = vmatprep.mubr.msk.bf16.mxu1 %vm2062_vm2, %v9950_v7  ;;  %3928 = vmatpush1.bf16.msra.mxu1 %v9968_v20  ;;  %v11559_v7 = vrot.slane %v2171_v22, %v11469_v34 }
 0x292   : > { %3929 = vmatprep.subr.bf16.mxu1 %v9973_v40 }
 0x295   : > { %3930 = vmatpush1.bf16.msra.mxu1 %v9971_v21 }
 0x296   : > { %3931 = vmatprep.subr.bf16.mxu1 %v9976_v61 }
 0x298   : > { %2148 = vmatmul.mubr.bf16.gmra.mrb[12].mxu1 %v9952_v9  ;;  %v11562_v9 = vrot.slane %v2171_v22, %v11472_v42 }
 0x299   : > { %9015 = vmatprep.mubr.msk.bf16.mxu1 %vm2062_vm2, %v9953_v10  ;;  %3932 = vmatpush1.bf16.msra.mxu1 %v9974_v46  ;;  %vm2236_vm2 = vcmask 1046528  }
 0x29a   : > { %3933 = vmatprep.subr.bf16.mxu1 %v9979_v31  ;;  %13711 = vst [vmem:[#allocation54_spill] sm:$0xff] %v11562_v9 }
 0x29d   : > { %3934 = vmatpush1.bf16.msra.mxu1 %v9977_v33 }
 0x29e   : > { %3935 = vmatprep.subr.bf16.mxu1 %v9982_v35 }
 0x2a0   : > { %2158 = vmatmul.mubr.bf16.gmra.mrb[16].mxu1 %v9955_v55  ;;  %v11565_v55 = vrot.slane %v2171_v22, %v11475_v43 }
 0x2a1   : > { %3936 = vmatpush1.bf16.msra.mxu1 %v9980_v50 }
 0x2a2   : > { %3937 = vmatprep.subr.bf16.mxu1 %v9985_v56 }
 0x2a5   : > { %3938 = vmatpush1.bf16.msra.mxu1 %v9983_v29 }
 0x353   : > { %v2119_v10 = vpop.f32.mrb[0].mxu1 }
 0x354   : > { %v11577_v16 = vmul.f32 %v11481_v45, %v2119_v10  ;;  %v11580_v52 = vmul.f32 %v11484_v24, %v2119_v10  ;;  %v11583_v41 = vmul.f32 %v11487_v37, %v2119_v10  ;;  %v11586_v54 = vmul.f32 %v11490_v15, %v2119_v10  ;;  %v2121_v44 = vpop.f32.mrb[1].mxu1 }
 0x355   : > { %v11589_v20 = vmul.f32 %v11493_v6, %v2119_v10  ;;  %v11592_v57 = vmul.f32 %v11496_v18, %v2119_v10  ;;  %v11595_v21 = vmul.f32 %v11499_v51, %v2119_v10  ;;  %v11598_v40 = vmul.f32 %v11502_v47, %v2119_v10  ;;  %v11600_v46 = vpop.f32.mrb[2].mxu1 }
 0x356   : > { %13714 = vst [vmem:[#allocation57_spill] sm:$0xff] %v11586_v54  ;;  %v2181_v35 = vmul.f32 %v11505_v19, %v2121_v44  ;;  %v11606_v50 = vpop.f32.mrb[3].mxu1  ;;  %v2205_v49 = vmul.f32 %v11508_v27, %v2121_v44  ;;  %v2308_v22 = vmul.f32 %v11511_v53, %v2121_v44  ;;  %v2419_v10 = vmul.f32 %v11514_v8, %v2121_v44 }
 0x357   : > { %13715 = vst [vmem:[#allocation58_spill] sm:$0xff] %v11589_v20  ;;  %13716 = vst [vmem:[#allocation59_spill] sm:$0xff] %v11592_v57  ;;  %v2530_v25 = vmul.f32 %v11517_v12, %v2121_v44  ;;  %v2640_v33 = vmul.f32 %v11520_v59, %v2121_v44  ;;  %v11618_v31 = vmul.f32 %v11523_v60, %v2121_v44 }
 0x358   : > { %13717 = vst [vmem:[#allocation60_spill] sm:$0xff] %v11595_v21  ;;  %13718 = vst [vmem:[#allocation61_spill] sm:$0xff] %v11598_v40  ;;  %v11621_v56 = vmul.f32 %v11526_v17, %v2121_v44  ;;  %v2183_v11 = vmul.f32 %v11505_v19, %v11606_v50  ;;  %v2240_v39 = vrot.slane %v2205_v49, 1  ;;  %v2347_v29 = vrot.slane %v2308_v22, 2 }
 0x359   : > { %v2458_v61 = vrot.slane %v2419_v10, 3  ;;  %v2568_v62 = vrot.slane %v2530_v25, 4  ;;  %v2679_v42 = vrot.slane %v2640_v33, 5  ;;  %v2790_v43 = vrot.slane %v11618_v31, 6 }
 0x35a   : > { %v2901_v34 = vrot.slane %v11621_v56, 7  ;;  %v2207_v5 = vmul.f32 %v11508_v27, %v11606_v50  ;;  %v2310_v49 = vmul.f32 %v11511_v53, %v11606_v50  ;;  %v2421_v25 = vmul.f32 %v11514_v8, %v11606_v50 }
 0x35b   : > { %v11627_v30 = vpop.f32.mrb[4].mxu1  ;;  %v2532_v31 = vmul.f32 %v11517_v12, %v11606_v50  ;;  %v2642_v33 = vmul.f32 %v11520_v59, %v11606_v50 }
 0x35c   : > { %v11631_v44 = vpop.f32.mrb[5].mxu1  ;;  %v2241_v10 = vrot.slane %v2207_v5, 1  ;;  %v2348_v13 = vrot.slane %v2310_v49, 2  ;;  %v2459_v40 = vrot.slane %v2421_v25, 3 }
 0x35d   : > { %v11641_v56 = vpop.f32.mrb[6].mxu1  ;;  %v11645_v22 = vmul.f32 %v11508_v27, %v11631_v44  ;;  %v11649_v26 = vmul.f32 %v11511_v53, %v11631_v44  ;;  %v11653_v28 = vmul.f32 %v11514_v8, %v11631_v44  ;;  %v2569_v48 = vrot.slane %v2532_v31, 4 }
 0x35e   : > { %13719 = vst [vmem:[#allocation62_spill] sm:$0xff] %v11641_v56  ;;  %v11655_v14 = vpop.f32.mrb[7].mxu1  ;;  %v11659_v56 = vmul.f32 %v11517_v12, %v11631_v44  ;;  %v2242_v21 = vsel %vm2236_vm2, %v2240_v39, %v2241_v10  ;;  %v2349_v20 = vsel %vm2343_vm6, %v2347_v29, %v2348_v13  ;;  %v2460_v18 = vsel %vm2454_vm7, %v2458_v61, %v2459_v40 }
 0x35f   : > { %13720 = vst [vmem:[#allocation63_spill] sm:$0xff] %v11645_v22  ;;  %13721 = vst [vmem:[#allocation64_spill] sm:$0xff] %v11649_v26  ;;  %v13488_v5 = vrot.slane %v11645_v22, 1  ;;  %v13486_v57 = vrot.slane %v11649_v26, 2  ;;  %v13485_v47 = vrot.slane %v11653_v28, 3  ;;  %v2284_v51 = vadd.f32 %v2242_v21, %v2181_v35 }
 0x360   : > { %13722 = vst [vmem:[#allocation65_spill] sm:$0xff] %v11653_v28  ;;  %13723 = vst [vmem:[#allocation66_spill] sm:$0xff] %v11659_v56  ;;  %v2570_v49 = vsel %vm2078_vm5, %v2568_v62, %v2569_v48  ;;  %v13487_v21 = vrot.slane %v11659_v56, 4  ;;  %v11680_v61 = vmul.f32 %v11520_v59, %v11631_v44  ;;  %v2680_v62 = vrot.slane %v2642_v33, 5 }
 0x361   : > { %v2246_v25 = vsel %vm2236_vm2, %v2241_v10, %v13488_v5  ;;  %v2353_v39 = vsel %vm2343_vm6, %v2348_v13, %v13486_v57  ;;  %v2464_v31 = vsel %vm2454_vm7, %v2459_v40, %v13485_v47  ;;  %v2395_v29 = vadd.f32 %v2349_v20, %v2284_v51 }
 0x362   : > { %v2286_v35 = vadd.f32 %v2246_v25, %v2183_v11  ;;  %13724 = vst [vmem:[#allocation67_spill] sm:$0xff] %v11680_v61  ;;  %v2574_v10 = vsel %vm2078_vm5, %v2569_v48, %v13487_v21  ;;  %v2753_v13 = vmul.f32 %v11523_v60, %v11606_v50  ;;  %v11691_v40 = vmul.f32 %v11523_v60, %v11631_v44 }
 0x363   : > { %v11682_v22 = vpop.f32.mrb[8].mxu1  ;;  %v2864_v51 = vmul.f32 %v11526_v17, %v11606_v50  ;;  %v2506_v33 = vadd.f32 %v2460_v18, %v2395_v29  ;;  %v2681_v25 = vsel %vm2675_vm8, %v2679_v42, %v2680_v62  ;;  %v13495_v47 = vrot.slane %v11680_v61, 5 }
 0x364   : > { %13725 = vst [vmem:[#allocation68_spill] sm:$0xff] %v11682_v22  ;;  %13726 = vst [vmem:[#allocation69_spill] sm:$0xff] %v11691_v40  ;;  %v11695_v20 = vpop.f32.mrb[9].mxu1  ;;  %v2397_v11 = vadd.f32 %v2353_v39, %v2286_v35  ;;  %v2791_v48 = vrot.slane %v2753_v13, 6  ;;  %v13493_v21 = vrot.slane %v11691_v40, 6  ;;  %v11704_v5 = vmul.f32 %v11526_v17, %v11631_v44 }
 0x365   : > { %13727 = vst [vmem:[#allocation70_spill] sm:$0xff] %v11695_v20  ;;  %v11699_v57 = vpop.f32.mrb[10].mxu1  ;;  %v2902_v22 = vrot.slane %v2864_v51, 7  ;;  %v2616_v26 = vadd.f32 %v2570_v49, %v2506_v33  ;;  %v2685_v42 = vsel %vm2675_vm8, %v2680_v62, %v13495_v47  ;;  %v2973_v18 = vmul.f32 %v11547_v63, %v11606_v50 }
 0x366   : > { %13728 = vst [vmem:[#allocation71_spill] sm:$0xff] %v11699_v57  ;;  %13729 = vst [vmem:[#allocation72_spill] sm:$0xff] %v11704_v5  ;;  %v11706_v56 = vpop.f32.mrb[11].mxu1  ;;  %v2508_v28 = vadd.f32 %v2464_v31, %v2397_v11  ;;  %v2792_v39 = vsel %vm2786_vm9, %v2790_v43, %v2791_v48  ;;  %v2796_v35 = vsel %vm2786_vm9, %v2791_v48, %v13493_v21  ;;  %v13494_v13 = vrot.slane %v11704_v5, 7 }
 0x367   : > { %13730 = vst [vmem:[#allocation73_spill] sm:$0xff] %v11706_v56  ;;  %v2903_v29 = vsel %vm2897_vm10, %v2901_v34, %v2902_v22  ;;  %v2727_v31 = vadd.f32 %v2681_v25, %v2616_v26  ;;  %v2975_v49 = vmul.f32 %v11547_v63, %v11631_v44  ;;  %v3013_v62 = vmul.f32 %v11550_v3, %v11606_v50 }
 0x368   : > { %v2618_v51 = vadd.f32 %v2574_v10, %v2508_v28  ;;  %v2907_v43 = vsel %vm2897_vm10, %v2902_v22, %v13494_v13  ;;  %v3015_v11 = vmul.f32 %v11550_v3, %v11631_v44  ;;  %v11730_v34 = vmul.f32 %v11550_v3, %v11655_v14 }
 0x369   : > { %v3115_v26 = vmul.f32 %v11553_v23, %v11606_v50  ;;  %v2838_v10 = vadd.f32 %v2792_v39, %v2727_v31  ;;  %v3047_v33 = vrot.slane %v3013_v62, 1  ;;  %v3117_v25 = vmul.f32 %v11553_v23, %v11631_v44 }
 0x36a   : > { %13731 = vst [vmem:[#allocation74_spill] sm:$0xff] %v11730_v34  ;;  %v2729_v28 = vadd.f32 %v2685_v42, %v2618_v51  ;;  %v3048_v21 = vrot.slane %v3015_v11, 1  ;;  %v13499_v22 = vrot.slane %v11730_v34, 1  ;;  %v11741_v13 = vmul.f32 %v11553_v23, %v11655_v14 }
 0x36b   : > { %v11736_v48 = vpop.f32.mrb[12].mxu1  ;;  %v3153_v47 = vrot.slane %v3115_v26, 2  ;;  %v2949_v56 = vadd.f32 %v2903_v29, %v2838_v10  ;;  %v3154_v42 = vrot.slane %v3117_v25, 2  ;;  %v11747_v39 = vmul.f32 %v11556_v32, %v11606_v50 }
 0x36c   : > { %13732 = vst [vmem:[#allocation75_spill] sm:$0xff] %v11736_v48  ;;  %13733 = vst [vmem:[#allocation76_spill] sm:$0xff] %v11741_v13  ;;  %v11743_v57 = vpop.f32.mrb[13].mxu1  ;;  %v2840_v5 = vadd.f32 %v2796_v35, %v2729_v28  ;;  %v3049_v31 = vsel %vm2236_vm2, %v3047_v33, %v3048_v21  ;;  %v3053_v62 = vsel %vm2236_vm2, %v3048_v21, %v13499_v22 }
 0x36d   : > { %13734 = vst [vmem:[#allocation77_spill] sm:$0xff] %v11743_v57  ;;  %v11749_v51 = vpop.f32.mrb[14].mxu1  ;;  %v11758_v26 = vmul.f32 %v11556_v32, %v11631_v44  ;;  %v2989_v28 = vadd.f32 %v2973_v18, %v2949_v56  ;;  %v11763_v10 = vsel %vm2343_vm6, %v3153_v47, %v3154_v42  ;;  %v11767_v33 = vmul.f32 %v11556_v32, %v11655_v14 }
 0x36e   : > { %13735 = vst [vmem:[#allocation78_spill] sm:$0xff] %v11749_v51  ;;  %v11760_v35 = vpop.f32.mrb[15].mxu1  ;;  %v2951_v29 = vadd.f32 %v2907_v43, %v2840_v5  ;;  %v13745_v51 = vrot.slane %v11741_v13, 2 }
 0x36f   : > { %13736 = vst [vmem:[#allocation79_spill] sm:$0xff] %v11760_v35  ;;  %v2195_v21 = vmul.f32 %v11505_v19, %v11760_v35  ;;  %v11773_v25 = vmul.f32 %v11508_v27, %v11760_v35  ;;  %v11777_v22 = vmul.f32 %v11511_v53, %v11760_v35  ;;  %v11781_v56 = vmul.f32 %v11514_v8, %v11760_v35 }
 0x370   : > { %v11785_v47 = vmul.f32 %v11517_v12, %v11760_v35  ;;  %v11789_v5 = vmul.f32 %v11520_v59, %v11760_v35  ;;  %v11793_v18 = vmul.f32 %v11523_v60, %v11760_v35  ;;  %v11797_v43 = vmul.f32 %v11526_v17, %v11760_v35 }
 0x371   : > { %13737 = vst [vmem:[#allocation80_spill] sm:$0xff] %v11773_v25  ;;  %13738 = vst [vmem:[#allocation81_spill] sm:$0xff] %v11777_v22  ;;  %v13514_v11 = vrot.slane %v11773_v25, 1  ;;  %v2991_v57 = vadd.f32 %v2975_v49, %v2951_v29  ;;  %v3091_v19 = vadd.f32 %v3049_v31, %v2989_v28  ;;  %v11815_v49 = vsel %vm2343_vm6, %v3154_v42, %v13745_v51 }
 0x372   : > { %13739 = vst [vmem:[#allocation82_spill] sm:$0xff] %v11781_v56  ;;  %13740 = vst [vmem:[#allocation83_spill] sm:$0xff] %v11785_v47 }
 0x373   : > { %13741 = vst [vmem:[#allocation84_spill] sm:$0xff] %v11789_v5  ;;  %13742 = vst [vmem:[#allocation85_spill] sm:$0xff] %v11793_v18  ;;  %v11806_v27 = vpop.f32.mrb[16].mxu1  ;;  %v2298_v35 = vadd.f32 %v13514_v11, %v2195_v21  ;;  %v11810_v54 = vadd.f32 %v3053_v62, %v2991_v57 }
 0x374   : > { %13743 = vst [vmem:[#allocation86_spill] sm:$0xff] %v11797_v43  ;;  %13744 = vst [vmem:[#allocation87_spill] sm:$0xff] %v11806_v27  ;;  %v11817_v29 = vpop.f32.mrb[17].mxu1  ;;  %v11821_v61 = vmul.f32 %v11529_v36, %v11806_v27 }
 0x375   : > { %13746 = vst [vmem:[#allocation88_spill] sm:$0xff] %v11817_v29  ;;  %v2163_v31 = vpop.f32.mrb[18].mxu1  ;;  %v2324_v57 = vmul.f32 %v11511_v53, %v11817_v29  ;;  %v2435_v42 = vmul.f32 %v11514_v8, %v11817_v29  ;;  %v2546_v51 = vmul.f32 %v11517_v12, %v11817_v29  ;;  %v2656_v62 = vmul.f32 %v11520_v59, %v11817_v29 }
 0x376   : > { %13747 = vst [vmem:[#allocation89_spill] sm:$0xff] %v11821_v61  ;;  %v3130_v28 = vmul.f32 %v11529_v36, %v2163_v31  ;;  %v11837_v20 = vmul.f32 %v11532_v1, %v2163_v31  ;;  %v11840_v21 = vmul.f32 %v11535_v0, %v2163_v31  ;;  %v2165_v40 = vpop.f32.mrb[19].mxu1  ;;  %v11843_v34 = vmul.f32 %v11538_v2, %v2163_v31 }
 0x377   : > { %v11846_v48 = vmul.f32 %v11541_v58, %v2163_v31  ;;  %v11849_v27 = vmul.f32 %v11544_v4, %v2163_v31  ;;  %v2376_v25 = vrot.slane %v2324_v57, 2  ;;  %v2487_v12 = vrot.slane %v2435_v42, 3 }
 0x378   : > { %13748 = vst [vmem:[#allocation90_spill] sm:$0xff] %v11837_v20  ;;  %13749 = vst [vmem:[#allocation91_spill] sm:$0xff] %v11840_v21  ;;  %v3180_v13 = vrot.slane %v3130_v28, 2  ;;  %v13753_v2 = vrot.slane %v11777_v22, 2  ;;  %v2597_v58 = vrot.slane %v2546_v51, 4  ;;  %v13754_v1 = vrot.slane %v11821_v61, 2 }
 0x379   : > { %13750 = vst [vmem:[#allocation92_spill] sm:$0xff] %v11843_v34  ;;  %13751 = vst [vmem:[#allocation93_spill] sm:$0xff] %v11846_v48  ;;  %v13756_v28 = vrot.slane %v11781_v56, 3  ;;  %v2708_v42 = vrot.slane %v2656_v62, 5  ;;  %v13757_v8 = vrot.slane %v11785_v47, 4  ;;  %v2767_v11 = vmul.f32 %v11523_v60, %v11817_v29  ;;  %v13794_v47 = vld [vmem:[#allocation46_spill] sm:$0xff] }
 0x37a   : > { %13752 = vst [vmem:[#allocation94_spill] sm:$0xff] %v11849_v27  ;;  %v2377_v0 = vsel %vm2343_vm6, %v13753_v2, %v2376_v25  ;;  %v11861_v31 = vsel %vm2343_vm6, %v13754_v1, %v3180_v13  ;;  %v2878_v2 = vmul.f32 %v11526_v17, %v11817_v29  ;;  %v2987_v1 = vmul.f32 %v11547_v63, %v11817_v29 }
 0x37b   : > { %13755 = vst [vmem:[#allocation95_spill] sm:$0xff] %v11861_v31  ;;  %v2409_v57 = vadd.f32 %v2377_v0, %v2298_v35  ;;  %v2488_v59 = vsel %vm2454_vm7, %v13756_v28, %v2487_v12  ;;  %v2598_v53 = vsel %vm2078_vm5, %v13757_v8, %v2597_v58  ;;  %v13758_v0 = vrot.slane %v11789_v5, 5 }
 0x37c   : > { %v11880_v12 = vmul.f32 %v11550_v3, %v11817_v29  ;;  %v11884_v8 = vmul.f32 %v11553_v23, %v11817_v29  ;;  %v2819_v58 = vrot.slane %v2767_v11, 6  ;;  %v2930_v25 = vrot.slane %v2878_v2, 7 }
 0x37d   : > { %v2520_v13 = vadd.f32 %v2488_v59, %v2409_v57  ;;  %v2709_v35 = vsel %vm2675_vm8, %v13758_v0, %v2708_v42  ;;  %v3131_v51 = vmul.f32 %v11553_v23, %v2165_v40  ;;  %v11889_v62 = vmul.f32 %v11556_v32, %v11817_v29 }
 0x37e   : > { %13759 = vst [vmem:[#allocation96_spill] sm:$0xff] %v11880_v12  ;;  %13760 = vst [vmem:[#allocation97_spill] sm:$0xff] %v11884_v8  ;;  %v13538_v28 = vrot.slane %v11884_v8, 2  ;;  %v3241_v42 = vmul.f32 %v11556_v32, %v2165_v40  ;;  %v13762_v0 = vrot.slane %v11793_v18, 6  ;;  %v13763_v11 = vrot.slane %v11797_v43, 7 }
 0x37f   : > { %13761 = vst [vmem:[#allocation98_spill] sm:$0xff] %v11889_v62  ;;  %v2630_v59 = vadd.f32 %v2598_v53, %v2520_v13  ;;  %v3182_v48 = vrot.slane %v3131_v51, 2  ;;  %v13539_v31 = vrot.slane %v11889_v62, 3  ;;  %v11902_v53 = vmul.f32 %v11559_v7, %v2165_v40 }
 0x380   : > { %v2820_v27 = vsel %vm2786_vm9, %v13762_v0, %v2819_v58  ;;  %v2931_v2 = vsel %vm2897_vm10, %v13763_v11, %v2930_v25  ;;  %v3292_v21 = vrot.slane %v3241_v42, 3  ;;  %v11905_v13 = vmul.f32 %v11562_v9, %v2165_v40 }
 0x381   : > { %v2741_v34 = vadd.f32 %v2709_v35, %v2630_v59  ;;  %13764 = vst [vmem:[#allocation99_spill] sm:$0xff] %v11902_v53  ;;  %v3183_v57 = vsel %vm2343_vm6, %v13538_v28, %v3182_v48  ;;  %v11911_v58 = vmul.f32 %v11565_v55, %v2165_v40  ;;  %v11914_v25 = vmul.f32 %v11568_v38, %v2165_v40 }
 0x382   : > { %13765 = vst [vmem:[#allocation100_spill] sm:$0xff] %v11905_v13  ;;  %v3201_v51 = vadd.f32 %v11763_v10, %v3091_v19  ;;  %v11920_v59 = vsel %vm2454_vm7, %v13539_v31, %v3292_v21  ;;  %v3203_v40 = vadd.f32 %v11815_v49, %v11810_v54  ;;  %v13769_v28 = vrot.slane %v11758_v26, 3 }
 0x383   : > { %13766 = vst [vmem:[#allocation101_spill] sm:$0xff] %v11911_v58  ;;  %13767 = vst [vmem:[#allocation102_spill] sm:$0xff] %v11914_v25  ;;  %v2852_v35 = vadd.f32 %v2820_v27, %v2741_v34  ;;  %v13770_v19 = vrot.slane %v11747_v39, 3  ;;  %v13771_v10 = vrot.slane %v11767_v33, 3  ;;  %v3335_v11 = vmul.f32 %v11559_v7, %v11606_v50 }
 0x384   : > { %13768 = vst [vmem:[#allocation103_spill] sm:$0xff] %v11920_v59  ;;  %v13772_v21 = vmov %v13769_v28  ;;  %v3337_v54 = vmul.f32 %v11559_v7, %v11631_v44  ;;  %v11944_v39 = vmul.f32 %v11559_v7, %v11655_v14  ;;  %v3445_v49 = vmul.f32 %v11562_v9, %v11606_v50 }
 0x385   : > { %v3265_v27 = vsel %vm2454_vm7, %v13770_v19, %v13769_v28  ;;  %v2963_v34 = vadd.f32 %v2931_v2, %v2852_v35  ;;  %v3269_v0 = vsel %vm2454_vm7, %v13772_v21, %v13771_v10  ;;  %v3373_v2 = vrot.slane %v3335_v11, 4 }
 0x386   : > { %v3311_v42 = vadd.f32 %v3265_v27, %v3201_v51  ;;  %v3313_v48 = vadd.f32 %v3269_v0, %v3203_v40  ;;  %v3447_v26 = vmul.f32 %v11562_v9, %v11631_v44  ;;  %v11952_v51 = vmul.f32 %v11562_v9, %v11655_v14 }
 0x387   : > { %v3003_v28 = vadd.f32 %v2987_v1, %v2963_v34  ;;  %v3374_v35 = vrot.slane %v3337_v54, 4  ;;  %v13543_v0 = vrot.slane %v11944_v39, 4  ;;  %v3483_v40 = vrot.slane %v3445_v49, 5 }
 0x388   : > { %v3555_v19 = vmul.f32 %v11565_v55, %v11606_v50  ;;  %v13773_v27 = vrot.slane %v11880_v12, 1  ;;  %v3484_v21 = vrot.slane %v3447_v26, 5  ;;  %v13546_v1 = vrot.slane %v11952_v51, 5 }
 0x389   : > { %v3557_v11 = vmul.f32 %v11565_v55, %v11631_v44  ;;  %v3375_v34 = vsel %vm2078_vm5, %v3373_v2, %v3374_v35  ;;  %v3379_v54 = vsel %vm2078_vm5, %v3374_v35, %v13543_v0  ;;  %v11968_v49 = vmul.f32 %v11565_v55, %v11655_v14 }
 0x38a   : > { %v3105_v10 = vadd.f32 %v13773_v27, %v3003_v28  ;;  %v3593_v31 = vrot.slane %v3555_v19, 6  ;;  %v3421_v28 = vadd.f32 %v3375_v34, %v3311_v42  ;;  %v3423_v26 = vadd.f32 %v3379_v54, %v3313_v48 }
 0x38b   : > { %v3485_v27 = vsel %vm2675_vm8, %v3483_v40, %v3484_v21  ;;  %v3489_v2 = vsel %vm2675_vm8, %v3484_v21, %v13546_v1  ;;  %v3594_v61 = vrot.slane %v3557_v11, 6  ;;  %v13545_v25 = vrot.slane %v11968_v49, 6 }
 0x38c   : > { %v11970_v20 = vadd.f32 %v3183_v57, %v3105_v10  ;;  %v3665_v35 = vmul.f32 %v11568_v38, %v11606_v50  ;;  %v3531_v0 = vadd.f32 %v3485_v27, %v3421_v28  ;;  %v3533_v58 = vadd.f32 %v3489_v2, %v3423_v26 }
 0x38d   : > { %v3667_v57 = vmul.f32 %v11568_v38, %v11631_v44  ;;  %v11983_v42 = vmul.f32 %v11568_v38, %v11655_v14  ;;  %v3595_v48 = vsel %vm2786_vm9, %v3593_v31, %v3594_v61  ;;  %v3599_v40 = vsel %vm2786_vm9, %v3594_v61, %v13545_v25 }
 0x38e   : > { %13774 = vst [vmem:[#allocation104_spill] sm:$0xff] %v11970_v20  ;;  %v3703_v19 = vrot.slane %v3665_v35, 7  ;;  %v2182_v10 = vmul.f32 %v11481_v45, %v11600_v46  ;;  %v3641_v50 = vadd.f32 %v3595_v48, %v3531_v0  ;;  %v3643_v21 = vadd.f32 %v3599_v40, %v3533_v58  ;;  %v13784_v20 = vld [vmem:[#allocation59_spill] sm:$0xff] }
 0x38f   : > { %v3704_v11 = vrot.slane %v3667_v57, 7  ;;  %v13548_v34 = vrot.slane %v11983_v42, 7  ;;  %v2206_v54 = vmul.f32 %v11484_v24, %v11600_v46  ;;  %v11996_v28 = vmul.f32 %v11484_v24, %v11627_v30 }
 0x390   : > { %v2309_v31 = vmul.f32 %v11487_v37, %v11600_v46  ;;  %v12002_v61 = vmul.f32 %v11487_v37, %v11627_v30  ;;  %v2420_v26 = vmul.f32 %v11490_v15, %v11600_v46  ;;  %v12012_v27 = vmul.f32 %v11490_v15, %v11627_v30 }
 0x391   : > { %v3705_v0 = vsel %vm2897_vm10, %v3703_v19, %v3704_v11  ;;  %v3709_v58 = vsel %vm2897_vm10, %v3704_v11, %v13548_v34  ;;  %v2238_v57 = vrot.slane %v2206_v54, 1  ;;  %v13552_v48 = vrot.slane %v11996_v28, 1 }
 0x392   : > { %v3751_v2 = vadd.f32 %v3705_v0, %v3641_v50  ;;  %v3753_v35 = vadd.f32 %v3709_v58, %v3643_v21  ;;  %v2345_v40 = vrot.slane %v2309_v31, 2  ;;  %v13551_v25 = vrot.slane %v12002_v61, 2  ;;  %v13777_v58 = vld [vmem:[#allocation57_spill] sm:$0xff] }
 0x393   : > { %v2456_v19 = vrot.slane %v2420_v26, 3  ;;  %v13550_v1 = vrot.slane %v12012_v27, 3  ;;  %v13775_v11 = vrot.slane %v11580_v52, 1  ;;  %v2244_v53 = vsel %vm2236_vm2, %v2238_v57, %v13552_v48 }
 0x394   : > { %v3767_v13 = vpack.c.bf16 %v3753_v35, %v3751_v2  ;;  %v2531_v50 = vmul.f32 %v11493_v6, %v11600_v46  ;;  %v2285_v54 = vadd.f32 %v2244_v53, %v2182_v10  ;;  %v13776_v31 = vrot.slane %v11583_v41, 2 }
 0x395   : > { %v2239_v34 = vsel %vm2236_vm2, %v13775_v11, %v2238_v57  ;;  %v2351_v52 = vsel %vm2343_vm6, %v2345_v40, %v13551_v25  ;;  %v13778_v26 = vrot.slane %v13777_v58, 3  ;;  %v2462_v35 = vsel %vm2454_vm7, %v2456_v19, %v13550_v1  ;;  %v13782_v58 = vld [vmem:[#allocation36_spill] sm:$0xff]  ;;  %v13783_v25 = vld [vmem:[#allocation37_spill] sm:$0xff] }
 0x396   : > { %v2283_v21 = vadd.f32 %v2239_v34, %v11577_v16  ;;  %v2346_v0 = vsel %vm2343_vm6, %v13776_v31, %v2345_v40  ;;  %9036 = vmatprep.mubr.msk.bf16.mxu1 %vm3906_vm11, %v3767_v13  ;;  %v12041_v16 = vmul.f32 %v11493_v6, %v11627_v30  ;;  %v2566_v41 = vrot.slane %v2531_v50, 4  ;;  %v13779_v34 = vld [vmem:[#allocation35_spill] sm:$0xff]  ;;  %v13780_v40 = vld [vmem:[#allocation58_spill] sm:$0xff] }
 0x397   : > { %v2457_v2 = vsel %vm2454_vm7, %v13778_v26, %v2456_v19  ;;  %v2396_v10 = vadd.f32 %v2351_v52, %v2285_v54  ;;  %v2641_v57 = vmul.f32 %v13779_v34, %v11600_v46  ;;  %v12047_v13 = vmul.f32 %v13779_v34, %v11627_v30 }
 0x398   : > { %v2394_v53 = vadd.f32 %v2346_v0, %v2283_v21  ;;  %v13781_v11 = vrot.slane %v13780_v40, 4  ;;  %v13558_v19 = vrot.slane %v12041_v16, 4  ;;  %v2752_v26 = vmul.f32 %v13782_v58, %v11600_v46 }
 0x399   : > { %v12057_v50 = vmul.f32 %v13782_v58, %v11627_v30  ;;  %v2507_v54 = vadd.f32 %v2462_v35, %v2396_v10  ;;  %v2677_v0 = vrot.slane %v2641_v57, 5  ;;  %v13556_v52 = vrot.slane %v12047_v13, 5 }
 0x39a   : > { %v2567_v31 = vsel %vm2078_vm5, %v13781_v11, %v2566_v41  ;;  %v2505_v21 = vadd.f32 %v2457_v2, %v2394_v53  ;;  %v2572_v40 = vsel %vm2078_vm5, %v2566_v41, %v13558_v19  ;;  %v2788_v1 = vrot.slane %v2752_v26, 6  ;;  %v13786_v53 = vld [vmem:[#allocation60_spill] sm:$0xff] }
 0x39b   : > { %v13557_v11 = vrot.slane %v12057_v50, 6  ;;  %v2863_v48 = vmul.f32 %v13783_v25, %v11600_v46  ;;  %v2617_v59 = vadd.f32 %v2572_v40, %v2507_v54  ;;  %v13785_v62 = vrot.slane %v13784_v20, 5  ;;  %v13789_v40 = vld [vmem:[#allocation61_spill] sm:$0xff] }
 0x39c   : > { %v2615_v29 = vadd.f32 %v2567_v31, %v2505_v21  ;;  %v2683_v35 = vsel %vm2675_vm8, %v2677_v0, %v13556_v52  ;;  %v13787_v10 = vrot.slane %v13786_v53, 6  ;;  %v12080_v31 = vmul.f32 %v13783_v25, %v11627_v30 }
 0x39d   : > { %v2678_v2 = vsel %vm2675_vm8, %v13785_v62, %v2677_v0  ;;  %v2794_v57 = vsel %vm2786_vm9, %v2788_v1, %v13557_v11  ;;  %v2899_v26 = vrot.slane %v2863_v48, 7  ;;  %v2728_v21 = vadd.f32 %v2683_v35, %v2617_v59  ;;  %v13788_v62 = vld [vmem:[#allocation55_spill] sm:$0xff] }
 0x39e   : > { %v2789_v41 = vsel %vm2786_vm9, %v13787_v10, %v2788_v1  ;;  %v2726_v20 = vadd.f32 %v2678_v2, %v2615_v29  ;;  %v2972_v54 = vmul.f32 %v13788_v62, %v11600_v46  ;;  %v2974_v0 = vmul.f32 %v13788_v62, %v11627_v30  ;;  %v13791_v1 = vld [vmem:[#allocation56_spill] sm:$0xff]  ;;  %v13792_v2 = vld [vmem:[#allocation62_spill] sm:$0xff] }
 0x39f   : > { %v13790_v53 = vrot.slane %v13789_v40, 7  ;;  %v13565_v52 = vrot.slane %v12080_v31, 7  ;;  %v3012_v11 = vmul.f32 %v13791_v1, %v11600_v46  ;;  %v3014_v48 = vmul.f32 %v13791_v1, %v11627_v30 }
 0x3a0   : > { %v2837_v29 = vadd.f32 %v2789_v41, %v2726_v20  ;;  %v2839_v59 = vadd.f32 %v2794_v57, %v2728_v21  ;;  %v12096_v35 = vmul.f32 %v13791_v1, %v13792_v2  ;;  %v3114_v19 = vmul.f32 %v11529_v36, %v11600_v46 }
 0x3a1   : > { %v2900_v10 = vsel %vm2897_vm10, %v13790_v53, %v2899_v26  ;;  %v2905_v40 = vsel %vm2897_vm10, %v2899_v26, %v13565_v52  ;;  %v3044_v53 = vrot.slane %v3012_v11, 1  ;;  %v3045_v8 = vrot.slane %v3014_v48, 1 }
 0x3a2   : > { %v3116_v12 = vmul.f32 %v11529_v36, %v11627_v30  ;;  %v2948_v43 = vadd.f32 %v2900_v10, %v2837_v29  ;;  %v2950_v18 = vadd.f32 %v2905_v40, %v2839_v59  ;;  %v13566_v41 = vrot.slane %v12096_v35, 1 }
 0x3a3   : > { %v12108_v57 = vmul.f32 %v11529_v36, %v13792_v2  ;;  %v3046_v20 = vsel %vm2236_vm2, %v3044_v53, %v3045_v8  ;;  %v3150_v21 = vrot.slane %v3114_v19, 2  ;;  %v3224_v26 = vmul.f32 %v13794_v47, %v11600_v46 }
 0x3a4   : > { %v3151_v5 = vrot.slane %v3116_v12, 2  ;;  %v2988_v11 = vadd.f32 %v2972_v54, %v2948_v43  ;;  %v2990_v48 = vadd.f32 %v2974_v0, %v2950_v18  ;;  %v3051_v10 = vsel %vm2236_vm2, %v3045_v8, %v13566_v41  ;;  %v13795_v43 = vld [vmem:[#allocation47_spill] sm:$0xff] }
 0x3a5   : > { %13793 = vst [vmem:[#allocation57_spill] sm:$0xff] %v12108_v57  ;;  %v13567_v29 = vrot.slane %v12108_v57, 2  ;;  %v3226_v40 = vmul.f32 %v13794_v47, %v11627_v30  ;;  %v12122_v19 = vmul.f32 %v13794_v47, %v13792_v2  ;;  %v3260_v12 = vrot.slane %v3224_v26, 3 }
 0x3a6   : > { %v3152_v59 = vsel %vm2343_vm6, %v3150_v21, %v3151_v5  ;;  %v3090_v53 = vadd.f32 %v3046_v20, %v2988_v11  ;;  %v3092_v52 = vadd.f32 %v3051_v10, %v2990_v48  ;;  %v3334_v8 = vmul.f32 %v13795_v43, %v11600_v46  ;;  %v13797_v48 = vld [vmem:[#allocation48_spill] sm:$0xff] }
 0x3a7   : > { %v3157_v18 = vsel %vm2343_vm6, %v3151_v5, %v13567_v29  ;;  %v3261_v54 = vrot.slane %v3226_v40, 3  ;;  %v13573_v0 = vrot.slane %v12122_v19, 3  ;;  %v3336_v21 = vmul.f32 %v13795_v43, %v11627_v30 }
 0x3a8   : > { %v12134_v41 = vmul.f32 %v13795_v43, %v13792_v2  ;;  %v3200_v26 = vadd.f32 %v3152_v59, %v3090_v53  ;;  %v3202_v20 = vadd.f32 %v3157_v18, %v3092_v52  ;;  %v3370_v11 = vrot.slane %v3334_v8, 4  ;;  %v13799_v18 = vld [vmem:[#allocation49_spill] sm:$0xff] }
 0x3a9   : > { %v3444_v10 = vmul.f32 %v13797_v48, %v11600_v46  ;;  %v3262_v5 = vsel %vm2454_vm7, %v3260_v12, %v3261_v54  ;;  %v3267_v40 = vsel %vm2454_vm7, %v3261_v54, %v13573_v0  ;;  %v3371_v29 = vrot.slane %v3336_v21, 4 }
 0x3aa   : > { %13796 = vst [vmem:[#allocation35_spill] sm:$0xff] %v12134_v41  ;;  %v13572_v56 = vrot.slane %v12134_v41, 4  ;;  %v3310_v22 = vadd.f32 %v3262_v5, %v3200_v26  ;;  %v3312_v57 = vadd.f32 %v3267_v40, %v3202_v20  ;;  %v3446_v43 = vmul.f32 %v13797_v48, %v11627_v30 }
 0x3ab   : > { %v12147_v52 = vmul.f32 %v13797_v48, %v13792_v2  ;;  %v3372_v59 = vsel %vm2078_vm5, %v3370_v11, %v3371_v29  ;;  %v3480_v53 = vrot.slane %v3444_v10, 5  ;;  %v3554_v8 = vmul.f32 %v13799_v18, %v11600_v46 }
 0x3ac   : > { %v3377_v12 = vsel %vm2078_vm5, %v3371_v29, %v13572_v56  ;;  %v3420_v54 = vadd.f32 %v3372_v59, %v3310_v22  ;;  %v3481_v26 = vrot.slane %v3446_v43, 5  ;;  %v3556_v5 = vmul.f32 %v13799_v18, %v11627_v30 }
 0x3ad   : > { %13798 = vst [vmem:[#allocation58_spill] sm:$0xff] %v12147_v52  ;;  %v3422_v21 = vadd.f32 %v3377_v12, %v3312_v57  ;;  %v13576_v20 = vrot.slane %v12147_v52, 5  ;;  %v12160_v40 = vmul.f32 %v13799_v18, %v13792_v2  ;;  %v3590_v11 = vrot.slane %v3554_v8, 6  ;;  %v13802_v52 = vld [vmem:[#allocation38_spill] sm:$0xff] }
 0x3ae   : > { %v3664_v29 = vmul.f32 %v11544_v4, %v11600_v46  ;;  %v3482_v10 = vsel %vm2675_vm8, %v3480_v53, %v3481_v26  ;;  %v3666_v57 = vmul.f32 %v11544_v4, %v11627_v30  ;;  %v12172_v43 = vmul.f32 %v11544_v4, %v13792_v2 }
 0x3af   : > { %13800 = vst [vmem:[#allocation36_spill] sm:$0xff] %v12160_v40  ;;  %v3487_v22 = vsel %vm2675_vm8, %v3481_v26, %v13576_v20  ;;  %v3530_v59 = vadd.f32 %v3482_v10, %v3420_v54  ;;  %v3591_v56 = vrot.slane %v3556_v5, 6  ;;  %v13578_v8 = vrot.slane %v12160_v40, 6 }
 0x3b0   : > { %13801 = vst [vmem:[#allocation37_spill] sm:$0xff] %v12172_v43  ;;  %v3532_v12 = vadd.f32 %v3487_v22, %v3422_v21  ;;  %v3700_v0 = vrot.slane %v3664_v29, 7  ;;  %v3701_v46 = vrot.slane %v3666_v57, 7  ;;  %v13580_v53 = vrot.slane %v12172_v43, 7  ;;  %v13803_v21 = vld [vmem:[#allocation39_spill] sm:$0xff]  ;;  %v13804_v57 = vld [vmem:[#allocation70_spill] sm:$0xff] }
 0x3b1   : > { %v2185_v41 = vmul.f32 %v13802_v52, %v11631_v44  ;;  %v3592_v26 = vsel %vm2786_vm9, %v3590_v11, %v3591_v56  ;;  %v3597_v20 = vsel %vm2786_vm9, %v3591_v56, %v13578_v8  ;;  %v2187_v54 = vmul.f32 %v13802_v52, %v11655_v14  ;;  %v13805_v56 = vld [vmem:[#allocation40_spill] sm:$0xff] }
 0x3b2   : > { %v2211_v5 = vmul.f32 %v13803_v21, %v11655_v14  ;;  %v3640_v10 = vadd.f32 %v3592_v26, %v3530_v59  ;;  %v3642_v29 = vadd.f32 %v3597_v20, %v3532_v12  ;;  %v3702_v22 = vsel %vm2897_vm10, %v3700_v0, %v3701_v46  ;;  %v13806_v0 = vld [vmem:[#allocation41_spill] sm:$0xff]  ;;  %v13808_v26 = vld [vmem:[#allocation63_spill] sm:$0xff] }
 0x3b3   : > { %v3707_v44 = vsel %vm2897_vm10, %v3701_v46, %v13580_v53  ;;  %v12192_v11 = vmul.f32 %v13803_v21, %v13804_v57  ;;  %v2314_v8 = vmul.f32 %v13805_v56, %v11655_v14  ;;  %v12198_v52 = vmul.f32 %v13805_v56, %v13804_v57 }
 0x3b4   : > { %v2249_v40 = vrot.slane %v2211_v5, 1  ;;  %v3750_v59 = vadd.f32 %v3702_v22, %v3640_v10  ;;  %v3752_v20 = vadd.f32 %v3707_v44, %v3642_v29  ;;  %v2425_v12 = vmul.f32 %v13806_v0, %v11655_v14  ;;  %v13810_v44 = vld [vmem:[#allocation64_spill] sm:$0xff] }
 0x3b5   : > { %v12204_v46 = vmul.f32 %v13806_v0, %v13804_v57  ;;  %v13809_v53 = vrot.slane %v13808_v26, 1  ;;  %v13591_v43 = vrot.slane %v12192_v11, 1  ;;  %v2356_v21 = vrot.slane %v2314_v8, 2  ;;  %v13812_v8 = vld [vmem:[#allocation42_spill] sm:$0xff] }
 0x3b6   : > { %v13589_v4 = vrot.slane %v12198_v52, 2  ;;  %v3766_v56 = vpack.c.bf16 %v3752_v20, %v3750_v59  ;;  %v2467_v10 = vrot.slane %v2425_v12, 3  ;;  %v13811_v0 = vrot.slane %v13810_v44, 2  ;;  %v13813_v20 = vld [vmem:[#allocation65_spill] sm:$0xff] }
 0x3b7   : > { %13807 = vst [vmem:[#allocation59_spill] sm:$0xff] %v12204_v46  ;;  %v2250_v5 = vsel %vm2236_vm2, %v13809_v53, %v2249_v40  ;;  %v13590_v29 = vrot.slane %v12204_v46, 3  ;;  %v2254_v22 = vsel %vm2236_vm2, %v2249_v40, %v13591_v43  ;;  %v2536_v48 = vmul.f32 %v13812_v8, %v11655_v14 }
 0x3b8   : > { %v2288_v18 = vadd.f32 %v2250_v5, %v2185_v41  ;;  %v2357_v26 = vsel %vm2343_vm6, %v13811_v0, %v2356_v21  ;;  %v2361_v53 = vsel %vm2343_vm6, %v2356_v21, %v13589_v4  ;;  %3952 = vmatmul.mubr.bf16.vlgmr.msra.gmra.mrb[20].mxu1 %v3766_v56  ;;  %v2290_v41 = vadd.f32 %v2254_v22, %v2187_v54  ;;  %v13815_v21 = vld [vmem:[#allocation43_spill] sm:$0xff] }
 0x3b9   : > { %v13814_v12 = vrot.slane %v13813_v20, 3  ;;  %v2472_v40 = vsel %vm2454_vm7, %v2467_v10, %v13590_v29  ;;  %v12231_v0 = vmul.f32 %v13812_v8, %v13804_v57  ;;  %v2577_v44 = vrot.slane %v2536_v48, 4 }
 0x3ba   : > { %v2399_v59 = vadd.f32 %v2357_v26, %v2288_v18  ;;  %v2646_v4 = vmul.f32 %v13815_v21, %v11655_v14  ;;  %v12237_v54 = vmul.f32 %v13815_v21, %v13804_v57  ;;  %v2401_v18 = vadd.f32 %v2361_v53, %v2290_v41  ;;  %v13818_v26 = vld [vmem:[#allocation66_spill] sm:$0xff] }
 0x3bb   : > { %v2468_v5 = vsel %vm2454_vm7, %v13814_v12, %v2467_v10  ;;  %v2757_v22 = vmul.f32 %v11523_v60, %v11655_v14  ;;  %v12243_v10 = vmul.f32 %v11523_v60, %v13804_v57  ;;  %v13819_v20 = vrot.slane %v13818_v26, 4 }
 0x3bc   : > { %13816 = vst [vmem:[#allocation60_spill] sm:$0xff] %v12237_v54  ;;  %v2510_v56 = vadd.f32 %v2468_v5, %v2399_v59  ;;  %v13598_v12 = vrot.slane %v12231_v0, 4  ;;  %v2688_v29 = vrot.slane %v2646_v4, 5  ;;  %v13597_v43 = vrot.slane %v12237_v54, 5  ;;  %v13820_v5 = vld [vmem:[#allocation67_spill] sm:$0xff]  ;;  %v13827_v54 = vld [vmem:[#allocation74_spill] sm:$0xff] }
 0x3bd   : > { %13817 = vst [vmem:[#allocation55_spill] sm:$0xff] %v12243_v10  ;;  %v2578_v48 = vsel %vm2078_vm5, %v13819_v20, %v2577_v44  ;;  %v2512_v21 = vadd.f32 %v2472_v40, %v2401_v18  ;;  %v2799_v53 = vrot.slane %v2757_v22, 6  ;;  %v13596_v41 = vrot.slane %v12243_v10, 6 }
 0x3be   : > { %v2620_v46 = vadd.f32 %v2578_v48, %v2510_v56  ;;  %v2582_v59 = vsel %vm2078_vm5, %v2577_v44, %v13598_v12  ;;  %v13821_v60 = vrot.slane %v13820_v5, 5  ;;  %v2693_v20 = vsel %vm2675_vm8, %v2688_v29, %v13597_v43  ;;  %v13822_v56 = vld [vmem:[#allocation69_spill] sm:$0xff] }
 0x3bf   : > { %v2868_v4 = vmul.f32 %v11526_v17, %v11655_v14  ;;  %v2622_v40 = vadd.f32 %v2582_v59, %v2512_v21  ;;  %v13823_v22 = vrot.slane %v13822_v56, 6  ;;  %v2804_v44 = vsel %vm2786_vm9, %v2799_v53, %v13596_v41  ;;  %v13824_v56 = vld [vmem:[#allocation73_spill] sm:$0xff] }
 0x3c0   : > { %v2689_v26 = vsel %vm2675_vm8, %v13821_v60, %v2688_v29  ;;  %v12270_v60 = vmul.f32 %v11526_v17, %v13804_v57  ;;  %v2977_v29 = vmul.f32 %v11547_v63, %v11655_v14  ;;  %v2979_v21 = vmul.f32 %v11547_v63, %v13804_v57 }
 0x3c1   : > { %v2731_v18 = vadd.f32 %v2689_v26, %v2620_v46  ;;  %v2800_v48 = vsel %vm2786_vm9, %v13823_v22, %v2799_v53  ;;  %v2910_v5 = vrot.slane %v2868_v4, 7  ;;  %v2733_v46 = vadd.f32 %v2693_v20, %v2622_v40  ;;  %v13825_v53 = vld [vmem:[#allocation72_spill] sm:$0xff] }
 0x3c2   : > { %v3019_v26 = vmul.f32 %v11550_v3, %v13804_v57  ;;  %v12280_v22 = vmul.f32 %v11550_v3, %v13824_v56  ;;  %v13826_v41 = vrot.slane %v13825_v53, 7  ;;  %v13611_v4 = vrot.slane %v12270_v60, 7 }
 0x3c3   : > { %v2842_v59 = vadd.f32 %v2800_v48, %v2731_v18  ;;  %v3121_v14 = vmul.f32 %v11553_v23, %v13804_v57  ;;  %v12290_v20 = vmul.f32 %v11553_v23, %v13824_v56  ;;  %v2844_v40 = vadd.f32 %v2804_v44, %v2733_v46  ;;  %v13829_v46 = vld [vmem:[#allocation76_spill] sm:$0xff] }
 0x3c4   : > { %v2911_v43 = vsel %vm2897_vm10, %v13826_v41, %v2910_v5  ;;  %v3056_v48 = vrot.slane %v3019_v26, 1  ;;  %v13610_v12 = vrot.slane %v12280_v22, 1  ;;  %v2915_v53 = vsel %vm2897_vm10, %v2910_v5, %v13611_v4 }
 0x3c5   : > { %v2953_v18 = vadd.f32 %v2911_v43, %v2842_v59  ;;  %v3162_v3 = vrot.slane %v3121_v14, 2  ;;  %v13609_v41 = vrot.slane %v12290_v20, 2  ;;  %v3231_v63 = vmul.f32 %v11556_v32, %v13804_v57 }
 0x3c6   : > { %v2955_v10 = vadd.f32 %v2915_v53, %v2844_v40  ;;  %v13828_v23 = vrot.slane %v13827_v54, 1  ;;  %v3061_v43 = vsel %vm2236_vm2, %v3056_v48, %v13610_v12  ;;  %v13830_v59 = vrot.slane %v13829_v46, 2 }
 0x3c7   : > { %v2993_v17 = vadd.f32 %v2977_v29, %v2953_v18  ;;  %v3167_v26 = vsel %vm2343_vm6, %v3162_v3, %v13609_v41  ;;  %v12313_v14 = vmul.f32 %v11556_v32, %v13824_v56  ;;  %v3272_v29 = vrot.slane %v3231_v63, 3 }
 0x3c8   : > { %v3057_v44 = vsel %vm2236_vm2, %v13828_v23, %v3056_v48  ;;  %v3163_v5 = vsel %vm2343_vm6, %v13830_v59, %v3162_v3  ;;  %v2995_v54 = vadd.f32 %v2979_v21, %v2955_v10  ;;  %v3341_v23 = vmul.f32 %v11559_v7, %v13804_v57 }
 0x3c9   : > { %v3095_v40 = vadd.f32 %v3057_v44, %v2993_v17  ;;  %v12319_v18 = vmul.f32 %v11559_v7, %v13824_v56  ;;  %v13831_v48 = vrot.slane %v11767_v33, 3  ;;  %v13617_v3 = vrot.slane %v12313_v14, 3 }
 0x3ca   : > { %v3451_v46 = vmul.f32 %v11562_v9, %v13804_v57  ;;  %v12329_v63 = vmul.f32 %v11562_v9, %v13824_v56  ;;  %v3097_v17 = vadd.f32 %v3061_v43, %v2995_v54  ;;  %v3382_v21 = vrot.slane %v3341_v23, 4 }
 0x3cb   : > { %v3273_v53 = vsel %vm2454_vm7, %v13831_v48, %v3272_v29  ;;  %v3205_v10 = vadd.f32 %v3163_v5, %v3095_v40  ;;  %v13616_v44 = vrot.slane %v12319_v18, 4  ;;  %v3277_v33 = vsel %vm2454_vm7, %v3272_v29, %v13617_v3 }
 0x3cc   : > { %v3492_v59 = vrot.slane %v3451_v46, 5  ;;  %v13614_v48 = vrot.slane %v12329_v63, 5  ;;  %v3561_v41 = vmul.f32 %v11565_v55, %v13804_v57  ;;  %v3207_v12 = vadd.f32 %v3167_v26, %v3097_v17 }
 0x3cd   : > { %v3315_v4 = vadd.f32 %v3273_v53, %v3205_v10  ;;  %v13832_v9 = vrot.slane %v11944_v39, 4  ;;  %v3387_v5 = vsel %vm2078_vm5, %v3382_v21, %v13616_v44  ;;  %v13833_v54 = vrot.slane %v11952_v51, 5 }
 0x3ce   : > { %v3497_v40 = vsel %vm2675_vm8, %v3492_v59, %v13614_v48  ;;  %v12352_v26 = vmul.f32 %v11565_v55, %v13824_v56  ;;  %v3602_v23 = vrot.slane %v3561_v41, 6  ;;  %v3317_v39 = vadd.f32 %v3277_v33, %v3207_v12 }
 0x3cf   : > { %v3383_v43 = vsel %vm2078_vm5, %v13832_v9, %v3382_v21  ;;  %v3493_v29 = vsel %vm2675_vm8, %v13833_v54, %v3492_v59  ;;  %v3671_v9 = vmul.f32 %v11568_v38, %v13804_v57  ;;  %v12358_v46 = vmul.f32 %v11568_v38, %v13824_v56  ;;  %v13835_v54 = vld [vmem:[#allocation68_spill] sm:$0xff] }
 0x3d0   : > { %v3425_v53 = vadd.f32 %v3383_v43, %v3315_v4  ;;  %v13834_v51 = vrot.slane %v11968_v49, 6  ;;  %v13615_v10 = vrot.slane %v12352_v26, 6  ;;  %v2184_v21 = vmul.f32 %v11481_v45, %v11627_v30 }
 0x3d1   : > { %v2186_v12 = vmul.f32 %v11481_v45, %v13792_v2  ;;  %v3427_v4 = vadd.f32 %v3387_v5, %v3317_v39  ;;  %v3712_v33 = vrot.slane %v3671_v9, 7  ;;  %v13630_v59 = vrot.slane %v12358_v46, 7 }
 0x3d2   : > { %v3603_v17 = vsel %vm2786_vm9, %v13834_v51, %v3602_v23  ;;  %v3535_v41 = vadd.f32 %v3493_v29, %v3425_v53  ;;  %v3607_v43 = vsel %vm2786_vm9, %v3602_v23, %v13615_v10  ;;  %v2210_v49 = vmul.f32 %v11484_v24, %v13792_v2 }
 0x3d3   : > { %v12376_v51 = vmul.f32 %v11484_v24, %v13835_v54  ;;  %v2313_v30 = vmul.f32 %v11487_v37, %v13792_v2  ;;  %v3537_v48 = vadd.f32 %v3497_v40, %v3427_v4  ;;  %v13836_v29 = vrot.slane %v11983_v42, 7 }
 0x3d4   : > { %v3645_v5 = vadd.f32 %v3603_v17, %v3535_v41  ;;  %v3717_v23 = vsel %vm2897_vm10, %v3712_v33, %v13630_v59  ;;  %v2247_v53 = vrot.slane %v2210_v49, 1  ;;  %v12389_v10 = vmul.f32 %v11487_v37, %v13835_v54 }
 0x3d5   : > { %v3713_v39 = vsel %vm2897_vm10, %v13836_v29, %v3712_v33  ;;  %v13620_v9 = vrot.slane %v12376_v51, 1  ;;  %v2354_v44 = vrot.slane %v2313_v30, 2  ;;  %v3647_v3 = vadd.f32 %v3607_v43, %v3537_v48 }
 0x3d6   : > { %v3755_v24 = vadd.f32 %v3713_v39, %v3645_v5  ;;  %v2424_v40 = vmul.f32 %v11490_v15, %v13792_v2  ;;  %v12395_v42 = vmul.f32 %v11490_v15, %v13835_v54  ;;  %v13837_v17 = vrot.slane %v11996_v28, 1 }
 0x3d7   : > { %v2252_v41 = vsel %vm2236_vm2, %v2247_v53, %v13620_v9  ;;  %v13838_v33 = vrot.slane %v12002_v61, 2  ;;  %v13626_v43 = vrot.slane %v12389_v10, 2  ;;  %v3757_v49 = vadd.f32 %v3717_v23, %v3647_v3 }
 0x3d8   : > { %v2248_v4 = vsel %vm2236_vm2, %v13837_v17, %v2247_v53  ;;  %v2289_v5 = vadd.f32 %v2252_v41, %v2186_v12  ;;  %v2465_v29 = vrot.slane %v2424_v40, 3  ;;  %v13625_v39 = vrot.slane %v12395_v42, 3 }
 0x3d9   : > { %v2355_v48 = vsel %vm2343_vm6, %v13838_v33, %v2354_v44  ;;  %v2287_v30 = vadd.f32 %v2248_v4, %v2184_v21  ;;  %v2359_v28 = vsel %vm2343_vm6, %v2354_v44, %v13626_v43  ;;  %v2535_v17 = vmul.f32 %v11493_v6, %v13792_v2 }
 0x3da   : > { %v12415_v61 = vmul.f32 %v11493_v6, %v13835_v54  ;;  %v3769_v53 = vpack.c.bf16 %v3757_v49, %v3755_v24  ;;  %v2400_v9 = vadd.f32 %v2359_v28, %v2289_v5  ;;  %v13839_v3 = vrot.slane %v12012_v27, 3 }
 0x3db   : > { %v2398_v33 = vadd.f32 %v2355_v48, %v2287_v30  ;;  %v2470_v44 = vsel %vm2454_vm7, %v2465_v29, %v13625_v39  ;;  %v2575_v12 = vrot.slane %v2535_v17, 4  ;;  %v2645_v40 = vmul.f32 %v13779_v34, %v13792_v2 }
 0x3dc   : > { %v2466_v21 = vsel %vm2454_vm7, %v13839_v3, %v2465_v29  ;;  %v13624_v23 = vrot.slane %v12415_v61, 4  ;;  %9037 = vmatprep.mubr.msk.bf16.mxu1 %vm3906_vm11, %v3769_v53  ;;  %v2511_v24 = vadd.f32 %v2470_v44, %v2400_v9  ;;  %v12429_v41 = vmul.f32 %v13779_v34, %v13835_v54 }
 0x3dd   : > { %v2509_v4 = vadd.f32 %v2466_v21, %v2398_v33  ;;  %v2756_v27 = vmul.f32 %v13782_v58, %v13792_v2  ;;  %v13840_v48 = vrot.slane %v12041_v16, 4  ;;  %v2686_v5 = vrot.slane %v2645_v40, 5 }
 0x3de   : > { %v2580_v30 = vsel %vm2078_vm5, %v2575_v12, %v13624_v23  ;;  %v12441_v29 = vmul.f32 %v13782_v58, %v13835_v54  ;;  %v13623_v17 = vrot.slane %v12429_v41, 5  ;;  %v13841_v33 = vrot.slane %v12047_v13, 5 }
 0x3df   : > { %v2576_v49 = vsel %vm2078_vm5, %v13840_v48, %v2575_v12  ;;  %v2621_v28 = vadd.f32 %v2580_v30, %v2511_v24  ;;  %v2797_v53 = vrot.slane %v2756_v27, 6  ;;  %v2867_v21 = vmul.f32 %v13783_v25, %v13792_v2 }
 0x3e0   : > { %v2619_v9 = vadd.f32 %v2576_v49, %v2509_v4  ;;  %v2687_v16 = vsel %vm2675_vm8, %v13841_v33, %v2686_v5  ;;  %v13621_v3 = vrot.slane %v12441_v29, 6  ;;  %v12452_v44 = vmul.f32 %v13783_v25, %v13835_v54 }
 0x3e1   : > { %v2691_v12 = vsel %vm2675_vm8, %v2686_v5, %v13623_v17  ;;  %v13842_v4 = vrot.slane %v12057_v50, 6  ;;  %v2976_v24 = vmul.f32 %v13788_v62, %v13792_v2  ;;  %v2908_v49 = vrot.slane %v2867_v21, 7 }
 0x3e2   : > { %v2730_v40 = vadd.f32 %v2687_v16, %v2619_v9  ;;  %v2732_v27 = vadd.f32 %v2691_v12, %v2621_v28  ;;  %v2802_v48 = vsel %vm2786_vm9, %v2797_v53, %v13621_v3  ;;  %v13622_v30 = vrot.slane %v12452_v44, 7  ;;  %v13843_v9 = vld [vmem:[#allocation71_spill] sm:$0xff] }
 0x3e3   : > { %v2798_v13 = vsel %vm2786_vm9, %v13842_v4, %v2797_v53  ;;  %v2978_v5 = vmul.f32 %v13788_v62, %v13835_v54  ;;  %v3018_v50 = vmul.f32 %v13791_v1, %v13835_v54  ;;  %v12472_v16 = vmul.f32 %v13791_v1, %v13843_v9 }
 0x3e4   : > { %v2841_v33 = vadd.f32 %v2798_v13, %v2730_v40  ;;  %v2843_v2 = vadd.f32 %v2802_v48, %v2732_v27  ;;  %v13844_v28 = vrot.slane %v12080_v31, 7  ;;  %v2913_v53 = vsel %vm2897_vm10, %v2908_v49, %v13622_v30 }
 0x3e5   : > { %v3120_v21 = vmul.f32 %v11529_v36, %v13835_v54  ;;  %v3054_v4 = vrot.slane %v3018_v50, 1  ;;  %v13628_v13 = vrot.slane %v12472_v16, 1  ;;  %v12485_v3 = vmul.f32 %v11529_v36, %v13843_v9 }
 0x3e6   : > { %v2909_v12 = vsel %vm2897_vm10, %v13844_v28, %v2908_v49  ;;  %v2954_v27 = vadd.f32 %v2913_v53, %v2843_v2  ;;  %v3230_v31 = vmul.f32 %v13794_v47, %v13835_v54  ;;  %v12491_v28 = vmul.f32 %v13794_v47, %v13843_v9  ;;  %v13847_v53 = vld [vmem:[#allocation57_spill] sm:$0xff] }
 0x3e7   : > { %v2952_v40 = vadd.f32 %v2909_v12, %v2841_v33  ;;  %v3160_v48 = vrot.slane %v3120_v21, 2  ;;  %v13846_v30 = vrot.slane %v12096_v35, 1  ;;  %v3059_v50 = vsel %vm2236_vm2, %v3054_v4, %v13628_v13 }
 0x3e8   : > { %13845 = vst [vmem:[#allocation61_spill] sm:$0xff] %v12491_v28  ;;  %v13627_v12 = vrot.slane %v12485_v3, 2  ;;  %v2994_v2 = vadd.f32 %v2978_v5, %v2954_v27  ;;  %v13848_v21 = vrot.slane %v13847_v53, 2  ;;  %v3270_v23 = vrot.slane %v3230_v31, 3 }
 0x3e9   : > { %v2992_v49 = vadd.f32 %v2976_v24, %v2952_v40  ;;  %v3055_v33 = vsel %vm2236_vm2, %v13846_v30, %v3054_v4  ;;  %v13629_v39 = vrot.slane %v12491_v28, 3  ;;  %v13849_v24 = vld [vmem:[#allocation47_spill] sm:$0xff]  ;;  %v13851_v4 = vrot.slane %v12122_v19, 3  ;;  %v13854_v19 = vld [vmem:[#allocation49_spill] sm:$0xff] }
 0x3ea   : > { %v3161_v17 = vsel %vm2343_vm6, %v13848_v21, %v3160_v48  ;;  %v3165_v35 = vsel %vm2343_vm6, %v3160_v48, %v13627_v12  ;;  %v3340_v30 = vmul.f32 %v13849_v24, %v13835_v54  ;;  %v12511_v40 = vmul.f32 %v13849_v24, %v13843_v9 }
 0x3eb   : > { %v3094_v43 = vadd.f32 %v3055_v33, %v2992_v49  ;;  %v3096_v5 = vadd.f32 %v3059_v50, %v2994_v2  ;;  %v3271_v27 = vsel %vm2454_vm7, %v13851_v4, %v3270_v23  ;;  %v3275_v31 = vsel %vm2454_vm7, %v3270_v23, %v13629_v39  ;;  %v13852_v49 = vld [vmem:[#allocation48_spill] sm:$0xff]  ;;  %v13856_v39 = vld [vmem:[#allocation35_spill] sm:$0xff] }
 0x3ec   : > { %13850 = vst [vmem:[#allocation56_spill] sm:$0xff] %v12511_v40  ;;  %v3450_v33 = vmul.f32 %v13852_v49, %v13835_v54  ;;  %v3380_v53 = vrot.slane %v3340_v30, 4  ;;  %v13636_v21 = vrot.slane %v12511_v40, 4  ;;  %v12524_v12 = vmul.f32 %v13852_v49, %v13843_v9 }
 0x3ed   : > { %v3204_v48 = vadd.f32 %v3161_v17, %v3094_v43  ;;  %v3206_v50 = vadd.f32 %v3165_v35, %v3096_v5  ;;  %v3560_v4 = vmul.f32 %v13854_v19, %v13835_v54  ;;  %v12530_v13 = vmul.f32 %v13854_v19, %v13843_v9  ;;  %v13858_v5 = vld [vmem:[#allocation58_spill] sm:$0xff] }
 0x3ee   : > { %13853 = vst [vmem:[#allocation62_spill] sm:$0xff] %v12524_v12  ;;  %v3490_v2 = vrot.slane %v3450_v33, 5  ;;  %v13857_v59 = vrot.slane %v13856_v39, 4  ;;  %v3385_v17 = vsel %vm2078_vm5, %v3380_v53, %v13636_v21  ;;  %v13635_v30 = vrot.slane %v12524_v12, 5 }
 0x3ef   : > { %13855 = vst [vmem:[#allocation46_spill] sm:$0xff] %v12530_v13  ;;  %v3314_v23 = vadd.f32 %v3271_v27, %v3204_v48  ;;  %v3316_v35 = vadd.f32 %v3275_v31, %v3206_v50  ;;  %v13859_v33 = vrot.slane %v13858_v5, 5  ;;  %v3600_v49 = vrot.slane %v3560_v4, 6 }
 0x3f0   : > { %v3381_v43 = vsel %vm2078_vm5, %v13857_v59, %v3380_v53  ;;  %v13638_v19 = vrot.slane %v12530_v13, 6  ;;  %v3495_v39 = vsel %vm2675_vm8, %v3490_v2, %v13635_v30  ;;  %v13860_v59 = vld [vmem:[#allocation50_spill] sm:$0xff]  ;;  %v13861_v53 = vld [vmem:[#allocation36_spill] sm:$0xff] }
 0x3f1   : > { %v3491_v28 = vsel %vm2675_vm8, %v13859_v33, %v3490_v2  ;;  %v3424_v24 = vadd.f32 %v3381_v43, %v3314_v23  ;;  %v3670_v27 = vmul.f32 %v13860_v59, %v13835_v54  ;;  %v12550_v48 = vmul.f32 %v13860_v59, %v13843_v9  ;;  %v13863_v23 = vld [vmem:[#allocation38_spill] sm:$0xff] }
 0x3f2   : > { %v3426_v31 = vadd.f32 %v3385_v17, %v3316_v35  ;;  %v13862_v50 = vrot.slane %v13861_v53, 6  ;;  %v3605_v4 = vsel %vm2786_vm9, %v3600_v49, %v13638_v19  ;;  %v2189_v43 = vmul.f32 %v13863_v23, %v13804_v57  ;;  %v13864_v17 = vld [vmem:[#allocation39_spill] sm:$0xff]  ;;  %v13865_v53 = vld [vmem:[#allocation77_spill] sm:$0xff] }
 0x3f3   : > { %v3534_v2 = vadd.f32 %v3491_v28, %v3424_v24  ;;  %v3710_v33 = vrot.slane %v3670_v27, 7  ;;  %v13643_v30 = vrot.slane %v12550_v48, 7  ;;  %v2191_v21 = vmul.f32 %v13863_v23, %v13824_v56  ;;  %v13867_v57 = vld [vmem:[#allocation37_spill] sm:$0xff] }
 0x3f4   : > { %v3601_v5 = vsel %vm2786_vm9, %v13862_v50, %v3600_v49  ;;  %v3536_v59 = vadd.f32 %v3495_v39, %v3426_v31  ;;  %v2215_v35 = vmul.f32 %v13864_v17, %v13824_v56  ;;  %v12567_v50 = vmul.f32 %v13864_v17, %v13865_v53  ;;  %v13866_v49 = vld [vmem:[#allocation40_spill] sm:$0xff] }
 0x3f5   : > { %v2318_v19 = vmul.f32 %v13866_v49, %v13824_v56  ;;  %v3644_v13 = vadd.f32 %v3601_v5, %v3534_v2  ;;  %v13868_v28 = vrot.slane %v13867_v57, 7  ;;  %v3715_v27 = vsel %vm2897_vm10, %v3710_v33, %v13643_v30  ;;  %v13869_v2 = vld [vmem:[#allocation41_spill] sm:$0xff] }
 0x3f6   : > { %v12579_v39 = vmul.f32 %v13866_v49, %v13865_v53  ;;  %v3646_v31 = vadd.f32 %v3605_v4, %v3536_v59  ;;  %v2257_v23 = vrot.slane %v2215_v35, 1  ;;  %v13649_v17 = vrot.slane %v12567_v50, 1 }
 0x3f7   : > { %v3711_v24 = vsel %vm2897_vm10, %v13868_v28, %v3710_v33  ;;  %v2364_v12 = vrot.slane %v2318_v19, 2  ;;  %v2429_v57 = vmul.f32 %v13869_v2, %v13824_v56  ;;  %v12587_v28 = vmul.f32 %v13869_v2, %v13865_v53 }
 0x3f8   : > { %v3754_v40 = vadd.f32 %v3711_v24, %v3644_v13  ;;  %v13647_v5 = vrot.slane %v12579_v39, 2  ;;  %v3756_v33 = vadd.f32 %v3715_v27, %v3646_v31  ;;  %v13870_v30 = vrot.slane %v12192_v11, 1 }
 0x3f9   : > { %v2262_v59 = vsel %vm2236_vm2, %v2257_v23, %v13649_v17  ;;  %v13871_v13 = vrot.slane %v12198_v52, 2  ;;  %v2475_v2 = vrot.slane %v2429_v57, 3  ;;  %v13646_v11 = vrot.slane %v12587_v28, 3 }
 0x3fa   : > { %v2258_v49 = vsel %vm2236_vm2, %v13870_v30, %v2257_v23  ;;  %v2294_v35 = vadd.f32 %v2262_v59, %v2191_v21  ;;  %v2369_v24 = vsel %vm2343_vm6, %v2364_v12, %v13647_v5  ;;  %v3768_v27 = vpack.c.bf16 %v3756_v33, %v3754_v40 }
 0x3fb   : > { %v2365_v19 = vsel %vm2343_vm6, %v13871_v13, %v2364_v12  ;;  %v2292_v4 = vadd.f32 %v2258_v49, %v2189_v43  ;;  %v2540_v30 = vmul.f32 %v13812_v8, %v13824_v56  ;;  %v12606_v23 = vmul.f32 %v13812_v8, %v13865_v53  ;;  %v13872_v13 = vld [vmem:[#allocation59_spill] sm:$0xff] }
 0x3fc   : > { %v2405_v31 = vadd.f32 %v2369_v24, %v2294_v35  ;;  %v13873_v43 = vrot.slane %v13872_v13, 3  ;;  %v13874_v49 = vld [vmem:[#allocation43_spill] sm:$0xff]  ;;  %3962 = vmatmul.mubr.bf16.gmra.mrb[24].mxu1 %v3768_v27  ;;  %v2480_v40 = vsel %vm2454_vm7, %v2475_v2, %v13646_v11  ;;  %v13875_v35 = vld [vmem:[#allocation44_spill] sm:$0xff]  ;;  %v13876_v13 = vrot.slane %v12231_v0, 4 }
 0x3fd   : > { %v2403_v52 = vadd.f32 %v2365_v19, %v2292_v4  ;;  %v2650_v12 = vmul.f32 %v13874_v49, %v13824_v56  ;;  %v2585_v57 = vrot.slane %v2540_v30, 4  ;;  %v13644_v33 = vrot.slane %v12606_v23, 4 }
 0x3fe   : > { %v2476_v21 = vsel %vm2454_vm7, %v13873_v43, %v2475_v2  ;;  %v12619_v8 = vmul.f32 %v13874_v49, %v13865_v53  ;;  %v2516_v19 = vadd.f32 %v2480_v40, %v2405_v31  ;;  %v2761_v24 = vmul.f32 %v13875_v35, %v13824_v56 }
 0x3ff   : > { %v2514_v59 = vadd.f32 %v2476_v21, %v2403_v52  ;;  %v2696_v4 = vrot.slane %v2650_v12, 5  ;;  %v2586_v27 = vsel %vm2078_vm5, %v13876_v13, %v2585_v57  ;;  %v2590_v2 = vsel %vm2078_vm5, %v2585_v57, %v13644_v33  ;;  %v13877_v21 = vld [vmem:[#allocation60_spill] sm:$0xff]  ;;  %v13879_v57 = vld [vmem:[#allocation45_spill] sm:$0xff] }
 0x400   : > { %v13645_v30 = vrot.slane %v12619_v8, 5  ;;  %v12632_v43 = vmul.f32 %v13875_v35, %v13865_v53  ;;  %v2626_v31 = vadd.f32 %v2590_v2, %v2516_v19  ;;  %v13878_v49 = vrot.slane %v13877_v21, 5 }
 0x401   : > { %v2624_v52 = vadd.f32 %v2586_v27, %v2514_v59  ;;  %v2807_v40 = vrot.slane %v2761_v24, 6  ;;  %v2872_v33 = vmul.f32 %v13879_v57, %v13824_v56  ;;  %v12645_v35 = vmul.f32 %v13879_v57, %v13865_v53  ;;  %v13880_v27 = vld [vmem:[#allocation55_spill] sm:$0xff] }
 0x402   : > { %v2697_v12 = vsel %vm2675_vm8, %v13878_v49, %v2696_v4  ;;  %v2701_v0 = vsel %vm2675_vm8, %v2696_v4, %v13645_v30  ;;  %v13648_v13 = vrot.slane %v12632_v43, 6  ;;  %v13881_v2 = vrot.slane %v13880_v27, 6  ;;  %v13882_v24 = vld [vmem:[#allocation51_spill] sm:$0xff] }
 0x403   : > { %v2735_v59 = vadd.f32 %v2697_v12, %v2624_v52  ;;  %v2737_v19 = vadd.f32 %v2701_v0, %v2626_v31  ;;  %v2981_v49 = vmul.f32 %v13882_v24, %v13824_v56  ;;  %v2918_v30 = vrot.slane %v2872_v33, 7  ;;  %v13883_v31 = vld [vmem:[#allocation52_spill] sm:$0xff]  ;;  %v13884_v0 = vld [vmem:[#allocation79_spill] sm:$0xff] }
 0x404   : > { %v2808_v21 = vsel %vm2786_vm9, %v13881_v2, %v2807_v40  ;;  %v2812_v4 = vsel %vm2786_vm9, %v2807_v40, %v13648_v13  ;;  %v13650_v11 = vrot.slane %v12645_v35, 7  ;;  %v2983_v57 = vmul.f32 %v13882_v24, %v13865_v53  ;;  %v13886_v40 = vld [vmem:[#allocation53_spill] sm:$0xff] }
 0x405   : > { %v2846_v5 = vadd.f32 %v2808_v21, %v2735_v59  ;;  %v2848_v52 = vadd.f32 %v2812_v4, %v2737_v19  ;;  %v3023_v12 = vmul.f32 %v13883_v31, %v13865_v53  ;;  %v12662_v27 = vmul.f32 %v13883_v31, %v13884_v0 }
 0x406   : > { %v13885_v56 = vrot.slane %v12270_v60, 7  ;;  %v2923_v33 = vsel %vm2897_vm10, %v2918_v30, %v13650_v11  ;;  %v3125_v13 = vmul.f32 %v13886_v40, %v13865_v53  ;;  %v12674_v59 = vmul.f32 %v13886_v40, %v13884_v0 }
 0x407   : > { %v2959_v21 = vadd.f32 %v2923_v33, %v2848_v52  ;;  %v3064_v4 = vrot.slane %v3023_v12, 1  ;;  %v13654_v31 = vrot.slane %v12662_v27, 1  ;;  %v13887_v40 = vrot.slane %v12280_v22, 1 }
 0x408   : > { %v2919_v2 = vsel %vm2897_vm10, %v13885_v56, %v2918_v30  ;;  %v3170_v17 = vrot.slane %v3125_v13, 2  ;;  %v13653_v60 = vrot.slane %v12674_v59, 2  ;;  %v3235_v56 = vmul.f32 %v11556_v32, %v13865_v53 }
 0x409   : > { %v2957_v19 = vadd.f32 %v2919_v2, %v2846_v5  ;;  %v12682_v30 = vmul.f32 %v11556_v32, %v13884_v0  ;;  %v2999_v24 = vadd.f32 %v2983_v57, %v2959_v21  ;;  %v3065_v5 = vsel %vm2236_vm2, %v13887_v40, %v3064_v4 }
 0x40a   : > { %v3069_v52 = vsel %vm2236_vm2, %v3064_v4, %v13654_v31  ;;  %v13888_v13 = vrot.slane %v12290_v20, 2  ;;  %v3175_v2 = vsel %vm2343_vm6, %v3170_v17, %v13653_v60  ;;  %v3280_v32 = vrot.slane %v3235_v56, 3  ;;  %v13891_v4 = vld [vmem:[#allocation54_spill] sm:$0xff] }
 0x40b   : > { %v2997_v11 = vadd.f32 %v2981_v49, %v2957_v19  ;;  %v13652_v49 = vrot.slane %v12682_v30, 3  ;;  %v3101_v33 = vadd.f32 %v3069_v52, %v2999_v24  ;;  %v3345_v22 = vmul.f32 %v11559_v7, %v13865_v53 }
 0x40c   : > { %v3171_v12 = vsel %vm2343_vm6, %v13888_v13, %v3170_v17  ;;  %v12701_v19 = vmul.f32 %v11559_v7, %v13884_v0  ;;  %v13890_v20 = vrot.slane %v12313_v14, 3  ;;  %v3455_v56 = vmul.f32 %v13891_v4, %v13865_v53 }
 0x40d   : > { %v3099_v57 = vadd.f32 %v3065_v5, %v2997_v11  ;;  %v3285_v17 = vsel %vm2454_vm7, %v3280_v32, %v13652_v49  ;;  %v12713_v11 = vmul.f32 %v13891_v4, %v13884_v0  ;;  %v3211_v40 = vadd.f32 %v3175_v2, %v3101_v33 }
 0x40e   : > { %13889 = vst [vmem:[#allocation70_spill] sm:$0xff] %v12701_v19  ;;  %v3281_v21 = vsel %vm2454_vm7, %v13890_v20, %v3280_v32  ;;  %v3390_v5 = vrot.slane %v3345_v22, 4  ;;  %v13657_v52 = vrot.slane %v12701_v19, 4  ;;  %v3500_v13 = vrot.slane %v3455_v56, 5 }
 0x40f   : > { %13892 = vst [vmem:[#allocation63_spill] sm:$0xff] %v12713_v11  ;;  %v3209_v24 = vadd.f32 %v3171_v12, %v3099_v57  ;;  %v13655_v14 = vrot.slane %v12713_v11, 5  ;;  %v3565_v20 = vmul.f32 %v11565_v55, %v13865_v53  ;;  %v12721_v32 = vmul.f32 %v11565_v55, %v13884_v0 }
 0x410   : > { %v3321_v60 = vadd.f32 %v3285_v17, %v3211_v40  ;;  %v13894_v31 = vrot.slane %v12319_v18, 4  ;;  %v3395_v2 = vsel %vm2078_vm5, %v3390_v5, %v13657_v52  ;;  %v13895_v57 = vrot.slane %v12329_v63, 5 }
 0x411   : > { %13893 = vst [vmem:[#allocation64_spill] sm:$0xff] %v12721_v32  ;;  %v3319_v49 = vadd.f32 %v3281_v21, %v3209_v24  ;;  %v3505_v22 = vsel %vm2675_vm8, %v3500_v13, %v13655_v14  ;;  %v3610_v56 = vrot.slane %v3565_v20, 6  ;;  %v13656_v21 = vrot.slane %v12721_v32, 6  ;;  %v13898_v14 = vld [vmem:[#allocation75_spill] sm:$0xff] }
 0x412   : > { %v3391_v12 = vsel %vm2078_vm5, %v13894_v31, %v3390_v5  ;;  %v3501_v33 = vsel %vm2675_vm8, %v13895_v57, %v3500_v13  ;;  %v3431_v24 = vadd.f32 %v3395_v2, %v3321_v60  ;;  %v3675_v18 = vmul.f32 %v11568_v38, %v13865_v53  ;;  %v13897_v57 = vld [vmem:[#allocation34_spill] sm:$0xff] }
 0x413   : > { %v3429_v17 = vadd.f32 %v3391_v12, %v3319_v49  ;;  %v12740_v31 = vmul.f32 %v11568_v38, %v13884_v0  ;;  %v13896_v63 = vrot.slane %v12352_v26, 6  ;;  %v3615_v5 = vsel %vm2786_vm9, %v3610_v56, %v13656_v21 }
 0x414   : > { %v2188_v13 = vmul.f32 %v11481_v45, %v13835_v54  ;;  %v2190_v60 = vmul.f32 %v11481_v45, %v13843_v9  ;;  %v3541_v20 = vadd.f32 %v3505_v22, %v3431_v24  ;;  %v3720_v12 = vrot.slane %v3675_v18, 7 }
 0x415   : > { %v3611_v40 = vsel %vm2786_vm9, %v13896_v63, %v3610_v56  ;;  %v3539_v49 = vadd.f32 %v3501_v33, %v3429_v17  ;;  %v13671_v2 = vrot.slane %v12740_v31, 7  ;;  %v2214_v26 = vmul.f32 %v13897_v57, %v13843_v9 }
 0x416   : > { %v12757_v63 = vmul.f32 %v13897_v57, %v13898_v14  ;;  %v2317_v56 = vmul.f32 %v11487_v37, %v13843_v9  ;;  %v12763_v54 = vmul.f32 %v11487_v37, %v13898_v14  ;;  %v3651_v33 = vadd.f32 %v3615_v5, %v3541_v20 }
 0x417   : > { %v3649_v21 = vadd.f32 %v3611_v40, %v3539_v49  ;;  %v13899_v22 = vrot.slane %v12358_v46, 7  ;;  %v3725_v24 = vsel %vm2897_vm10, %v3720_v12, %v13671_v2  ;;  %v2255_v18 = vrot.slane %v2214_v26, 1  ;;  %v13919_v2 = vld [vmem:[#allocation49_spill] sm:$0xff] }
 0x418   : > { %v13670_v52 = vrot.slane %v12757_v63, 1  ;;  %v2362_v32 = vrot.slane %v2317_v56, 2  ;;  %v13669_v11 = vrot.slane %v12763_v54, 2  ;;  %v3761_v57 = vadd.f32 %v3725_v24, %v3651_v33 }
 0x419   : > { %v3721_v17 = vsel %vm2897_vm10, %v13899_v22, %v3720_v12  ;;  %v2428_v40 = vmul.f32 %v11490_v15, %v13843_v9  ;;  %v12777_v46 = vmul.f32 %v11490_v15, %v13898_v14  ;;  %v13900_v5 = vrot.slane %v12376_v51, 1 }
 0x41a   : > { %v3759_v19 = vadd.f32 %v3721_v17, %v3649_v21  ;;  %v2260_v20 = vsel %vm2236_vm2, %v2255_v18, %v13670_v52  ;;  %v13901_v12 = vrot.slane %v12389_v10, 2  ;;  %v2367_v26 = vsel %vm2343_vm6, %v2362_v32, %v13669_v11  ;;  %v13917_v11 = vld [vmem:[#allocation56_spill] sm:$0xff] }
 0x41b   : > { %v2256_v49 = vsel %vm2236_vm2, %v13900_v5, %v2255_v18  ;;  %v2293_v22 = vadd.f32 %v2260_v20, %v2190_v60  ;;  %v2473_v17 = vrot.slane %v2428_v40, 3  ;;  %v13665_v51 = vrot.slane %v12777_v46, 3 }
 0x41c   : > { %v2363_v21 = vsel %vm2343_vm6, %v13901_v12, %v2362_v32  ;;  %v3771_v56 = vpack.c.bf16 %v3761_v57, %v3759_v19  ;;  %v2291_v33 = vadd.f32 %v2256_v49, %v2188_v13  ;;  %v2539_v24 = vmul.f32 %v11493_v6, %v13843_v9 }
 0x41d   : > { %v12796_v18 = vmul.f32 %v11493_v6, %v13898_v14  ;;  %v2649_v10 = vmul.f32 %v13779_v34, %v13843_v9  ;;  %v2404_v32 = vadd.f32 %v2367_v26, %v2293_v22  ;;  %v13902_v19 = vrot.slane %v12395_v42, 3 }
 0x41e   : > { %9038 = vmatprep.mubr.msk.bf16.mxu1 %vm3906_vm11, %v3771_v56  ;;  %v2402_v5 = vadd.f32 %v2363_v21, %v2291_v33  ;;  %v12806_v60 = vmul.f32 %v13779_v34, %v13898_v14  ;;  %v2478_v57 = vsel %vm2454_vm7, %v2473_v17, %v13665_v51  ;;  %v2583_v40 = vrot.slane %v2539_v24, 4 }
 0x41f   : > { %v2474_v13 = vsel %vm2454_vm7, %v13902_v19, %v2473_v17  ;;  %v13664_v49 = vrot.slane %v12796_v18, 4  ;;  %v2694_v20 = vrot.slane %v2649_v10, 5  ;;  %v2515_v56 = vadd.f32 %v2478_v57, %v2404_v32 }
 0x420   : > { %v2513_v12 = vadd.f32 %v2474_v13, %v2402_v5  ;;  %v13662_v21 = vrot.slane %v12806_v60, 5  ;;  %v2760_v42 = vmul.f32 %v13782_v58, %v13843_v9  ;;  %v13903_v26 = vrot.slane %v12415_v61, 4 }
 0x421   : > { %v2588_v22 = vsel %vm2078_vm5, %v2583_v40, %v13664_v49  ;;  %v13904_v17 = vrot.slane %v12429_v41, 5  ;;  %v12826_v10 = vmul.f32 %v13782_v58, %v13898_v14  ;;  %v2871_v57 = vmul.f32 %v13783_v25, %v13843_v9 }
 0x422   : > { %v2584_v33 = vsel %vm2078_vm5, %v13903_v26, %v2583_v40  ;;  %v2625_v32 = vadd.f32 %v2588_v22, %v2515_v56  ;;  %v2699_v61 = vsel %vm2675_vm8, %v2694_v20, %v13662_v21  ;;  %v2805_v19 = vrot.slane %v2760_v42, 6 }
 0x423   : > { %v2695_v24 = vsel %vm2675_vm8, %v13904_v17, %v2694_v20  ;;  %v2623_v5 = vadd.f32 %v2584_v33, %v2513_v12  ;;  %v13663_v13 = vrot.slane %v12826_v10, 6  ;;  %v12836_v41 = vmul.f32 %v13783_v25, %v13898_v14 }
 0x424   : > { %v2980_v40 = vmul.f32 %v13788_v62, %v13843_v9  ;;  %v2736_v12 = vadd.f32 %v2699_v61, %v2625_v32  ;;  %v13905_v56 = vrot.slane %v12441_v29, 6  ;;  %v2982_v20 = vmul.f32 %v13788_v62, %v13898_v14 }
 0x425   : > { %v2734_v26 = vadd.f32 %v2695_v24, %v2623_v5  ;;  %v2810_v42 = vsel %vm2786_vm9, %v2805_v19, %v13663_v13  ;;  %v2916_v22 = vrot.slane %v2871_v57, 7  ;;  %v13666_v17 = vrot.slane %v12836_v41, 7  ;;  %v13906_v5 = vld [vmem:[#allocation78_spill] sm:$0xff] }
 0x426   : > { %v2806_v33 = vsel %vm2786_vm9, %v13905_v56, %v2805_v19  ;;  %v3022_v21 = vmul.f32 %v13791_v1, %v13898_v14  ;;  %v2847_v24 = vadd.f32 %v2810_v42, %v2736_v12  ;;  %v12853_v29 = vmul.f32 %v13791_v1, %v13906_v5 }
 0x427   : > { %v2845_v9 = vadd.f32 %v2806_v33, %v2734_v26  ;;  %v3124_v32 = vmul.f32 %v11529_v36, %v13898_v14  ;;  %v13908_v61 = vrot.slane %v12452_v44, 7  ;;  %v2921_v19 = vsel %vm2897_vm10, %v2916_v22, %v13666_v17 }
 0x428   : > { %13907 = vst [vmem:[#allocation42_spill] sm:$0xff] %v12853_v29  ;;  %v3062_v57 = vrot.slane %v3022_v21, 1  ;;  %v12865_v26 = vmul.f32 %v11529_v36, %v13906_v5  ;;  %v2958_v33 = vadd.f32 %v2921_v19, %v2847_v24  ;;  %v13667_v42 = vrot.slane %v12853_v29, 1  ;;  %v13912_v19 = vld [vmem:[#allocation47_spill] sm:$0xff]  ;;  %v13923_v29 = vld [vmem:[#allocation50_spill] sm:$0xff] }
 0x429   : > { %v2917_v56 = vsel %vm2897_vm10, %v13908_v61, %v2916_v22  ;;  %v3168_v13 = vrot.slane %v3124_v32, 2  ;;  %v13909_v49 = vrot.slane %v12472_v16, 1  ;;  %v3234_v51 = vmul.f32 %v13794_v47, %v13898_v14 }
 0x42a   : > { %v2956_v12 = vadd.f32 %v2917_v56, %v2845_v9  ;;  %v13668_v61 = vrot.slane %v12865_v26, 2  ;;  %v12876_v21 = vmul.f32 %v13794_v47, %v13906_v5  ;;  %v2998_v22 = vadd.f32 %v2982_v20, %v2958_v33  ;;  %v13914_v33 = vld [vmem:[#allocation61_spill] sm:$0xff] }
 0x42b   : > { %v3063_v44 = vsel %vm2236_vm2, %v13909_v49, %v3062_v57  ;;  %v3067_v9 = vsel %vm2236_vm2, %v3062_v57, %v13667_v42  ;;  %v13911_v24 = vrot.slane %v12485_v3, 2  ;;  %v3278_v32 = vrot.slane %v3234_v51, 3  ;;  %v13913_v3 = vld [vmem:[#allocation48_spill] sm:$0xff] }
 0x42c   : > { %13910 = vst [vmem:[#allocation65_spill] sm:$0xff] %v12876_v21  ;;  %v2996_v36 = vadd.f32 %v2980_v40, %v2956_v12  ;;  %v3173_v49 = vsel %vm2343_vm6, %v3168_v13, %v13668_v61  ;;  %v13673_v56 = vrot.slane %v12876_v21, 3  ;;  %v3344_v17 = vmul.f32 %v13912_v19, %v13898_v14 }
 0x42d   : > { %v3169_v16 = vsel %vm2343_vm6, %v13911_v24, %v3168_v13  ;;  %v3100_v20 = vadd.f32 %v3067_v9, %v2998_v22  ;;  %v12892_v12 = vmul.f32 %v13912_v19, %v13906_v5  ;;  %v3454_v57 = vmul.f32 %v13913_v3, %v13898_v14 }
 0x42e   : > { %v3098_v40 = vadd.f32 %v3063_v44, %v2996_v36  ;;  %v13915_v24 = vrot.slane %v13914_v33, 3  ;;  %v3283_v51 = vsel %vm2454_vm7, %v3278_v32, %v13673_v56  ;;  %v3388_v13 = vrot.slane %v3344_v17, 4 }
 0x42f   : > { %v12904_v44 = vmul.f32 %v13913_v3, %v13906_v5  ;;  %v3210_v22 = vadd.f32 %v3173_v49, %v3100_v20  ;;  %v13676_v9 = vrot.slane %v12892_v12, 4  ;;  %v3498_v61 = vrot.slane %v3454_v57, 5  ;;  %v13921_v49 = vld [vmem:[#allocation62_spill] sm:$0xff] }
 0x430   : > { %v3279_v42 = vsel %vm2454_vm7, %v13915_v24, %v3278_v32  ;;  %v3208_v36 = vadd.f32 %v3169_v16, %v3098_v40  ;;  %v13918_v52 = vrot.slane %v13917_v11, 4  ;;  %v3564_v21 = vmul.f32 %v13919_v2, %v13898_v14 }
 0x431   : > { %13916 = vst [vmem:[#allocation66_spill] sm:$0xff] %v12904_v44  ;;  %v13677_v24 = vrot.slane %v12904_v44, 5  ;;  %v12915_v17 = vmul.f32 %v13919_v2, %v13906_v5  ;;  %v3320_v56 = vadd.f32 %v3283_v51, %v3210_v22  ;;  %v3393_v16 = vsel %vm2078_vm5, %v3388_v13, %v13676_v9 }
 0x432   : > { %v3389_v33 = vsel %vm2078_vm5, %v13918_v52, %v3388_v13  ;;  %v3318_v32 = vadd.f32 %v3279_v42, %v3208_v36  ;;  %v13922_v40 = vrot.slane %v13921_v49, 5  ;;  %v3608_v20 = vrot.slane %v3564_v21, 6  ;;  %v13924_v13 = vld [vmem:[#allocation38_spill] sm:$0xff] }
 0x433   : > { %13920 = vst [vmem:[#allocation67_spill] sm:$0xff] %v12915_v17  ;;  %v3503_v52 = vsel %vm2675_vm8, %v3498_v61, %v13677_v24  ;;  %v13681_v57 = vrot.slane %v12915_v17, 6  ;;  %v3674_v2 = vmul.f32 %v13923_v29, %v13898_v14  ;;  %v3430_v51 = vadd.f32 %v3393_v16, %v3320_v56  ;;  %v13925_v49 = vld [vmem:[#allocation46_spill] sm:$0xff]  ;;  %v13927_v24 = vld [vmem:[#allocation80_spill] sm:$0xff] }
 0x434   : > { %v3499_v11 = vsel %vm2675_vm8, %v13922_v40, %v3498_v61  ;;  %v3428_v42 = vadd.f32 %v3389_v33, %v3318_v32  ;;  %v12931_v36 = vmul.f32 %v13923_v29, %v13906_v5  ;;  %v2193_v22 = vmul.f32 %v13924_v13, %v13865_v53 }
 0x435   : > { %v13926_v40 = vrot.slane %v13925_v49, 6  ;;  %v3613_v61 = vsel %vm2786_vm9, %v3608_v20, %v13681_v57  ;;  %v3718_v21 = vrot.slane %v3674_v2, 7  ;;  %v13928_v44 = vrot.slane %v13927_v24, 1  ;;  %v13934_v24 = vld [vmem:[#allocation82_spill] sm:$0xff] }
 0x436   : > { %v13929_v56 = vrot.slane %v12567_v50, 1  ;;  %v3538_v32 = vadd.f32 %v3499_v11, %v3428_v42  ;;  %v3540_v16 = vadd.f32 %v3503_v52, %v3430_v51  ;;  %v3722_v29 = vrot.slane %v12931_v36, 7  ;;  %v13937_v11 = vld [vmem:[#allocation83_spill] sm:$0xff] }
 0x437   : > { %v3609_v9 = vsel %vm2786_vm9, %v13926_v40, %v3608_v20  ;;  %v13930_v13 = vrot.slane %v12550_v48, 7  ;;  %v13931_v40 = vld [vmem:[#allocation81_spill] sm:$0xff]  ;;  %v13933_v20 = vrot.slane %v12579_v39, 2  ;;  %v13935_v57 = vrot.slane %v13934_v24, 3  ;;  %v13946_v24 = vld [vmem:[#allocation86_spill] sm:$0xff] }
 0x438   : > { %v2266_v33 = vsel %vm2236_vm2, %v13929_v56, %v13928_v44  ;;  %v13932_v17 = vrot.slane %v13931_v40, 2  ;;  %v13936_v50 = vrot.slane %v12587_v28, 3  ;;  %v13938_v52 = vrot.slane %v13937_v11, 4 }
 0x439   : > { %v2296_v53 = vadd.f32 %v2266_v33, %v2193_v22  ;;  %v3719_v49 = vsel %vm2897_vm10, %v13930_v13, %v3718_v21  ;;  %v13939_v42 = vrot.slane %v12606_v23, 4  ;;  %v3648_v51 = vadd.f32 %v3609_v9, %v3538_v32 }
 0x43a   : > { %v2373_v2 = vsel %vm2343_vm6, %v13933_v20, %v13932_v17  ;;  %v2484_v44 = vsel %vm2454_vm7, %v13936_v50, %v13935_v57  ;;  %v3650_v22 = vadd.f32 %v3613_v61, %v3540_v16  ;;  %v3723_v39 = vsel %vm2897_vm10, %v3718_v21, %v3722_v29  ;;  %v13940_v17 = vld [vmem:[#allocation84_spill] sm:$0xff]  ;;  %v13943_v57 = vld [vmem:[#allocation85_spill] sm:$0xff]  ;;  %v13949_v21 = vld [vmem:[#allocation51_spill] sm:$0xff] }
 0x43b   : > { %v2594_v48 = vsel %vm2078_vm5, %v13939_v42, %v13938_v52  ;;  %v2407_v56 = vadd.f32 %v2373_v2, %v2296_v53  ;;  %v13941_v33 = vrot.slane %v13940_v17, 5  ;;  %v13942_v13 = vrot.slane %v12619_v8, 5  ;;  %v13950_v50 = vld [vmem:[#allocation96_spill] sm:$0xff]  ;;  %v13953_v42 = vld [vmem:[#allocation97_spill] sm:$0xff] }
 0x43c   : > { %v13944_v40 = vrot.slane %v13943_v57, 6  ;;  %v13945_v20 = vrot.slane %v12632_v43, 6  ;;  %v13947_v9 = vrot.slane %v13946_v24, 7  ;;  %v13948_v61 = vrot.slane %v12645_v35, 7 }
 0x43d   : > { %v2705_v28 = vsel %vm2675_vm8, %v13942_v13, %v13941_v33  ;;  %v2985_v16 = vmul.f32 %v13949_v21, %v13884_v0  ;;  %v3758_v53 = vadd.f32 %v3719_v49, %v3648_v51  ;;  %v3760_v2 = vadd.f32 %v3723_v39, %v3650_v22  ;;  %v13956_v13 = vld [vmem:[#allocation98_spill] sm:$0xff]  ;;  %v13959_v49 = vld [vmem:[#allocation104_spill] sm:$0xff] }
 0x43e   : > { %v2816_v23 = vsel %vm2786_vm9, %v13945_v20, %v13944_v40  ;;  %v2927_v32 = vsel %vm2897_vm10, %v13948_v61, %v13947_v9  ;;  %v2518_v8 = vadd.f32 %v2484_v44, %v2407_v56  ;;  %v13951_v11 = vrot.slane %v13950_v50, 1  ;;  %v13960_v44 = vld [vmem:[#allocation103_spill] sm:$0xff]  ;;  %v13961_v22 = vld [vmem:[#allocation88_spill] sm:$0xff] }
 0x43f   : > { %v13952_v52 = vrot.slane %v12662_v27, 1  ;;  %v13954_v17 = vrot.slane %v13953_v42, 2  ;;  %v13955_v33 = vrot.slane %v12674_v59, 2  ;;  %v13957_v57 = vrot.slane %v13956_v13, 3  ;;  %v13965_v50 = vld [vmem:[#allocation99_spill] sm:$0xff]  ;;  %v13969_v13 = vld [vmem:[#allocation100_spill] sm:$0xff] }
 0x440   : > { %v13958_v40 = vrot.slane %v12682_v30, 3  ;;  %v3325_v51 = vadd.f32 %v13960_v44, %v13959_v49  ;;  %v3349_v27 = vmul.f32 %v11559_v7, %v13961_v22  ;;  %v3770_v39 = vpack.c.bf16 %v3760_v2, %v3758_v53  ;;  %v13962_v53 = vld [vmem:[#allocation34_spill] sm:$0xff]  ;;  %v13971_v49 = vld [vmem:[#allocation64_spill] sm:$0xff] }
 0x441   : > { %v3073_v43 = vsel %vm2236_vm2, %v13952_v52, %v13951_v11  ;;  %v3179_v35 = vsel %vm2343_vm6, %v13955_v33, %v13954_v17  ;;  %v2628_v56 = vadd.f32 %v2594_v48, %v2518_v8  ;;  %v3459_v20 = vmul.f32 %v13891_v4, %v13961_v22  ;;  %v13963_v2 = vld [vmem:[#allocation70_spill] sm:$0xff] }
 0x442   : > { %v3289_v0 = vsel %vm2454_vm7, %v13958_v40, %v13957_v57  ;;  %v3569_v59 = vmul.f32 %v11565_v55, %v13961_v22  ;;  %v3398_v24 = vrot.slane %v3349_v27, 4  ;;  %v3679_v30 = vmul.f32 %v11568_v38, %v13961_v22  ;;  %3972 = vmatmul.mubr.bf16.gmra.mrb[28].mxu1 %v3770_v39  ;;  %v13973_v27 = vld [vmem:[#allocation101_spill] sm:$0xff] }
 0x443   : > { %v2192_v9 = vmul.f32 %v11481_v45, %v13898_v14  ;;  %v2194_v61 = vmul.f32 %v11481_v45, %v13906_v5  ;;  %v2739_v7 = vadd.f32 %v2705_v28, %v2628_v56  ;;  %v3508_v21 = vrot.slane %v3459_v20, 5  ;;  %v13967_v28 = vld [vmem:[#allocation63_spill] sm:$0xff] }
 0x444   : > { %v3618_v48 = vrot.slane %v3569_v59, 6  ;;  %v2218_v4 = vmul.f32 %v13962_v53, %v13906_v5  ;;  %v13964_v8 = vrot.slane %v13963_v2, 4  ;;  %v13966_v11 = vrot.slane %v13965_v50, 4  ;;  %v13978_v53 = vld [vmem:[#allocation87_spill] sm:$0xff] }
 0x445   : > { %v3728_v52 = vrot.slane %v3679_v30, 7  ;;  %v2321_v14 = vmul.f32 %v11487_v37, %v13906_v5  ;;  %v2850_v45 = vadd.f32 %v2816_v23, %v2739_v7  ;;  %v13968_v17 = vrot.slane %v13967_v28, 5 }
 0x446   : > { %v3399_v55 = vsel %vm2078_vm5, %v13964_v8, %v3398_v24  ;;  %v3403_v38 = vsel %vm2078_vm5, %v3398_v24, %v13966_v11  ;;  %v13970_v57 = vrot.slane %v13969_v13, 5  ;;  %v13972_v44 = vrot.slane %v13971_v49, 6 }
 0x447   : > { %v3435_v42 = vadd.f32 %v3403_v38, %v3325_v51  ;;  %v3509_v33 = vsel %vm2675_vm8, %v13968_v17, %v3508_v21  ;;  %v13974_v39 = vrot.slane %v13973_v27, 6  ;;  %v13975_v20 = vrot.slane %v12740_v31, 7  ;;  %v13976_v51 = vld [vmem:[#allocation102_spill] sm:$0xff] }
 0x448   : > { %v3513_v40 = vsel %vm2675_vm8, %v3508_v21, %v13970_v57  ;;  %v3619_v22 = vsel %vm2786_vm9, %v13972_v44, %v3618_v48  ;;  %v13977_v59 = vrot.slane %v13976_v51, 7  ;;  %v2961_v30 = vadd.f32 %v2927_v32, %v2850_v45 }
 0x449   : > { %v3623_v56 = vsel %vm2786_vm9, %v3618_v48, %v13974_v39  ;;  %v13039_v23 = vsel %vm2897_vm10, %v13975_v20, %v3728_v52  ;;  %v3545_v7 = vadd.f32 %v3513_v40, %v3435_v42  ;;  %v2263_v21 = vrot.slane %v2218_v4, 1 }
 0x44a   : > { %v3733_v24 = vsel %vm2897_vm10, %v3728_v52, %v13977_v59  ;;  %v2323_v2 = vmul.f32 %v11487_v37, %v13978_v53  ;;  %v2370_v8 = vrot.slane %v2321_v14, 2  ;;  %v2432_v50 = vmul.f32 %v11490_v15, %v13906_v5 }
 0x44b   : > { %v2434_v31 = vmul.f32 %v11490_v15, %v13978_v53  ;;  %v2543_v48 = vmul.f32 %v11493_v6, %v13906_v5  ;;  %v3001_v11 = vadd.f32 %v2985_v16, %v2961_v30  ;;  %v3655_v38 = vadd.f32 %v3623_v56, %v3545_v7 }
 0x44c   : > { %v13979_v52 = vrot.slane %v12757_v63, 1  ;;  %v2297_v4 = vadd.f32 %v2263_v21, %v2194_v61  ;;  %v13980_v37 = vrot.slane %v12763_v54, 2  ;;  %v2374_v42 = vrot.slane %v2323_v2, 2 }
 0x44d   : > { %v2481_v28 = vrot.slane %v2432_v50, 3  ;;  %v3103_v17 = vadd.f32 %v3073_v43, %v3001_v11  ;;  %v13058_v13 = vadd.f32 %v3733_v24, %v3655_v38  ;;  %v2485_v15 = vrot.slane %v2434_v31, 3 }
 0x44e   : > { %v2264_v32 = vsel %vm2236_vm2, %v13979_v52, %v2263_v21  ;;  %v2371_v14 = vsel %vm2343_vm6, %v13980_v37, %v2370_v8  ;;  %v2545_v16 = vmul.f32 %v11493_v6, %v13978_v53  ;;  %v2375_v57 = vsel %vm2343_vm6, %v2370_v8, %v2374_v42 }
 0x44f   : > { %v2295_v45 = vadd.f32 %v2264_v32, %v2192_v9  ;;  %v13981_v40 = vrot.slane %v12777_v46, 3  ;;  %v2591_v61 = vrot.slane %v2543_v48, 4  ;;  %v3213_v54 = vadd.f32 %v3179_v35, %v3103_v17 }
 0x450   : > { %v2408_v49 = vadd.f32 %v2375_v57, %v2297_v4  ;;  %v2486_v44 = vsel %vm2454_vm7, %v2481_v28, %v2485_v15  ;;  %v2595_v27 = vrot.slane %v2545_v16, 4  ;;  %v13982_v39 = vrot.slane %v12796_v18, 4  ;;  %v13986_v16 = vld [vmem:[#allocation89_spill] sm:$0xff] }
 0x451   : > { %v2406_v63 = vadd.f32 %v2371_v14, %v2295_v45  ;;  %v2482_v9 = vsel %vm2454_vm7, %v13981_v40, %v2481_v28  ;;  %v2653_v6 = vmul.f32 %v13779_v34, %v13906_v5  ;;  %v2655_v20 = vmul.f32 %v13779_v34, %v13978_v53 }
 0x452   : > { %v2592_v56 = vsel %vm2078_vm5, %v13982_v39, %v2591_v61  ;;  %v3323_v46 = vadd.f32 %v3289_v0, %v3213_v54  ;;  %v2519_v51 = vadd.f32 %v2486_v44, %v2408_v49  ;;  %v2596_v59 = vsel %vm2078_vm5, %v2591_v61, %v2595_v27  ;;  %v13989_v54 = vld [vmem:[#allocation49_spill] sm:$0xff] }
 0x453   : > { %v2517_v43 = vadd.f32 %v2482_v9, %v2406_v63  ;;  %v2764_v35 = vmul.f32 %v13782_v58, %v13906_v5  ;;  %v2702_v30 = vrot.slane %v2653_v6, 5  ;;  %v2706_v7 = vrot.slane %v2655_v20, 5 }
 0x454   : > { %v2766_v18 = vmul.f32 %v13782_v58, %v13978_v53  ;;  %v3433_v21 = vadd.f32 %v3399_v55, %v3323_v46  ;;  %v2629_v2 = vadd.f32 %v2596_v59, %v2519_v51  ;;  %v2875_v50 = vmul.f32 %v13783_v25, %v13906_v5 }
 0x455   : > { %v2627_v24 = vadd.f32 %v2592_v56, %v2517_v43  ;;  %v2813_v8 = vrot.slane %v2764_v35, 6  ;;  %v13983_v34 = vrot.slane %v12806_v60, 5  ;;  %v2707_v31 = vsel %vm2675_vm8, %v2702_v30, %v2706_v7  ;;  %v13990_v43 = vld [vmem:[#allocation42_spill] sm:$0xff] }
 0x456   : > { %v2817_v48 = vrot.slane %v2766_v18, 6  ;;  %v2877_v11 = vmul.f32 %v13783_v25, %v13978_v53  ;;  %v3543_v38 = vadd.f32 %v3509_v33, %v3433_v21  ;;  %v2740_v32 = vadd.f32 %v2707_v31, %v2629_v2  ;;  %v13994_v35 = vld [vmem:[#allocation90_spill] sm:$0xff]  ;;  %v13997_v18 = vld [vmem:[#allocation91_spill] sm:$0xff] }
 0x457   : > { %v2703_v0 = vsel %vm2675_vm8, %v13983_v34, %v2702_v30  ;;  %v13984_v58 = vrot.slane %v12826_v10, 6  ;;  %v2924_v45 = vrot.slane %v2875_v50, 7  ;;  %v2984_v60 = vmul.f32 %v13788_v62, %v13906_v5 }
 0x458   : > { %v2738_v52 = vadd.f32 %v2703_v0, %v2627_v24  ;;  %v2818_v4 = vsel %vm2786_vm9, %v2813_v8, %v2817_v48  ;;  %v2928_v37 = vrot.slane %v2877_v11, 7  ;;  %v3653_v14 = vadd.f32 %v3619_v22, %v3543_v38  ;;  %v14001_v0 = vld [vmem:[#allocation92_spill] sm:$0xff]  ;;  %v14003_v38 = vld [vmem:[#allocation95_spill] sm:$0xff] }
 0x459   : > { %v2814_v55 = vsel %vm2786_vm9, %v13984_v58, %v2813_v8  ;;  %v2851_v28 = vadd.f32 %v2818_v4, %v2740_v32  ;;  %v2986_v25 = vmul.f32 %v13788_v62, %v13978_v53  ;;  %v13985_v33 = vrot.slane %v12836_v41, 7  ;;  %v13999_v8 = vld [vmem:[#allocation66_spill] sm:$0xff]  ;;  %v14004_v32 = vld [vmem:[#allocation67_spill] sm:$0xff] }
 0x45a   : > { %v2849_v42 = vadd.f32 %v2814_v55, %v2738_v52  ;;  %v2929_v10 = vsel %vm2897_vm10, %v2924_v45, %v2928_v37  ;;  %v3026_v15 = vmul.f32 %v13791_v1, %v13978_v53  ;;  %v13987_v57 = vrot.slane %v13986_v16, 2  ;;  %v14006_v55 = vld [vmem:[#allocation93_spill] sm:$0xff]  ;;  %v14008_v37 = vld [vmem:[#allocation50_spill] sm:$0xff] }
 0x45b   : > { %v2925_v17 = vsel %vm2897_vm10, %v13985_v33, %v2924_v45  ;;  %v13988_v63 = vrot.slane %v12865_v26, 2  ;;  %v3763_v22 = vadd.f32 %v13039_v23, %v3653_v14  ;;  %v2962_v9 = vadd.f32 %v2929_v10, %v2851_v28  ;;  %v14009_v14 = vld [vmem:[#allocation94_spill] sm:$0xff] }
 0x45c   : > { %v2960_v40 = vadd.f32 %v2925_v17, %v2849_v42  ;;  %v3238_v62 = vmul.f32 %v13794_v47, %v13978_v53  ;;  %v3070_v41 = vrot.slane %v3026_v15, 1  ;;  %v3348_v61 = vmul.f32 %v13912_v19, %v13978_v53 }
 0x45d   : > { %v3177_v5 = vsel %vm2343_vm6, %v13988_v63, %v13987_v57  ;;  %v3458_v1 = vmul.f32 %v13913_v3, %v13978_v53  ;;  %v3568_v49 = vmul.f32 %v13989_v54, %v13978_v53  ;;  %v3773_v26 = vpack.c.bf16 %v13058_v13, %v3763_v22  ;;  %v13992_v3 = vld [vmem:[#allocation65_spill] sm:$0xff] }
 0x45e   : > { %v3000_v44 = vadd.f32 %v2984_v60, %v2960_v40  ;;  %v3002_v27 = vadd.f32 %v2986_v25, %v2962_v9  ;;  %v3286_v23 = vrot.slane %v3238_v62, 3  ;;  %v13991_v39 = vrot.slane %v13990_v43, 1  ;;  %v3794_v62 = vld [vmem:[#allocation12] sm:$0x3] }
 0x45f   : > { %v3396_v47 = vrot.slane %v3348_v61, 4  ;;  %v3506_v6 = vrot.slane %v3458_v1, 5  ;;  %v3616_v20 = vrot.slane %v3568_v49, 6  ;;  %9039 = vmatprep.mubr.msk.bf16.mxu1 %vm3906_vm11, %v3773_v26  ;;  %v13993_v51 = vrot.slane %v13992_v3, 3 }
 0x460   : > { %v3071_v56 = vsel %vm2236_vm2, %v13991_v39, %v3070_v41  ;;  %v3104_v46 = vadd.f32 %v3070_v41, %v3002_v27  ;;  %v13995_v13 = vrot.slane %v13994_v35, 3  ;;  %v13996_v30 = vrot.slane %v12892_v12, 4  ;;  %v14010_v41 = vld [vmem:[#allocation26_spill] sm:$0xff] }
 0x461   : > { %v3102_v19 = vadd.f32 %v3071_v56, %v3000_v44  ;;  %v3287_v59 = vsel %vm2454_vm7, %v13993_v51, %v3286_v23  ;;  %v13998_v21 = vrot.slane %v13997_v18, 4  ;;  %v14000_v50 = vrot.slane %v13999_v8, 5 }
 0x462   : > { %v3291_v24 = vsel %vm2454_vm7, %v3286_v23, %v13995_v13  ;;  %v3397_v7 = vsel %vm2078_vm5, %v13996_v30, %v3396_v47  ;;  %v14002_v31 = vrot.slane %v14001_v0, 5  ;;  %v3214_v52 = vadd.f32 %v14003_v38, %v3104_v46 }
 0x463   : > { %v3401_v2 = vsel %vm2078_vm5, %v3396_v47, %v13998_v21  ;;  %v3507_v34 = vsel %vm2675_vm8, %v14000_v50, %v3506_v6  ;;  %v3212_v11 = vadd.f32 %v3177_v5, %v3102_v19  ;;  %v14005_v58 = vrot.slane %v14004_v32, 6 }
 0x464   : > { %v3511_v48 = vsel %vm2675_vm8, %v3506_v6, %v14002_v31  ;;  %v14007_v4 = vrot.slane %v14006_v55, 6  ;;  %v3678_v60 = vmul.f32 %v14008_v37, %v13978_v53  ;;  %v3730_v42 = vrot.slane %v14009_v14, 7 }
 0x465   : > { %v3617_v12 = vsel %vm2786_vm9, %v14005_v58, %v3616_v20  ;;  %v3322_v28 = vadd.f32 %v3287_v59, %v3212_v11  ;;  %v3324_v25 = vadd.f32 %v3291_v24, %v3214_v52  ;;  %v13153_v61 = vrot.slane %v3794_v62, %v14010_v41 }
 0x466   : > { %v3621_v45 = vsel %vm2786_vm9, %v3616_v20, %v14007_v4  ;;  %v3726_v33 = vrot.slane %v3678_v60, 7  ;;  %v14011_v20 = vld [vmem:[#allocation27_spill] sm:$0xff]  ;;  %v10395_v38 = vmov 0  }
 0x467   : > { %v3432_v17 = vadd.f32 %v3397_v7, %v3322_v28  ;;  %v3434_v10 = vadd.f32 %v3401_v2, %v3324_v25  ;;  %v13158_v19 = vrot.slane %v3794_v62, %v14011_v20 }
 0x468   : > { %v3727_v15 = vsel %vm2897_vm10, %v3722_v29, %v3726_v33  ;;  %v3731_v16 = vsel %vm2897_vm10, %v3726_v33, %v3730_v42  ;;  %vm4101_vm10 = vcmask 1047552  }
 0x469   : > { %v3542_v57 = vadd.f32 %v3507_v34, %v3432_v17  ;;  %v3544_v63 = vadd.f32 %v3511_v48, %v3434_v10 }
 0x46b   : > { %v3652_v5 = vadd.f32 %v3617_v12, %v3542_v57  ;;  %v3654_v22 = vadd.f32 %v3621_v45, %v3544_v63 }
 0x46d   : > { %v3762_v40 = vadd.f32 %v3727_v15, %v3652_v5  ;;  %v3764_v9 = vadd.f32 %v3731_v16, %v3654_v22 }
 0x46f   : > { %v3772_v53 = vpack.c.bf16 %v3764_v9, %v3762_v40 }
 0x471   : > { %3982 = vmatmul.mubr.bf16.gmra.mrb[32].mxu1 %v3772_v53 }
 0x472   : > { %4142 = vmatprep.mubr.bf16.mxu1 %v10395_v38 }
 0x48b   : > { %v3953_v1 = vpop.f32.mrb[20].mxu1 }
 0x48c   : > { %v3954_v54 = vadd.f32 %v3953_v1, %v13153_v61  ;;  %v3955_v36 = vpop.f32.mrb[21].mxu1 }
 0x48d   : > { %v3957_v49 = vpop.f32.mrb[22].mxu1  ;;  %v3956_v59 = vadd.f32 %v3955_v36, %v13158_v19 }
 0x48e   : > { %v4008_v29 = vmin.f32 %v3954_v54, 0.0  ;;  %v3958_v26 = vadd.f32 %v3957_v49, %v13153_v61  ;;  %v3959_v44 = vpop.f32.mrb[23].mxu1  ;;  %vm3992_vm12 = vcmp.gt.f32.partialorder %v3954_v54, 0.0 }
 0x48f   : > { %v3960_v35 = vadd.f32 %v3959_v44, %v13158_v19  ;;  %v4009_v13 = vmin.f32 %v3956_v59, 0.0  ;;  %vm3993_vm14 = vcmp.gt.f32.partialorder %v3956_v59, 0.0 }
 0x490   : > { %v4024_v27 = vmul.f32 1.442695, %v4008_v29  ;;  %v4010_v23 = vmin.f32 %v3958_v26, 0.0  ;;  %vm3994_vm13 = vcmp.gt.f32.partialorder %v3958_v26, 0.0 }
 0x491   : > { %v4011_v24 = vmin.f32 %v3960_v35, 0.0  ;;  %v4026_v30 = vmul.f32 1.442695, %v4009_v13  ;;  %vm3995_vm15 = vcmp.gt.f32.partialorder %v3960_v35, 0.0 }
 0x492   : > { %10110 = vpow2.f32 %v4024_v27  ;;  %v4028_v43 = vmul.f32 1.442695, %v4010_v23 }
 0x493   : > { %v4030_v7 = vmul.f32 1.442695, %v4011_v24 }
 0x494   : > { %10112 = vpow2.f32 %v4028_v43 }
 0x495   : > { %10114 = vpow2.f32 %v4026_v30 }
 0x496   : > { %10116 = vpow2.f32 %v4030_v7 }
 0x49c   : > { %v10111_v39 = vpop.eup %10110 }
 0x49d   : > { %v9040_v56 = vadd.f32 -1.0, %v10111_v39 }
 0x49e   : > { %v10113_v47 = vpop.eup %10112 }
 0x49f   : > { %v9042_v6 = vadd.f32 -1.0, %v10113_v47  ;;  %v4072_v46 = vsel %vm3992_vm12, %v3954_v54, %v9040_v56  ;;  %v10115_v18 = vpop.eup %10114 }
 0x4a0   : > { %v10117_v21 = vpop.eup %10116  ;;  %v9041_v2 = vadd.f32 -1.0, %v10115_v18 }
 0x4a1   : > { %v4074_v3 = vsel %vm3994_vm13, %v3958_v26, %v9042_v6  ;;  %v9043_v8 = vadd.f32 -1.0, %v10117_v21 }
 0x4a2   : > { %v4089_v51 = vpack.c.bf16 %v4074_v3, %v4072_v46  ;;  %v4073_v50 = vsel %vm3993_vm14, %v3956_v59, %v9041_v2 }
 0x4a3   : > { %v4075_v34 = vsel %vm3995_vm15, %v3960_v35, %v9043_v8 }
 0x4a4   : > { %v4090_v0 = vpack.c.bf16 %v4075_v34, %v4073_v50 }
 0x4a6   : > { %4110 = vmatprep.subr.bf16.mxu1 %v4090_v0 }
 0x4a7   : > { %4111 = vmatpush1.bf16.msra.mxu1 %v4089_v51 }
 0x4cf   : > { %v3963_v31 = vpop.f32.mrb[24].mxu1 }
 0x4d0   : > { %v3964_v48 = vadd.f32 %v3963_v31, %v13153_v61  ;;  %v3965_v11 = vpop.f32.mrb[25].mxu1 }
 0x4d1   : > { %v3966_v52 = vadd.f32 %v3965_v11, %v13158_v19  ;;  %v3967_v32 = vpop.f32.mrb[26].mxu1 }
 0x4d2   : > { %v4012_v58 = vmin.f32 %v3964_v48, 0.0  ;;  %v3968_v12 = vadd.f32 %v3967_v32, %v13153_v61  ;;  %v3969_v55 = vpop.f32.mrb[27].mxu1  ;;  %vm3996_vm0 = vcmp.gt.f32.partialorder %v3964_v48, 0.0 }
 0x4d3   : > { %v4013_v4 = vmin.f32 %v3966_v52, 0.0  ;;  %v3970_v45 = vadd.f32 %v3969_v55, %v13158_v19  ;;  %vm3997_vm3 = vcmp.gt.f32.partialorder %v3966_v52, 0.0 }
 0x4d4   : > { %v4032_v37 = vmul.f32 1.442695, %v4012_v58  ;;  %v4014_v60 = vmin.f32 %v3968_v12, 0.0  ;;  %vm3998_vm1 = vcmp.gt.f32.partialorder %v3968_v12, 0.0 }
 0x4d5   : > { %v4034_v14 = vmul.f32 1.442695, %v4013_v4  ;;  %v4015_v42 = vmin.f32 %v3970_v45, 0.0  ;;  %vm3999_vm4 = vcmp.gt.f32.partialorder %v3970_v45, 0.0 }
 0x4d6   : > { %10118 = vpow2.f32 %v4032_v37  ;;  %v4036_v28 = vmul.f32 1.442695, %v4014_v60 }
 0x4d7   : > { %10120 = vpow2.f32 %v4034_v14  ;;  %v4038_v25 = vmul.f32 1.442695, %v4015_v42 }
 0x4d8   : > { %10122 = vpow2.f32 %v4036_v28 }
 0x4d9   : > { %10124 = vpow2.f32 %v4038_v25 }
 0x4e0   : > { %v10119_v33 = vpop.eup %10118 }
 0x4e1   : > { %v10121_v17 = vpop.eup %10120  ;;  %v9044_v10 = vadd.f32 -1.0, %v10119_v33 }
 0x4e2   : > { %v10123_v15 = vpop.eup %10122  ;;  %v9045_v16 = vadd.f32 -1.0, %v10121_v17 }
 0x4e3   : > { %v10125_v57 = vpop.eup %10124  ;;  %v9046_v63 = vadd.f32 -1.0, %v10123_v15  ;;  %v4076_v22 = vsel %vm3996_vm0, %v3964_v48, %v9044_v10 }
 0x4e4   : > { %v9047_v5 = vadd.f32 -1.0, %v10125_v57  ;;  %v4077_v53 = vsel %vm3997_vm3, %v3966_v52, %v9045_v16  ;;  %v10396_v16 = vmov 65535  }
 0x4e5   : > { %v4078_v40 = vsel %vm3998_vm1, %v3968_v12, %v9046_v63 }
 0x4e6   : > { %v4091_v9 = vpack.c.bf16 %v4078_v40, %v4076_v22  ;;  %v4079_v62 = vsel %vm3999_vm4, %v3970_v45, %v9047_v5 }
 0x4e7   : > { %v4092_v41 = vpack.c.bf16 %v4079_v62, %v4077_v53 }
 0x4e9   : > { %4112 = vmatprep.subr.bf16.mxu1 %v4092_v41 }
 0x4ea   : > { %4113 = vmatpush1.bf16.msra.mxu1 %v4091_v9 }
 0x515   : > { %v3973_v1 = vpop.f32.mrb[28].mxu1 }
 0x516   : > { %v3974_v54 = vadd.f32 %v3973_v1, %v13153_v61  ;;  %v3975_v36 = vpop.f32.mrb[29].mxu1 }
 0x517   : > { %v3976_v49 = vadd.f32 %v3975_v36, %v13158_v19  ;;  %v3977_v29 = vpop.f32.mrb[30].mxu1  ;;  %v10397_v36 = vmov 1966171168  }
 0x518   : > { %v4016_v26 = vmin.f32 %v3974_v54, 0.0  ;;  %v3978_v44 = vadd.f32 %v3977_v29, %v13153_v61  ;;  %v3979_v27 = vpop.f32.mrb[31].mxu1  ;;  %vm4000_vm5 = vcmp.gt.f32.partialorder %v3974_v54, 0.0 }
 0x519   : > { %v4017_v23 = vmin.f32 %v3976_v49, 0.0  ;;  %v3980_v43 = vadd.f32 %v3979_v27, %v13158_v19  ;;  %vm4001_vm7 = vcmp.gt.f32.partialorder %v3976_v49, 0.0 }
 0x51a   : > { %v4040_v39 = vmul.f32 1.442695, %v4016_v26  ;;  %v4018_v56 = vmin.f32 %v3978_v44, 0.0  ;;  %vm4002_vm6 = vcmp.gt.f32.partialorder %v3978_v44, 0.0 }
 0x51b   : > { %v4042_v47 = vmul.f32 1.442695, %v4017_v23  ;;  %v4019_v6 = vmin.f32 %v3980_v43, 0.0  ;;  %vm4003_vm8 = vcmp.gt.f32.partialorder %v3980_v43, 0.0 }
 0x51c   : > { %10126 = vpow2.f32 %v4040_v39  ;;  %v4044_v20 = vmul.f32 1.442695, %v4018_v56 }
 0x51d   : > { %10128 = vpow2.f32 %v4042_v47  ;;  %v4046_v46 = vmul.f32 1.442695, %v4019_v6 }
 0x51e   : > { %10130 = vpow2.f32 %v4044_v20 }
 0x51f   : > { %10132 = vpow2.f32 %v4046_v46  ;;  %v14013_v46 = vlaneseq }
 0x521   : > { %vm4171_vm0 = vcmp.lt.s32.totalorder %v14013_v46, 160  ;;  %vm13186_vm1 = vcmp.ge.s32.totalorder %v14013_v46, 32  ;;  %vm13191_vm3 = vcmp.lt.s32.totalorder %v14013_v46, 192  ;;  %vm13196_vm4 = vcmp.ge.s32.totalorder %v14013_v46, 64 }
 0x526   : > { %v10127_v3 = vpop.eup %10126 }
 0x527   : > { %v10129_v51 = vpop.eup %10128  ;;  %v9048_v59 = vadd.f32 -1.0, %v10127_v3 }
 0x528   : > { %v10131_v35 = vpop.eup %10130  ;;  %v9049_v13 = vadd.f32 -1.0, %v10129_v51 }
 0x529   : > { %v10133_v24 = vpop.eup %10132  ;;  %v9050_v30 = vadd.f32 -1.0, %v10131_v35  ;;  %v4080_v18 = vsel %vm4000_vm5, %v3974_v54, %v9048_v59  ;;  %v4088_v54 = vld [vmem:[#allocation13] sm:$0xf]  ;;  %vm13201_vm5 = vcmp.lt.s32.totalorder %v14013_v46, 224 }
 0x52a   : > { %v9051_v7 = vadd.f32 -1.0, %v10133_v24  ;;  %v4081_v8 = vsel %vm4001_vm7, %v3976_v49, %v9049_v13  ;;  %v4155_v49 = vunpack.c.l.s4 %v10397_v36  ;;  %vm4197_vm7 = vmand %vm13186_vm1, %vm13191_vm3 }
 0x52b   : > { %v4082_v21 = vsel %vm4002_vm6, %v3978_v44, %v9050_v30  ;;  %v14012_v44 = vld [vmem:[#allocation25_spill] sm:$0xff]  ;;  %vm4207_vm6 = vcmask 523264  }
 0x52c   : > { %v4093_v2 = vpack.c.bf16 %v4082_v21, %v4080_v18  ;;  %v4083_v50 = vsel %vm4003_vm8, %v3980_v43, %v9051_v7  ;;  %v4156_v29 = vunpack.c.0.s8 %v4155_v49  ;;  %vm4212_vm8 = vmand %vm13196_vm4, %vm13201_vm5  ;;  %v4372_v49 = vld [vmem:[#allocation15 + $0xc0] sm:$0xff] (%p140_p8)  ;;  %v4393_v21 = vld [vmem:[#allocation15 + $0x168] sm:$0xff] (%p140_p8) }
 0x52d   : > { %v4094_v34 = vpack.c.bf16 %v4083_v50, %v4081_v8 }
 0x52e   : > { %v4159_v27 = vsub.s32 %v4156_v29, %v14012_v44  ;;  %v4376_v29 = vld [vmem:[#allocation15 + $0xe0] sm:$0xff] (%p140_p8)  ;;  %v4377_v44 = vld [vmem:[#allocation15 + $0xe8] sm:$0xff] (%p140_p8) }
 0x52f   : > { %4114 = vmatprep.subr.bf16.mxu1 %v4094_v34 }
 0x530   : > { %4115 = vmatpush1.bf16.msra.mxu1 %v4093_v2 }
 0x544   : > { %v3983_v0 = vpop.f32.mrb[32].mxu1 }
 0x545   : > { %v3984_v31 = vadd.f32 %v3983_v0, %v13153_v61  ;;  %v3985_v48 = vpop.f32.mrb[33].mxu1 }
 0x546   : > { %v3986_v11 = vadd.f32 %v3985_v48, %v13158_v19  ;;  %v3987_v38 = vpop.f32.mrb[34].mxu1 }
 0x547   : > { %v4020_v52 = vmin.f32 %v3984_v31, 0.0  ;;  %v3988_v32 = vadd.f32 %v3987_v38, %v13153_v61  ;;  %v3989_v58 = vpop.f32.mrb[35].mxu1  ;;  %vm4004_vm12 = vcmp.gt.f32.partialorder %v3984_v31, 0.0 }
 0x548   : > { %v4021_v12 = vmin.f32 %v3986_v11, 0.0  ;;  %v3990_v55 = vadd.f32 %v3989_v58, %v13158_v19  ;;  %v4102_v19 = vsel %vm2236_vm2, 4294967295, %v10396_v16  ;;  %vm4005_vm14 = vcmp.gt.f32.partialorder %v3986_v11, 0.0 }
 0x549   : > { %v4048_v4 = vmul.f32 1.442695, %v4020_v52  ;;  %v4022_v45 = vmin.f32 %v3988_v32, 0.0  ;;  %vm4006_vm13 = vcmp.gt.f32.partialorder %v3988_v32, 0.0  ;;  %v4103_v53 = vsel %vm4101_vm10, %v4102_v19, 0 }
 0x54a   : > { %v4050_v37 = vmul.f32 1.442695, %v4021_v12  ;;  %v4023_v60 = vmin.f32 %v3990_v55, 0.0  ;;  %vm4007_vm15 = vcmp.gt.f32.partialorder %v3990_v55, 0.0  ;;  %vm4097_vm2 = vcmask 515072  }
 0x54b   : > { %10134 = vpow2.f32 %v4048_v4  ;;  %v4052_v14 = vmul.f32 1.442695, %v4022_v45  ;;  %vm13214_vm10 = vcmp.ge.s32.totalorder %v14013_v46, 96 }
 0x54c   : > { %10136 = vpow2.f32 %v4050_v37  ;;  %v4054_v42 = vmul.f32 1.442695, %v4023_v60 }
 0x54d   : > { %10138 = vpow2.f32 %v4052_v14 }
 0x54e   : > { %10140 = vpow2.f32 %v4054_v42  ;;  %v4348_v42 = vld [vmem:[#allocation15] sm:$0xff] (%p140_p8) }
 0x555   : > { %v10135_v28 = vpop.eup %10134 }
 0x556   : > { %v10137_v25 = vpop.eup %10136  ;;  %v9052_v33 = vadd.f32 -1.0, %v10135_v28  ;;  %v4352_v28 = vld [vmem:[#allocation15 + $0x20] sm:$0xff] (%p140_p8) }
 0x557   : > { %v10139_v17 = vpop.eup %10138  ;;  %v9053_v10 = vadd.f32 -1.0, %v10137_v25  ;;  %v4349_v25 = vld [vmem:[#allocation15 + $0x8] sm:$0xff] (%p140_p8) }
 0x558   : > { %v10141_v61 = vpop.eup %10140  ;;  %v9054_v15 = vadd.f32 -1.0, %v10139_v17  ;;  %v4084_v63 = vsel %vm4004_vm12, %v3984_v31, %v9052_v33  ;;  %vm4226_vm12 = vcmp.lt.s32.totalorder %v14013_v46, 256  ;;  %v9072_v33 = vcombine.high (%p140_p8), %v4348_v42, %v4352_v28  ;;  %v4353_v17 = vld [vmem:[#allocation15 + $0x28] sm:$0xff] (%p140_p8) }
 0x559   : > { %v9055_v57 = vadd.f32 -1.0, %v10141_v61  ;;  %v4085_v22 = vsel %vm4005_vm14, %v3986_v11, %v9053_v10  ;;  %vm4227_vm14 = vmand %vm13214_vm10, %vm4226_vm12  ;;  %v9071_v10 = vcombine.low (%p140_p8), %v4348_v42, %v4352_v28  ;;  %v4356_v61 = vld [vmem:[#allocation15 + $0x40] sm:$0xff] (%p140_p8)  ;;  %v9074_v16 = vcombine.high (%p140_p8), %v4349_v25, %v4353_v17  ;;  %v4381_v46 = vld [vmem:[#allocation15 + $0x108] sm:$0xff] (%p140_p8) }
 0x55a   : > { %v4086_v5 = vsel %vm4006_vm13, %v3988_v32, %v9054_v15  ;;  %vm4222_vm13 = vcmask 785408   ;;  %v4360_v15 = vld [vmem:[#allocation15 + $0x60] sm:$0xff] (%p140_p8)  ;;  %v9073_v19 = vcombine.low (%p140_p8), %v4349_v25, %v4353_v17  ;;  %7754 = vmatprep.subr.bf16.mxu0 (%p140_p8), %v9072_v33  ;;  %v4409_v42 = vld [vmem:[#allocation15 + $0x1e8] sm:$0xff] (%p140_p8) }
 0x55b   : > { %v4095_v40 = vpack.c.bf16 %v4086_v5, %v4084_v63  ;;  %v4087_v9 = vsel %vm4007_vm15, %v3990_v55, %v9055_v57  ;;  %v9080_v57 = vcombine.high (%p140_p8), %v4356_v61, %v4360_v15  ;;  %v4357_v63 = vld [vmem:[#allocation15 + $0x48] sm:$0xff] (%p140_p8)  ;;  %7755 = vmatpush1.bf16.msra.mxu0 (%p140_p8), %v9071_v10 }
 0x55c   : > { %v4096_v62 = vpack.c.bf16 %v4087_v9, %v4085_v22  ;;  %v4361_v5 = vld [vmem:[#allocation15 + $0x68] sm:$0xff] (%p140_p8)  ;;  %v4364_v22 = vld [vmem:[#allocation15 + $0x80] sm:$0xff] (%p140_p8) }
 0x55d   : > { %v4105_v1 = vand.u32 %v4103_v53, %v4095_v40  ;;  %v9082_v40 = vcombine.high (%p140_p8), %v4357_v63, %v4361_v5  ;;  %v4368_v9 = vld [vmem:[#allocation15 + $0xa0] sm:$0xff] (%p140_p8)  ;;  %7756 = vmatprep.subr.bf16.mxu0 (%p140_p8), %v9080_v57  ;;  %v4417_v57 = vld [vmem:[#allocation15 + $0x228] sm:$0xff] (%p140_p8) }
 0x55e   : > { %v4108_v41 = vand.u32 %v4103_v53, %v4096_v62  ;;  %v4365_v53 = vld [vmem:[#allocation15 + $0x88] sm:$0xff] (%p140_p8) }
 0x55f   :  { %v4369_v62 = vld [vmem:[#allocation15 + $0xa8] sm:$0xff] (%p140_p8) }
 0x560   : > { %4116 = vmatprep.subr.bf16.mxu1 %v4108_v41  ;;  %v9079_v41 = vcombine.low (%p140_p8), %v4356_v61, %v4360_v15  ;;  %v9090_v36 = vcombine.high (%p140_p8), %v4365_v53, %v4369_v62  ;;  %v4412_v61 = vld [vmem:[#allocation15 + $0x200] sm:$0xff] (%p140_p8) }
 0x561   : > { %4117 = vmatpush1.bf16.msra.mxu1 %v4105_v1  ;;  %v9081_v1 = vcombine.low (%p140_p8), %v4357_v63, %v4361_v5  ;;  %v4416_v15 = vld [vmem:[#allocation15 + $0x220] sm:$0xff] (%p140_p8) }
 0x562   :  { %7959 = vmatprep.subr.bf16.mxu1 (%p140_p8), %v9074_v16  ;;  %7757 = vmatpush1.bf16.msra.mxu0 (%p140_p8), %v9079_v41  ;;  %v4425_v41 = vld [vmem:[#allocation15 + $0x268] sm:$0xff] (%p140_p8) }
 0x564   : > { %9056 = vmatmul.mubr.msk.bf16.vlgmr.msra.gmra.mrb[36].mxu1 %vm4097_vm2, %v4088_v54  ;;  %v9088_v54 = vcombine.high (%p140_p8), %v4364_v22, %v4368_v9 }
 0x565   :  { %7960 = vmatpush1.bf16.msra.mxu1 (%p140_p8), %v9073_v19  ;;  %v4413_v19 = vld [vmem:[#allocation15 + $0x208] sm:$0xff] (%p140_p8) }
 0x566   :  { %7961 = vmatprep.subr.bf16.mxu1 (%p140_p8), %v9082_v40  ;;  %7758 = vmatprep.subr.bf16.mxu0 (%p140_p8), %v9088_v54  ;;  %v9138_v40 = vcombine.high (%p140_p8), %v4413_v19, %v4417_v57  ;;  %v9137_v54 = vcombine.low (%p140_p8), %v4413_v19, %v4417_v57 }
 0x569   :  { %7962 = vmatpush1.bf16.msra.mxu1 (%p140_p8), %v9081_v1  ;;  %v9135_v1 = vcombine.low (%p140_p8), %v4412_v61, %v4416_v15 }
 0x56a   :  { %7963 = vmatprep.subr.bf16.mxu1 (%p140_p8), %v9090_v36 }
 0x637   : > { %v4144_v26 = vpop.f32.mrb[36].mxu1 }
 0x638   : > { %v4146_v23 = vpop.f32.mrb[37].mxu1 }
 0x639   : > { %v4153_v43 = vcombine.low %v4144_v26, %v4146_v23  ;;  %v4233_v39 = vcombine.high %v4144_v26, %v4146_v23  ;;  %v4148_v56 = vpop.f32.mrb[38].mxu1  ;;  %v4373_v26 = vld [vmem:[#allocation15 + $0xc8] sm:$0xff] (%p140_p8)  ;;  %v9089_v23 = vcombine.low (%p140_p8), %v4365_v53, %v4369_v62  ;;  %v4424_v53 = vld [vmem:[#allocation15 + $0x260] sm:$0xff] (%p140_p8) }
 0x63a   : > { %v4149_v47 = vpop.f32.mrb[39].mxu1  ;;  %v4380_v56 = vld [vmem:[#allocation15 + $0x100] sm:$0xff] (%p140_p8)  ;;  %v4421_v62 = vld [vmem:[#allocation15 + $0x248] sm:$0xff] (%p140_p8) }
 0x63b   : > { %v4160_v6 = vrot.slane %v4153_v43, %v4159_v27  ;;  %v4240_v20 = vrot.slane %v4233_v39, %v4159_v27  ;;  %v9096_v43 = vcombine.high (%p140_p8), %v4372_v49, %v4376_v29  ;;  %v9098_v39 = vcombine.high (%p140_p8), %v4373_v26, %v4377_v44  ;;  %v4384_v47 = vld [vmem:[#allocation15 + $0x120] sm:$0xff] (%p140_p8)  ;;  %7964 = vmatpush1.bf16.msra.mxu1 (%p140_p8), %v9089_v23 }
 0x63c   :  { %v9103_v2 = vcombine.low (%p140_p8), %v4380_v56, %v4384_v47 }
 0x63d   : > { %v4167_v3 = vrot.slane %v4160_v6, %v4159_v27  ;;  %v4182_v51 = vcombine.high %v4160_v6, %v4160_v6  ;;  %v4247_v59 = vrot.slane %v4240_v20, %v4159_v27  ;;  %v4254_v35 = vcombine.high %v4240_v20, %v4240_v20  ;;  %7965 = vmatprep.subr.bf16.mxu1 (%p140_p8), %v9098_v39 }
 0x63e   :  { %v10400_v6 = vmov (%p140_p8), 1983009808  }
 0x63f   : > { %v4189_v13 = vrot.slane %v4182_v51, %v4159_v27  ;;  %v4203_v24 = vcombine.high %v4167_v3, %v4167_v3  ;;  %4181 = vst.msk [vmem:[%s13179_s22] ss:$2 sm:$0x3] %vm4171_vm0, %v4167_v3  ;;  %9065 = vst.msk [vmem:[%s13179_s22 + $0xa] ss:$2 sm:$0x3] %vm4171_vm0, %v4247_v59  ;;  %v4261_v30 = vrot.slane %v4254_v35, %v4159_v27  ;;  %v4291_v20 = vunpack.c.l.s4 (%p140_p8), %v10400_v6 }
 0x640   : > { %v4272_v18 = vcombine.high %v4247_v59, %v4247_v59  ;;  %v9087_v27 = vcombine.low (%p140_p8), %v4364_v22, %v4368_v9  ;;  %v4385_v3 = vld [vmem:[#allocation15 + $0x128] sm:$0xff] (%p140_p8)  ;;  %v9095_v51 = vcombine.low (%p140_p8), %v4372_v49, %v4376_v29  ;;  %v9097_v59 = vcombine.low (%p140_p8), %v4373_v26, %v4377_v44  ;;  %v4420_v9 = vld [vmem:[#allocation15 + $0x240] sm:$0xff] (%p140_p8) }
 0x641   : > { %4190 = vrot.lane.b32.xlu0 %v4189_v13, %s10398_s25  ;;  %4204 = vrot.lane.b32.xlu1 %v4203_v24, %s10394_s28  ;;  %v4218_v7 = vcombine.high %v4189_v13, %v4189_v13  ;;  %v9104_v35 = vcombine.high (%p140_p8), %v4380_v56, %v4384_v47  ;;  %v9106_v13 = vcombine.high (%p140_p8), %v4381_v46, %v4385_v3  ;;  %v4388_v24 = vld [vmem:[#allocation15 + $0x140] sm:$0xff] (%p140_p8)  ;;  %v4429_v44 = vld [vmem:[#allocation15 + $0x288] sm:$0xff] (%p140_p8) }
 0x642   :  { %7759 = vmatpush1.bf16.msra.mxu0 (%p140_p8), %v9087_v27  ;;  %7966 = vmatpush1.bf16.msra.mxu1 (%p140_p8), %v9097_v59  ;;  %v9105_v8 = vcombine.low (%p140_p8), %v4381_v46, %v4385_v3  ;;  %v9136_v22 = vcombine.high (%p140_p8), %v4412_v61, %v4416_v15  ;;  %v9144_v36 = vcombine.high (%p140_p8), %v4420_v9, %v4424_v53  ;;  %v4428_v29 = vld [vmem:[#allocation15 + $0x280] sm:$0xff] (%p140_p8)  ;;  %v4433_v27 = vld [vmem:[#allocation15 + $0x2a8] sm:$0xff] (%p140_p8) }
 0x643   :  { %7760 = vmatprep.subr.bf16.mxu0 (%p140_p8), %v9096_v43  ;;  %7967 = vmatprep.subr.bf16.mxu1 (%p140_p8), %v9106_v13  ;;  %v9146_v49 = vcombine.high (%p140_p8), %v4421_v62, %v4425_v41  ;;  %v4432_v26 = vld [vmem:[#allocation15 + $0x2a0] sm:$0xff] (%p140_p8)  ;;  %v9143_v23 = vcombine.low (%p140_p8), %v4420_v9, %v4424_v53  ;;  %v9145_v43 = vcombine.low (%p140_p8), %v4421_v62, %v4425_v41  ;;  %v4441_v46 = vld [vmem:[#allocation15 + $0x2e8] sm:$0xff] (%p140_p8) }
 0x644   :  { %v9152_v39 = vcombine.high (%p140_p8), %v4428_v29, %v4432_v26  ;;  %v9154_v56 = vcombine.high (%p140_p8), %v4429_v44, %v4433_v27  ;;  %v4436_v47 = vld [vmem:[#allocation15 + $0x2c0] sm:$0xff] (%p140_p8)  ;;  %v9151_v3 = vcombine.low (%p140_p8), %v4428_v29, %v4432_v26  ;;  %v4473_v61 = vld [vmem:[#allocation15 + $0x3e8] sm:$0xff] (%p140_p8) }
 0x645   : > { %4262 = vrot.lane.b32.xlu0 %v4261_v30, %s10398_s25  ;;  %4219 = vrot.lane.b32.xlu1 %v4218_v7, %s10399_s26  ;;  %v4392_v30 = vld [vmem:[#allocation15 + $0x160] sm:$0xff] (%p140_p8)  ;;  %v4292_v7 = vunpack.c.0.s8 (%p140_p8), %v4291_v20  ;;  %v4437_v20 = vld [vmem:[#allocation15 + $0x2c8] sm:$0xff] (%p140_p8) }
 0x646   :  { %7761 = vmatpush1.bf16.msra.mxu0 (%p140_p8), %v9095_v51  ;;  %v9112_v50 = vcombine.high (%p140_p8), %v4388_v24, %v4392_v30  ;;  %7968 = vmatpush1.bf16.msra.mxu1 (%p140_p8), %v9105_v8  ;;  %v4440_v6 = vld [vmem:[#allocation15 + $0x2e0] sm:$0xff] (%p140_p8)  ;;  %v9153_v51 = vcombine.low (%p140_p8), %v4429_v44, %v4433_v27  ;;  %v4477_v9 = vld [vmem:[#allocation15 + $0x408] sm:$0xff] (%p140_p8) }
 0x647   :  { %7762 = vmatprep.subr.bf16.mxu0 (%p140_p8), %v9104_v35  ;;  %v9160_v59 = vcombine.high (%p140_p8), %v4436_v47, %v4440_v6  ;;  %v9162_v35 = vcombine.high (%p140_p8), %v4437_v20, %v4441_v46  ;;  %v4444_v13 = vld [vmem:[#allocation15 + $0x300] sm:$0xff] (%p140_p8)  ;;  %v4481_v53 = vld [vmem:[#allocation15 + $0x428] sm:$0xff] (%p140_p8) }
 0x648   :  { %v4485_v26 = vld [vmem:[#allocation15 + $0x448] sm:$0xff] (%p140_p8) }
 0x649   : > { %4273 = vrot.lane.b32.xlu0 %v4272_v18, %s10394_s28  ;;  %v4389_v18 = vld [vmem:[#allocation15 + $0x148] sm:$0xff] (%p140_p8) }
 0x64a   :  { %7763 = vmatpush1.bf16.msra.mxu0 (%p140_p8), %v9103_v2  ;;  %v4489_v44 = vld [vmem:[#allocation15 + $0x468] sm:$0xff] (%p140_p8) }
 0x64b   :  { %7764 = vmatprep.subr.bf16.mxu0 (%p140_p8), %v9112_v50  ;;  %v4452_v50 = vld [vmem:[#allocation15 + $0x340] sm:$0xff] (%p140_p8) }
 0x6b3   : > { %v4191_v34 = vpop.permute.xlu0 %4190  ;;  %v4205_v0 = vpop.permute.xlu1 %4204 }
 0x6b4   : > { %v4192_v31 = vrot.slane %v4191_v34, 7  ;;  %v4206_v48 = vrot.slane %v4205_v0, 7 }
 0x6b6   : > { %v4193_v38 = vsel %vm3906_vm11, %v4192_v31, %v4191_v34  ;;  %v4208_v52 = vsel %vm4207_vm6, %v4206_v48, %v4205_v0  ;;  %v9114_v34 = vcombine.high (%p140_p8), %v4389_v18, %v4393_v21  ;;  %v4396_v0 = vld [vmem:[#allocation15 + $0x180] sm:$0xff] (%p140_p8)  ;;  %v14024_v48 = vld [vmem:[#allocation25_spill] sm:$0xff] (%p140_p8) }
 0x6b7   : > { %9059 = vst.msk [vmem:[%s13179_s22 + $0x2] ss:$2 sm:$0x3] %vm4197_vm7, %v4193_v38  ;;  %v4263_v32 = vpop.permute.xlu0 %4262  ;;  %v4220_v58 = vpop.permute.xlu1 %4219  ;;  %v4400_v31 = vld [vmem:[#allocation15 + $0x1a0] sm:$0xff] (%p140_p8)  ;;  %v13255_v11 = vsub.s32 (%p140_p8), %v4292_v7, %v14024_v48  ;;  %v4397_v38 = vld [vmem:[#allocation15 + $0x188] sm:$0xff] (%p140_p8) }
 0x6b8   : > { %9061 = vst.msk [vmem:[%s13179_s22 + $0x4] ss:$2 sm:$0x3] %vm4212_vm8, %v4208_v52  ;;  %v4264_v12 = vrot.slane %v4263_v32, 7  ;;  %v4221_v55 = vrot.slane %v4220_v58, 7  ;;  %v4401_v52 = vld [vmem:[#allocation15 + $0x1a8] sm:$0xff] (%p140_p8)  ;;  %7969 = vmatprep.subr.bf16.mxu1 (%p140_p8), %v9114_v34  ;;  %v9119_v28 = vcombine.low (%p140_p8), %v4396_v0, %v4400_v31 }
 0x6b9   :  { %142 = sbr.rel (!%p140_p8) target bundleno = 146 (0x92), region = 107  ;;  %v9121_v33 = vcombine.low (%p140_p8), %v4397_v38, %v4401_v52  ;;  %v4449_v7 = vld [vmem:[#allocation15 + $0x328] sm:$0xff] (%p140_p8)  ;;  %v4456_v34 = vld [vmem:[#allocation15 + $0x360] sm:$0xff] (%p140_p8) }
 0x6ba   : > { %v4265_v4 = vsel %vm3906_vm11, %v4264_v12, %v4263_v32  ;;  %v4223_v45 = vsel %vm4222_vm13, %v4221_v55, %v4220_v58  ;;  %v9111_v32 = vcombine.low (%p140_p8), %v4388_v24, %v4392_v30  ;;  %v9113_v58 = vcombine.low (%p140_p8), %v4389_v18, %v4393_v21  ;;  %v4448_v24 = vld [vmem:[#allocation15 + $0x320] sm:$0xff] (%p140_p8)  ;;  %v4445_v30 = vld [vmem:[#allocation15 + $0x308] sm:$0xff] (%p140_p8) }
 0x6bb   : > { %9067 = vst.msk [vmem:[%s13179_s22 + $0xc] ss:$2 sm:$0x3] %vm4197_vm7, %v4265_v4  ;;  %v4274_v37 = vpop.permute.xlu0 %4273  ;;  %v9120_v12 = vcombine.high (%p140_p8), %v4396_v0, %v4400_v31  ;;  %v9122_v4 = vcombine.high (%p140_p8), %v4397_v38, %v4401_v52  ;;  %v9159_v18 = vcombine.low (%p140_p8), %v4436_v47, %v4440_v6  ;;  %v9161_v21 = vcombine.low (%p140_p8), %v4437_v20, %v4441_v46  ;;  %v4453_v0 = vld [vmem:[#allocation15 + $0x348] sm:$0xff] (%p140_p8)  ;;  %v4496_v47 = vld [vmem:[#allocation15 + $0x4a0] sm:$0xff] (%p140_p8) }
 0x6bc   : > { %9063 = vst.msk [vmem:[%s13179_s22 + $0x6] ss:$2 sm:$0x3] %vm4227_vm14, %v4223_v45  ;;  %v4275_v60 = vrot.slane %v4274_v37, 7  ;;  %v4404_v45 = vld [vmem:[#allocation15 + $0x1c0] sm:$0xff] (%p140_p8)  ;;  %7765 = vmatpush1.bf16.msra.mxu0 (%p140_p8), %v9111_v32  ;;  %7970 = vmatpush1.bf16.msra.mxu1 (%p140_p8), %v9113_v58  ;;  %v9168_v2 = vcombine.high (%p140_p8), %v4444_v13, %v4448_v24  ;;  %v9170_v8 = vcombine.high (%p140_p8), %v4445_v30, %v4449_v7  ;;  %v4457_v31 = vld [vmem:[#allocation15 + $0x368] sm:$0xff] (%p140_p8) }
 0x6bd   :  { %7766 = vmatprep.subr.bf16.mxu0 (%p140_p8), %v9120_v12  ;;  %7971 = vmatprep.subr.bf16.mxu1 (%p140_p8), %v9122_v4  ;;  %v9167_v48 = vcombine.low (%p140_p8), %v4444_v13, %v4448_v24  ;;  %v9169_v38 = vcombine.low (%p140_p8), %v4445_v30, %v4449_v7  ;;  %v9176_v52 = vcombine.high (%p140_p8), %v4452_v50, %v4456_v34  ;;  %v4460_v58 = vld [vmem:[#allocation15 + $0x380] sm:$0xff] (%p140_p8)  ;;  %v4461_v4 = vld [vmem:[#allocation15 + $0x388] sm:$0xff] (%p140_p8) }
 0x6be   : > { %v4276_v14 = vsel %vm4207_vm6, %v4275_v60, %v4274_v37  ;;  %v4408_v37 = vld [vmem:[#allocation15 + $0x1e0] sm:$0xff] (%p140_p8)  ;;  %v9178_v32 = vcombine.high (%p140_p8), %v4453_v0, %v4457_v31  ;;  %v4493_v20 = vld [vmem:[#allocation15 + $0x488] sm:$0xff] (%p140_p8) }
 0x6bf   : > { %9069 = vst.msk [vmem:[%s13179_s22 + $0xe] ss:$2 sm:$0x3] %vm4212_vm8, %v4276_v14  ;;  %v4405_v14 = vld [vmem:[#allocation15 + $0x1c8] sm:$0xff] (%p140_p8)  ;;  %v9128_v17 = vcombine.high (%p140_p8), %v4404_v45, %v4408_v37  ;;  %v9127_v63 = vcombine.low (%p140_p8), %v4404_v45, %v4408_v37  ;;  %v4464_v12 = vld [vmem:[#allocation15 + $0x3a0] sm:$0xff] (%p140_p8)  ;;  %v9175_v37 = vcombine.low (%p140_p8), %v4452_v50, %v4456_v34 }
 0x6c0   :  { %v9130_v10 = vcombine.high %v4405_v14, %v4409_v42  ;;  %7767 = vmatpush1.bf16.msra.mxu0 %v9119_v28  ;;  %7972 = vmatpush1.bf16.msra.mxu1 %v9121_v33  ;;  %v9129_v5 = vcombine.low %v4405_v14, %v4409_v42  ;;  %v4465_v45 = vld [vmem:[#allocation15 + $0x3a8] sm:$0xff]  ;;  %v9177_v14 = vcombine.low %v4453_v0, %v4457_v31  ;;  %v4472_v33 = vld [vmem:[#allocation15 + $0x3e0] sm:$0xff] }
 0x6c1   :  { %7768 = vmatprep.subr.bf16.mxu0 %v9128_v17  ;;  %v9184_v42 = vcombine.high %v4460_v58, %v4464_v12  ;;  %v9186_v28 = vcombine.high %v4461_v4, %v4465_v45  ;;  %v9183_v15 = vcombine.low %v4460_v58, %v4464_v12  ;;  %v9185_v19 = vcombine.low %v4461_v4, %v4465_v45  ;;  %v4497_v46 = vld [vmem:[#allocation15 + $0x4a8] sm:$0xff]  ;;  %v4504_v13 = vld [vmem:[#allocation15 + $0x4e0] sm:$0xff] }
 0x6c2   :  { %7973 = vmatprep.subr.bf16.mxu1 %v9130_v10  ;;  %v4469_v10 = vld [vmem:[#allocation15 + $0x3c8] sm:$0xff]  ;;  %v4512_v50 = vld [vmem:[#allocation15 + $0x520] sm:$0xff] }
 0x6c3   :  { %v4501_v24 = vld [vmem:[#allocation15 + $0x4c8] sm:$0xff]  ;;  %v4520_v58 = vld [vmem:[#allocation15 + $0x560] sm:$0xff] }
 0x6c4   :  { %7769 = vmatpush1.bf16.msra.mxu0 %v9127_v63  ;;  %7974 = vmatpush1.bf16.msra.mxu1 %v9129_v5  ;;  %v9194_v63 = vcombine.high %v4469_v10, %v4473_v61  ;;  %v4476_v5 = vld [vmem:[#allocation15 + $0x400] sm:$0xff]  ;;  %v4505_v30 = vld [vmem:[#allocation15 + $0x4e8] sm:$0xff] }
 0x6c5   :  { %7770 = vmatprep.subr.bf16.mxu0 %v9136_v22  ;;  %7975 = vmatprep.subr.bf16.mxu1 %v9138_v40  ;;  %v4480_v22 = vld [vmem:[#allocation15 + $0x420] sm:$0xff]  ;;  %v4509_v34 = vld [vmem:[#allocation15 + $0x508] sm:$0xff] }
 0x6c6   :  { %v13257_v55 = vld [vmem:[#allocation3] sm:$0xff]  ;;  %v9200_v41 = vcombine.high %v4476_v5, %v4480_v22  ;;  %v9199_v27 = vcombine.low %v4476_v5, %v4480_v22  ;;  %v4513_v0 = vld [vmem:[#allocation15 + $0x528] sm:$0xff] }
 0x6c7   :  { %v13261_v60 = vrot.slane %v13257_v55, %v13255_v11  ;;  %v4289_v17 = vcombine.high %v13257_v55, %v13257_v55  ;;  %v9193_v55 = vcombine.low %v4469_v10, %v4473_v61  ;;  %v4517_v12 = vld [vmem:[#allocation15 + $0x548] sm:$0xff] }
 0x6c8   :  { %7771 = vmatpush1.bf16.msra.mxu0 %v9135_v1  ;;  %7976 = vmatpush1.bf16.msra.mxu1 %v9137_v54  ;;  %v9202_v1 = vcombine.high %v4477_v9, %v4481_v53  ;;  %v4484_v54 = vld [vmem:[#allocation15 + $0x440] sm:$0xff]  ;;  %v4521_v4 = vld [vmem:[#allocation15 + $0x568] sm:$0xff] }
 0x6c9   :  { %v4304_v25 = vcombine.high %v13261_v60, %v13261_v60  ;;  %7772 = vmatprep.subr.bf16.mxu0 %v9144_v36  ;;  %7977 = vmatprep.subr.bf16.mxu1 %v9146_v49  ;;  %v13272_v40 = vrot.slane %v4289_v17, %v13255_v11  ;;  %v4488_v36 = vld [vmem:[#allocation15 + $0x460] sm:$0xff]  ;;  %v13278_v29 = vpack.c.bf16 %v13261_v60, %v13261_v60  ;;  %v4529_v17 = vld [vmem:[#allocation15 + $0x5a8] sm:$0xff] }
 0x6ca   :  { %v9207_v60 = vcombine.low %v4484_v54, %v4488_v36  ;;  %v9241_v61 = vcombine.low %v4517_v12, %v4521_v4  ;;  %v4533_v5 = vld [vmem:[#allocation15 + $0x5c8] sm:$0xff] }
 0x6cb   :  { %v13265_v16 = vpack.c.bf16 %v4304_v25, %v4304_v25  ;;  %v4468_v25 = vld [vmem:[#allocation15 + $0x3c0] sm:$0xff]  ;;  %v4305_v49 = vcombine.high %v13272_v40, %v13272_v40  ;;  %v4537_v22 = vld [vmem:[#allocation15 + $0x5e8] sm:$0xff] }
 0x6cc   :  { %7773 = vmatpush1.bf16.msra.mxu0 %v9143_v23  ;;  %7978 = vmatpush1.bf16.msra.mxu1 %v9145_v43  ;;  %v9192_v57 = vcombine.high %v4468_v25, %v4472_v33  ;;  %v9191_v62 = vcombine.low %v4468_v25, %v4472_v33  ;;  %v9201_v23 = vcombine.low %v4477_v9, %v4481_v53  ;;  %v4528_v25 = vld [vmem:[#allocation15 + $0x5a0] sm:$0xff]  ;;  %v4525_v33 = vld [vmem:[#allocation15 + $0x588] sm:$0xff] }
 0x6cd   :  { %7786 = vmatprep.mubr.bf16.mxu0 %v13265_v16  ;;  %7991 = vmatprep.mubr.bf16.mxu1 %v13265_v16  ;;  %v9208_v43 = vcombine.high %v4484_v54, %v4488_v36  ;;  %v13280_v6 = vpack.c.bf16 %v4305_v49, %v4305_v49  ;;  %v9249_v53 = vcombine.low %v4525_v33, %v4529_v17  ;;  %v4541_v54 = vld [vmem:[#allocation15 + $0x608] sm:$0xff] }
 0x6ce   :  { %7774 = vmatprep.subr.bf16.mxu0 %v9152_v39  ;;  %7979 = vmatprep.subr.bf16.mxu1 %v9154_v56  ;;  %v9210_v39 = vcombine.high %v4485_v26, %v4489_v44  ;;  %v4492_v56 = vld [vmem:[#allocation15 + $0x480] sm:$0xff]  ;;  %v4545_v36 = vld [vmem:[#allocation15 + $0x628] sm:$0xff] }
 0x6cf   :  { %v9215_v7 = vcombine.low %v4492_v56, %v4496_v47 }
 0x6d0   :  { %7775 = vmatpush1.bf16.msra.mxu0 %v9151_v3  ;;  %7980 = vmatpush1.bf16.msra.mxu1 %v9153_v51  ;;  %v9209_v3 = vcombine.low %v4485_v26, %v4489_v44  ;;  %v9216_v51 = vcombine.high %v4492_v56, %v4496_v47  ;;  %v9257_v26 = vcombine.low %v4533_v5, %v4537_v22  ;;  %v4553_v56 = vld [vmem:[#allocation15 + $0x668] sm:$0xff] }
 0x6d1   :  { %7776 = vmatprep.subr.bf16.mxu0 %v9160_v59  ;;  %7981 = vmatprep.subr.bf16.mxu1 %v9162_v35  ;;  %v9218_v59 = vcombine.high %v4493_v20, %v4497_v46  ;;  %v4500_v35 = vld [vmem:[#allocation15 + $0x4c0] sm:$0xff] }
 0x6d2   :  { %v9223_v31 = vcombine.low %v4500_v35, %v4504_v13 }
 0x6d4   :  { %7777 = vmatpush1.bf16.msra.mxu0 %v9159_v18  ;;  %7982 = vmatpush1.bf16.msra.mxu1 %v9161_v21  ;;  %v9217_v18 = vcombine.low %v4493_v20, %v4497_v46  ;;  %v9224_v21 = vcombine.high %v4500_v35, %v4504_v13  ;;  %v9265_v20 = vcombine.low %v4541_v54, %v4545_v36  ;;  %v4561_v35 = vld [vmem:[#allocation15 + $0x6a8] sm:$0xff] }
 0x6d5   :  { %7778 = vmatprep.subr.bf16.mxu0 %v9168_v2  ;;  %7983 = vmatprep.subr.bf16.mxu1 %v9170_v8  ;;  %v9226_v2 = vcombine.high %v4501_v24, %v4505_v30  ;;  %v4508_v8 = vld [vmem:[#allocation15 + $0x500] sm:$0xff] }
 0x6d6   :  { %v9231_v45 = vcombine.low %v4508_v8, %v4512_v50 }
 0x6d8   :  { %7779 = vmatpush1.bf16.msra.mxu0 %v9167_v48  ;;  %7984 = vmatpush1.bf16.msra.mxu1 %v9169_v38  ;;  %v9225_v48 = vcombine.low %v4501_v24, %v4505_v30  ;;  %v9232_v38 = vcombine.high %v4508_v8, %v4512_v50  ;;  %v4569_v8 = vld [vmem:[#allocation15 + $0x6e8] sm:$0xff] }
 0x6d9   :  { %7780 = vmatprep.subr.bf16.mxu0 %v9176_v52  ;;  %7985 = vmatprep.subr.bf16.mxu1 %v9178_v32  ;;  %v9234_v52 = vcombine.high %v4509_v34, %v4513_v0  ;;  %v4516_v32 = vld [vmem:[#allocation15 + $0x540] sm:$0xff] }
 0x6da   :  { %v9239_v10 = vcombine.low %v4516_v32, %v4520_v58 }
 0x6dc   :  { %7781 = vmatpush1.bf16.msra.mxu0 %v9175_v37  ;;  %7986 = vmatpush1.bf16.msra.mxu1 %v9177_v14  ;;  %v9233_v37 = vcombine.low %v4509_v34, %v4513_v0  ;;  %v9240_v14 = vcombine.high %v4516_v32, %v4520_v58  ;;  %v4577_v32 = vld [vmem:[#allocation15 + $0x728] sm:$0xff] }
 0x6dd   :  { %7782 = vmatprep.subr.bf16.mxu0 %v9184_v42  ;;  %7987 = vmatprep.subr.bf16.mxu1 %v9186_v28  ;;  %v9242_v42 = vcombine.high %v4517_v12, %v4521_v4  ;;  %v4524_v28 = vld [vmem:[#allocation15 + $0x580] sm:$0xff] }
 0x6de   :  { %v9247_v9 = vcombine.low %v4524_v28, %v4528_v25 }
 0x6e0   :  { %7783 = vmatpush1.bf16.msra.mxu0 %v9183_v15  ;;  %7988 = vmatpush1.bf16.msra.mxu1 %v9185_v19  ;;  %v9248_v15 = vcombine.high %v4524_v28, %v4528_v25  ;;  %v9250_v19 = vcombine.high %v4525_v33, %v4529_v17  ;;  %v4585_v28 = vld [vmem:[#allocation15 + $0x768] sm:$0xff] }
 0x6e1   :  { %7784 = vmatprep.subr.bf16.mxu0 %v9192_v57  ;;  %7989 = vmatprep.subr.bf16.mxu1 %v9194_v63  ;;  %v4532_v57 = vld [vmem:[#allocation15 + $0x5c0] sm:$0xff] }
 0x6e2   :  { %v4536_v63 = vld [vmem:[#allocation15 + $0x5e0] sm:$0xff] }
 0x6e3   :  { %v9255_v49 = vcombine.low %v4532_v57, %v4536_v63 }
 0x6e4   :  { %7785 = vmatpush1.bf16.msra.mxu0 %v9191_v62  ;;  %7990 = vmatpush1.bf16.msra.mxu1 %v9193_v55  ;;  %v9256_v62 = vcombine.high %v4532_v57, %v4536_v63  ;;  %v9258_v55 = vcombine.high %v4533_v5, %v4537_v22  ;;  %v4593_v57 = vld [vmem:[#allocation15 + $0x7a8] sm:$0xff] }
 0x6e5   :  { %7795 = vmatprep.subr.bf16.mxu0 %v9200_v41  ;;  %8000 = vmatprep.subr.bf16.mxu1 %v9202_v1  ;;  %v4540_v41 = vld [vmem:[#allocation15 + $0x600] sm:$0xff] }
 0x6e6   :  { %v4544_v1 = vld [vmem:[#allocation15 + $0x620] sm:$0xff] }
 0x6e7   :  { %7787 = vmatmul.mubr.bf16.vlgmr.msra.gmra.mrb[0].mxu0 %v13278_v29  ;;  %7992 = vmatmul.mubr.bf16.vlgmr.msra.gmra.mrb[0].mxu1 %v13278_v29  ;;  %v9264_v44 = vcombine.high %v4540_v41, %v4544_v1  ;;  %v9263_v47 = vcombine.low %v4540_v41, %v4544_v1  ;;  %v4601_v41 = vld [vmem:[#allocation15 + $0x7e8] sm:$0xff]  ;;  %v13286_v1 = vld [vmem:[#allocation3 + $0x8] sm:$0xff] }
 0x6e8   :  { %7796 = vmatpush1.bf16.msra.mxu0 %v9199_v27  ;;  %8001 = vmatpush1.bf16.msra.mxu1 %v9201_v23  ;;  %v9266_v27 = vcombine.high %v4541_v54, %v4545_v36  ;;  %v4548_v23 = vld [vmem:[#allocation15 + $0x640] sm:$0xff] }
 0x6e9   :  { %7797 = vmatprep.subr.bf16.mxu0 %v9208_v43  ;;  %8002 = vmatprep.subr.bf16.mxu1 %v9210_v39  ;;  %v4552_v43 = vld [vmem:[#allocation15 + $0x660] sm:$0xff]  ;;  %v4549_v39 = vld [vmem:[#allocation15 + $0x648] sm:$0xff] }
 0x6ea   :  { %7827 = vmatprep.mubr.bf16.mxu0 %v13280_v6  ;;  %8032 = vmatprep.mubr.bf16.mxu1 %v13280_v6  ;;  %v9272_v46 = vcombine.high %v4548_v23, %v4552_v43  ;;  %v9271_v13 = vcombine.low %v4548_v23, %v4552_v43  ;;  %v9273_v24 = vcombine.low %v4549_v39, %v4553_v56  ;;  %v4605_v43 = vld [vmem:[#allocation15 + $0x808] sm:$0xff] }
 0x6eb   :  { %v13290_v23 = vrot.slane %v13286_v1, %v13255_v11 }
 0x6ec   :  { %7798 = vmatpush1.bf16.msra.mxu0 %v9207_v60  ;;  %8003 = vmatpush1.bf16.msra.mxu1 %v9209_v3  ;;  %v9274_v60 = vcombine.high %v4549_v39, %v4553_v56  ;;  %v4556_v3 = vld [vmem:[#allocation15 + $0x680] sm:$0xff]  ;;  %v4609_v39 = vld [vmem:[#allocation15 + $0x828] sm:$0xff] }
 0x6ed   :  { %7799 = vmatprep.subr.bf16.mxu0 %v9216_v51  ;;  %8004 = vmatprep.subr.bf16.mxu1 %v9218_v59  ;;  %v4560_v51 = vld [vmem:[#allocation15 + $0x6a0] sm:$0xff]  ;;  %v4557_v59 = vld [vmem:[#allocation15 + $0x688] sm:$0xff] }
 0x6ee   :  { %v9280_v30 = vcombine.high %v4556_v3, %v4560_v51  ;;  %v9279_v50 = vcombine.low %v4556_v3, %v4560_v51  ;;  %v9281_v34 = vcombine.low %v4557_v59, %v4561_v35  ;;  %v4616_v3 = vld [vmem:[#allocation15 + $0x860] sm:$0xff]  ;;  %v4321_v51 = vcombine.high %v13290_v23, %v13290_v23 }
 0x6f0   :  { %7800 = vmatpush1.bf16.msra.mxu0 %v9215_v7  ;;  %8005 = vmatpush1.bf16.msra.mxu1 %v9217_v18  ;;  %v9282_v7 = vcombine.high %v4557_v59, %v4561_v35  ;;  %v4564_v18 = vld [vmem:[#allocation15 + $0x6c0] sm:$0xff]  ;;  %v13296_v59 = vpack.c.bf16 %v13272_v40, %v13272_v40  ;;  %v4613_v35 = vld [vmem:[#allocation15 + $0x848] sm:$0xff] }
 0x6f1   :  { %7801 = vmatprep.subr.bf16.mxu0 %v9224_v21  ;;  %8006 = vmatprep.subr.bf16.mxu1 %v9226_v2  ;;  %v4568_v21 = vld [vmem:[#allocation15 + $0x6e0] sm:$0xff]  ;;  %v4565_v2 = vld [vmem:[#allocation15 + $0x6c8] sm:$0xff] }
 0x6f2   :  { %v9288_v0 = vcombine.high %v4564_v18, %v4568_v21  ;;  %v9287_v58 = vcombine.low %v4564_v18, %v4568_v21  ;;  %v9289_v12 = vcombine.low %v4565_v2, %v4569_v8  ;;  %v4620_v21 = vld [vmem:[#allocation15 + $0x880] sm:$0xff] }
 0x6f4   :  { %7802 = vmatpush1.bf16.msra.mxu0 %v9223_v31  ;;  %8007 = vmatpush1.bf16.msra.mxu1 %v9225_v48  ;;  %v9290_v31 = vcombine.high %v4565_v2, %v4569_v8  ;;  %v4572_v48 = vld [vmem:[#allocation15 + $0x700] sm:$0xff]  ;;  %v13298_v8 = vpack.c.bf16 %v4321_v51, %v4321_v51 }
 0x6f5   :  { %7803 = vmatprep.subr.bf16.mxu0 %v9232_v38  ;;  %8008 = vmatprep.subr.bf16.mxu1 %v9234_v52  ;;  %v4576_v38 = vld [vmem:[#allocation15 + $0x720] sm:$0xff]  ;;  %v4573_v52 = vld [vmem:[#allocation15 + $0x708] sm:$0xff] }
 0x6f6   :  { %v9296_v4 = vcombine.high %v4572_v48, %v4576_v38  ;;  %v9295_v25 = vcombine.low %v4572_v48, %v4576_v38  ;;  %v9297_v33 = vcombine.low %v4573_v52, %v4577_v32  ;;  %v4624_v2 = vld [vmem:[#allocation15 + $0x8a0] sm:$0xff] }
 0x6f7   :  { %v4628_v38 = vld [vmem:[#allocation15 + $0x8c0] sm:$0xff] }
 0x6f8   :  { %7804 = vmatpush1.bf16.msra.mxu0 %v9231_v45  ;;  %8009 = vmatpush1.bf16.msra.mxu1 %v9233_v37  ;;  %v9298_v45 = vcombine.high %v4573_v52, %v4577_v32  ;;  %v4580_v37 = vld [vmem:[#allocation15 + $0x740] sm:$0xff]  ;;  %v4629_v32 = vld [vmem:[#allocation15 + $0x8c8] sm:$0xff] }
 0x6f9   :  { %7805 = vmatprep.subr.bf16.mxu0 %v9240_v14  ;;  %8010 = vmatprep.subr.bf16.mxu1 %v9242_v42  ;;  %v4584_v14 = vld [vmem:[#allocation15 + $0x760] sm:$0xff]  ;;  %v4581_v42 = vld [vmem:[#allocation15 + $0x748] sm:$0xff] }
 0x6fa   :  { %v9304_v17 = vcombine.high %v4580_v37, %v4584_v14  ;;  %v9303_v63 = vcombine.low %v4580_v37, %v4584_v14  ;;  %v9305_v5 = vcombine.low %v4581_v42, %v4585_v28  ;;  %v4632_v52 = vld [vmem:[#allocation15 + $0x8e0] sm:$0xff] }
 0x6fb   :  { %v4636_v14 = vld [vmem:[#allocation15 + $0x900] sm:$0xff] }
 0x6fc   :  { %7806 = vmatpush1.bf16.msra.mxu0 %v9239_v10  ;;  %8011 = vmatpush1.bf16.msra.mxu1 %v9241_v61  ;;  %v9306_v10 = vcombine.high %v4581_v42, %v4585_v28  ;;  %v4588_v61 = vld [vmem:[#allocation15 + $0x780] sm:$0xff]  ;;  %v4637_v28 = vld [vmem:[#allocation15 + $0x908] sm:$0xff] }
 0x6fd   :  { %7807 = vmatprep.subr.bf16.mxu0 %v9248_v15  ;;  %8012 = vmatprep.subr.bf16.mxu1 %v9250_v19  ;;  %v4592_v15 = vld [vmem:[#allocation15 + $0x7a0] sm:$0xff]  ;;  %v4589_v19 = vld [vmem:[#allocation15 + $0x788] sm:$0xff] }
 0x6fe   :  { %v9312_v22 = vcombine.high %v4588_v61, %v4592_v15  ;;  %v9311_v54 = vcombine.low %v4588_v61, %v4592_v15  ;;  %v9313_v36 = vcombine.low %v4589_v19, %v4593_v57  ;;  %v4640_v42 = vld [vmem:[#allocation15 + $0x920] sm:$0xff] }
 0x6ff   :  { %v4644_v15 = vld [vmem:[#allocation15 + $0x940] sm:$0xff] }
 0x700   :  { %7808 = vmatpush1.bf16.msra.mxu0 %v9247_v9  ;;  %8013 = vmatpush1.bf16.msra.mxu1 %v9249_v53  ;;  %v9314_v9 = vcombine.high %v4589_v19, %v4593_v57  ;;  %v4596_v53 = vld [vmem:[#allocation15 + $0x7c0] sm:$0xff]  ;;  %v4645_v57 = vld [vmem:[#allocation15 + $0x948] sm:$0xff] }
 0x701   :  { %7809 = vmatprep.subr.bf16.mxu0 %v9256_v62  ;;  %8014 = vmatprep.subr.bf16.mxu1 %v9258_v55  ;;  %v4600_v62 = vld [vmem:[#allocation15 + $0x7e0] sm:$0xff]  ;;  %v4597_v55 = vld [vmem:[#allocation15 + $0x7c8] sm:$0xff] }
 0x702   :  { %v9319_v56 = vcombine.low %v4596_v53, %v4600_v62  ;;  %v4648_v19 = vld [vmem:[#allocation15 + $0x960] sm:$0xff] }
 0x703   :  { %v4672_v51 = vld [vmem:[#allocation15 + $0xa20] sm:$0xff] }
 0x704   :  { %7810 = vmatpush1.bf16.msra.mxu0 %v9255_v49  ;;  %8015 = vmatpush1.bf16.msra.mxu1 %v9257_v26  ;;  %v9320_v49 = vcombine.high %v4596_v53, %v4600_v62  ;;  %v9322_v26 = vcombine.high %v4597_v55, %v4601_v41  ;;  %v4652_v62 = vld [vmem:[#allocation15 + $0x980] sm:$0xff] }
 0x705   :  { %7811 = vmatprep.subr.bf16.mxu0 %v9264_v44  ;;  %8016 = vmatprep.subr.bf16.mxu1 %v9266_v27  ;;  %v4604_v44 = vld [vmem:[#allocation15 + $0x800] sm:$0xff] }
 0x706   :  { %v4608_v27 = vld [vmem:[#allocation15 + $0x820] sm:$0xff] }
 0x708   :  { %7812 = vmatpush1.bf16.msra.mxu0 %v9263_v47  ;;  %8017 = vmatpush1.bf16.msra.mxu1 %v9265_v20  ;;  %v9321_v47 = vcombine.low %v4597_v55, %v4601_v41  ;;  %v9328_v20 = vcombine.high %v4604_v44, %v4608_v27  ;;  %v4656_v55 = vld [vmem:[#allocation15 + $0x9a0] sm:$0xff]  ;;  %v4653_v41 = vld [vmem:[#allocation15 + $0x988] sm:$0xff] }
 0x709   :  { %7813 = vmatprep.subr.bf16.mxu0 %v9272_v46  ;;  %8018 = vmatprep.subr.bf16.mxu1 %v9274_v60  ;;  %v9330_v46 = vcombine.high %v4605_v43, %v4609_v39  ;;  %v4612_v60 = vld [vmem:[#allocation15 + $0x840] sm:$0xff] }
 0x70a   :  { %v9335_v40 = vcombine.low %v4612_v60, %v4616_v3 }
 0x70c   :  { %7814 = vmatpush1.bf16.msra.mxu0 %v9271_v13  ;;  %8019 = vmatpush1.bf16.msra.mxu1 %v9273_v24  ;;  %v4617_v13 = vld [vmem:[#allocation15 + $0x868] sm:$0xff]  ;;  %v9327_v24 = vcombine.low %v4604_v44, %v4608_v27  ;;  %v4660_v27 = vld [vmem:[#allocation15 + $0x9c0] sm:$0xff] }
 0x70d   :  { %7815 = vmatprep.subr.bf16.mxu0 %v9280_v30  ;;  %8020 = vmatprep.subr.bf16.mxu1 %v9282_v7  ;;  %v9329_v30 = vcombine.low %v4605_v43, %v4609_v39  ;;  %v9336_v7 = vcombine.high %v4612_v60, %v4616_v3  ;;  %v9338_v18 = vcombine.high %v4613_v35, %v4617_v13  ;;  %v4664_v43 = vld [vmem:[#allocation15 + $0x9e0] sm:$0xff]  ;;  %v4661_v39 = vld [vmem:[#allocation15 + $0x9c8] sm:$0xff] }
 0x70e   :  { %v4668_v3 = vld [vmem:[#allocation15 + $0xa00] sm:$0xff] }
 0x710   :  { %7816 = vmatpush1.bf16.msra.mxu0 %v9279_v50  ;;  %8021 = vmatpush1.bf16.msra.mxu1 %v9281_v34  ;;  %v4621_v50 = vld [vmem:[#allocation15 + $0x888] sm:$0xff] }
 0x711   :  { %7817 = vmatprep.subr.bf16.mxu0 %v9288_v0  ;;  %8022 = vmatprep.subr.bf16.mxu1 %v9290_v31  ;;  %v4625_v34 = vld [vmem:[#allocation15 + $0x8a8] sm:$0xff]  ;;  %v9337_v0 = vcombine.low %v4613_v35, %v4617_v13  ;;  %v9344_v31 = vcombine.high %v4620_v21, %v4624_v2 }
 0x712   :  { %v9346_v48 = vcombine.high %v4621_v50, %v4625_v34  ;;  %v4669_v35 = vld [vmem:[#allocation15 + $0xa08] sm:$0xff] }
 0x713   :  { %v4673_v13 = vld [vmem:[#allocation15 + $0xa28] sm:$0xff] }
 0x714   :  { %7818 = vmatpush1.bf16.msra.mxu0 %v9287_v58  ;;  %8023 = vmatpush1.bf16.msra.mxu1 %v9289_v12  ;;  %v4633_v58 = vld [vmem:[#allocation15 + $0x8e8] sm:$0xff]  ;;  %v9343_v12 = vcombine.low %v4620_v21, %v4624_v2  ;;  %v4676_v21 = vld [vmem:[#allocation15 + $0xa40] sm:$0xff] }
 0x715   :  { %7819 = vmatprep.subr.bf16.mxu0 %v9296_v4  ;;  %8024 = vmatprep.subr.bf16.mxu1 %v9298_v45  ;;  %v9345_v4 = vcombine.low %v4621_v50, %v4625_v34  ;;  %v9352_v45 = vcombine.high %v4628_v38, %v4632_v52  ;;  %v9354_v37 = vcombine.high %v4629_v32, %v4633_v58  ;;  %v4680_v2 = vld [vmem:[#allocation15 + $0xa60] sm:$0xff]  ;;  %v4677_v50 = vld [vmem:[#allocation15 + $0xa48] sm:$0xff] }
 0x716   :  { %v4681_v34 = vld [vmem:[#allocation15 + $0xa68] sm:$0xff] }
 0x718   :  { %7820 = vmatpush1.bf16.msra.mxu0 %v9295_v25  ;;  %8025 = vmatpush1.bf16.msra.mxu1 %v9297_v33  ;;  %v4641_v25 = vld [vmem:[#allocation15 + $0x928] sm:$0xff]  ;;  %v9351_v33 = vcombine.low %v4628_v38, %v4632_v52  ;;  %v4684_v38 = vld [vmem:[#allocation15 + $0xa80] sm:$0xff] }
 0x719   :  { %7821 = vmatprep.subr.bf16.mxu0 %v9304_v17  ;;  %8026 = vmatprep.subr.bf16.mxu1 %v9306_v10  ;;  %v9353_v17 = vcombine.low %v4629_v32, %v4633_v58  ;;  %v9360_v10 = vcombine.high %v4636_v14, %v4640_v42  ;;  %v9362_v61 = vcombine.high %v4637_v28, %v4641_v25  ;;  %v4688_v52 = vld [vmem:[#allocation15 + $0xaa0] sm:$0xff]  ;;  %v4685_v32 = vld [vmem:[#allocation15 + $0xa88] sm:$0xff] }
 0x71a   :  { %v4689_v58 = vld [vmem:[#allocation15 + $0xaa8] sm:$0xff] }
 0x71c   :  { %7822 = vmatpush1.bf16.msra.mxu0 %v9303_v63  ;;  %8027 = vmatpush1.bf16.msra.mxu1 %v9305_v5  ;;  %v4649_v63 = vld [vmem:[#allocation15 + $0x968] sm:$0xff]  ;;  %v9359_v5 = vcombine.low %v4636_v14, %v4640_v42  ;;  %v4692_v14 = vld [vmem:[#allocation15 + $0xac0] sm:$0xff] }
 0x71d   :  { %7823 = vmatprep.subr.bf16.mxu0 %v9312_v22  ;;  %8028 = vmatprep.subr.bf16.mxu1 %v9314_v9  ;;  %v9361_v22 = vcombine.low %v4637_v28, %v4641_v25  ;;  %v9368_v9 = vcombine.high %v4644_v15, %v4648_v19  ;;  %v9370_v53 = vcombine.high %v4645_v57, %v4649_v63  ;;  %v4696_v42 = vld [vmem:[#allocation15 + $0xae0] sm:$0xff]  ;;  %v4693_v28 = vld [vmem:[#allocation15 + $0xac8] sm:$0xff] }
 0x71e   :  { %v4697_v25 = vld [vmem:[#allocation15 + $0xae8] sm:$0xff] }
 0x720   :  { %7824 = vmatpush1.bf16.msra.mxu0 %v9311_v54  ;;  %8029 = vmatpush1.bf16.msra.mxu1 %v9313_v36  ;;  %v4657_v54 = vld [vmem:[#allocation15 + $0x9a8] sm:$0xff]  ;;  %v9367_v36 = vcombine.low %v4644_v15, %v4648_v19  ;;  %v4700_v15 = vld [vmem:[#allocation15 + $0xb00] sm:$0xff] }
 0x721   :  { %7825 = vmatprep.subr.bf16.mxu0 %v9320_v49  ;;  %8030 = vmatprep.subr.bf16.mxu1 %v9322_v26  ;;  %v9369_v49 = vcombine.low %v4645_v57, %v4649_v63  ;;  %v9376_v26 = vcombine.high %v4652_v62, %v4656_v55  ;;  %v9378_v44 = vcombine.high %v4653_v41, %v4657_v54  ;;  %v4704_v19 = vld [vmem:[#allocation15 + $0xb20] sm:$0xff]  ;;  %v4701_v57 = vld [vmem:[#allocation15 + $0xb08] sm:$0xff] }
 0x722   :  { %v4705_v63 = vld [vmem:[#allocation15 + $0xb28] sm:$0xff] }
 0x724   :  { %7826 = vmatpush1.bf16.msra.mxu0 %v9319_v56  ;;  %8031 = vmatpush1.bf16.msra.mxu1 %v9321_v47  ;;  %v4665_v56 = vld [vmem:[#allocation15 + $0x9e8] sm:$0xff]  ;;  %v9375_v47 = vcombine.low %v4652_v62, %v4656_v55  ;;  %v4708_v62 = vld [vmem:[#allocation15 + $0xb40] sm:$0xff] }
 0x725   :  { %7836 = vmatprep.subr.bf16.mxu0 %v9328_v20  ;;  %8041 = vmatprep.subr.bf16.mxu1 %v9330_v46  ;;  %v9377_v20 = vcombine.low %v4653_v41, %v4657_v54  ;;  %v9384_v46 = vcombine.high %v4660_v27, %v4664_v43  ;;  %v9386_v60 = vcombine.high %v4661_v39, %v4665_v56  ;;  %v4712_v55 = vld [vmem:[#allocation15 + $0xb60] sm:$0xff]  ;;  %v4709_v41 = vld [vmem:[#allocation15 + $0xb48] sm:$0xff] }
 0x726   :  { %v4713_v54 = vld [vmem:[#allocation15 + $0xb68] sm:$0xff] }
 0x727   :  { %7828 = vmatmul.mubr.bf16.vlgmr.msra.gmra.mrb[0].mxu0 %v13296_v59  ;;  %8033 = vmatmul.mubr.bf16.vlgmr.msra.gmra.mrb[0].mxu1 %v13296_v59 }
 0x728   :  { %7837 = vmatpush1.bf16.msra.mxu0 %v9327_v24  ;;  %8042 = vmatpush1.bf16.msra.mxu1 %v9329_v30  ;;  %v9383_v24 = vcombine.low %v4660_v27, %v4664_v43  ;;  %v9385_v30 = vcombine.low %v4661_v39, %v4665_v56  ;;  %v4716_v27 = vld [vmem:[#allocation15 + $0xb80] sm:$0xff]  ;;  %v4717_v39 = vld [vmem:[#allocation15 + $0xb88] sm:$0xff] }
 0x729   :  { %7838 = vmatprep.subr.bf16.mxu0 %v9336_v7  ;;  %8043 = vmatprep.subr.bf16.mxu1 %v9338_v18  ;;  %v9392_v7 = vcombine.high %v4668_v3, %v4672_v51  ;;  %v9394_v18 = vcombine.high %v4669_v35, %v4673_v13  ;;  %v4720_v43 = vld [vmem:[#allocation15 + $0xba0] sm:$0xff]  ;;  %v4721_v56 = vld [vmem:[#allocation15 + $0xba8] sm:$0xff] }
 0x72a   :  { %7868 = vmatprep.mubr.bf16.mxu0 %v13298_v8  ;;  %8073 = vmatprep.mubr.bf16.mxu1 %v13298_v8 }
 0x72c   :  { %7839 = vmatpush1.bf16.msra.mxu0 %v9335_v40  ;;  %8044 = vmatpush1.bf16.msra.mxu1 %v9337_v0  ;;  %v9391_v40 = vcombine.low %v4668_v3, %v4672_v51  ;;  %v9393_v0 = vcombine.low %v4669_v35, %v4673_v13  ;;  %v4724_v3 = vld [vmem:[#allocation15 + $0xbc0] sm:$0xff]  ;;  %v4306_v35 = vcombine.high %v13286_v1, %v13286_v1  ;;  %v4725_v13 = vld [vmem:[#allocation15 + $0xbc8] sm:$0xff] }
 0x72d   :  { %7840 = vmatprep.subr.bf16.mxu0 %v9344_v31  ;;  %8045 = vmatprep.subr.bf16.mxu1 %v9346_v48  ;;  %v9400_v31 = vcombine.high %v4676_v21, %v4680_v2  ;;  %v9402_v48 = vcombine.high %v4677_v50, %v4681_v34  ;;  %v4728_v51 = vld [vmem:[#allocation15 + $0xbe0] sm:$0xff] }
 0x730   :  { %7841 = vmatpush1.bf16.msra.mxu0 %v9343_v12  ;;  %8046 = vmatpush1.bf16.msra.mxu1 %v9345_v4  ;;  %v9399_v12 = vcombine.low %v4676_v21, %v4680_v2  ;;  %v9401_v4 = vcombine.low %v4677_v50, %v4681_v34  ;;  %v4732_v2 = vld [vmem:[#allocation15 + $0xc00] sm:$0xff]  ;;  %v13307_v34 = vrot.slane %v4306_v35, %v13255_v11 }
 0x731   :  { %7842 = vmatprep.subr.bf16.mxu0 %v9352_v45  ;;  %8047 = vmatprep.subr.bf16.mxu1 %v9354_v37  ;;  %v9408_v45 = vcombine.high %v4684_v38, %v4688_v52  ;;  %v9410_v37 = vcombine.high %v4685_v32, %v4689_v58  ;;  %v4736_v50 = vld [vmem:[#allocation15 + $0xc20] sm:$0xff] }
 0x734   :  { %7843 = vmatpush1.bf16.msra.mxu0 %v9351_v33  ;;  %8048 = vmatpush1.bf16.msra.mxu1 %v9353_v17  ;;  %v9407_v33 = vcombine.low %v4684_v38, %v4688_v52  ;;  %v9409_v17 = vcombine.low %v4685_v32, %v4689_v58  ;;  %v4740_v52 = vld [vmem:[#allocation15 + $0xc40] sm:$0xff]  ;;  %v4322_v58 = vcombine.high %v13307_v34, %v13307_v34 }
 0x735   :  { %7844 = vmatprep.subr.bf16.mxu0 %v9360_v10  ;;  %8049 = vmatprep.subr.bf16.mxu1 %v9362_v61  ;;  %v9416_v10 = vcombine.high %v4692_v14, %v4696_v42  ;;  %v9418_v61 = vcombine.high %v4693_v28, %v4697_v25  ;;  %v4744_v32 = vld [vmem:[#allocation15 + $0xc60] sm:$0xff] }
 0x738   :  { %7845 = vmatpush1.bf16.msra.mxu0 %v9359_v5  ;;  %8050 = vmatpush1.bf16.msra.mxu1 %v9361_v22  ;;  %v9415_v5 = vcombine.low %v4692_v14, %v4696_v42  ;;  %v9417_v22 = vcombine.low %v4693_v28, %v4697_v25  ;;  %v9464_v42 = vcombine.high %v4740_v52, %v4744_v32  ;;  %v4748_v25 = vld [vmem:[#allocation15 + $0xc80] sm:$0xff] }
 0x739   :  { %7846 = vmatprep.subr.bf16.mxu0 %v9368_v9  ;;  %8051 = vmatprep.subr.bf16.mxu1 %v9370_v53  ;;  %v9424_v9 = vcombine.high %v4700_v15, %v4704_v19  ;;  %v9426_v53 = vcombine.high %v4701_v57, %v4705_v63 }
 0x73c   :  { %7847 = vmatpush1.bf16.msra.mxu0 %v9367_v36  ;;  %8052 = vmatpush1.bf16.msra.mxu1 %v9369_v49  ;;  %v9423_v36 = vcombine.low %v4700_v15, %v4704_v19  ;;  %v9425_v49 = vcombine.low %v4701_v57, %v4705_v63  ;;  %v4756_v63 = vld [vmem:[#allocation15 + $0xcc0] sm:$0xff] }
 0x73d   :  { %7848 = vmatprep.subr.bf16.mxu0 %v9376_v26  ;;  %8053 = vmatprep.subr.bf16.mxu1 %v9378_v44  ;;  %v9432_v26 = vcombine.high %v4708_v62, %v4712_v55  ;;  %v9434_v44 = vcombine.high %v4709_v41, %v4713_v54 }
 0x740   :  { %7849 = vmatpush1.bf16.msra.mxu0 %v9375_v47  ;;  %8054 = vmatpush1.bf16.msra.mxu1 %v9377_v20  ;;  %v9431_v47 = vcombine.low %v4708_v62, %v4712_v55  ;;  %v9433_v20 = vcombine.low %v4709_v41, %v4713_v54  ;;  %v4764_v54 = vld [vmem:[#allocation15 + $0xd00] sm:$0xff] }
 0x741   :  { %7850 = vmatprep.subr.bf16.mxu0 %v9384_v46  ;;  %8055 = vmatprep.subr.bf16.mxu1 %v9386_v60  ;;  %v9440_v46 = vcombine.high %v4716_v27, %v4720_v43  ;;  %v9442_v60 = vcombine.high %v4717_v39, %v4721_v56 }
 0x744   :  { %7851 = vmatpush1.bf16.msra.mxu0 %v9383_v24  ;;  %8056 = vmatpush1.bf16.msra.mxu1 %v9385_v30  ;;  %v4729_v24 = vld [vmem:[#allocation15 + $0xbe8] sm:$0xff]  ;;  %v9439_v30 = vcombine.low %v4716_v27, %v4720_v43 }
 0x745   :  { %7852 = vmatprep.subr.bf16.mxu0 %v9392_v7  ;;  %8057 = vmatprep.subr.bf16.mxu1 %v9394_v18  ;;  %v9441_v7 = vcombine.low %v4717_v39, %v4721_v56  ;;  %v9448_v18 = vcombine.high %v4724_v3, %v4728_v51  ;;  %v9450_v21 = vcombine.high %v4725_v13, %v4729_v24  ;;  %v4772_v56 = vld [vmem:[#allocation15 + $0xd40] sm:$0xff] }
 0x746   :  { %v9449_v1 = vcombine.low %v4725_v13, %v4729_v24  ;;  %v4780_v13 = vld [vmem:[#allocation15 + $0xd80] sm:$0xff] }
 0x747   :  { %v4784_v24 = vld [vmem:[#allocation15 + $0xda0] sm:$0xff] }
 0x748   :  { %7853 = vmatpush1.bf16.msra.mxu0 %v9391_v40  ;;  %8058 = vmatpush1.bf16.msra.mxu1 %v9393_v0  ;;  %v4733_v40 = vld [vmem:[#allocation15 + $0xc08] sm:$0xff] }
 0x749   :  { %7854 = vmatprep.subr.bf16.mxu0 %v9400_v31  ;;  %8059 = vmatprep.subr.bf16.mxu1 %v9402_v48  ;;  %v4737_v0 = vld [vmem:[#allocation15 + $0xc28] sm:$0xff]  ;;  %v9447_v31 = vcombine.low %v4724_v3, %v4728_v51  ;;  %v9456_v48 = vcombine.high %v4732_v2, %v4736_v50 }
 0x74a   :  { %v9458_v38 = vcombine.high %v4733_v40, %v4737_v0  ;;  %v9457_v14 = vcombine.low %v4733_v40, %v4737_v0  ;;  %v4788_v40 = vld [vmem:[#allocation15 + $0xdc0] sm:$0xff] }
 0x74b   :  { %v4792_v0 = vld [vmem:[#allocation15 + $0xde0] sm:$0xff] }
 0x74c   :  { %7855 = vmatpush1.bf16.msra.mxu0 %v9399_v12  ;;  %8060 = vmatpush1.bf16.msra.mxu1 %v9401_v4  ;;  %v13313_v12 = vpack.c.bf16 %v13290_v23, %v13290_v23  ;;  %v4741_v4 = vld [vmem:[#allocation15 + $0xc48] sm:$0xff]  ;;  %v9463_v23 = vcombine.low %v4740_v52, %v4744_v32  ;;  %v9512_v52 = vcombine.high %v4788_v40, %v4792_v0 }
 0x74d   :  { %7856 = vmatprep.subr.bf16.mxu0 %v9408_v45  ;;  %8061 = vmatprep.subr.bf16.mxu1 %v9410_v37  ;;  %v4745_v45 = vld [vmem:[#allocation15 + $0xc68] sm:$0xff]  ;;  %v9455_v37 = vcombine.low %v4732_v2, %v4736_v50  ;;  %v9504_v2 = vcombine.high %v4780_v13, %v4784_v24 }
 0x74e   :  { %v9466_v28 = vcombine.high %v4741_v4, %v4745_v45  ;;  %v9465_v15 = vcombine.low %v4741_v4, %v4745_v45  ;;  %v4800_v4 = vld [vmem:[#allocation15 + $0xe20] sm:$0xff]  ;;  %v4797_v45 = vld [vmem:[#allocation15 + $0xe08] sm:$0xff] }
 0x750   :  { %7857 = vmatpush1.bf16.msra.mxu0 %v9407_v33  ;;  %8062 = vmatpush1.bf16.msra.mxu1 %v9409_v17  ;;  %v4752_v33 = vld [vmem:[#allocation15 + $0xca0] sm:$0xff]  ;;  %v13315_v17 = vpack.c.bf16 %v4322_v58, %v4322_v58 }
 0x751   :  { %7858 = vmatprep.subr.bf16.mxu0 %v9416_v10  ;;  %8063 = vmatprep.subr.bf16.mxu1 %v9418_v61  ;;  %v4749_v10 = vld [vmem:[#allocation15 + $0xc88] sm:$0xff]  ;;  %v9472_v19 = vcombine.high %v4748_v25, %v4752_v33  ;;  %v4796_v58 = vld [vmem:[#allocation15 + $0xe00] sm:$0xff] }
 0x752   :  { %v4753_v61 = vld [vmem:[#allocation15 + $0xca8] sm:$0xff] }
 0x753   :  { %v9474_v57 = vcombine.high %v4749_v10, %v4753_v61  ;;  %v9473_v62 = vcombine.low %v4749_v10, %v4753_v61  ;;  %v4808_v10 = vld [vmem:[#allocation15 + $0xe60] sm:$0xff]  ;;  %v4805_v61 = vld [vmem:[#allocation15 + $0xe48] sm:$0xff] }
 0x754   :  { %7859 = vmatpush1.bf16.msra.mxu0 %v9415_v5  ;;  %8064 = vmatpush1.bf16.msra.mxu1 %v9417_v22  ;;  %v4760_v5 = vld [vmem:[#allocation15 + $0xce0] sm:$0xff]  ;;  %v4757_v22 = vld [vmem:[#allocation15 + $0xcc8] sm:$0xff] }
 0x755   :  { %7860 = vmatprep.subr.bf16.mxu0 %v9424_v9  ;;  %8065 = vmatprep.subr.bf16.mxu1 %v9426_v53  ;;  %v4761_v9 = vld [vmem:[#allocation15 + $0xce8] sm:$0xff]  ;;  %v9471_v53 = vcombine.low %v4748_v25, %v4752_v33  ;;  %v9480_v55 = vcombine.high %v4756_v63, %v4760_v5  ;;  %v4804_v33 = vld [vmem:[#allocation15 + $0xe40] sm:$0xff] }
 0x756   :  { %v9482_v41 = vcombine.high %v4757_v22, %v4761_v9  ;;  %v9481_v27 = vcombine.low %v4757_v22, %v4761_v9  ;;  %v4816_v22 = vld [vmem:[#allocation15 + $0xea0] sm:$0xff]  ;;  %v4813_v9 = vld [vmem:[#allocation15 + $0xe88] sm:$0xff] }
 0x758   :  { %7861 = vmatpush1.bf16.msra.mxu0 %v9423_v36  ;;  %8066 = vmatpush1.bf16.msra.mxu1 %v9425_v49  ;;  %v4768_v36 = vld [vmem:[#allocation15 + $0xd20] sm:$0xff]  ;;  %v4765_v49 = vld [vmem:[#allocation15 + $0xd08] sm:$0xff] }
 0x759   :  { %7862 = vmatprep.subr.bf16.mxu0 %v9432_v26  ;;  %8067 = vmatprep.subr.bf16.mxu1 %v9434_v44  ;;  %v4769_v26 = vld [vmem:[#allocation15 + $0xd28] sm:$0xff]  ;;  %v9479_v44 = vcombine.low %v4756_v63, %v4760_v5  ;;  %v9488_v43 = vcombine.high %v4764_v54, %v4768_v36  ;;  %v4812_v5 = vld [vmem:[#allocation15 + $0xe80] sm:$0xff] }
 0x75a   :  { %v9490_v39 = vcombine.high %v4765_v49, %v4769_v26  ;;  %v9489_v3 = vcombine.low %v4765_v49, %v4769_v26  ;;  %v4824_v49 = vld [vmem:[#allocation15 + $0xee0] sm:$0xff]  ;;  %v4821_v26 = vld [vmem:[#allocation15 + $0xec8] sm:$0xff] }
 0x75c   :  { %7863 = vmatpush1.bf16.msra.mxu0 %v9431_v47  ;;  %8068 = vmatpush1.bf16.msra.mxu1 %v9433_v20  ;;  %v4776_v47 = vld [vmem:[#allocation15 + $0xd60] sm:$0xff]  ;;  %v4773_v20 = vld [vmem:[#allocation15 + $0xd48] sm:$0xff] }
 0x75d   :  { %7864 = vmatprep.subr.bf16.mxu0 %v9440_v46  ;;  %8069 = vmatprep.subr.bf16.mxu1 %v9442_v60  ;;  %v4777_v46 = vld [vmem:[#allocation15 + $0xd68] sm:$0xff]  ;;  %v9487_v60 = vcombine.low %v4764_v54, %v4768_v36  ;;  %v9496_v51 = vcombine.high %v4772_v56, %v4776_v47  ;;  %v4820_v36 = vld [vmem:[#allocation15 + $0xec0] sm:$0xff] }
 0x75e   :  { %v9498_v35 = vcombine.high %v4773_v20, %v4777_v46 }
 0x760   :  { %7865 = vmatpush1.bf16.msra.mxu0 %v9439_v30  ;;  %8070 = vmatpush1.bf16.msra.mxu1 %v9441_v7  ;;  %v4781_v30 = vld [vmem:[#allocation15 + $0xd88] sm:$0xff] }
 0x761   :  { %7866 = vmatprep.subr.bf16.mxu0 %v9448_v18  ;;  %8071 = vmatprep.subr.bf16.mxu1 %v9450_v21  ;;  %v4785_v7 = vld [vmem:[#allocation15 + $0xda8] sm:$0xff]  ;;  %v9495_v18 = vcombine.low %v4772_v56, %v4776_v47  ;;  %v9497_v21 = vcombine.low %v4773_v20, %v4777_v46  ;;  %v4828_v47 = vld [vmem:[#allocation15 + $0xf00] sm:$0xff] }
 0x762   :  { %v9506_v50 = vcombine.high %v4781_v30, %v4785_v7  ;;  %v4832_v20 = vld [vmem:[#allocation15 + $0xf20] sm:$0xff]  ;;  %v4829_v46 = vld [vmem:[#allocation15 + $0xf08] sm:$0xff] }
 0x764   :  { %7867 = vmatpush1.bf16.msra.mxu0 %v9447_v31  ;;  %8072 = vmatpush1.bf16.msra.mxu1 %v9449_v1  ;;  %v4789_v31 = vld [vmem:[#allocation15 + $0xdc8] sm:$0xff] }
 0x765   :  { %7877 = vmatprep.subr.bf16.mxu0 %v9456_v48  ;;  %8082 = vmatprep.subr.bf16.mxu1 %v9458_v38  ;;  %v4793_v1 = vld [vmem:[#allocation15 + $0xde8] sm:$0xff]  ;;  %v9503_v48 = vcombine.low %v4780_v13, %v4784_v24  ;;  %v9505_v38 = vcombine.low %v4781_v30, %v4785_v7  ;;  %v4836_v24 = vld [vmem:[#allocation15 + $0xf40] sm:$0xff] }
 0x766   :  { %v9514_v32 = vcombine.high %v4789_v31, %v4793_v1  ;;  %v4840_v30 = vld [vmem:[#allocation15 + $0xf60] sm:$0xff]  ;;  %v4837_v7 = vld [vmem:[#allocation15 + $0xf48] sm:$0xff] }
 0x767   :  { %7869 = vmatmul.mubr.bf16.vlgmr.msra.gmra.mrb[0].mxu0 %v13313_v12  ;;  %8074 = vmatmul.mubr.bf16.vlgmr.msra.gmra.mrb[0].mxu1 %v13313_v12 }
 0x768   :  { %7878 = vmatpush1.bf16.msra.mxu0 %v9455_v37  ;;  %8083 = vmatpush1.bf16.msra.mxu1 %v9457_v14  ;;  %v4801_v37 = vld [vmem:[#allocation15 + $0xe28] sm:$0xff]  ;;  %v9511_v14 = vcombine.low %v4788_v40, %v4792_v0  ;;  %v4844_v0 = vld [vmem:[#allocation15 + $0xf80] sm:$0xff] }
 0x769   :  { %7879 = vmatprep.subr.bf16.mxu0 %v9464_v42  ;;  %8084 = vmatprep.subr.bf16.mxu1 %v9466_v28  ;;  %v9513_v42 = vcombine.low %v4789_v31, %v4793_v1  ;;  %v9520_v28 = vcombine.high %v4796_v58, %v4800_v4  ;;  %v9522_v25 = vcombine.high %v4797_v45, %v4801_v37  ;;  %v4848_v31 = vld [vmem:[#allocation15 + $0xfa0] sm:$0xff]  ;;  %v4845_v1 = vld [vmem:[#allocation15 + $0xf88] sm:$0xff] }
 0x76a   :  { %7909 = vmatprep.mubr.bf16.mxu0 %v13315_v17  ;;  %8114 = vmatprep.mubr.bf16.mxu1 %v13315_v17 }
 0x76c   :  { %7880 = vmatpush1.bf16.msra.mxu0 %v9463_v23  ;;  %8085 = vmatpush1.bf16.msra.mxu1 %v9465_v15  ;;  %v4809_v23 = vld [vmem:[#allocation15 + $0xe68] sm:$0xff]  ;;  %v9519_v15 = vcombine.low %v4796_v58, %v4800_v4  ;;  %v4852_v4 = vld [vmem:[#allocation15 + $0xfc0] sm:$0xff] }
 0x76d   :  { %7881 = vmatprep.subr.bf16.mxu0 %v9472_v19  ;;  %8086 = vmatprep.subr.bf16.mxu1 %v9474_v57  ;;  %v9521_v19 = vcombine.low %v4797_v45, %v4801_v37  ;;  %v9528_v57 = vcombine.high %v4804_v33, %v4808_v10  ;;  %v9530_v63 = vcombine.high %v4805_v61, %v4809_v23  ;;  %v4856_v45 = vld [vmem:[#allocation15 + $0xfe0] sm:$0xff]  ;;  %v4853_v37 = vld [vmem:[#allocation15 + $0xfc8] sm:$0xff] }
 0x770   :  { %7882 = vmatpush1.bf16.msra.mxu0 %v9471_v53  ;;  %8087 = vmatpush1.bf16.msra.mxu1 %v9473_v62  ;;  %v4817_v53 = vld [vmem:[#allocation15 + $0xea8] sm:$0xff]  ;;  %v9527_v62 = vcombine.low %v4804_v33, %v4808_v10  ;;  %v4860_v10 = vld [vmem:[#allocation15 + $0x1000] sm:$0xff] }
 0x771   :  { %7883 = vmatprep.subr.bf16.mxu0 %v9480_v55  ;;  %8088 = vmatprep.subr.bf16.mxu1 %v9482_v41  ;;  %v9529_v55 = vcombine.low %v4805_v61, %v4809_v23  ;;  %v9536_v41 = vcombine.high %v4812_v5, %v4816_v22  ;;  %v9538_v54 = vcombine.high %v4813_v9, %v4817_v53  ;;  %v4864_v61 = vld [vmem:[#allocation15 + $0x1020] sm:$0xff]  ;;  %v4861_v23 = vld [vmem:[#allocation15 + $0x1008] sm:$0xff] }
 0x774   :  { %7884 = vmatpush1.bf16.msra.mxu0 %v9479_v44  ;;  %8089 = vmatpush1.bf16.msra.mxu1 %v9481_v27  ;;  %v4825_v44 = vld [vmem:[#allocation15 + $0xee8] sm:$0xff]  ;;  %v9535_v27 = vcombine.low %v4812_v5, %v4816_v22  ;;  %v4868_v22 = vld [vmem:[#allocation15 + $0x1040] sm:$0xff] }
 0x775   :  { %7885 = vmatprep.subr.bf16.mxu0 %v9488_v43  ;;  %8090 = vmatprep.subr.bf16.mxu1 %v9490_v39  ;;  %v9537_v43 = vcombine.low %v4813_v9, %v4817_v53  ;;  %v9544_v39 = vcombine.high %v4820_v36, %v4824_v49  ;;  %v9546_v56 = vcombine.high %v4821_v26, %v4825_v44  ;;  %v4872_v9 = vld [vmem:[#allocation15 + $0x1060] sm:$0xff] }
 0x776   :  { %v13323_v53 = vpack.c.bf16 %v13307_v34, %v13307_v34  ;;  %v9591_v34 = vcombine.low %v4868_v22, %v4872_v9 }
 0x778   :  { %7886 = vmatpush1.bf16.msra.mxu0 %v9487_v60  ;;  %8091 = vmatpush1.bf16.msra.mxu1 %v9489_v3  ;;  %v4833_v60 = vld [vmem:[#allocation15 + $0xf28] sm:$0xff]  ;;  %v9543_v3 = vcombine.low %v4820_v36, %v4824_v49  ;;  %v9592_v36 = vcombine.high %v4868_v22, %v4872_v9 }
 0x779   :  { %7887 = vmatprep.subr.bf16.mxu0 %v9496_v51  ;;  %8092 = vmatprep.subr.bf16.mxu1 %v9498_v35  ;;  %v9545_v51 = vcombine.low %v4821_v26, %v4825_v44  ;;  %v9552_v35 = vcombine.high %v4828_v47, %v4832_v20  ;;  %v9554_v13 = vcombine.high %v4829_v46, %v4833_v60  ;;  %v4876_v26 = vld [vmem:[#allocation15 + $0x1080] sm:$0xff] }
 0x77a   :  { %v4880_v44 = vld [vmem:[#allocation15 + $0x10a0] sm:$0xff] }
 0x77c   :  { %7888 = vmatpush1.bf16.msra.mxu0 %v9495_v18  ;;  %8093 = vmatpush1.bf16.msra.mxu1 %v9497_v21  ;;  %v4841_v18 = vld [vmem:[#allocation15 + $0xf68] sm:$0xff]  ;;  %v9551_v21 = vcombine.low %v4828_v47, %v4832_v20  ;;  %v4884_v20 = vld [vmem:[#allocation15 + $0x10c0] sm:$0xff] }
 0x77d   :  { %7889 = vmatprep.subr.bf16.mxu0 %v9504_v2  ;;  %8094 = vmatprep.subr.bf16.mxu1 %v9506_v50  ;;  %v9553_v2 = vcombine.low %v4829_v46, %v4833_v60  ;;  %v9560_v50 = vcombine.high %v4836_v24, %v4840_v30  ;;  %v9562_v40 = vcombine.high %v4837_v7, %v4841_v18  ;;  %v4888_v46 = vld [vmem:[#allocation15 + $0x10e0] sm:$0xff]  ;;  %v10401_v60 = vmov 0  }
 0x780   :  { %7890 = vmatpush1.bf16.msra.mxu0 %v9503_v48  ;;  %8095 = vmatpush1.bf16.msra.mxu1 %v9505_v38  ;;  %v4849_v48 = vld [vmem:[#allocation15 + $0xfa8] sm:$0xff]  ;;  %v9559_v38 = vcombine.low %v4836_v24, %v4840_v30  ;;  %v9608_v24 = vcombine.high %v4884_v20, %v4888_v46 }
 0x781   :  { %7891 = vmatprep.subr.bf16.mxu0 %v9512_v52  ;;  %8096 = vmatprep.subr.bf16.mxu1 %v9514_v32  ;;  %v9561_v52 = vcombine.low %v4837_v7, %v4841_v18  ;;  %v9568_v32 = vcombine.high %v4844_v0, %v4848_v31  ;;  %v9570_v58 = vcombine.high %v4845_v1, %v4849_v48  ;;  %v4892_v7 = vld [vmem:[#allocation15 + $0x1100] sm:$0xff] }
 0x782   :  { %v4896_v18 = vld [vmem:[#allocation15 + $0x1120] sm:$0xff] }
 0x784   :  { %7892 = vmatpush1.bf16.msra.mxu0 %v9511_v14  ;;  %8097 = vmatpush1.bf16.msra.mxu1 %v9513_v42  ;;  %v4857_v14 = vld [vmem:[#allocation15 + $0xfe8] sm:$0xff]  ;;  %v9567_v42 = vcombine.low %v4844_v0, %v4848_v31  ;;  %v9616_v0 = vcombine.high %v4892_v7, %v4896_v18 }
 0x785   :  { %7893 = vmatprep.subr.bf16.mxu0 %v9520_v28  ;;  %8098 = vmatprep.subr.bf16.mxu1 %v9522_v25  ;;  %v9569_v28 = vcombine.low %v4845_v1, %v4849_v48  ;;  %v9576_v25 = vcombine.high %v4852_v4, %v4856_v45  ;;  %v9578_v33 = vcombine.high %v4853_v37, %v4857_v14  ;;  %v4900_v1 = vld [vmem:[#allocation15 + $0x1140] sm:$0xff] }
 0x786   :  { %v4904_v48 = vld [vmem:[#allocation15 + $0x1160] sm:$0xff] }
 0x788   :  { %7894 = vmatpush1.bf16.msra.mxu0 %v9519_v15  ;;  %8099 = vmatpush1.bf16.msra.mxu1 %v9521_v19  ;;  %v4865_v15 = vld [vmem:[#allocation15 + $0x1028] sm:$0xff]  ;;  %v9575_v19 = vcombine.low %v4852_v4, %v4856_v45  ;;  %v9624_v4 = vcombine.high %v4900_v1, %v4904_v48 }
 0x789   :  { %7895 = vmatprep.subr.bf16.mxu0 %v9528_v57  ;;  %8100 = vmatprep.subr.bf16.mxu1 %v9530_v63  ;;  %v9577_v57 = vcombine.low %v4853_v37, %v4857_v14  ;;  %v9584_v63 = vcombine.high %v4860_v10, %v4864_v61  ;;  %v9586_v5 = vcombine.high %v4861_v23, %v4865_v15  ;;  %v4350_v37 = vld [vmem:[#allocation15 + $0x10] sm:$0xff] }
 0x78a   :  { %v4354_v14 = vld [vmem:[#allocation15 + $0x30] sm:$0xff] }
 0x78b   :  { %v9075_v22 = vcombine.low %v4350_v37, %v4354_v14 }
 0x78c   :  { %7896 = vmatpush1.bf16.msra.mxu0 %v9527_v62  ;;  %8101 = vmatpush1.bf16.msra.mxu1 %v9529_v55  ;;  %v4869_v62 = vld [vmem:[#allocation15 + $0x1048] sm:$0xff] }
 0x78d   :  { %7897 = vmatprep.subr.bf16.mxu0 %v9536_v41  ;;  %8102 = vmatprep.subr.bf16.mxu1 %v9538_v54  ;;  %v4873_v55 = vld [vmem:[#allocation15 + $0x1068] sm:$0xff]  ;;  %v9583_v41 = vcombine.low %v4860_v10, %v4864_v61  ;;  %v9585_v54 = vcombine.low %v4861_v23, %v4865_v15  ;;  %v9076_v61 = vcombine.high %v4350_v37, %v4354_v14  ;;  %v4358_v15 = vld [vmem:[#allocation15 + $0x50] sm:$0xff] }
 0x78e   :  { %v9594_v49 = vcombine.high %v4869_v62, %v4873_v55 }
 0x790   :  { %7898 = vmatpush1.bf16.msra.mxu0 %v9535_v27  ;;  %8103 = vmatpush1.bf16.msra.mxu1 %v9537_v43  ;;  %v4877_v27 = vld [vmem:[#allocation15 + $0x1088] sm:$0xff] }
 0x791   :  { %7899 = vmatprep.subr.bf16.mxu0 %v9544_v39  ;;  %8104 = vmatprep.subr.bf16.mxu1 %v9546_v56  ;;  %v4881_v43 = vld [vmem:[#allocation15 + $0x10a8] sm:$0xff]  ;;  %v9593_v39 = vcombine.low %v4869_v62, %v4873_v55  ;;  %v9600_v56 = vcombine.high %v4876_v26, %v4880_v44 }
 0x792   :  { %v9602_v47 = vcombine.high %v4877_v27, %v4881_v43 }
 0x794   :  { %7900 = vmatpush1.bf16.msra.mxu0 %v9543_v3  ;;  %8105 = vmatpush1.bf16.msra.mxu1 %v9545_v51  ;;  %v4885_v3 = vld [vmem:[#allocation15 + $0x10c8] sm:$0xff] }
 0x795   :  { %7901 = vmatprep.subr.bf16.mxu0 %v9552_v35  ;;  %8106 = vmatprep.subr.bf16.mxu1 %v9554_v13  ;;  %v4889_v51 = vld [vmem:[#allocation15 + $0x10e8] sm:$0xff]  ;;  %v9599_v35 = vcombine.low %v4876_v26, %v4880_v44  ;;  %v9601_v13 = vcombine.low %v4877_v27, %v4881_v43 }
 0x796   :  { %v9610_v30 = vcombine.high %v4885_v3, %v4889_v51 }
 0x798   :  { %7902 = vmatpush1.bf16.msra.mxu0 %v9551_v21  ;;  %8107 = vmatpush1.bf16.msra.mxu1 %v9553_v2  ;;  %v4893_v21 = vld [vmem:[#allocation15 + $0x1108] sm:$0xff] }
 0x799   :  { %7903 = vmatprep.subr.bf16.mxu0 %v9560_v50  ;;  %8108 = vmatprep.subr.bf16.mxu1 %v9562_v40  ;;  %v4897_v2 = vld [vmem:[#allocation15 + $0x1128] sm:$0xff]  ;;  %v9607_v50 = vcombine.low %v4884_v20, %v4888_v46  ;;  %v9609_v40 = vcombine.low %v4885_v3, %v4889_v51 }
 0x79a   :  { %v9618_v31 = vcombine.high %v4893_v21, %v4897_v2 }
 0x79c   :  { %7904 = vmatpush1.bf16.msra.mxu0 %v9559_v38  ;;  %8109 = vmatpush1.bf16.msra.mxu1 %v9561_v52  ;;  %v4901_v38 = vld [vmem:[#allocation15 + $0x1148] sm:$0xff] }
 0x79d   :  { %7905 = vmatprep.subr.bf16.mxu0 %v9568_v32  ;;  %8110 = vmatprep.subr.bf16.mxu1 %v9570_v58  ;;  %v4905_v52 = vld [vmem:[#allocation15 + $0x1168] sm:$0xff]  ;;  %v9615_v32 = vcombine.low %v4892_v7, %v4896_v18  ;;  %v9617_v58 = vcombine.low %v4893_v21, %v4897_v2  ;;  %v4390_v2 = vld [vmem:[#allocation15 + $0x150] sm:$0xff] }
 0x79e   :  { %v9626_v45 = vcombine.high %v4901_v38, %v4905_v52  ;;  %v9625_v10 = vcombine.low %v4901_v38, %v4905_v52  ;;  %v4398_v52 = vld [vmem:[#allocation15 + $0x190] sm:$0xff] }
 0x7a0   :  { %7906 = vmatpush1.bf16.msra.mxu0 %v9567_v42  ;;  %8111 = vmatpush1.bf16.msra.mxu1 %v9569_v28  ;;  %v4351_v42 = vld [vmem:[#allocation15 + $0x18] sm:$0xff] }
 0x7a1   :  { %7907 = vmatprep.subr.bf16.mxu0 %v9576_v25  ;;  %8112 = vmatprep.subr.bf16.mxu1 %v9578_v33  ;;  %v4355_v28 = vld [vmem:[#allocation15 + $0x38] sm:$0xff]  ;;  %v9623_v25 = vcombine.low %v4900_v1, %v4904_v48  ;;  %v9070_v33 = vld.sshfl [vmem:[#allocation3 + $0x10] sm:$0x3 pattern:$0x76325410] }
 0x7a2   :  { %v9078_v23 = vcombine.high %v4351_v42, %v4355_v28  ;;  %v9077_v9 = vcombine.low %v4351_v42, %v4355_v28  ;;  %v4406_v28 = vld [vmem:[#allocation15 + $0x1d0] sm:$0xff] }
 0x7a4   :  { %7908 = vmatpush1.bf16.msra.mxu0 %v9575_v19  ;;  %8113 = vmatpush1.bf16.msra.mxu1 %v9577_v57  ;;  %v4362_v19 = vld [vmem:[#allocation15 + $0x70] sm:$0xff]  ;;  %v13329_v57 = vpack.c.bf16 %v9070_v33, %v9070_v33  ;;  %v4407_v33 = vld [vmem:[#allocation15 + $0x1d8] sm:$0xff] }
 0x7a5   :  { %7918 = vmatprep.subr.bf16.mxu0 %v9584_v63  ;;  %8123 = vmatprep.subr.bf16.mxu1 %v9586_v5  ;;  %v4359_v63 = vld [vmem:[#allocation15 + $0x58] sm:$0xff]  ;;  %v9084_v62 = vcombine.high %v4358_v15, %v4362_v19  ;;  %v9083_v26 = vcombine.low %v4358_v15, %v4362_v19 }
 0x7a6   :  { %v4363_v5 = vld [vmem:[#allocation15 + $0x78] sm:$0xff] }
 0x7a7   :  { %7910 = vmatmul.mubr.bf16.vlgmr.msra.gmra.mrb[0].mxu0 %v13323_v53  ;;  %8115 = vmatmul.mubr.bf16.vlgmr.msra.gmra.mrb[0].mxu1 %v13323_v53  ;;  %v9086_v55 = vcombine.high %v4359_v63, %v4363_v5  ;;  %v9085_v44 = vcombine.low %v4359_v63, %v4363_v5  ;;  %v4414_v63 = vld [vmem:[#allocation15 + $0x210] sm:$0xff] }
 0x7a8   :  { %7919 = vmatpush1.bf16.msra.mxu0 %v9583_v41  ;;  %8124 = vmatpush1.bf16.msra.mxu1 %v9585_v54  ;;  %v4366_v41 = vld [vmem:[#allocation15 + $0x90] sm:$0xff] }
 0x7a9   :  { %7920 = vmatprep.subr.bf16.mxu0 %v9592_v36  ;;  %8125 = vmatprep.subr.bf16.mxu1 %v9594_v49  ;;  %v4370_v54 = vld [vmem:[#allocation15 + $0xb0] sm:$0xff]  ;;  %v4367_v36 = vld [vmem:[#allocation15 + $0x98] sm:$0xff] }
 0x7aa   :  { %7950 = vmatprep.mubr.bf16.mxu0 %v10401_v60  ;;  %8155 = vmatprep.mubr.bf16.mxu1 %v10401_v60  ;;  %v4371_v49 = vld [vmem:[#allocation15 + $0xb8] sm:$0xff]  ;;  %v9092_v27 = vcombine.high %v4366_v41, %v4370_v54  ;;  %v9091_v20 = vcombine.low %v4366_v41, %v4370_v54  ;;  %v4418_v5 = vld [vmem:[#allocation15 + $0x230] sm:$0xff] }
 0x7ab   :  { %v9094_v43 = vcombine.high %v4367_v36, %v4371_v49  ;;  %v9093_v46 = vcombine.low %v4367_v36, %v4371_v49  ;;  %v9140_v41 = vcombine.high %v4414_v63, %v4418_v5  ;;  %v4422_v36 = vld [vmem:[#allocation15 + $0x250] sm:$0xff] }
 0x7ac   :  { %7921 = vmatpush1.bf16.msra.mxu0 %v9591_v34  ;;  %8126 = vmatpush1.bf16.msra.mxu1 %v9593_v39  ;;  %v4374_v34 = vld [vmem:[#allocation15 + $0xd0] sm:$0xff] }
 0x7ad   :  { %7922 = vmatprep.subr.bf16.mxu0 %v9600_v56  ;;  %8127 = vmatprep.subr.bf16.mxu1 %v9602_v47  ;;  %v4378_v39 = vld [vmem:[#allocation15 + $0xf0] sm:$0xff]  ;;  %v4375_v56 = vld [vmem:[#allocation15 + $0xd8] sm:$0xff] }
 0x7ae   :  { %v4379_v47 = vld [vmem:[#allocation15 + $0xf8] sm:$0xff]  ;;  %v9100_v3 = vcombine.high %v4374_v34, %v4378_v39  ;;  %v9099_v7 = vcombine.low %v4374_v34, %v4378_v39  ;;  %v4426_v49 = vld [vmem:[#allocation15 + $0x270] sm:$0xff] }
 0x7af   :  { %v9102_v51 = vcombine.high %v4375_v56, %v4379_v47  ;;  %v9101_v18 = vcombine.low %v4375_v56, %v4379_v47  ;;  %v9148_v34 = vcombine.high %v4422_v36, %v4426_v49  ;;  %v4430_v56 = vld [vmem:[#allocation15 + $0x290] sm:$0xff] }
 0x7b0   :  { %7923 = vmatpush1.bf16.msra.mxu0 %v9599_v35  ;;  %8128 = vmatpush1.bf16.msra.mxu1 %v9601_v13  ;;  %v4382_v35 = vld [vmem:[#allocation15 + $0x110] sm:$0xff] }
 0x7b1   :  { %7924 = vmatprep.subr.bf16.mxu0 %v9608_v24  ;;  %8129 = vmatprep.subr.bf16.mxu1 %v9610_v30  ;;  %v4386_v13 = vld [vmem:[#allocation15 + $0x130] sm:$0xff]  ;;  %v4383_v24 = vld [vmem:[#allocation15 + $0x118] sm:$0xff] }
 0x7b2   :  { %v4387_v30 = vld [vmem:[#allocation15 + $0x138] sm:$0xff]  ;;  %v9108_v21 = vcombine.high %v4382_v35, %v4386_v13  ;;  %v4434_v47 = vld [vmem:[#allocation15 + $0x2b0] sm:$0xff] }
 0x7b3   :  { %v9109_v1 = vcombine.low %v4383_v24, %v4387_v30 }
 0x7b4   :  { %7925 = vmatpush1.bf16.msra.mxu0 %v9607_v50  ;;  %8130 = vmatpush1.bf16.msra.mxu1 %v9609_v40  ;;  %v4394_v50 = vld [vmem:[#allocation15 + $0x170] sm:$0xff]  ;;  %v4391_v40 = vld [vmem:[#allocation15 + $0x158] sm:$0xff] }
 0x7b5   :  { %7926 = vmatprep.subr.bf16.mxu0 %v9616_v0  ;;  %8131 = vmatprep.subr.bf16.mxu1 %v9618_v31  ;;  %v4395_v0 = vld [vmem:[#allocation15 + $0x178] sm:$0xff]  ;;  %v9107_v31 = vcombine.low %v4382_v35, %v4386_v13  ;;  %v9116_v48 = vcombine.high %v4390_v2, %v4394_v50  ;;  %v9156_v35 = vcombine.high %v4430_v56, %v4434_v47 }
 0x7b6   :  { %v9118_v38 = vcombine.high %v4391_v40, %v4395_v0  ;;  %v9117_v37 = vcombine.low %v4391_v40, %v4395_v0  ;;  %v4446_v40 = vld [vmem:[#allocation15 + $0x310] sm:$0xff] }
 0x7b7   :  { %v4450_v0 = vld [vmem:[#allocation15 + $0x330] sm:$0xff] }
 0x7b8   :  { %7927 = vmatpush1.bf16.msra.mxu0 %v9615_v32  ;;  %8132 = vmatpush1.bf16.msra.mxu1 %v9617_v58  ;;  %v4402_v32 = vld [vmem:[#allocation15 + $0x1b0] sm:$0xff]  ;;  %v4399_v58 = vld [vmem:[#allocation15 + $0x198] sm:$0xff] }
 0x7b9   :  { %7928 = vmatprep.subr.bf16.mxu0 %v9624_v4  ;;  %8133 = vmatprep.subr.bf16.mxu1 %v9626_v45  ;;  %v4403_v4 = vld [vmem:[#allocation15 + $0x1b8] sm:$0xff]  ;;  %v9115_v45 = vcombine.low %v4390_v2, %v4394_v50  ;;  %v9124_v14 = vcombine.high %v4398_v52, %v4402_v32 }
 0x7ba   :  { %v9126_v42 = vcombine.high %v4399_v58, %v4403_v4 }
 0x7bc   :  { %7929 = vmatpush1.bf16.msra.mxu0 %v9623_v25  ;;  %8134 = vmatpush1.bf16.msra.mxu1 %v9625_v10  ;;  %v4410_v25 = vld [vmem:[#allocation15 + $0x1f0] sm:$0xff]  ;;  %v4411_v10 = vld [vmem:[#allocation15 + $0x1f8] sm:$0xff] }
 0x7bd   :  { %8164 = vmatprep.subr.bf16.mxu0 %v9076_v61  ;;  %8369 = vmatprep.subr.bf16.mxu1 %v9078_v23  ;;  %v9123_v61 = vcombine.low %v4398_v52, %v4402_v32  ;;  %v9125_v23 = vcombine.low %v4399_v58, %v4403_v4  ;;  %v9132_v15 = vcombine.high %v4406_v28, %v4410_v25  ;;  %v4454_v58 = vld [vmem:[#allocation15 + $0x350] sm:$0xff] }
 0x7be   :  { %v9134_v19 = vcombine.high %v4407_v33, %v4411_v10  ;;  %v9172_v52 = vcombine.high %v4446_v40, %v4450_v0  ;;  %v4458_v4 = vld [vmem:[#allocation15 + $0x370] sm:$0xff] }
 0x7bf   :  { %9631 = vmatmul.mubr.msk.bf16.vlgmr.msra.gmra.mrb[0].mxu0 %vm4222_vm13, %v13329_v57  ;;  %9632 = vmatmul.mubr.msk.bf16.vlgmr.msra.gmra.mrb[0].mxu1 %vm4222_vm13, %v13329_v57 }
 0x7c0   :  { %8165 = vmatpush1.bf16.msra.mxu0 %v9075_v22  ;;  %8370 = vmatpush1.bf16.msra.mxu1 %v9077_v9  ;;  %v4415_v22 = vld [vmem:[#allocation15 + $0x218] sm:$0xff] }
 0x7c1   :  { %8166 = vmatprep.subr.bf16.mxu0 %v9084_v62  ;;  %8371 = vmatprep.subr.bf16.mxu1 %v9086_v55  ;;  %v4419_v9 = vld [vmem:[#allocation15 + $0x238] sm:$0xff]  ;;  %v9131_v62 = vcombine.low %v4406_v28, %v4410_v25  ;;  %v9133_v55 = vcombine.low %v4407_v33, %v4411_v10  ;;  %v9180_v28 = vcombine.high %v4454_v58, %v4458_v4  ;;  %v4462_v33 = vld [vmem:[#allocation15 + $0x390] sm:$0xff] }
 0x7c2   :  { %8196 = vmatprep.mubr.bf16.mxu0 %v13265_v16  ;;  %8401 = vmatprep.mubr.bf16.mxu1 %v13265_v16  ;;  %v9110_v16 = vcombine.high %v4383_v24, %v4387_v30  ;;  %v9142_v54 = vcombine.high %v4415_v22, %v4419_v9  ;;  %v4438_v24 = vld [vmem:[#allocation15 + $0x2d0] sm:$0xff] }
 0x7c3   :  { %v4442_v30 = vld [vmem:[#allocation15 + $0x2f0] sm:$0xff] }
 0x7c4   :  { %8167 = vmatpush1.bf16.msra.mxu0 %v9083_v26  ;;  %8372 = vmatpush1.bf16.msra.mxu1 %v9085_v44  ;;  %v4423_v26 = vld [vmem:[#allocation15 + $0x258] sm:$0xff]  ;;  %v9164_v2 = vcombine.high %v4438_v24, %v4442_v30  ;;  %v4466_v10 = vld [vmem:[#allocation15 + $0x3b0] sm:$0xff] }
 0x7c5   :  { %8168 = vmatprep.subr.bf16.mxu0 %v9092_v27  ;;  %8373 = vmatprep.subr.bf16.mxu1 %v9094_v43  ;;  %v4427_v44 = vld [vmem:[#allocation15 + $0x278] sm:$0xff]  ;;  %v9139_v27 = vcombine.low %v4414_v63, %v4418_v5  ;;  %v9141_v43 = vcombine.low %v4415_v22, %v4419_v9  ;;  %v9188_v63 = vcombine.high %v4462_v33, %v4466_v10  ;;  %v4470_v22 = vld [vmem:[#allocation15 + $0x3d0] sm:$0xff] }
 0x7c6   :  { %v9150_v39 = vcombine.high %v4423_v26, %v4427_v44  ;;  %v4474_v9 = vld [vmem:[#allocation15 + $0x3f0] sm:$0xff] }
 0x7c8   :  { %8169 = vmatpush1.bf16.msra.mxu0 %v9091_v20  ;;  %8374 = vmatpush1.bf16.msra.mxu1 %v9093_v46  ;;  %v4431_v20 = vld [vmem:[#allocation15 + $0x298] sm:$0xff] }
 0x7c9   :  { %8170 = vmatprep.subr.bf16.mxu0 %v9100_v3  ;;  %8375 = vmatprep.subr.bf16.mxu1 %v9102_v51  ;;  %v4435_v46 = vld [vmem:[#allocation15 + $0x2b8] sm:$0xff]  ;;  %v9147_v3 = vcombine.low %v4422_v36, %v4426_v49  ;;  %v9149_v51 = vcombine.low %v4423_v26, %v4427_v44  ;;  %v9196_v36 = vcombine.high %v4470_v22, %v4474_v9  ;;  %v4478_v26 = vld [vmem:[#allocation15 + $0x410] sm:$0xff] }
 0x7ca   :  { %v9158_v13 = vcombine.high %v4431_v20, %v4435_v46  ;;  %v4482_v44 = vld [vmem:[#allocation15 + $0x430] sm:$0xff] }
 0x7cc   :  { %8171 = vmatpush1.bf16.msra.mxu0 %v9099_v7  ;;  %8376 = vmatpush1.bf16.msra.mxu1 %v9101_v18  ;;  %v4439_v7 = vld [vmem:[#allocation15 + $0x2d8] sm:$0xff] }
 0x7cd   :  { %8172 = vmatprep.subr.bf16.mxu0 %v9108_v21  ;;  %8377 = vmatprep.subr.bf16.mxu1 %v9110_v16  ;;  %v4443_v18 = vld [vmem:[#allocation15 + $0x2f8] sm:$0xff]  ;;  %v9155_v21 = vcombine.low %v4430_v56, %v4434_v47  ;;  %v9157_v16 = vcombine.low %v4431_v20, %v4435_v46  ;;  %v9204_v56 = vcombine.high %v4478_v26, %v4482_v44  ;;  %v4486_v20 = vld [vmem:[#allocation15 + $0x450] sm:$0xff] }
 0x7ce   :  { %v9166_v50 = vcombine.high %v4439_v7, %v4443_v18  ;;  %v4490_v46 = vld [vmem:[#allocation15 + $0x470] sm:$0xff] }
 0x7d0   :  { %8173 = vmatpush1.bf16.msra.mxu0 %v9107_v31  ;;  %8378 = vmatpush1.bf16.msra.mxu1 %v9109_v1  ;;  %v4447_v31 = vld [vmem:[#allocation15 + $0x318] sm:$0xff] }
 0x7d1   :  { %8174 = vmatprep.subr.bf16.mxu0 %v9116_v48  ;;  %8379 = vmatprep.subr.bf16.mxu1 %v9118_v38  ;;  %v4451_v1 = vld [vmem:[#allocation15 + $0x338] sm:$0xff]  ;;  %v9163_v48 = vcombine.low %v4438_v24, %v4442_v30  ;;  %v9165_v38 = vcombine.low %v4439_v7, %v4443_v18  ;;  %v9212_v24 = vcombine.high %v4486_v20, %v4490_v46  ;;  %v4494_v7 = vld [vmem:[#allocation15 + $0x490] sm:$0xff] }
 0x7d2   :  { %v9174_v32 = vcombine.high %v4447_v31, %v4451_v1  ;;  %v4498_v18 = vld [vmem:[#allocation15 + $0x4b0] sm:$0xff] }
 0x7d4   :  { %8175 = vmatpush1.bf16.msra.mxu0 %v9115_v45  ;;  %8380 = vmatpush1.bf16.msra.mxu1 %v9117_v37  ;;  %v4455_v45 = vld [vmem:[#allocation15 + $0x358] sm:$0xff] }
 0x7d5   :  { %8176 = vmatprep.subr.bf16.mxu0 %v9124_v14  ;;  %8381 = vmatprep.subr.bf16.mxu1 %v9126_v42  ;;  %v4459_v37 = vld [vmem:[#allocation15 + $0x378] sm:$0xff]  ;;  %v9171_v14 = vcombine.low %v4446_v40, %v4450_v0  ;;  %v9173_v42 = vcombine.low %v4447_v31, %v4451_v1  ;;  %v9220_v40 = vcombine.high %v4494_v7, %v4498_v18  ;;  %v4502_v31 = vld [vmem:[#allocation15 + $0x4d0] sm:$0xff] }
 0x7d6   :  { %v9182_v25 = vcombine.high %v4455_v45, %v4459_v37  ;;  %v4506_v1 = vld [vmem:[#allocation15 + $0x4f0] sm:$0xff] }
 0x7d8   :  { %8177 = vmatpush1.bf16.msra.mxu0 %v9123_v61  ;;  %8382 = vmatpush1.bf16.msra.mxu1 %v9125_v23  ;;  %v4463_v61 = vld [vmem:[#allocation15 + $0x398] sm:$0xff] }
 0x7d9   :  { %8178 = vmatprep.subr.bf16.mxu0 %v9132_v15  ;;  %8383 = vmatprep.subr.bf16.mxu1 %v9134_v19  ;;  %v4467_v23 = vld [vmem:[#allocation15 + $0x3b8] sm:$0xff]  ;;  %v9179_v15 = vcombine.low %v4454_v58, %v4458_v4  ;;  %v9181_v19 = vcombine.low %v4455_v45, %v4459_v37  ;;  %v4510_v4 = vld [vmem:[#allocation15 + $0x510] sm:$0xff] }
 0x7da   :  { %v9190_v5 = vcombine.high %v4463_v61, %v4467_v23  ;;  %v4514_v45 = vld [vmem:[#allocation15 + $0x530] sm:$0xff]  ;;  %v4511_v37 = vld [vmem:[#allocation15 + $0x518] sm:$0xff] }
 0x7dc   :  { %8179 = vmatpush1.bf16.msra.mxu0 %v9131_v62  ;;  %8384 = vmatpush1.bf16.msra.mxu1 %v9133_v55  ;;  %v4471_v62 = vld [vmem:[#allocation15 + $0x3d8] sm:$0xff] }
 0x7dd   :  { %8180 = vmatprep.subr.bf16.mxu0 %v9140_v41  ;;  %8385 = vmatprep.subr.bf16.mxu1 %v9142_v54  ;;  %v4475_v55 = vld [vmem:[#allocation15 + $0x3f8] sm:$0xff]  ;;  %v9187_v41 = vcombine.low %v4462_v33, %v4466_v10  ;;  %v9189_v54 = vcombine.low %v4463_v61, %v4467_v23  ;;  %v4518_v33 = vld [vmem:[#allocation15 + $0x550] sm:$0xff] }
 0x7de   :  { %v9198_v49 = vcombine.high %v4471_v62, %v4475_v55  ;;  %v4522_v10 = vld [vmem:[#allocation15 + $0x570] sm:$0xff]  ;;  %v4519_v61 = vld [vmem:[#allocation15 + $0x558] sm:$0xff] }
 0x7df   :  { %v4523_v23 = vld [vmem:[#allocation15 + $0x578] sm:$0xff] }
 0x7e0   :  { %8181 = vmatpush1.bf16.msra.mxu0 %v9139_v27  ;;  %8386 = vmatpush1.bf16.msra.mxu1 %v9141_v43  ;;  %v4479_v27 = vld [vmem:[#allocation15 + $0x418] sm:$0xff] }
 0x7e1   :  { %8182 = vmatprep.subr.bf16.mxu0 %v9148_v34  ;;  %8387 = vmatprep.subr.bf16.mxu1 %v9150_v39  ;;  %v4483_v43 = vld [vmem:[#allocation15 + $0x438] sm:$0xff]  ;;  %v9195_v34 = vcombine.low %v4470_v22, %v4474_v9  ;;  %v9197_v39 = vcombine.low %v4471_v62, %v4475_v55  ;;  %v4526_v22 = vld [vmem:[#allocation15 + $0x590] sm:$0xff] }
 0x7e2   :  { %v9206_v47 = vcombine.high %v4479_v27, %v4483_v43  ;;  %v4530_v9 = vld [vmem:[#allocation15 + $0x5b0] sm:$0xff]  ;;  %v4527_v62 = vld [vmem:[#allocation15 + $0x598] sm:$0xff] }
 0x7e3   :  { %v4531_v55 = vld [vmem:[#allocation15 + $0x5b8] sm:$0xff] }
 0x7e4   :  { %8183 = vmatpush1.bf16.msra.mxu0 %v9147_v3  ;;  %8388 = vmatpush1.bf16.msra.mxu1 %v9149_v51  ;;  %v4487_v3 = vld [vmem:[#allocation15 + $0x458] sm:$0xff] }
 0x7e5   :  { %8184 = vmatprep.subr.bf16.mxu0 %v9156_v35  ;;  %8389 = vmatprep.subr.bf16.mxu1 %v9158_v13  ;;  %v4491_v51 = vld [vmem:[#allocation15 + $0x478] sm:$0xff]  ;;  %v9203_v35 = vcombine.low %v4478_v26, %v4482_v44  ;;  %v9205_v13 = vcombine.low %v4479_v27, %v4483_v43  ;;  %v4534_v26 = vld [vmem:[#allocation15 + $0x5d0] sm:$0xff] }
 0x7e6   :  { %v9214_v30 = vcombine.high %v4487_v3, %v4491_v51  ;;  %v4538_v44 = vld [vmem:[#allocation15 + $0x5f0] sm:$0xff]  ;;  %v4535_v27 = vld [vmem:[#allocation15 + $0x5d8] sm:$0xff] }
 0x7e7   :  { %v4539_v43 = vld [vmem:[#allocation15 + $0x5f8] sm:$0xff] }
 0x7e8   :  { %8185 = vmatpush1.bf16.msra.mxu0 %v9155_v21  ;;  %8390 = vmatpush1.bf16.msra.mxu1 %v9157_v16  ;;  %v4495_v21 = vld [vmem:[#allocation15 + $0x498] sm:$0xff] }
 0x7e9   :  { %8186 = vmatprep.subr.bf16.mxu0 %v9164_v2  ;;  %8391 = vmatprep.subr.bf16.mxu1 %v9166_v50  ;;  %v4499_v16 = vld [vmem:[#allocation15 + $0x4b8] sm:$0xff]  ;;  %v9211_v2 = vcombine.low %v4486_v20, %v4490_v46  ;;  %v9213_v50 = vcombine.low %v4487_v3, %v4491_v51  ;;  %v4542_v20 = vld [vmem:[#allocation15 + $0x610] sm:$0xff] }
 0x7ea   :  { %v9222_v0 = vcombine.high %v4495_v21, %v4499_v16  ;;  %v4546_v46 = vld [vmem:[#allocation15 + $0x630] sm:$0xff]  ;;  %v4543_v3 = vld [vmem:[#allocation15 + $0x618] sm:$0xff] }
 0x7eb   :  { %v4547_v51 = vld [vmem:[#allocation15 + $0x638] sm:$0xff] }
 0x7ec   :  { %8187 = vmatpush1.bf16.msra.mxu0 %v9163_v48  ;;  %8392 = vmatpush1.bf16.msra.mxu1 %v9165_v38  ;;  %v4503_v48 = vld [vmem:[#allocation15 + $0x4d8] sm:$0xff] }
 0x7ed   :  { %8188 = vmatprep.subr.bf16.mxu0 %v9172_v52  ;;  %8393 = vmatprep.subr.bf16.mxu1 %v9174_v32  ;;  %v4507_v38 = vld [vmem:[#allocation15 + $0x4f8] sm:$0xff]  ;;  %v9219_v52 = vcombine.low %v4494_v7, %v4498_v18  ;;  %v9228_v32 = vcombine.high %v4502_v31, %v4506_v1  ;;  %v4550_v7 = vld [vmem:[#allocation15 + $0x650] sm:$0xff] }
 0x7ee   :  { %v9230_v58 = vcombine.high %v4503_v48, %v4507_v38  ;;  %v4554_v18 = vld [vmem:[#allocation15 + $0x670] sm:$0xff] }
 0x7f0   :  { %8189 = vmatpush1.bf16.msra.mxu0 %v9171_v14  ;;  %8394 = vmatpush1.bf16.msra.mxu1 %v9173_v42  ;;  %v4515_v14 = vld [vmem:[#allocation15 + $0x538] sm:$0xff]  ;;  %v9227_v42 = vcombine.low %v4502_v31, %v4506_v1  ;;  %v4558_v31 = vld [vmem:[#allocation15 + $0x690] sm:$0xff] }
 0x7f1   :  { %8190 = vmatprep.subr.bf16.mxu0 %v9180_v28  ;;  %8395 = vmatprep.subr.bf16.mxu1 %v9182_v25  ;;  %v9229_v28 = vcombine.low %v4503_v48, %v4507_v38  ;;  %v9236_v25 = vcombine.high %v4510_v4, %v4514_v45  ;;  %v4562_v1 = vld [vmem:[#allocation15 + $0x6b0] sm:$0xff]  ;;  %v4559_v48 = vld [vmem:[#allocation15 + $0x698] sm:$0xff] }
 0x7f2   :  { %v4563_v38 = vld [vmem:[#allocation15 + $0x6b8] sm:$0xff] }
 0x7f4   :  { %8191 = vmatpush1.bf16.msra.mxu0 %v9179_v15  ;;  %8396 = vmatpush1.bf16.msra.mxu1 %v9181_v19  ;;  %v9235_v15 = vcombine.low %v4510_v4, %v4514_v45  ;;  %v9237_v19 = vcombine.low %v4511_v37, %v4515_v14  ;;  %v4566_v4 = vld [vmem:[#allocation15 + $0x6d0] sm:$0xff] }
 0x7f5   :  { %8192 = vmatprep.subr.bf16.mxu0 %v9188_v63  ;;  %8397 = vmatprep.subr.bf16.mxu1 %v9190_v5  ;;  %v9244_v63 = vcombine.high %v4518_v33, %v4522_v10  ;;  %v9246_v5 = vcombine.high %v4519_v61, %v4523_v23  ;;  %v4570_v45 = vld [vmem:[#allocation15 + $0x6f0] sm:$0xff] }
 0x7f8   :  { %8193 = vmatpush1.bf16.msra.mxu0 %v9187_v41  ;;  %8398 = vmatpush1.bf16.msra.mxu1 %v9189_v54  ;;  %v9243_v41 = vcombine.low %v4518_v33, %v4522_v10  ;;  %v9245_v54 = vcombine.low %v4519_v61, %v4523_v23  ;;  %v4574_v33 = vld [vmem:[#allocation15 + $0x710] sm:$0xff]  ;;  %v4575_v61 = vld [vmem:[#allocation15 + $0x718] sm:$0xff] }
 0x7f9   :  { %8194 = vmatprep.subr.bf16.mxu0 %v9196_v36  ;;  %8399 = vmatprep.subr.bf16.mxu1 %v9198_v49  ;;  %v9252_v36 = vcombine.high %v4526_v22, %v4530_v9  ;;  %v9254_v49 = vcombine.high %v4527_v62, %v4531_v55  ;;  %v4578_v10 = vld [vmem:[#allocation15 + $0x730] sm:$0xff]  ;;  %v4579_v23 = vld [vmem:[#allocation15 + $0x738] sm:$0xff] }
 0x7fc   :  { %8195 = vmatpush1.bf16.msra.mxu0 %v9195_v34  ;;  %8400 = vmatpush1.bf16.msra.mxu1 %v9197_v39  ;;  %v9251_v34 = vcombine.low %v4526_v22, %v4530_v9  ;;  %v9253_v39 = vcombine.low %v4527_v62, %v4531_v55  ;;  %v4582_v22 = vld [vmem:[#allocation15 + $0x750] sm:$0xff]  ;;  %v4583_v62 = vld [vmem:[#allocation15 + $0x758] sm:$0xff] }
 0x7fd   :  { %8205 = vmatprep.subr.bf16.mxu0 %v9204_v56  ;;  %8410 = vmatprep.subr.bf16.mxu1 %v9206_v47  ;;  %v9260_v56 = vcombine.high %v4534_v26, %v4538_v44  ;;  %v9262_v47 = vcombine.high %v4535_v27, %v4539_v43  ;;  %v4586_v9 = vld [vmem:[#allocation15 + $0x770] sm:$0xff]  ;;  %v4587_v55 = vld [vmem:[#allocation15 + $0x778] sm:$0xff] }
 0x7ff   :  { %8197 = vmatmul.mubr.bf16.vlgmr.msra.gmra.mrb[4].mxu0 %v13278_v29  ;;  %8402 = vmatmul.mubr.bf16.vlgmr.msra.gmra.mrb[4].mxu1 %v13278_v29  ;;  %v9221_v29 = vcombine.low %v4495_v21, %v4499_v16  ;;  %v4551_v21 = vld [vmem:[#allocation15 + $0x658] sm:$0xff] }
 0x800   :  { %8206 = vmatpush1.bf16.msra.mxu0 %v9203_v35  ;;  %8411 = vmatpush1.bf16.msra.mxu1 %v9205_v13  ;;  %v9259_v35 = vcombine.low %v4534_v26, %v4538_v44  ;;  %v9261_v13 = vcombine.low %v4535_v27, %v4539_v43  ;;  %v4555_v16 = vld [vmem:[#allocation15 + $0x678] sm:$0xff]  ;;  %v4590_v26 = vld [vmem:[#allocation15 + $0x790] sm:$0xff] }
 0x801   :  { %8207 = vmatprep.subr.bf16.mxu0 %v9212_v24  ;;  %8412 = vmatprep.subr.bf16.mxu1 %v9214_v30  ;;  %v9268_v24 = vcombine.high %v4542_v20, %v4546_v46  ;;  %v9270_v30 = vcombine.high %v4543_v3, %v4547_v51  ;;  %v4594_v44 = vld [vmem:[#allocation15 + $0x7b0] sm:$0xff]  ;;  %v4591_v27 = vld [vmem:[#allocation15 + $0x798] sm:$0xff] }
 0x802   :  { %8237 = vmatprep.mubr.bf16.mxu0 %v13280_v6  ;;  %8442 = vmatprep.mubr.bf16.mxu1 %v13280_v6  ;;  %v9238_v6 = vcombine.high %v4511_v37, %v4515_v14  ;;  %v4567_v37 = vld [vmem:[#allocation15 + $0x6d8] sm:$0xff] }
 0x803   :  { %v4571_v14 = vld [vmem:[#allocation15 + $0x6f8] sm:$0xff] }
 0x804   :  { %8208 = vmatpush1.bf16.msra.mxu0 %v9211_v2  ;;  %8413 = vmatpush1.bf16.msra.mxu1 %v9213_v50  ;;  %v9267_v2 = vcombine.low %v4542_v20, %v4546_v46  ;;  %v9269_v50 = vcombine.low %v4543_v3, %v4547_v51  ;;  %v4595_v43 = vld [vmem:[#allocation15 + $0x7b8] sm:$0xff]  ;;  %v4598_v20 = vld [vmem:[#allocation15 + $0x7d0] sm:$0xff] }
 0x805   :  { %8209 = vmatprep.subr.bf16.mxu0 %v9220_v40  ;;  %8414 = vmatprep.subr.bf16.mxu1 %v9222_v0  ;;  %v9276_v40 = vcombine.high %v4550_v7, %v4554_v18  ;;  %v9278_v0 = vcombine.high %v4551_v21, %v4555_v16  ;;  %v4602_v46 = vld [vmem:[#allocation15 + $0x7f0] sm:$0xff]  ;;  %v4599_v3 = vld [vmem:[#allocation15 + $0x7d8] sm:$0xff] }
 0x806   :  { %v4603_v51 = vld [vmem:[#allocation15 + $0x7f8] sm:$0xff] }
 0x808   :  { %8210 = vmatpush1.bf16.msra.mxu0 %v9219_v52  ;;  %8415 = vmatpush1.bf16.msra.mxu1 %v9221_v29  ;;  %v9275_v52 = vcombine.low %v4550_v7, %v4554_v18  ;;  %v9277_v29 = vcombine.low %v4551_v21, %v4555_v16  ;;  %v4606_v7 = vld [vmem:[#allocation15 + $0x810] sm:$0xff]  ;;  %v4607_v21 = vld [vmem:[#allocation15 + $0x818] sm:$0xff] }
 0x809   :  { %8211 = vmatprep.subr.bf16.mxu0 %v9228_v32  ;;  %8416 = vmatprep.subr.bf16.mxu1 %v9230_v58  ;;  %v9284_v32 = vcombine.high %v4558_v31, %v4562_v1  ;;  %v9286_v58 = vcombine.high %v4559_v48, %v4563_v38  ;;  %v4610_v18 = vld [vmem:[#allocation15 + $0x830] sm:$0xff]  ;;  %v4611_v16 = vld [vmem:[#allocation15 + $0x838] sm:$0xff] }
 0x80c   :  { %8212 = vmatpush1.bf16.msra.mxu0 %v9227_v42  ;;  %8417 = vmatpush1.bf16.msra.mxu1 %v9229_v28  ;;  %v9283_v42 = vcombine.low %v4558_v31, %v4562_v1  ;;  %v9285_v28 = vcombine.low %v4559_v48, %v4563_v38  ;;  %v4614_v31 = vld [vmem:[#allocation15 + $0x850] sm:$0xff]  ;;  %v4615_v48 = vld [vmem:[#allocation15 + $0x858] sm:$0xff] }
 0x80d   :  { %8213 = vmatprep.subr.bf16.mxu0 %v9236_v25  ;;  %8418 = vmatprep.subr.bf16.mxu1 %v9238_v6  ;;  %v9292_v25 = vcombine.high %v4566_v4, %v4570_v45  ;;  %v9294_v6 = vcombine.high %v4567_v37, %v4571_v14  ;;  %v4618_v1 = vld [vmem:[#allocation15 + $0x870] sm:$0xff]  ;;  %v4619_v38 = vld [vmem:[#allocation15 + $0x878] sm:$0xff] }
 0x810   :  { %8214 = vmatpush1.bf16.msra.mxu0 %v9235_v15  ;;  %8419 = vmatpush1.bf16.msra.mxu1 %v9237_v19  ;;  %v9291_v15 = vcombine.low %v4566_v4, %v4570_v45  ;;  %v9293_v19 = vcombine.low %v4567_v37, %v4571_v14  ;;  %v4622_v4 = vld [vmem:[#allocation15 + $0x890] sm:$0xff]  ;;  %v4623_v37 = vld [vmem:[#allocation15 + $0x898] sm:$0xff] }
 0x811   :  { %8215 = vmatprep.subr.bf16.mxu0 %v9244_v63  ;;  %8420 = vmatprep.subr.bf16.mxu1 %v9246_v5  ;;  %v9300_v63 = vcombine.high %v4574_v33, %v4578_v10  ;;  %v9302_v5 = vcombine.high %v4575_v61, %v4579_v23  ;;  %v4626_v45 = vld [vmem:[#allocation15 + $0x8b0] sm:$0xff]  ;;  %v4627_v14 = vld [vmem:[#allocation15 + $0x8b8] sm:$0xff] }
 0x814   :  { %8216 = vmatpush1.bf16.msra.mxu0 %v9243_v41  ;;  %8421 = vmatpush1.bf16.msra.mxu1 %v9245_v54  ;;  %v9299_v41 = vcombine.low %v4574_v33, %v4578_v10  ;;  %v9301_v54 = vcombine.low %v4575_v61, %v4579_v23  ;;  %v4630_v33 = vld [vmem:[#allocation15 + $0x8d0] sm:$0xff]  ;;  %v4631_v61 = vld [vmem:[#allocation15 + $0x8d8] sm:$0xff] }
 0x815   :  { %8217 = vmatprep.subr.bf16.mxu0 %v9252_v36  ;;  %8422 = vmatprep.subr.bf16.mxu1 %v9254_v49  ;;  %v9308_v36 = vcombine.high %v4582_v22, %v4586_v9  ;;  %v9310_v49 = vcombine.high %v4583_v62, %v4587_v55  ;;  %v4634_v10 = vld [vmem:[#allocation15 + $0x8f0] sm:$0xff]  ;;  %v4635_v23 = vld [vmem:[#allocation15 + $0x8f8] sm:$0xff] }
 0x818   :  { %8218 = vmatpush1.bf16.msra.mxu0 %v9251_v34  ;;  %8423 = vmatpush1.bf16.msra.mxu1 %v9253_v39  ;;  %v9307_v34 = vcombine.low %v4582_v22, %v4586_v9  ;;  %v9309_v39 = vcombine.low %v4583_v62, %v4587_v55  ;;  %v4642_v22 = vld [vmem:[#allocation15 + $0x930] sm:$0xff]  ;;  %v4639_v9 = vld [vmem:[#allocation15 + $0x918] sm:$0xff]  ;;  %v9355_v55 = vcombine.low %v4630_v33, %v4634_v10 }
 0x819   :  { %8219 = vmatprep.subr.bf16.mxu0 %v9260_v56  ;;  %8424 = vmatprep.subr.bf16.mxu1 %v9262_v47  ;;  %v9316_v56 = vcombine.high %v4590_v26, %v4594_v44  ;;  %v9318_v47 = vcombine.high %v4591_v27, %v4595_v43  ;;  %v4643_v62 = vld [vmem:[#allocation15 + $0x938] sm:$0xff] }
 0x81c   :  { %8220 = vmatpush1.bf16.msra.mxu0 %v9259_v35  ;;  %8425 = vmatpush1.bf16.msra.mxu1 %v9261_v13  ;;  %v9315_v35 = vcombine.low %v4590_v26, %v4594_v44  ;;  %v9317_v13 = vcombine.low %v4591_v27, %v4595_v43  ;;  %v4647_v26 = vld [vmem:[#allocation15 + $0x958] sm:$0xff]  ;;  %v9365_v43 = vcombine.low %v4639_v9, %v4643_v62 }
 0x81d   :  { %8221 = vmatprep.subr.bf16.mxu0 %v9268_v24  ;;  %8426 = vmatprep.subr.bf16.mxu1 %v9270_v30  ;;  %v9324_v24 = vcombine.high %v4598_v20, %v4602_v46  ;;  %v9326_v30 = vcombine.high %v4599_v3, %v4603_v51  ;;  %v4651_v44 = vld [vmem:[#allocation15 + $0x978] sm:$0xff] }
 0x820   :  { %8222 = vmatpush1.bf16.msra.mxu0 %v9267_v2  ;;  %8427 = vmatpush1.bf16.msra.mxu1 %v9269_v50  ;;  %v9323_v2 = vcombine.low %v4598_v20, %v4602_v46  ;;  %v9325_v50 = vcombine.low %v4599_v3, %v4603_v51  ;;  %v4655_v20 = vld [vmem:[#allocation15 + $0x998] sm:$0xff]  ;;  %v9373_v51 = vcombine.low %v4647_v26, %v4651_v44 }
 0x821   :  { %8223 = vmatprep.subr.bf16.mxu0 %v9276_v40  ;;  %8428 = vmatprep.subr.bf16.mxu1 %v9278_v0  ;;  %v9332_v40 = vcombine.high %v4606_v7, %v4610_v18  ;;  %v9334_v0 = vcombine.high %v4607_v21, %v4611_v16  ;;  %v4659_v46 = vld [vmem:[#allocation15 + $0x9b8] sm:$0xff] }
 0x824   :  { %8224 = vmatpush1.bf16.msra.mxu0 %v9275_v52  ;;  %8429 = vmatpush1.bf16.msra.mxu1 %v9277_v29  ;;  %v9331_v52 = vcombine.low %v4606_v7, %v4610_v18  ;;  %v9333_v29 = vcombine.low %v4607_v21, %v4611_v16  ;;  %v4663_v7 = vld [vmem:[#allocation15 + $0x9d8] sm:$0xff]  ;;  %v9381_v16 = vcombine.low %v4655_v20, %v4659_v46 }
 0x825   :  { %8225 = vmatprep.subr.bf16.mxu0 %v9284_v32  ;;  %8430 = vmatprep.subr.bf16.mxu1 %v9286_v58  ;;  %v9340_v32 = vcombine.high %v4614_v31, %v4618_v1  ;;  %v9342_v58 = vcombine.high %v4615_v48, %v4619_v38  ;;  %v4667_v18 = vld [vmem:[#allocation15 + $0x9f8] sm:$0xff] }
 0x828   :  { %8226 = vmatpush1.bf16.msra.mxu0 %v9283_v42  ;;  %8431 = vmatpush1.bf16.msra.mxu1 %v9285_v28  ;;  %v9339_v42 = vcombine.low %v4614_v31, %v4618_v1  ;;  %v9341_v28 = vcombine.low %v4615_v48, %v4619_v38  ;;  %v4671_v31 = vld [vmem:[#allocation15 + $0xa18] sm:$0xff]  ;;  %v9389_v38 = vcombine.low %v4663_v7, %v4667_v18 }
 0x829   :  { %8227 = vmatprep.subr.bf16.mxu0 %v9292_v25  ;;  %8432 = vmatprep.subr.bf16.mxu1 %v9294_v6  ;;  %v9348_v25 = vcombine.high %v4622_v4, %v4626_v45  ;;  %v9350_v6 = vcombine.high %v4623_v37, %v4627_v14  ;;  %v4675_v1 = vld [vmem:[#allocation15 + $0xa38] sm:$0xff] }
 0x82c   :  { %8228 = vmatpush1.bf16.msra.mxu0 %v9291_v15  ;;  %8433 = vmatpush1.bf16.msra.mxu1 %v9293_v19  ;;  %v9347_v15 = vcombine.low %v4622_v4, %v4626_v45  ;;  %v9356_v19 = vcombine.high %v4630_v33, %v4634_v10  ;;  %v4679_v4 = vld [vmem:[#allocation15 + $0xa58] sm:$0xff] }
 0x82d   :  { %8229 = vmatprep.subr.bf16.mxu0 %v9300_v63  ;;  %8434 = vmatprep.subr.bf16.mxu1 %v9302_v5  ;;  %v9358_v63 = vcombine.high %v4631_v61, %v4635_v23  ;;  %v4638_v5 = vld [vmem:[#allocation15 + $0x910] sm:$0xff]  ;;  %v4683_v45 = vld [vmem:[#allocation15 + $0xa78] sm:$0xff] }
 0x82e   :  { %v9363_v27 = vcombine.low %v4638_v5, %v4642_v22  ;;  %v4687_v33 = vld [vmem:[#allocation15 + $0xa98] sm:$0xff] }
 0x82f   :  { %v4691_v10 = vld [vmem:[#allocation15 + $0xab8] sm:$0xff] }
 0x830   :  { %8230 = vmatpush1.bf16.msra.mxu0 %v9299_v41  ;;  %8435 = vmatpush1.bf16.msra.mxu1 %v9301_v54  ;;  %v9357_v41 = vcombine.low %v4631_v61, %v4635_v23  ;;  %v9364_v54 = vcombine.high %v4638_v5, %v4642_v22  ;;  %v9405_v23 = vcombine.low %v4679_v4, %v4683_v45  ;;  %v4695_v5 = vld [vmem:[#allocation15 + $0xad8] sm:$0xff] }
 0x831   :  { %8231 = vmatprep.subr.bf16.mxu0 %v9308_v36  ;;  %8436 = vmatprep.subr.bf16.mxu1 %v9310_v49  ;;  %v4646_v36 = vld [vmem:[#allocation15 + $0x950] sm:$0xff]  ;;  %v4699_v22 = vld [vmem:[#allocation15 + $0xaf8] sm:$0xff] }
 0x832   :  { %v4650_v49 = vld [vmem:[#allocation15 + $0x970] sm:$0xff] }
 0x833   :  { %v9371_v3 = vcombine.low %v4646_v36, %v4650_v49 }
 0x834   :  { %8232 = vmatpush1.bf16.msra.mxu0 %v9307_v34  ;;  %8437 = vmatpush1.bf16.msra.mxu1 %v9309_v39  ;;  %v9372_v34 = vcombine.high %v4646_v36, %v4650_v49  ;;  %v9374_v39 = vcombine.high %v4647_v26, %v4651_v44  ;;  %v4703_v36 = vld [vmem:[#allocation15 + $0xb18] sm:$0xff]  ;;  %v9421_v44 = vcombine.low %v4695_v5, %v4699_v22 }
 0x835   :  { %8233 = vmatprep.subr.bf16.mxu0 %v9316_v56  ;;  %8438 = vmatprep.subr.bf16.mxu1 %v9318_v47  ;;  %v4654_v56 = vld [vmem:[#allocation15 + $0x990] sm:$0xff]  ;;  %v4707_v49 = vld [vmem:[#allocation15 + $0xb38] sm:$0xff] }
 0x836   :  { %v4658_v47 = vld [vmem:[#allocation15 + $0x9b0] sm:$0xff] }
 0x837   :  { %v9379_v21 = vcombine.low %v4654_v56, %v4658_v47 }
 0x838   :  { %8234 = vmatpush1.bf16.msra.mxu0 %v9315_v35  ;;  %8439 = vmatpush1.bf16.msra.mxu1 %v9317_v13  ;;  %v9380_v35 = vcombine.high %v4654_v56, %v4658_v47  ;;  %v9382_v13 = vcombine.high %v4655_v20, %v4659_v46  ;;  %v4711_v56 = vld [vmem:[#allocation15 + $0xb58] sm:$0xff]  ;;  %v9429_v46 = vcombine.low %v4703_v36, %v4707_v49 }
 0x839   :  { %8235 = vmatprep.subr.bf16.mxu0 %v9324_v24  ;;  %8440 = vmatprep.subr.bf16.mxu1 %v9326_v30  ;;  %v4662_v24 = vld [vmem:[#allocation15 + $0x9d0] sm:$0xff]  ;;  %v4715_v47 = vld [vmem:[#allocation15 + $0xb78] sm:$0xff] }
 0x83a   :  { %v4666_v30 = vld [vmem:[#allocation15 + $0x9f0] sm:$0xff] }
 0x83b   :  { %v9387_v48 = vcombine.low %v4662_v24, %v4666_v30 }
 0x83c   :  { %8236 = vmatpush1.bf16.msra.mxu0 %v9323_v2  ;;  %8441 = vmatpush1.bf16.msra.mxu1 %v9325_v50  ;;  %v9388_v2 = vcombine.high %v4662_v24, %v4666_v30  ;;  %v9390_v50 = vcombine.high %v4663_v7, %v4667_v18  ;;  %v4719_v24 = vld [vmem:[#allocation15 + $0xb98] sm:$0xff]  ;;  %v9437_v18 = vcombine.low %v4711_v56, %v4715_v47 }
 0x83d   :  { %8246 = vmatprep.subr.bf16.mxu0 %v9332_v40  ;;  %8451 = vmatprep.subr.bf16.mxu1 %v9334_v0  ;;  %v4670_v40 = vld [vmem:[#allocation15 + $0xa10] sm:$0xff]  ;;  %v4723_v30 = vld [vmem:[#allocation15 + $0xbb8] sm:$0xff] }
 0x83e   :  { %v4674_v0 = vld [vmem:[#allocation15 + $0xa30] sm:$0xff] }
 0x83f   :  { %8238 = vmatmul.mubr.bf16.vlgmr.msra.gmra.mrb[4].mxu0 %v13296_v59  ;;  %8443 = vmatmul.mubr.bf16.vlgmr.msra.gmra.mrb[4].mxu1 %v13296_v59  ;;  %v9349_v59 = vcombine.low %v4623_v37, %v4627_v14  ;;  %v9395_v37 = vcombine.low %v4670_v40, %v4674_v0  ;;  %v9397_v14 = vcombine.low %v4671_v31, %v4675_v1 }
 0x840   :  { %8247 = vmatpush1.bf16.msra.mxu0 %v9331_v52  ;;  %8452 = vmatpush1.bf16.msra.mxu1 %v9333_v29  ;;  %v9396_v52 = vcombine.high %v4670_v40, %v4674_v0  ;;  %v9398_v29 = vcombine.high %v4671_v31, %v4675_v1  ;;  %v4727_v40 = vld [vmem:[#allocation15 + $0xbd8] sm:$0xff]  ;;  %v9445_v1 = vcombine.low %v4719_v24, %v4723_v30 }
 0x841   :  { %8248 = vmatprep.subr.bf16.mxu0 %v9340_v32  ;;  %8453 = vmatprep.subr.bf16.mxu1 %v9342_v58  ;;  %v4678_v32 = vld [vmem:[#allocation15 + $0xa50] sm:$0xff]  ;;  %v4731_v0 = vld [vmem:[#allocation15 + $0xbf8] sm:$0xff] }
 0x842   :  { %8278 = vmatprep.mubr.bf16.mxu0 %v13298_v8  ;;  %8483 = vmatprep.mubr.bf16.mxu1 %v13298_v8  ;;  %v9366_v8 = vcombine.high %v4639_v9, %v4643_v62  ;;  %v4682_v58 = vld [vmem:[#allocation15 + $0xa70] sm:$0xff]  ;;  %v9413_v62 = vcombine.low %v4687_v33, %v4691_v10 }
 0x843   :  { %v9403_v61 = vcombine.low %v4678_v32, %v4682_v58 }
 0x844   :  { %8249 = vmatpush1.bf16.msra.mxu0 %v9339_v42  ;;  %8454 = vmatpush1.bf16.msra.mxu1 %v9341_v28  ;;  %v9404_v42 = vcombine.high %v4678_v32, %v4682_v58  ;;  %v9406_v28 = vcombine.high %v4679_v4, %v4683_v45  ;;  %v4735_v32 = vld [vmem:[#allocation15 + $0xc18] sm:$0xff]  ;;  %v9453_v45 = vcombine.low %v4727_v40, %v4731_v0 }
 0x845   :  { %8250 = vmatprep.subr.bf16.mxu0 %v9348_v25  ;;  %8455 = vmatprep.subr.bf16.mxu1 %v9350_v6  ;;  %v4686_v25 = vld [vmem:[#allocation15 + $0xa90] sm:$0xff]  ;;  %v4739_v58 = vld [vmem:[#allocation15 + $0xc38] sm:$0xff] }
 0x846   :  { %v4690_v6 = vld [vmem:[#allocation15 + $0xab0] sm:$0xff] }
 0x847   :  { %v9411_v9 = vcombine.low %v4686_v25, %v4690_v6 }
 0x848   :  { %8251 = vmatpush1.bf16.msra.mxu0 %v9347_v15  ;;  %8456 = vmatpush1.bf16.msra.mxu1 %v9349_v59  ;;  %v9412_v15 = vcombine.high %v4686_v25, %v4690_v6  ;;  %v9414_v59 = vcombine.high %v4687_v33, %v4691_v10  ;;  %v4743_v25 = vld [vmem:[#allocation15 + $0xc58] sm:$0xff]  ;;  %v9461_v10 = vcombine.low %v4735_v32, %v4739_v58 }
 0x849   :  { %8252 = vmatprep.subr.bf16.mxu0 %v9356_v19  ;;  %8457 = vmatprep.subr.bf16.mxu1 %v9358_v63  ;;  %v4694_v19 = vld [vmem:[#allocation15 + $0xad0] sm:$0xff]  ;;  %v4747_v6 = vld [vmem:[#allocation15 + $0xc78] sm:$0xff] }
 0x84a   :  { %v4698_v63 = vld [vmem:[#allocation15 + $0xaf0] sm:$0xff] }
 0x84b   :  { %v9419_v26 = vcombine.low %v4694_v19, %v4698_v63 }
 0x84c   :  { %8253 = vmatpush1.bf16.msra.mxu0 %v9355_v55  ;;  %8458 = vmatpush1.bf16.msra.mxu1 %v9357_v41  ;;  %v9420_v55 = vcombine.high %v4694_v19, %v4698_v63  ;;  %v9422_v41 = vcombine.high %v4695_v5, %v4699_v22  ;;  %v4751_v19 = vld [vmem:[#allocation15 + $0xc98] sm:$0xff]  ;;  %v9469_v22 = vcombine.low %v4743_v25, %v4747_v6 }
 0x84d   :  { %8254 = vmatprep.subr.bf16.mxu0 %v9364_v54  ;;  %8459 = vmatprep.subr.bf16.mxu1 %v9366_v8  ;;  %v4702_v54 = vld [vmem:[#allocation15 + $0xb10] sm:$0xff]  ;;  %v4755_v63 = vld [vmem:[#allocation15 + $0xcb8] sm:$0xff] }
 0x84e   :  { %v4706_v8 = vld [vmem:[#allocation15 + $0xb30] sm:$0xff] }
 0x84f   :  { %v9427_v20 = vcombine.low %v4702_v54, %v4706_v8 }
 0x850   :  { %8255 = vmatpush1.bf16.msra.mxu0 %v9363_v27  ;;  %8460 = vmatpush1.bf16.msra.mxu1 %v9365_v43  ;;  %v9428_v27 = vcombine.high %v4702_v54, %v4706_v8  ;;  %v9430_v43 = vcombine.high %v4703_v36, %v4707_v49  ;;  %v4759_v54 = vld [vmem:[#allocation15 + $0xcd8] sm:$0xff] }
 0x851   :  { %8256 = vmatprep.subr.bf16.mxu0 %v9372_v34  ;;  %8461 = vmatprep.subr.bf16.mxu1 %v9374_v39  ;;  %v4710_v34 = vld [vmem:[#allocation15 + $0xb50] sm:$0xff]  ;;  %v4763_v8 = vld [vmem:[#allocation15 + $0xcf8] sm:$0xff] }
 0x852   :  { %v4714_v39 = vld [vmem:[#allocation15 + $0xb70] sm:$0xff] }
 0x853   :  { %v9435_v7 = vcombine.low %v4710_v34, %v4714_v39 }
 0x854   :  { %8257 = vmatpush1.bf16.msra.mxu0 %v9371_v3  ;;  %8462 = vmatpush1.bf16.msra.mxu1 %v9373_v51  ;;  %v9436_v3 = vcombine.high %v4710_v34, %v4714_v39  ;;  %v9438_v51 = vcombine.high %v4711_v56, %v4715_v47  ;;  %v4771_v34 = vld [vmem:[#allocation15 + $0xd38] sm:$0xff]  ;;  %v9485_v56 = vcombine.low %v4759_v54, %v4763_v8 }
 0x855   :  { %8258 = vmatprep.subr.bf16.mxu0 %v9380_v35  ;;  %8463 = vmatprep.subr.bf16.mxu1 %v9382_v13  ;;  %v4718_v35 = vld [vmem:[#allocation15 + $0xb90] sm:$0xff] }
 0x856   :  { %v4722_v13 = vld [vmem:[#allocation15 + $0xbb0] sm:$0xff] }
 0x857   :  { %v9443_v31 = vcombine.low %v4718_v35, %v4722_v13 }
 0x858   :  { %8259 = vmatpush1.bf16.msra.mxu0 %v9379_v21  ;;  %8464 = vmatpush1.bf16.msra.mxu1 %v9381_v16  ;;  %v9444_v21 = vcombine.high %v4718_v35, %v4722_v13  ;;  %v9446_v16 = vcombine.high %v4719_v24, %v4723_v30 }
 0x859   :  { %8260 = vmatprep.subr.bf16.mxu0 %v9388_v2  ;;  %8465 = vmatprep.subr.bf16.mxu1 %v9390_v50  ;;  %v4726_v2 = vld [vmem:[#allocation15 + $0xbd0] sm:$0xff] }
 0x85a   :  { %v4730_v50 = vld [vmem:[#allocation15 + $0xbf0] sm:$0xff] }
 0x85b   :  { %v9451_v4 = vcombine.low %v4726_v2, %v4730_v50 }
 0x85c   :  { %8261 = vmatpush1.bf16.msra.mxu0 %v9387_v48  ;;  %8466 = vmatpush1.bf16.msra.mxu1 %v9389_v38  ;;  %v9452_v48 = vcombine.high %v4726_v2, %v4730_v50  ;;  %v9454_v38 = vcombine.high %v4727_v40, %v4731_v0 }
 0x85d   :  { %8262 = vmatprep.subr.bf16.mxu0 %v9396_v52  ;;  %8467 = vmatprep.subr.bf16.mxu1 %v9398_v29  ;;  %v4734_v52 = vld [vmem:[#allocation15 + $0xc10] sm:$0xff] }
 0x85e   :  { %v4738_v29 = vld [vmem:[#allocation15 + $0xc30] sm:$0xff] }
 0x85f   :  { %v9459_v33 = vcombine.low %v4734_v52, %v4738_v29 }
 0x860   :  { %8263 = vmatpush1.bf16.msra.mxu0 %v9395_v37  ;;  %8468 = vmatpush1.bf16.msra.mxu1 %v9397_v14  ;;  %v9460_v37 = vcombine.high %v4734_v52, %v4738_v29  ;;  %v9462_v14 = vcombine.high %v4735_v32, %v4739_v58  ;;  %v4791_v29 = vld [vmem:[#allocation15 + $0xdd8] sm:$0xff] }
 0x861   :  { %8264 = vmatprep.subr.bf16.mxu0 %v9404_v42  ;;  %8469 = vmatprep.subr.bf16.mxu1 %v9406_v28  ;;  %v4742_v42 = vld [vmem:[#allocation15 + $0xc50] sm:$0xff]  ;;  %v4795_v32 = vld [vmem:[#allocation15 + $0xdf8] sm:$0xff] }
 0x862   :  { %v4746_v28 = vld [vmem:[#allocation15 + $0xc70] sm:$0xff] }
 0x863   :  { %v9467_v5 = vcombine.low %v4742_v42, %v4746_v28 }
 0x864   :  { %8265 = vmatpush1.bf16.msra.mxu0 %v9403_v61  ;;  %8470 = vmatpush1.bf16.msra.mxu1 %v9405_v23  ;;  %v9468_v61 = vcombine.high %v4742_v42, %v4746_v28  ;;  %v9470_v23 = vcombine.high %v4743_v25, %v4747_v6  ;;  %v9518_v6 = vcombine.high %v4791_v29, %v4795_v32 }
 0x865   :  { %8266 = vmatprep.subr.bf16.mxu0 %v9412_v15  ;;  %8471 = vmatprep.subr.bf16.mxu1 %v9414_v59  ;;  %v4750_v15 = vld [vmem:[#allocation15 + $0xc90] sm:$0xff] }
 0x866   :  { %v4754_v59 = vld [vmem:[#allocation15 + $0xcb0] sm:$0xff] }
 0x867   :  { %v9475_v36 = vcombine.low %v4750_v15, %v4754_v59 }
 0x868   :  { %8267 = vmatpush1.bf16.msra.mxu0 %v9411_v9  ;;  %8472 = vmatpush1.bf16.msra.mxu1 %v9413_v62  ;;  %v9476_v9 = vcombine.high %v4750_v15, %v4754_v59  ;;  %v9478_v62 = vcombine.high %v4751_v19, %v4755_v63  ;;  %v9517_v59 = vcombine.low %v4791_v29, %v4795_v32 }
 0x869   :  { %8268 = vmatprep.subr.bf16.mxu0 %v9420_v55  ;;  %8473 = vmatprep.subr.bf16.mxu1 %v9422_v41  ;;  %v4758_v55 = vld [vmem:[#allocation15 + $0xcd0] sm:$0xff] }
 0x86a   :  { %v4762_v41 = vld [vmem:[#allocation15 + $0xcf0] sm:$0xff] }
 0x86b   :  { %v9484_v49 = vcombine.high %v4758_v55, %v4762_v41  ;;  %v9483_v39 = vcombine.low %v4758_v55, %v4762_v41 }
 0x86c   :  { %8269 = vmatpush1.bf16.msra.mxu0 %v9419_v26  ;;  %8474 = vmatpush1.bf16.msra.mxu1 %v9421_v44  ;;  %v9486_v26 = vcombine.high %v4759_v54, %v4763_v8  ;;  %v4766_v44 = vld [vmem:[#allocation15 + $0xd10] sm:$0xff] }
 0x86d   :  { %8270 = vmatprep.subr.bf16.mxu0 %v9428_v27  ;;  %8475 = vmatprep.subr.bf16.mxu1 %v9430_v43  ;;  %v4770_v27 = vld [vmem:[#allocation15 + $0xd30] sm:$0xff]  ;;  %v4767_v43 = vld [vmem:[#allocation15 + $0xd18] sm:$0xff] }
 0x86e   :  { %v9492_v47 = vcombine.high %v4766_v44, %v4770_v27  ;;  %v9491_v35 = vcombine.low %v4766_v44, %v4770_v27  ;;  %v9493_v13 = vcombine.low %v4767_v43, %v4771_v34 }
 0x870   :  { %8271 = vmatpush1.bf16.msra.mxu0 %v9427_v20  ;;  %8476 = vmatpush1.bf16.msra.mxu1 %v9429_v46  ;;  %v4774_v20 = vld [vmem:[#allocation15 + $0xd50] sm:$0xff] }
 0x871   :  { %8272 = vmatprep.subr.bf16.mxu0 %v9436_v3  ;;  %8477 = vmatprep.subr.bf16.mxu1 %v9438_v51  ;;  %v4778_v46 = vld [vmem:[#allocation15 + $0xd70] sm:$0xff]  ;;  %v4775_v3 = vld [vmem:[#allocation15 + $0xd58] sm:$0xff] }
 0x872   :  { %v4779_v51 = vld [vmem:[#allocation15 + $0xd78] sm:$0xff]  ;;  %v9500_v24 = vcombine.high %v4774_v20, %v4778_v46  ;;  %v9499_v2 = vcombine.low %v4774_v20, %v4778_v46 }
 0x873   :  { %v9502_v30 = vcombine.high %v4775_v3, %v4779_v51  ;;  %v9501_v50 = vcombine.low %v4775_v3, %v4779_v51 }
 0x874   :  { %8273 = vmatpush1.bf16.msra.mxu0 %v9435_v7  ;;  %8478 = vmatpush1.bf16.msra.mxu1 %v9437_v18  ;;  %v4782_v7 = vld [vmem:[#allocation15 + $0xd90] sm:$0xff] }
 0x875   :  { %8274 = vmatprep.subr.bf16.mxu0 %v9444_v21  ;;  %8479 = vmatprep.subr.bf16.mxu1 %v9446_v16  ;;  %v4786_v18 = vld [vmem:[#allocation15 + $0xdb0] sm:$0xff]  ;;  %v4783_v21 = vld [vmem:[#allocation15 + $0xd98] sm:$0xff] }
 0x876   :  { %v4787_v16 = vld [vmem:[#allocation15 + $0xdb8] sm:$0xff]  ;;  %v9508_v40 = vcombine.high %v4782_v7, %v4786_v18 }
 0x877   :  { %v9509_v42 = vcombine.low %v4783_v21, %v4787_v16 }
 0x878   :  { %8275 = vmatpush1.bf16.msra.mxu0 %v9443_v31  ;;  %8480 = vmatpush1.bf16.msra.mxu1 %v9445_v1  ;;  %v9510_v31 = vcombine.high %v4783_v21, %v4787_v16  ;;  %v4790_v1 = vld [vmem:[#allocation15 + $0xdd0] sm:$0xff] }
 0x879   :  { %8276 = vmatprep.subr.bf16.mxu0 %v9452_v48  ;;  %8481 = vmatprep.subr.bf16.mxu1 %v9454_v38  ;;  %v4794_v48 = vld [vmem:[#allocation15 + $0xdf0] sm:$0xff] }
 0x87a   :  { %v9516_v28 = vcombine.high %v4790_v1, %v4794_v48  ;;  %v9515_v15 = vcombine.low %v4790_v1, %v4794_v48 }
 0x87c   :  { %8277 = vmatpush1.bf16.msra.mxu0 %v9451_v4  ;;  %8482 = vmatpush1.bf16.msra.mxu1 %v9453_v45  ;;  %v9507_v45 = vcombine.low %v4782_v7, %v4786_v18 }
 0x87d   :  { %8287 = vmatprep.subr.bf16.mxu0 %v9460_v37  ;;  %8492 = vmatprep.subr.bf16.mxu1 %v9462_v14 }
 0x87f   :  { %8279 = vmatmul.mubr.bf16.vlgmr.msra.gmra.mrb[4].mxu0 %v13313_v12  ;;  %8484 = vmatmul.mubr.bf16.vlgmr.msra.gmra.mrb[4].mxu1 %v13313_v12  ;;  %v9477_v12 = vcombine.low %v4751_v19, %v4755_v63 }
 0x880   :  { %8288 = vmatpush1.bf16.msra.mxu0 %v9459_v33  ;;  %8493 = vmatpush1.bf16.msra.mxu1 %v9461_v10  ;;  %v4798_v33 = vld [vmem:[#allocation15 + $0xe10] sm:$0xff] }
 0x881   :  { %8289 = vmatprep.subr.bf16.mxu0 %v9468_v61  ;;  %8494 = vmatprep.subr.bf16.mxu1 %v9470_v23  ;;  %v4802_v10 = vld [vmem:[#allocation15 + $0xe30] sm:$0xff]  ;;  %v4799_v61 = vld [vmem:[#allocation15 + $0xe18] sm:$0xff] }
 0x882   :  { %8319 = vmatprep.mubr.bf16.mxu0 %v13315_v17  ;;  %8524 = vmatprep.mubr.bf16.mxu1 %v13315_v17  ;;  %v9494_v17 = vcombine.high %v4767_v43, %v4771_v34  ;;  %v4803_v23 = vld [vmem:[#allocation15 + $0xe38] sm:$0xff]  ;;  %v9524_v19 = vcombine.high %v4798_v33, %v4802_v10  ;;  %v9523_v55 = vcombine.low %v4798_v33, %v4802_v10  ;;  %v4854_v33 = vld [vmem:[#allocation15 + $0xfd0] sm:$0xff] }
 0x883   :  { %v9526_v63 = vcombine.high %v4799_v61, %v4803_v23  ;;  %v9525_v41 = vcombine.low %v4799_v61, %v4803_v23  ;;  %v4858_v10 = vld [vmem:[#allocation15 + $0xff0] sm:$0xff]  ;;  %v4855_v61 = vld [vmem:[#allocation15 + $0xfd8] sm:$0xff] }
 0x884   :  { %8290 = vmatpush1.bf16.msra.mxu0 %v9467_v5  ;;  %8495 = vmatpush1.bf16.msra.mxu1 %v9469_v22  ;;  %v4806_v5 = vld [vmem:[#allocation15 + $0xe50] sm:$0xff]  ;;  %v4859_v23 = vld [vmem:[#allocation15 + $0xff8] sm:$0xff] }
 0x885   :  { %8291 = vmatprep.subr.bf16.mxu0 %v9476_v9  ;;  %8496 = vmatprep.subr.bf16.mxu1 %v9478_v62  ;;  %v4810_v22 = vld [vmem:[#allocation15 + $0xe70] sm:$0xff]  ;;  %v4807_v9 = vld [vmem:[#allocation15 + $0xe58] sm:$0xff] }
 0x886   :  { %v4811_v62 = vld [vmem:[#allocation15 + $0xe78] sm:$0xff]  ;;  %v9532_v54 = vcombine.high %v4806_v5, %v4810_v22  ;;  %v9531_v44 = vcombine.low %v4806_v5, %v4810_v22  ;;  %v4862_v5 = vld [vmem:[#allocation15 + $0x1010] sm:$0xff] }
 0x887   :  { %v9534_v8 = vcombine.high %v4807_v9, %v4811_v62  ;;  %v9533_v27 = vcombine.low %v4807_v9, %v4811_v62  ;;  %v4866_v22 = vld [vmem:[#allocation15 + $0x1030] sm:$0xff]  ;;  %v4863_v9 = vld [vmem:[#allocation15 + $0x1018] sm:$0xff] }
 0x888   :  { %8292 = vmatpush1.bf16.msra.mxu0 %v9475_v36  ;;  %8497 = vmatpush1.bf16.msra.mxu1 %v9477_v12  ;;  %v4814_v36 = vld [vmem:[#allocation15 + $0xe90] sm:$0xff]  ;;  %v4867_v62 = vld [vmem:[#allocation15 + $0x1038] sm:$0xff] }
 0x889   :  { %8293 = vmatprep.subr.bf16.mxu0 %v9484_v49  ;;  %8498 = vmatprep.subr.bf16.mxu1 %v9486_v26  ;;  %v4818_v12 = vld [vmem:[#allocation15 + $0xeb0] sm:$0xff]  ;;  %v4815_v49 = vld [vmem:[#allocation15 + $0xe98] sm:$0xff] }
 0x88a   :  { %v4819_v26 = vld [vmem:[#allocation15 + $0xeb8] sm:$0xff]  ;;  %v9540_v43 = vcombine.high %v4814_v36, %v4818_v12  ;;  %v9539_v20 = vcombine.low %v4814_v36, %v4818_v12  ;;  %v4870_v36 = vld [vmem:[#allocation15 + $0x1050] sm:$0xff] }
 0x88b   :  { %v9542_v34 = vcombine.high %v4815_v49, %v4819_v26  ;;  %v9541_v46 = vcombine.low %v4815_v49, %v4819_v26  ;;  %v4874_v12 = vld [vmem:[#allocation15 + $0x1070] sm:$0xff]  ;;  %v4871_v49 = vld [vmem:[#allocation15 + $0x1058] sm:$0xff] }
 0x88c   :  { %8294 = vmatpush1.bf16.msra.mxu0 %v9483_v39  ;;  %8499 = vmatpush1.bf16.msra.mxu1 %v9485_v56  ;;  %v4822_v39 = vld [vmem:[#allocation15 + $0xed0] sm:$0xff]  ;;  %v4875_v26 = vld [vmem:[#allocation15 + $0x1078] sm:$0xff] }
 0x88d   :  { %8295 = vmatprep.subr.bf16.mxu0 %v9492_v47  ;;  %8500 = vmatprep.subr.bf16.mxu1 %v9494_v17  ;;  %v4826_v56 = vld [vmem:[#allocation15 + $0xef0] sm:$0xff]  ;;  %v4823_v47 = vld [vmem:[#allocation15 + $0xed8] sm:$0xff] }
 0x88e   :  { %v4827_v17 = vld [vmem:[#allocation15 + $0xef8] sm:$0xff]  ;;  %v9548_v3 = vcombine.high %v4822_v39, %v4826_v56  ;;  %v9547_v7 = vcombine.low %v4822_v39, %v4826_v56  ;;  %v4878_v39 = vld [vmem:[#allocation15 + $0x1090] sm:$0xff] }
 0x88f   :  { %v9550_v51 = vcombine.high %v4823_v47, %v4827_v17  ;;  %v9549_v18 = vcombine.low %v4823_v47, %v4827_v17  ;;  %v4882_v56 = vld [vmem:[#allocation15 + $0x10b0] sm:$0xff]  ;;  %v4879_v47 = vld [vmem:[#allocation15 + $0x1098] sm:$0xff] }
 0x890   :  { %8296 = vmatpush1.bf16.msra.mxu0 %v9491_v35  ;;  %8501 = vmatpush1.bf16.msra.mxu1 %v9493_v13  ;;  %v4830_v35 = vld [vmem:[#allocation15 + $0xf10] sm:$0xff]  ;;  %v4883_v17 = vld [vmem:[#allocation15 + $0x10b8] sm:$0xff] }
 0x891   :  { %8297 = vmatprep.subr.bf16.mxu0 %v9500_v24  ;;  %8502 = vmatprep.subr.bf16.mxu1 %v9502_v30  ;;  %v4834_v13 = vld [vmem:[#allocation15 + $0xf30] sm:$0xff]  ;;  %v4831_v24 = vld [vmem:[#allocation15 + $0xf18] sm:$0xff] }
 0x892   :  { %v13349_v0 = vpop.f32.mrb[0].mxu0  ;;  %v13351_v38 = vpop.f32.mrb[0].mxu1  ;;  %v4835_v30 = vld [vmem:[#allocation15 + $0xf38] sm:$0xff]  ;;  %v9556_v21 = vcombine.high %v4830_v35, %v4834_v13  ;;  %v9555_v1 = vcombine.low %v4830_v35, %v4834_v13  ;;  %v4886_v35 = vld [vmem:[#allocation15 + $0x10d0] sm:$0xff] }
 0x893   :  { %v13353_v52 = vpop.f32.mrb[1].mxu0  ;;  %v13355_v58 = vpop.f32.mrb[1].mxu1  ;;  %v9558_v16 = vcombine.high %v4831_v24, %v4835_v30  ;;  %v9557_v48 = vcombine.low %v4831_v24, %v4835_v30  ;;  %v4890_v13 = vld [vmem:[#allocation15 + $0x10f0] sm:$0xff]  ;;  %v4887_v24 = vld [vmem:[#allocation15 + $0x10d8] sm:$0xff] }
 0x894   :  { %v7956_v4 = vpop.f32.mrb[2].mxu0  ;;  %8298 = vmatpush1.bf16.msra.mxu0 %v9499_v2  ;;  %v8161_v37 = vpop.f32.mrb[2].mxu1  ;;  %8503 = vmatpush1.bf16.msra.mxu1 %v9501_v50  ;;  %v4838_v2 = vld [vmem:[#allocation15 + $0xf50] sm:$0xff]  ;;  %v4891_v30 = vld [vmem:[#allocation15 + $0x10f8] sm:$0xff] }
 0x895   :  { %v7957_v14 = vpop.f32.mrb[3].mxu0  ;;  %8299 = vmatprep.subr.bf16.mxu0 %v9508_v40  ;;  %v8162_v25 = vpop.f32.mrb[3].mxu1  ;;  %8504 = vmatprep.subr.bf16.mxu1 %v9510_v31  ;;  %v4842_v50 = vld [vmem:[#allocation15 + $0xf70] sm:$0xff]  ;;  %v4839_v40 = vld [vmem:[#allocation15 + $0xf58] sm:$0xff] }
 0x896   :  { %v4843_v31 = vld [vmem:[#allocation15 + $0xf78] sm:$0xff]  ;;  %v9564_v29 = vcombine.high %v4838_v2, %v4842_v50  ;;  %v4846_v4 = vld [vmem:[#allocation15 + $0xf90] sm:$0xff] }
 0x897   :  { %v9566_v32 = vcombine.high %v4839_v40, %v4843_v31  ;;  %v4847_v37 = vld [vmem:[#allocation15 + $0xf98] sm:$0xff] }
 0x898   :  { %8300 = vmatpush1.bf16.msra.mxu0 %v9507_v45  ;;  %8505 = vmatpush1.bf16.msra.mxu1 %v9509_v42  ;;  %v4850_v45 = vld [vmem:[#allocation15 + $0xfb0] sm:$0xff]  ;;  %v4851_v14 = vld [vmem:[#allocation15 + $0xfb8] sm:$0xff]  ;;  %v9563_v42 = vcombine.low %v4838_v2, %v4842_v50 }
 0x899   :  { %8301 = vmatprep.subr.bf16.mxu0 %v9516_v28  ;;  %8506 = vmatprep.subr.bf16.mxu1 %v9518_v6  ;;  %v9565_v28 = vcombine.low %v4839_v40, %v4843_v31  ;;  %v9572_v25 = vcombine.high %v4846_v4, %v4850_v45  ;;  %v9574_v6 = vcombine.high %v4847_v37, %v4851_v14  ;;  %v4898_v2 = vld [vmem:[#allocation15 + $0x1130] sm:$0xff]  ;;  %v4895_v50 = vld [vmem:[#allocation15 + $0x1118] sm:$0xff] }
 0x89a   :  { %v4899_v40 = vld [vmem:[#allocation15 + $0x1138] sm:$0xff]  ;;  %v9611_v31 = vcombine.low %v4886_v35, %v4890_v13 }
 0x89c   :  { %8302 = vmatpush1.bf16.msra.mxu0 %v9515_v15  ;;  %8507 = vmatpush1.bf16.msra.mxu1 %v9517_v59  ;;  %v9571_v15 = vcombine.low %v4846_v4, %v4850_v45  ;;  %v9573_v59 = vcombine.low %v4847_v37, %v4851_v14  ;;  %v4903_v4 = vld [vmem:[#allocation15 + $0x1158] sm:$0xff]  ;;  %v9621_v14 = vcombine.low %v4895_v50, %v4899_v40 }
 0x89d   :  { %8303 = vmatprep.subr.bf16.mxu0 %v9524_v19  ;;  %8508 = vmatprep.subr.bf16.mxu1 %v9526_v63  ;;  %v9580_v19 = vcombine.high %v4854_v33, %v4858_v10  ;;  %v9582_v63 = vcombine.high %v4855_v61, %v4859_v23  ;;  %v4907_v45 = vld [vmem:[#allocation15 + $0x1178] sm:$0xff] }
 0x8a0   :  { %8304 = vmatpush1.bf16.msra.mxu0 %v9523_v55  ;;  %8509 = vmatpush1.bf16.msra.mxu1 %v9525_v41  ;;  %v9579_v55 = vcombine.low %v4854_v33, %v4858_v10  ;;  %v9581_v41 = vcombine.low %v4855_v61, %v4859_v23  ;;  %v4908_v33 = vld [vmem:[#allocation16] sm:$0xff]  ;;  %v14026_v23 = vld [vmem:[#allocation27_spill] sm:$0xff] }
 0x8a1   :  { %8305 = vmatprep.subr.bf16.mxu0 %v9532_v54  ;;  %8510 = vmatprep.subr.bf16.mxu1 %v9534_v8  ;;  %v9588_v54 = vcombine.high %v4862_v5, %v4866_v22  ;;  %v9590_v8 = vcombine.high %v4863_v9, %v4867_v62  ;;  %v14025_v10 = vld [vmem:[#allocation26_spill] sm:$0xff] }
 0x8a2   :  { %v4913_v61 = vrot.slane %v4908_v33, %v14025_v10 }
 0x8a4   :  { %8306 = vmatpush1.bf16.msra.mxu0 %v9531_v44  ;;  %8511 = vmatpush1.bf16.msra.mxu1 %v9533_v27  ;;  %v9587_v44 = vcombine.low %v4862_v5, %v4866_v22  ;;  %v9589_v27 = vcombine.low %v4863_v9, %v4867_v62  ;;  %v14029_v22 = vld [vmem:[#allocation30_spill] sm:$0xff]  ;;  %v14030_v62 = vld [vmem:[#allocation32_spill] sm:$0xff] }
 0x8a5   :  { %8307 = vmatprep.subr.bf16.mxu0 %v9540_v43  ;;  %8512 = vmatprep.subr.bf16.mxu1 %v9542_v34  ;;  %v9596_v43 = vcombine.high %v4870_v36, %v4874_v12  ;;  %v9598_v34 = vcombine.high %v4871_v49, %v4875_v26  ;;  %v4929_v9 = vrot.slane %v4908_v33, %v14029_v22 }
 0x8a8   :  { %8308 = vmatpush1.bf16.msra.mxu0 %v9539_v20  ;;  %8513 = vmatpush1.bf16.msra.mxu1 %v9541_v46  ;;  %v9595_v20 = vcombine.low %v4870_v36, %v4874_v12  ;;  %v9597_v46 = vcombine.low %v4871_v49, %v4875_v26  ;;  %v14032_v36 = vld [vmem:[#allocation33_spill] sm:$0xff] }
 0x8a9   :  { %8309 = vmatprep.subr.bf16.mxu0 %v9548_v3  ;;  %8514 = vmatprep.subr.bf16.mxu1 %v9550_v51  ;;  %v9604_v3 = vcombine.high %v4878_v39, %v4882_v56  ;;  %v9606_v51 = vcombine.high %v4879_v47, %v4883_v17  ;;  %v4941_v12 = vrot.slane %v4908_v33, %v14032_v36 }
 0x8ac   :  { %8310 = vmatpush1.bf16.msra.mxu0 %v9547_v7  ;;  %8515 = vmatpush1.bf16.msra.mxu1 %v9549_v18  ;;  %v9603_v7 = vcombine.low %v4878_v39, %v4882_v56  ;;  %v9612_v18 = vcombine.high %v4886_v35, %v4890_v13 }
 0x8ad   :  { %8311 = vmatprep.subr.bf16.mxu0 %v9556_v21  ;;  %8516 = vmatprep.subr.bf16.mxu1 %v9558_v16  ;;  %v9614_v21 = vcombine.high %v4887_v24, %v4891_v30  ;;  %v4894_v16 = vld [vmem:[#allocation15 + $0x1110] sm:$0xff] }
 0x8ae   :  { %v9619_v37 = vcombine.low %v4894_v16, %v4898_v2 }
 0x8b0   :  { %8312 = vmatpush1.bf16.msra.mxu0 %v9555_v1  ;;  %8517 = vmatpush1.bf16.msra.mxu1 %v9557_v48  ;;  %v9613_v1 = vcombine.low %v4887_v24, %v4891_v30  ;;  %v9620_v48 = vcombine.high %v4894_v16, %v4898_v2 }
 0x8b1   :  { %8313 = vmatprep.subr.bf16.mxu0 %v9564_v29  ;;  %8518 = vmatprep.subr.bf16.mxu1 %v9566_v32  ;;  %v4902_v29 = vld [vmem:[#allocation15 + $0x1150] sm:$0xff] }
 0x8b2   :  { %v4906_v32 = vld [vmem:[#allocation15 + $0x1170] sm:$0xff] }
 0x8b4   :  { %8314 = vmatpush1.bf16.msra.mxu0 %v9563_v42  ;;  %8519 = vmatpush1.bf16.msra.mxu1 %v9565_v28  ;;  %v9628_v42 = vcombine.high %v4902_v29, %v4906_v32  ;;  %v9630_v28 = vcombine.high %v4903_v4, %v4907_v45 }
 0x8b5   :  { %8315 = vmatprep.subr.bf16.mxu0 %v9572_v25  ;;  %8520 = vmatprep.subr.bf16.mxu1 %v9574_v6  ;;  %v9627_v25 = vcombine.low %v4902_v29, %v4906_v32  ;;  %v9629_v6 = vcombine.low %v4903_v4, %v4907_v45 }
 0x8b8   :  { %8316 = vmatpush1.bf16.msra.mxu0 %v9571_v15  ;;  %8521 = vmatpush1.bf16.msra.mxu1 %v9573_v59  ;;  %v4917_v15 = vrot.slane %v4908_v33, %v14026_v23  ;;  %v14027_v59 = vld [vmem:[#allocation28_spill] sm:$0xff] }
 0x8b9   :  { %8317 = vmatprep.subr.bf16.mxu0 %v9580_v19  ;;  %8522 = vmatprep.subr.bf16.mxu1 %v9582_v63  ;;  %v4921_v19 = vrot.slane %v4908_v33, %v14027_v59  ;;  %v14028_v63 = vld [vmem:[#allocation29_spill] sm:$0xff] }
 0x8ba   :  { %v4925_v5 = vrot.slane %v4908_v33, %v14028_v63 }
 0x8bb   :  { %v13380_v49 = vadd.f32 %v13351_v38, %v4921_v19 }
 0x8bc   :  { %8318 = vmatpush1.bf16.msra.mxu0 %v9579_v55  ;;  %8523 = vmatpush1.bf16.msra.mxu1 %v9581_v41  ;;  %v4937_v55 = vrot.slane %v4908_v33, %v14030_v62  ;;  %v14031_v41 = vld [vmem:[#allocation31_spill] sm:$0xff] }
 0x8bd   :  { %8328 = vmatprep.subr.bf16.mxu0 %v9588_v54  ;;  %8533 = vmatprep.subr.bf16.mxu1 %v9590_v8  ;;  %v4933_v54 = vrot.slane %v4908_v33, %v14031_v41  ;;  %v13373_v8 = vadd.f32 %v13349_v0, %v4913_v61 }
 0x8bf   :  { %8320 = vmatmul.mubr.bf16.vlgmr.msra.gmra.mrb[4].mxu0 %v13323_v53  ;;  %8525 = vmatmul.mubr.bf16.vlgmr.msra.gmra.mrb[4].mxu1 %v13323_v53  ;;  %v9605_v53 = vcombine.low %v4879_v47, %v4883_v17  ;;  %v8575_v38 = vsel %vm2786_vm9, %v13373_v8, -inf }
 0x8c0   :  { %8329 = vmatpush1.bf16.msra.mxu0 %v9587_v44  ;;  %8534 = vmatpush1.bf16.msra.mxu1 %v9589_v27  ;;  %v13383_v44 = vadd.f32 %v13355_v58, %v4925_v5 }
 0x8c1   :  { %8330 = vmatprep.subr.bf16.mxu0 %v9596_v43  ;;  %8535 = vmatprep.subr.bf16.mxu1 %v9598_v34 }
 0x8c2   :  { %8360 = vmatprep.mubr.bf16.mxu0 %v10401_v60  ;;  %8565 = vmatprep.mubr.bf16.mxu1 %v10401_v60  ;;  %v9622_v60 = vcombine.high %v4895_v50, %v4899_v40  ;;  %v8578_v30 = vsel %vm2786_vm9, %v13383_v44, -inf }
 0x8c4   :  { %8331 = vmatpush1.bf16.msra.mxu0 %v9595_v20  ;;  %8536 = vmatpush1.bf16.msra.mxu1 %v9597_v46 }
 0x8c5   :  { %8332 = vmatprep.subr.bf16.mxu0 %v9604_v3  ;;  %8537 = vmatprep.subr.bf16.mxu1 %v9606_v51  ;;  %v8577_v51 = vsel %vm2786_vm9, %v13380_v49, -inf }
 0x8c8   :  { %8333 = vmatpush1.bf16.msra.mxu0 %v9603_v7  ;;  %8538 = vmatpush1.bf16.msra.mxu1 %v9605_v53 }
 0x8c9   :  { %8334 = vmatprep.subr.bf16.mxu0 %v9612_v18  ;;  %8539 = vmatprep.subr.bf16.mxu1 %v9614_v21 }
 0x8cc   :  { %8335 = vmatpush1.bf16.msra.mxu0 %v9611_v31  ;;  %8540 = vmatpush1.bf16.msra.mxu1 %v9613_v1 }
 0x8cd   :  { %8336 = vmatprep.subr.bf16.mxu0 %v9620_v48  ;;  %8541 = vmatprep.subr.bf16.mxu1 %v9622_v60 }
 0x8d0   :  { %8337 = vmatpush1.bf16.msra.mxu0 %v9619_v37  ;;  %8542 = vmatpush1.bf16.msra.mxu1 %v9621_v14 }
 0x8d1   :  { %8338 = vmatprep.subr.bf16.mxu0 %v9628_v42  ;;  %8543 = vmatprep.subr.bf16.mxu1 %v9630_v28 }
 0x8d4   :  { %8339 = vmatpush1.bf16.msra.mxu0 %v9627_v25  ;;  %8544 = vmatpush1.bf16.msra.mxu1 %v9629_v6 }
 0x8d7   :  { %9633 = vmatmul.mubr.msk.bf16.vlgmr.msra.gmra.mrb[4].mxu0 %vm4222_vm13, %v13329_v57  ;;  %9634 = vmatmul.mubr.msk.bf16.vlgmr.msra.gmra.mrb[4].mxu1 %vm4222_vm13, %v13329_v57  ;;  %v13376_v57 = vadd.f32 %v13353_v52, %v4917_v15 }
 0x8d9   :  { %v8576_v58 = vsel %vm2786_vm9, %v13376_v57, -inf }
 0x9aa   :  { %v8362_v26 = vpop.f32.mrb[4].mxu0  ;;  %v8567_v43 = vpop.f32.mrb[4].mxu1 }
 0x9ab   :  { %v13385_v27 = vadd.f32 %v8362_v26, %v4929_v9  ;;  %v8364_v34 = vpop.f32.mrb[5].mxu0  ;;  %v13387_v39 = vadd.f32 %v8567_v43, %v4937_v55  ;;  %v8569_v56 = vpop.f32.mrb[5].mxu1 }
 0x9ac   :  { %v13389_v0 = vadd.f32 %v8364_v34, %v4933_v54  ;;  %v8366_v52 = vpop.f32.mrb[6].mxu0  ;;  %v13391_v47 = vadd.f32 %v8569_v56, %v4941_v12  ;;  %v8571_v17 = vpop.f32.mrb[6].mxu1 }
 0x9ad   :  { %v8367_v20 = vpop.f32.mrb[7].mxu0  ;;  %v8579_v46 = vsel %vm2786_vm9, %v13385_v27, -inf  ;;  %v8572_v3 = vpop.f32.mrb[7].mxu1  ;;  %v8583_v24 = vsel %vm2786_vm9, %v13387_v39, -inf }
 0x9ae   :  { %v8580_v35 = vmax.f32 %v8575_v38, %v8579_v46  ;;  %v8581_v13 = vsel %vm2786_vm9, %v13389_v0, -inf  ;;  %v8584_v53 = vmax.f32 %v8577_v51, %v8583_v24  ;;  %v8585_v18 = vsel %vm2786_vm9, %v13391_v47, -inf }
 0x9af   :  { %v8582_v7 = vmax.f32 %v8576_v58, %v8581_v13  ;;  %v8586_v21 = vmax.f32 %v8578_v30, %v8585_v18 }
 0x9b1   :  { %v8587_v16 = vmax.f32 %v8580_v35, %v8582_v7  ;;  %v8588_v2 = vmax.f32 %v8584_v53, %v8586_v21 }
 0x9b3   :  { %v8589_v50 = vmax.f32 %v8587_v16, %v8588_v2 }
 0x9b5   :  { %8590 = vmax.xlane.f32.xlu0 %v8589_v50 }
 0xa42   :  { %v8591_v40 = vpop.xlane.xlu0 %8590 }
 0xa43   :  { %v8592_v31 = vsub.f32 %v13373_v8, %v8591_v40  ;;  %v8593_v1 = vsub.f32 %v13376_v57, %v8591_v40  ;;  %v8594_v48 = vsub.f32 %v13380_v49, %v8591_v40  ;;  %v8595_v60 = vsub.f32 %v13383_v44, %v8591_v40 }
 0xa44   :  { %v8596_v29 = vsub.f32 %v13385_v27, %v8591_v40  ;;  %v8597_v37 = vsub.f32 %v13389_v0, %v8591_v40  ;;  %v8598_v42 = vsub.f32 %v13387_v39, %v8591_v40  ;;  %v8599_v25 = vsub.f32 %v13391_v47, %v8591_v40 }
 0xa45   :  { %v8600_v32 = vmul.f32 1.442695, %v8592_v31  ;;  %v8602_v4 = vmul.f32 1.442695, %v8593_v1  ;;  %v8604_v45 = vmul.f32 1.442695, %v8594_v48 }
 0xa46   :  { %v8606_v14 = vmul.f32 1.442695, %v8595_v60  ;;  %v8608_v28 = vmul.f32 1.442695, %v8596_v29  ;;  %v8610_v6 = vmul.f32 1.442695, %v8597_v37 }
 0xa47   :  { %10144 = vpow2.f32 %v8600_v32  ;;  %v8612_v33 = vmul.f32 1.442695, %v8598_v42  ;;  %v8614_v10 = vmul.f32 1.442695, %v8599_v25 }
 0xa48   :  { %10146 = vpow2.f32 %v8602_v4 }
 0xa49   :  { %10148 = vpow2.f32 %v8604_v45 }
 0xa4a   :  { %10150 = vpow2.f32 %v8606_v14 }
 0xa4b   :  { %10152 = vpow2.f32 %v8608_v28 }
 0xa4c   :  { %10154 = vpow2.f32 %v8610_v6 }
 0xa4d   :  { %10156 = vpow2.f32 %v8612_v33 }
 0xa4e   :  { %10158 = vpow2.f32 %v8614_v10 }
 0xa51   :  { %v10145_v61 = vpop.eup %10144 }
 0xa52   :  { %v10147_v23 = vpop.eup %10146  ;;  %v8616_v15 = vsel %vm2786_vm9, %v10145_v61, 0.0 }
 0xa53   :  { %v10149_v59 = vpop.eup %10148  ;;  %v8617_v19 = vsel %vm2786_vm9, %v10147_v23, 0.0 }
 0xa54   :  { %v10151_v63 = vpop.eup %10150  ;;  %v8618_v5 = vadd.f32 %v8617_v19, %v8616_v15  ;;  %v8619_v22 = vsel %vm2786_vm9, %v10149_v59, 0.0 }
 0xa55   :  { %v10153_v9 = vpop.eup %10152  ;;  %v8621_v55 = vsel %vm2786_vm9, %v10151_v63, 0.0 }
 0xa56   :  { %v8620_v62 = vadd.f32 %v8619_v22, %v8618_v5  ;;  %v10155_v41 = vpop.eup %10154  ;;  %v8623_v36 = vsel %vm2786_vm9, %v10153_v9, 0.0 }
 0xa57   :  { %v10157_v12 = vpop.eup %10156  ;;  %v8625_v43 = vsel %vm2786_vm9, %v10155_v41, 0.0 }
 0xa58   :  { %v8622_v54 = vadd.f32 %v8621_v55, %v8620_v62  ;;  %v10159_v34 = vpop.eup %10158  ;;  %v8627_v52 = vsel %vm2786_vm9, %v10157_v12, 0.0 }
 0xa59   :  { %v8629_v20 = vsel %vm2786_vm9, %v10159_v34, 0.0 }
 0xa5a   :  { %v8624_v26 = vadd.f32 %v8623_v36, %v8622_v54 }
 0xa5c   :  { %v8626_v56 = vadd.f32 %v8625_v43, %v8624_v26 }
 0xa5e   :  { %v8628_v17 = vadd.f32 %v8627_v52, %v8626_v56 }
 0xa60   :  { %v8630_v38 = vadd.f32 %v8629_v20, %v8628_v17 }
 0xa62   :  { %8631 = vadd.xlane.f32.xlu0 %v8630_v38 }
 0xaef   :  { %v8632_v58 = vpop.xlane.xlu0 %8631 }
 0xaf0   :  { %10160 = vlog2.f32 %v8632_v58 }
 0xafa   :  { %v10161_v46 = vpop.eup %10160 }
 0xafb   :  { %v8634_v3 = vmul.f32 0.6931472, %v10161_v46 }
 0xafd   :  { %v8635_v51 = vadd.f32 %v8634_v3, %v8591_v40 }
 0xaff   :  { %v8636_v35 = vsub.f32 %v13373_v8, %v8635_v51  ;;  %v8637_v13 = vsub.f32 %v13376_v57, %v8635_v51  ;;  %v8638_v24 = vsub.f32 %v13380_v49, %v8635_v51  ;;  %v8639_v30 = vsub.f32 %v13383_v44, %v8635_v51 }
 0xb00   :  { %v8640_v7 = vsub.f32 %v13385_v27, %v8635_v51  ;;  %v8641_v53 = vsub.f32 %v13389_v0, %v8635_v51  ;;  %v8642_v18 = vsub.f32 %v13387_v39, %v8635_v51  ;;  %v8643_v21 = vsub.f32 %v13391_v47, %v8635_v51 }
 0xb01   :  { %v8652_v16 = vcombine.low %v8636_v35, %v8637_v13  ;;  %v8653_v2 = vcombine.low %v8638_v24, %v8639_v30 }
 0xb02   :  { %v8669_v50 = vcombine.low %v8640_v7, %v8641_v53  ;;  %v8670_v40 = vcombine.low %v8642_v18, %v8643_v21 }
 0xb03   :  { %v8660_v8 = vrot.slane %v8652_v16, %v13255_v11  ;;  %v8667_v57 = vrot.slane %v8653_v2, %v13255_v11 }
 0xb04   :  { %v8677_v49 = vrot.slane %v8669_v50, %v13255_v11  ;;  %v8684_v44 = vrot.slane %v8670_v40, %v13255_v11 }
 0xb05   :  { %v8668_v27 = vcombine.low %v8660_v8, %v8667_v57 }
 0xb06   :  { %v8685_v0 = vcombine.low %v8677_v49, %v8684_v44 }
 0xb07   :  { %8688 = vst [vmem:[#allocation18] sm:$0xff] %v8668_v27 }
 0xb08   :  { %8689 = vst [vmem:[#allocation18 + $0x8] sm:$0xff] %v8685_v0 }
 0xb09   :  { %10349 = shalt.err (!%p10346_p13)
}
 0xb0a   :  { %s10350_s29 = scalar_lea.hbm %s13459_s10, 256 }
 0xb0b   :  { %p10351_p0 = scmp.ne.s32.totalorder %s13459_s10, %s10350_s29  ;;  %p10354_p1 = scmp.lt.u32.totalorder %s10350_s29, %s13459_s10 }
 0xb0d   :  { %p10356_p2 = pnand %p10354_p1, %p10351_p0 }
 0xb0f   :  { %10359 = shalt.err (!%p10356_p2)
}
 0xb10   :  { %8699 = dma.vmem_to_hbm [thread:$0]  %s8697_s1, 256, %s13459_s10, [#allocation6]  }
 0xb11   :  { %10374 = dma.done.wait [#allocation6], 256  }
 0xb12   :  { %10375 = vsyncadd [#allocation6], 4294967040 }
 0xb13   :  { %8703 = vsyncpa [#allocation5], 1 }
 0xb14   :  { %8704 = vsyncpa [#allocation8], 1 }
 0xb15   :  { %8705 = vsyncpa [#allocation11], 1 }
 0xb16   :  { %8706 = vsyncpa [#allocation14], 1 }
 0xb17   :  { %8707 = vsyncpa [#allocation17], 1 }
 0xb18   :  { %8708 = vsyncpa [#allocation6], 1 }

</bundles_post_ra>
